<compile_context>
chip_gen: v7x
topology: tpu7x:2x2x1
jax: 0.10.0
libtpu: 0.0.40
codegen_flags: <defaults>
</compile_context>

<pallas_src>
import jax
import jax.numpy as jnp
from jax.experimental import pallas as pl
from jax.experimental.pallas import tpu as pltpu


def _silu(v):
    # sigmoid via EUP exp + approximate EUP reciprocal -> no VPU divide.
    return v * pl.reciprocal(1.0 + jnp.exp(-v), approx=True)


def _make_kernel(H, W, Cin, Ch, K, tile_h, halo):
    """Builds the per-(image, row-tile) kernel with static config baked in."""
    TH = tile_h + 2 * halo               # rows held per grid step (tile + halo)
    lane_aligned = (Ch % 128 == 0)       # direct interior store / per-tap dots

    def kernel(x_ref, w12_ref, b12_ref, w3_ref, b3_ref, o_ref, pad_ref):
        # x_ref   : (TH*W, Cin)      bf16  input rows (tile + halo), chan last
        # w12_ref : (Cin, 2*Ch)      bf16  conv1|conv2 folded 1x1+BN weights
        # b12_ref : (1, 2*Ch)        f32   conv1|conv2 folded biases
        # w3_ref  : (K, 9*Ch, Ch)    bf16  RepVgg-fused 3x3 weights
        # b3_ref  : (K, Ch)          f32   RepVgg-fused biases
        # o_ref   : (tile_h, W*Ch)   f32/bf16  lane-dense output rows
        # pad_ref : (TH+2, W+2, Ch)  bf16  zero-bordered spatial scratch

        # --- conv1 | conv2 : one fused 1x1 matmul + bias + SiLU --------------
        x12 = jnp.dot(x_ref[...], w12_ref[...],
                      preferred_element_type=jnp.float32) + b12_ref[...]
        x12 = _silu(x12)
        cur = x12[:, :Ch].reshape(TH, W, Ch)          # conv1 branch -> blocks
        # Park the conv2 branch (centre rows only) in the output block.
        x2 = x12[:, Ch:].reshape(TH, W, Ch)[halo:halo + tile_h]
        o_ref[...] = x2.reshape(tile_h, W * Ch).astype(o_ref.dtype)

        # --- halo-row validity: rows outside the image must stay exactly 0 ---
        if halo > 0:
            t = pl.program_id(1)
            row0 = t * tile_h - halo
            rows = jax.lax.broadcasted_iota(jnp.int32, (TH, W, 1), 0) + row0
            valid = jnp.logical_and(rows >= 0, rows < H)

            def masked(v):                             # (TH, W, Ch) f32
                return jnp.where(valid, v, 0.0)
        else:
            def masked(v):
                return v

        # --- zero only the pad border (interior rewritten every block) -------
        zrow = jnp.zeros((1, W + 2, Ch), pad_ref.dtype)
        pad_ref[0:1, :, :] = zrow
        pad_ref[TH + 1:TH + 2, :, :] = zrow
        zcol = jnp.zeros((TH, 1, Ch), pad_ref.dtype)
        if lane_aligned:
            pad_ref[1:TH + 1, 0:1, :] = zcol
            pad_ref[1:TH + 1, W + 1:W + 2, :] = zcol

        # --- RepVgg bottlenecks (num_blocks static -> unrolled) --------------
        for k in range(K):
            if lane_aligned:
                # Ch multiple of 128 -> dense interior store, 9 per-tap dots.
                pad_ref[1:TH + 1, 1:W + 1, :] = masked(cur).astype(pad_ref.dtype)
                acc = jnp.zeros((TH * W, Ch), jnp.float32)
                for dy in range(3):
                    for dx in range(3):
                        tap = pad_ref[dy:dy + TH, dx:dx + W, :].reshape(TH * W, Ch)
                        off = (dy * 3 + dx) * Ch
                        acc = acc + jnp.dot(tap, w3_ref[k, off:off + Ch, :],
                                            preferred_element_type=jnp.float32)
                y = acc + b3_ref[k:k + 1, :]
            else:
                # Tiny Ch: keep im2col so the single contraction is 9*Ch deep.
                pad_ref[1:TH + 1, :, :] = jnp.concatenate(
                    [zcol, masked(cur).astype(pad_ref.dtype), zcol], axis=1)
                taps = [pad_ref[dy:dy + TH, dx:dx + W, :].reshape(TH * W, Ch)
                        for dy in range(3) for dx in range(3)]
                col = jnp.concatenate(taps, axis=1)           # (TH*W, 9*Ch) bf16
                y = jnp.dot(col, w3_ref[k],
                            preferred_element_type=jnp.float32) + b3_ref[k:k + 1, :]
            cur = _silu(y).reshape(TH, W, Ch)

        # --- residual add in f32, single final cast; conv3 == Identity -------
        cur_c = cur[halo:halo + tile_h].reshape(tile_h, W * Ch)
        o_ref[...] = (o_ref[...].astype(jnp.float32) + cur_c).astype(o_ref.dtype)

    return kernel


def _vmem_limit_bytes():
    """~7/8 of physical VMEM: ~56 MiB on v7x, 112 MiB on 128-MiB parts."""
    try:
        cap = int(pltpu.get_tpu_info().vmem_capacity_bytes)
        return min(cap * 7 // 8, 112 * 1024 * 1024)
    except Exception:
        return 48 * 1024 * 1024          # conservative fallback


def csp_rep_layer(x_nchw, params, *, tile_h=None, out_dtype=jnp.float32):
    """CSPRepLayer forward. x_nchw: (N, Cin, H, W) f32 -> (N, Cout, H, W)."""
    N, Cin, H, W = x_nchw.shape
    Ch = params["b3"].shape[1]
    K = params["w3"].shape[0]
    # conv3 == nn.Identity: only expansion == 1.0 (hidden_channels == Cout);
    # other configs must fail loudly rather than silently skip conv3.
    assert params["w12"].shape == (Cin, 2 * Ch), "unsupported CSPRepLayer config"

    if tile_h is None:
        tile_h = H                       # small maps: one row-tile per image
    assert H % tile_h == 0, "H must be divisible by tile_h"
    n_t = H // tile_h
    halo = 0 if n_t == 1 else K          # rows of context the 3x3 chain needs
    TH = tile_h + 2 * halo

    # NCHW -> (N, n_t, TH*W, Cin) overlapping row windows, bf16 matmul inputs.
    x = jnp.transpose(x_nchw, (0, 2, 3, 1))                  # (N, H, W, Cin)
    if halo:
        xp = jnp.pad(x, ((0, 0), (halo, halo), (0, 0), (0, 0)))
        x = jnp.stack([xp[:, t * tile_h: t * tile_h + TH] for t in range(n_t)],
                      axis=1)                                # (N, n_t, TH, W, Cin)
    else:
        x = x[:, None]
    x = x.reshape(N, n_t, TH * W, Cin).astype(jnp.bfloat16)

    kernel = _make_kernel(H, W, Cin, Ch, K, tile_h, halo)

    out = pl.pallas_call(
        kernel,
        out_shape=jax.ShapeDtypeStruct((N, n_t, tile_h, W * Ch), out_dtype),
        grid=(N, n_t),
        in_specs=[
            pl.BlockSpec((None, None, TH * W, Cin), lambda n, t: (n, t, 0, 0)),
            pl.BlockSpec((Cin, 2 * Ch), lambda n, t: (0, 0)),       # weights stay
            pl.BlockSpec((1, 2 * Ch), lambda n, t: (0, 0)),         # resident in
            pl.BlockSpec((K, 9 * Ch, Ch), lambda n, t: (0, 0, 0)),  # VMEM across
            pl.BlockSpec((K, Ch), lambda n, t: (0, 0)),             # the grid
        ],
        out_specs=pl.BlockSpec((None, None, tile_h, W * Ch),
                               lambda n, t: (n, t, 0, 0)),
        scratch_shapes=[pltpu.VMEM((TH + 2, W + 2, Ch), jnp.bfloat16)],
        compiler_params=pltpu.CompilerParams(
            dimension_semantics=("parallel", "parallel"),     # megacore / v7x
            vmem_limit_bytes=_vmem_limit_bytes()),
    )(x, params["w12"], params["b12"], params["w3"], params["b3"])

    out = out.reshape(N, H, W, Ch)
    return jnp.transpose(out, (0, 3, 1, 2))


# ------------------------------ parameter prep -------------------------------

def _fold_bn(w, gamma, beta, mean, var, eps=1e-5):
    """Fold eval-mode BatchNorm (running stats) into the preceding conv."""
    scale = gamma / jnp.sqrt(var + eps)       # (Cout,)
    return w * scale, beta - mean * scale     # scale broadcasts on last dim


def init_params(key, cin, ch, num_blocks):
    keys = iter(jax.random.split(key, 5 * (2 + 2 * num_blocks)))

    def bn_params(cout):
        g = 1.0 + 0.1 * jax.random.normal(next(keys), (cout,), jnp.float32)
        b = 0.1 * jax.random.normal(next(keys), (cout,), jnp.float32)
        m = 0.1 * jax.random.normal(next(keys), (cout,), jnp.float32)
        v = jax.random.uniform(next(keys), (cout,), jnp.float32,
                               minval=0.5, maxval=1.5)
        return g, b, m, v

    def conv1x1(ci, co):
        w = jax.random.normal(next(keys), (ci, co), jnp.float32) / jnp.sqrt(ci)
        return _fold_bn(w, *bn_params(co))

    def conv3x3(ci, co):
        w = jax.random.normal(next(keys), (3, 3, ci, co), jnp.float32) / jnp.sqrt(9.0 * ci)
        return _fold_bn(w, *bn_params(co))

    # conv1 / conv2: one fused 1x1 matmul.
    w1, b1 = conv1x1(cin, ch)
    w2, b2 = conv1x1(cin, ch)
    w12 = jnp.concatenate([w1, w2], axis=1)                 # (cin, 2*ch)
    b12 = jnp.concatenate([b1, b2]).reshape(1, 2 * ch)

    # RepVgg blocks: fold the 1x1 branch into the centre tap of the 3x3
    # (exactly RepVggBlock.get_equivalent_kernel_bias).
    w3_list, b3_list = [], []
    for _ in range(num_blocks):
        w3, b3 = conv3x3(ch, ch)                            # (3,3,ch,ch), (ch,)
        wk, bk = conv1x1(ch, ch)                            # (ch,ch),     (ch,)
        w3 = w3.at[1, 1].add(wk)
        b3 = b3 + bk
        w3_list.append(w3.reshape(9 * ch, ch))              # (dy,dx,cin) -> rows
        b3_list.append(b3)

    return {
        "w12": w12.astype(jnp.bfloat16),
        "b12": b12,                                         # f32
        "w3": jnp.stack(w3_list).astype(jnp.bfloat16),      # (K, 9*ch, ch)
        "b3": jnp.stack(b3_list),                           # (K, ch) f32
    }


def csp_rep_reference(x_nchw, params):
    """Plain-JAX reference using the same folded/fused params (f32 math)."""
    N, Cin, H, W = x_nchw.shape
    Ch = params["b3"].shape[1]
    K = params["w3"].shape[0]
    w12 = params["w12"].astype(jnp.float32)
    b12 = params["b12"].reshape(2 * Ch)
    w3 = params["w3"].astype(jnp.float32).reshape(K, 3, 3, Ch, Ch)
    b3 = params["b3"]

    def silu(v):
        return v * jax.nn.sigmoid(v)

    x = jnp.transpose(x_nchw, (0, 2, 3, 1)).astype(jnp.bfloat16).astype(jnp.float32)
    x12 = silu(jnp.einsum("nhwc,cd->nhwd", x, w12) + b12)
    cur, x2 = x12[..., :Ch], x12[..., Ch:]
    for k in range(K):
        p = jnp.pad(cur, ((0, 0), (1, 1), (1, 1), (0, 0)))
        y = b3[k]
        for dy in range(3):
            for dx in range(3):
                y = y + jnp.einsum("nhwc,cd->nhwd",
                                   p[:, dy:dy + H, dx:dx + W, :], w3[k, dy, dx])
        cur = silu(y)
    return jnp.transpose(cur + x2, (0, 3, 1, 2))


if __name__ == "__main__":
    key = jax.random.PRNGKey(0)
    kx1, kp1, kx2, kp2 = jax.random.split(key, 4)

    # --- test 1: toy config (Ch=32 -> im2col path), row-tiled with halo ------
    # CSPRepLayer(in_channels=4, out_channels=32, num_blocks=3, expansion=1.0,
    #             act='silu') -> hidden_channels == out_channels, conv3=Identity.
    N, Cin, H, W, Cout, num_blocks = 2, 4, 16, 16, 32, 3
    x_nchw = jax.random.normal(kx1, (N, Cin, H, W), jnp.float32)
    params = init_params(kp1, Cin, Cout, num_blocks)

    out = jax.block_until_ready(csp_rep_layer(x_nchw, params, tile_h=8))
    ref = csp_rep_reference(x_nchw, params)
    assert out.shape == (N, Cout, H, W)
    assert bool(jnp.all(jnp.isfinite(out)))
    assert bool(jnp.allclose(out, ref, rtol=5e-2, atol=5e-2)), \
        float(jnp.max(jnp.abs(out - ref)))

    # --- test 2: lane-aligned config (Ch=128 -> per-tap MXU path), bf16 out ---
    N2, Cin2, H2, W2, Cout2, nb2 = 1, 16, 8, 8, 128, 2
    x2_nchw = jax.random.normal(kx2, (N2, Cin2, H2, W2), jnp.float32)
    params2 = init_params(kp2, Cin2, Cout2, nb2)

    out2 = jax.block_until_ready(
        csp_rep_layer(x2_nchw, params2, tile_h=4, out_dtype=jnp.bfloat16)
    ).astype(jnp.float32)
    ref2 = csp_rep_reference(x2_nchw, params2)
    assert out2.shape == (N2, Cout2, H2, W2)
    assert bool(jnp.all(jnp.isfinite(out2)))
    assert bool(jnp.allclose(out2, ref2, rtol=5e-2, atol=1e-1)), \
        float(jnp.max(jnp.abs(out2 - ref2)))

    print("KERNEL_OK")
</pallas_src>

<mosaic_0001>
module attributes {stable_mosaic.version = 11 : i64} {
  func.func @kernel(%arg0: i32, %arg1: i32, %arg2: memref<1x1x224x4xbf16, #tpu.memory_space<vmem>>, %arg3: memref<4x64xbf16, #tpu.memory_space<vmem>>, %arg4: memref<1x64xf32, #tpu.memory_space<vmem>>, %arg5: memref<3x288x32xbf16, #tpu.memory_space<vmem>>, %arg6: memref<3x32xf32, #tpu.memory_space<vmem>>, %arg7: memref<1x1x8x512xf32, #tpu.memory_space<vmem>>, %arg8: memref<16x18x32xbf16, #tpu.memory_space<vmem>>) attributes {dimension_semantics = [#tpu.dimension_semantics<parallel>, #tpu.dimension_semantics<parallel>], iteration_bounds = array<i64: 2, 2>, scalar_prefetch = 0 : i64, scratch_operands = 1 : i64, tpu.core_type = #tpu.core_type<tc>, window_params = [{transform_indices = @transform_0, window_bounds = array<i64: 1, 1, 224, 4>}, {pipeline_mode = #tpu.pipeline_mode<synchronous>, transform_indices = @transform_1, window_bounds = array<i64: 4, 64>}, {pipeline_mode = #tpu.pipeline_mode<synchronous>, transform_indices = @transform_2, window_bounds = array<i64: 1, 64>}, {pipeline_mode = #tpu.pipeline_mode<synchronous>, transform_indices = @transform_3, window_bounds = array<i64: 3, 288, 32>}, {pipeline_mode = #tpu.pipeline_mode<synchronous>, transform_indices = @transform_4, window_bounds = array<i64: 3, 32>}, {transform_indices = @transform_5, window_bounds = array<i64: 1, 1, 8, 512>}]} {
    %c0 = arith.constant 0 : index
    %c0_0 = arith.constant 0 : index
    %c0_1 = arith.constant 0 : index
    %c0_2 = arith.constant 0 : index
    %0 = vector.load %arg2[%c0, %c0_0, %c0_1, %c0_2] : memref<1x1x224x4xbf16, #tpu.memory_space<vmem>>, vector<1x1x224x4xbf16>
    %1 = vector.shape_cast %0 : vector<1x1x224x4xbf16> to vector<224x4xbf16>
    %c0_3 = arith.constant 0 : index
    %c0_4 = arith.constant 0 : index
    %2 = vector.load %arg3[%c0_3, %c0_4] : memref<4x64xbf16, #tpu.memory_space<vmem>>, vector<4x64xbf16>
    %cst = arith.constant dense<0.000000e+00> : vector<224x64xf32>
    %3 = tpu.matmul %1, %2, %cst {dimension_numbers = #tpu.dot_dimension_numbers<[1], [0], [0], [1], [0, 0, 1, 1], [], []>} : vector<224x4xbf16>, vector<4x64xbf16>, vector<224x64xf32> -> vector<224x64xf32>
    %c0_5 = arith.constant 0 : index
    %c0_6 = arith.constant 0 : index
    %4 = vector.load %arg4[%c0_5, %c0_6] : memref<1x64xf32, #tpu.memory_space<vmem>>, vector<1x64xf32>
    %5 = vector.broadcast %4 : vector<1x64xf32> to vector<224x64xf32>
    %6 = arith.addf %3, %5 : vector<224x64xf32>
    %cst_7 = arith.constant 0.000000e+00 : f32
    %7 = vector.broadcast %cst_7 : f32 to vector<224x64xf32>
    %8 = arith.subf %7, %6 : vector<224x64xf32>
    %9 = math.exp %8 : vector<224x64xf32>
    %cst_8 = arith.constant 1.000000e+00 : f32
    %10 = vector.broadcast %cst_8 : f32 to vector<224x64xf32>
    %11 = arith.addf %10, %9 : vector<224x64xf32>
    %12 = tpu.reciprocal %11 {approx = true} : vector<224x64xf32> -> vector<224x64xf32>
    %13 = arith.mulf %6, %12 : vector<224x64xf32>
    %14 = vector.extract_strided_slice %13 {offsets = [0, 0], sizes = [224, 32], strides = [1, 1]} : vector<224x64xf32> to vector<224x32xf32>
    %15 = vector.shape_cast %14 : vector<224x32xf32> to vector<14x16x32xf32>
    %16 = vector.extract_strided_slice %13 {offsets = [0, 32], sizes = [224, 32], strides = [1, 1]} : vector<224x64xf32> to vector<224x32xf32>
    %17 = vector.shape_cast %16 : vector<224x32xf32> to vector<14x16x32xf32>
    %18 = vector.extract_strided_slice %17 {offsets = [3, 0, 0], sizes = [8, 16, 32], strides = [1, 1, 1]} : vector<14x16x32xf32> to vector<8x16x32xf32>
    %19 = vector.shape_cast %18 : vector<8x16x32xf32> to vector<8x512xf32>
    %c0_9 = arith.constant 0 : index
    %c0_10 = arith.constant 0 : index
    %c0_11 = arith.constant 0 : index
    %c0_12 = arith.constant 0 : index
    %20 = vector.load %arg7[%c0_9, %c0_10, %c0_11, %c0_12] : memref<1x1x8x512xf32, #tpu.memory_space<vmem>>, vector<1x1x8x512xf32>
    %21 = vector.shape_cast %20 : vector<1x1x8x512xf32> to vector<8x512xf32>
    %22 = vector.shape_cast %19 : vector<8x512xf32> to vector<1x1x8x512xf32>
    tpu.vector_store %arg7[%c0_9, %c0_10, %c0_11, %c0_12], %22 {strides = array<i32>} : memref<1x1x8x512xf32, #tpu.memory_space<vmem>>, vector<1x1x8x512xf32>,
    %c8_i32 = arith.constant 8 : i32
    %23 = arith.muli %arg1, %c8_i32 : i32
    %c3_i32 = arith.constant 3 : i32
    %24 = arith.subi %23, %c3_i32 : i32
    %25 = tpu.iota {dimensions = array<i32: 0>} : vector<14x16x1xi32>
    %26 = vector.broadcast %24 : i32 to vector<14x16x1xi32>
    %27 = arith.addi %25, %26 : vector<14x16x1xi32>
    %c0_i32 = arith.constant 0 : i32
    %28 = vector.broadcast %c0_i32 : i32 to vector<14x16x1xi32>
    %29 = arith.cmpi sge, %27, %28 : vector<14x16x1xi32>
    %c16_i32 = arith.constant 16 : i32
    %30 = vector.broadcast %c16_i32 : i32 to vector<14x16x1xi32>
    %31 = arith.cmpi slt, %27, %30 : vector<14x16x1xi32>
    %32 = arith.andi %29, %31 : vector<14x16x1xi1>
    %cst_13 = arith.constant 0.000000e+00 : bf16
    %33 = vector.broadcast %cst_13 : bf16 to vector<1x18x32xbf16>
    %c0_14 = arith.constant 0 : index
    %c0_15 = arith.constant 0 : index
    %c0_16 = arith.constant 0 : index
    %34 = vector.load %arg8[%c0_14, %c0_15, %c0_16] : memref<16x18x32xbf16, #tpu.memory_space<vmem>>, vector<1x18x32xbf16>
    tpu.vector_store %arg8[%c0_14, %c0_15, %c0_16], %33 {strides = array<i32>} : memref<16x18x32xbf16, #tpu.memory_space<vmem>>, vector<1x18x32xbf16>,
    %c15 = arith.constant 15 : index
    %c0_17 = arith.constant 0 : index
    %c0_18 = arith.constant 0 : index
    %35 = vector.load %arg8[%c15, %c0_17, %c0_18] : memref<16x18x32xbf16, #tpu.memory_space<vmem>>, vector<1x18x32xbf16>
    tpu.vector_store %arg8[%c15, %c0_17, %c0_18], %33 {strides = array<i32>} : memref<16x18x32xbf16, #tpu.memory_space<vmem>>, vector<1x18x32xbf16>,
    %cst_19 = arith.constant 0.000000e+00 : bf16
    %36 = vector.broadcast %cst_19 : bf16 to vector<14x1x32xbf16>
    %cst_20 = arith.constant 0.000000e+00 : f32
    %37 = vector.shape_cast %32 : vector<14x16x1xi1> to vector<14x16x1xi1>
    %38 = vector.broadcast %37 : vector<14x16x1xi1> to vector<14x16x32xi1>
    %39 = vector.broadcast %cst_20 : f32 to vector<14x16x32xf32>
    %40 = arith.select %38, %15, %39 : vector<14x16x32xi1>, vector<14x16x32xf32>
    %41 = arith.truncf %40 : vector<14x16x32xf32> to vector<14x16x32xbf16>
    %42 = tpu.concatenate %36, %41, %36 in 1 : vector<14x1x32xbf16>, vector<14x16x32xbf16>, vector<14x1x32xbf16> -> vector<14x18x32xbf16>
    %c1 = arith.constant 1 : index
    %c0_21 = arith.constant 0 : index
    %c0_22 = arith.constant 0 : index
    %43 = vector.load %arg8[%c1, %c0_21, %c0_22] : memref<16x18x32xbf16, #tpu.memory_space<vmem>>, vector<14x18x32xbf16>
    tpu.vector_store %arg8[%c1, %c0_21, %c0_22], %42 {strides = array<i32>} : memref<16x18x32xbf16, #tpu.memory_space<vmem>>, vector<14x18x32xbf16>,
    %c0_23 = arith.constant 0 : index
    %c0_24 = arith.constant 0 : index
    %c0_25 = arith.constant 0 : index
    %44 = vector.load %arg8[%c0_23, %c0_24, %c0_25] : memref<16x18x32xbf16, #tpu.memory_space<vmem>>, vector<14x16x32xbf16>
    %45 = vector.shape_cast %44 : vector<14x16x32xbf16> to vector<224x32xbf16>
    %c0_26 = arith.constant 0 : index
    %c1_27 = arith.constant 1 : index
    %c0_28 = arith.constant 0 : index
    %46 = vector.load %arg8[%c0_26, %c1_27, %c0_28] : memref<16x18x32xbf16, #tpu.memory_space<vmem>>, vector<14x16x32xbf16>
    %47 = vector.shape_cast %46 : vector<14x16x32xbf16> to vector<224x32xbf16>
    %c0_29 = arith.constant 0 : index
    %c2 = arith.constant 2 : index
    %c0_30 = arith.constant 0 : index
    %48 = vector.load %arg8[%c0_29, %c2, %c0_30] : memref<16x18x32xbf16, #tpu.memory_space<vmem>>, vector<14x16x32xbf16>
    %49 = vector.shape_cast %48 : vector<14x16x32xbf16> to vector<224x32xbf16>
    %c1_31 = arith.constant 1 : index
    %c0_32 = arith.constant 0 : index
    %c0_33 = arith.constant 0 : index
    %50 = vector.load %arg8[%c1_31, %c0_32, %c0_33] : memref<16x18x32xbf16, #tpu.memory_space<vmem>>, vector<14x16x32xbf16>
    %51 = vector.shape_cast %50 : vector<14x16x32xbf16> to vector<224x32xbf16>
    %c1_34 = arith.constant 1 : index
    %c1_35 = arith.constant 1 : index
    %c0_36 = arith.constant 0 : index
    %52 = vector.load %arg8[%c1_34, %c1_35, %c0_36] : memref<16x18x32xbf16, #tpu.memory_space<vmem>>, vector<14x16x32xbf16>
    %53 = vector.shape_cast %52 : vector<14x16x32xbf16> to vector<224x32xbf16>
    %c1_37 = arith.constant 1 : index
    %c2_38 = arith.constant 2 : index
    %c0_39 = arith.constant 0 : index
    %54 = vector.load %arg8[%c1_37, %c2_38, %c0_39] : memref<16x18x32xbf16, #tpu.memory_space<vmem>>, vector<14x16x32xbf16>
    %55 = vector.shape_cast %54 : vector<14x16x32xbf16> to vector<224x32xbf16>
    %c2_40 = arith.constant 2 : index
    %c0_41 = arith.constant 0 : index
    %c0_42 = arith.constant 0 : index
    %56 = vector.load %arg8[%c2_40, %c0_41, %c0_42] : memref<16x18x32xbf16, #tpu.memory_space<vmem>>, vector<14x16x32xbf16>
    %57 = vector.shape_cast %56 : vector<14x16x32xbf16> to vector<224x32xbf16>
    %c2_43 = arith.constant 2 : index
    %c1_44 = arith.constant 1 : index
    %c0_45 = arith.constant 0 : index
    %58 = vector.load %arg8[%c2_43, %c1_44, %c0_45] : memref<16x18x32xbf16, #tpu.memory_space<vmem>>, vector<14x16x32xbf16>
    %59 = vector.shape_cast %58 : vector<14x16x32xbf16> to vector<224x32xbf16>
    %c2_46 = arith.constant 2 : index
    %c2_47 = arith.constant 2 : index
    %c0_48 = arith.constant 0 : index
    %60 = vector.load %arg8[%c2_46, %c2_47, %c0_48] : memref<16x18x32xbf16, #tpu.memory_space<vmem>>, vector<14x16x32xbf16>
    %61 = vector.shape_cast %60 : vector<14x16x32xbf16> to vector<224x32xbf16>
    %62 = tpu.concatenate %45, %47, %49, %51, %53, %55, %57, %59, %61 in 1 : vector<224x32xbf16>, vector<224x32xbf16>, vector<224x32xbf16>, vector<224x32xbf16>, vector<224x32xbf16>, vector<224x32xbf16>, vector<224x32xbf16>, vector<224x32xbf16>, vector<224x32xbf16> -> vector<224x288xbf16>
    %c0_49 = arith.constant 0 : index
    %c0_50 = arith.constant 0 : index
    %c0_51 = arith.constant 0 : index
    %63 = vector.load %arg5[%c0_49, %c0_50, %c0_51] : memref<3x288x32xbf16, #tpu.memory_space<vmem>>, vector<1x288x32xbf16>
    %64 = vector.shape_cast %63 : vector<1x288x32xbf16> to vector<288x32xbf16>
    %cst_52 = arith.constant dense<0.000000e+00> : vector<224x32xf32>
    %65 = tpu.matmul %62, %64, %cst_52 {dimension_numbers = #tpu.dot_dimension_numbers<[1], [0], [0], [1], [0, 0, 1, 1], [], []>} : vector<224x288xbf16>, vector<288x32xbf16>, vector<224x32xf32> -> vector<224x32xf32>
    %c0_53 = arith.constant 0 : index
    %c0_54 = arith.constant 0 : index
    %66 = vector.load %arg6[%c0_53, %c0_54] : memref<3x32xf32, #tpu.memory_space<vmem>>, vector<1x32xf32>
    %67 = vector.broadcast %66 : vector<1x32xf32> to vector<224x32xf32>
    %68 = arith.addf %65, %67 : vector<224x32xf32>
    %cst_55 = arith.constant 0.000000e+00 : f32
    %69 = vector.broadcast %cst_55 : f32 to vector<224x32xf32>
    %70 = arith.subf %69, %68 : vector<224x32xf32>
    %71 = math.exp %70 : vector<224x32xf32>
    %cst_56 = arith.constant 1.000000e+00 : f32
    %72 = vector.broadcast %cst_56 : f32 to vector<224x32xf32>
    %73 = arith.addf %72, %71 : vector<224x32xf32>
    %74 = tpu.reciprocal %73 {approx = true} : vector<224x32xf32> -> vector<224x32xf32>
    %75 = arith.mulf %68, %74 : vector<224x32xf32>
    %76 = vector.shape_cast %75 : vector<224x32xf32> to vector<14x16x32xf32>
    %cst_57 = arith.constant 0.000000e+00 : f32
    %77 = vector.shape_cast %32 : vector<14x16x1xi1> to vector<14x16x1xi1>
    %78 = vector.broadcast %77 : vector<14x16x1xi1> to vector<14x16x32xi1>
    %79 = vector.broadcast %cst_57 : f32 to vector<14x16x32xf32>
    %80 = arith.select %78, %76, %79 : vector<14x16x32xi1>, vector<14x16x32xf32>
    %81 = arith.truncf %80 : vector<14x16x32xf32> to vector<14x16x32xbf16>
    %82 = tpu.concatenate %36, %81, %36 in 1 : vector<14x1x32xbf16>, vector<14x16x32xbf16>, vector<14x1x32xbf16> -> vector<14x18x32xbf16>
    %c1_58 = arith.constant 1 : index
    %c0_59 = arith.constant 0 : index
    %c0_60 = arith.constant 0 : index
    %83 = vector.load %arg8[%c1_58, %c0_59, %c0_60] : memref<16x18x32xbf16, #tpu.memory_space<vmem>>, vector<14x18x32xbf16>
    tpu.vector_store %arg8[%c1_58, %c0_59, %c0_60], %82 {strides = array<i32>} : memref<16x18x32xbf16, #tpu.memory_space<vmem>>, vector<14x18x32xbf16>,
    %c0_61 = arith.constant 0 : index
    %c0_62 = arith.constant 0 : index
    %c0_63 = arith.constant 0 : index
    %84 = vector.load %arg8[%c0_61, %c0_62, %c0_63] : memref<16x18x32xbf16, #tpu.memory_space<vmem>>, vector<14x16x32xbf16>
    %85 = vector.shape_cast %84 : vector<14x16x32xbf16> to vector<224x32xbf16>
    %c0_64 = arith.constant 0 : index
    %c1_65 = arith.constant 1 : index
    %c0_66 = arith.constant 0 : index
    %86 = vector.load %arg8[%c0_64, %c1_65, %c0_66] : memref<16x18x32xbf16, #tpu.memory_space<vmem>>, vector<14x16x32xbf16>
    %87 = vector.shape_cast %86 : vector<14x16x32xbf16> to vector<224x32xbf16>
    %c0_67 = arith.constant 0 : index
    %c2_68 = arith.constant 2 : index
    %c0_69 = arith.constant 0 : index
    %88 = vector.load %arg8[%c0_67, %c2_68, %c0_69] : memref<16x18x32xbf16, #tpu.memory_space<vmem>>, vector<14x16x32xbf16>
    %89 = vector.shape_cast %88 : vector<14x16x32xbf16> to vector<224x32xbf16>
    %c1_70 = arith.constant 1 : index
    %c0_71 = arith.constant 0 : index
    %c0_72 = arith.constant 0 : index
    %90 = vector.load %arg8[%c1_70, %c0_71, %c0_72] : memref<16x18x32xbf16, #tpu.memory_space<vmem>>, vector<14x16x32xbf16>
    %91 = vector.shape_cast %90 : vector<14x16x32xbf16> to vector<224x32xbf16>
    %c1_73 = arith.constant 1 : index
    %c1_74 = arith.constant 1 : index
    %c0_75 = arith.constant 0 : index
    %92 = vector.load %arg8[%c1_73, %c1_74, %c0_75] : memref<16x18x32xbf16, #tpu.memory_space<vmem>>, vector<14x16x32xbf16>
    %93 = vector.shape_cast %92 : vector<14x16x32xbf16> to vector<224x32xbf16>
    %c1_76 = arith.constant 1 : index
    %c2_77 = arith.constant 2 : index
    %c0_78 = arith.constant 0 : index
    %94 = vector.load %arg8[%c1_76, %c2_77, %c0_78] : memref<16x18x32xbf16, #tpu.memory_space<vmem>>, vector<14x16x32xbf16>
    %95 = vector.shape_cast %94 : vector<14x16x32xbf16> to vector<224x32xbf16>
    %c2_79 = arith.constant 2 : index
    %c0_80 = arith.constant 0 : index
    %c0_81 = arith.constant 0 : index
    %96 = vector.load %arg8[%c2_79, %c0_80, %c0_81] : memref<16x18x32xbf16, #tpu.memory_space<vmem>>, vector<14x16x32xbf16>
    %97 = vector.shape_cast %96 : vector<14x16x32xbf16> to vector<224x32xbf16>
    %c2_82 = arith.constant 2 : index
    %c1_83 = arith.constant 1 : index
    %c0_84 = arith.constant 0 : index
    %98 = vector.load %arg8[%c2_82, %c1_83, %c0_84] : memref<16x18x32xbf16, #tpu.memory_space<vmem>>, vector<14x16x32xbf16>
    %99 = vector.shape_cast %98 : vector<14x16x32xbf16> to vector<224x32xbf16>
    %c2_85 = arith.constant 2 : index
    %c2_86 = arith.constant 2 : index
    %c0_87 = arith.constant 0 : index
    %100 = vector.load %arg8[%c2_85, %c2_86, %c0_87] : memref<16x18x32xbf16, #tpu.memory_space<vmem>>, vector<14x16x32xbf16>
    %101 = vector.shape_cast %100 : vector<14x16x32xbf16> to vector<224x32xbf16>
    %102 = tpu.concatenate %85, %87, %89, %91, %93, %95, %97, %99, %101 in 1 : vector<224x32xbf16>, vector<224x32xbf16>, vector<224x32xbf16>, vector<224x32xbf16>, vector<224x32xbf16>, vector<224x32xbf16>, vector<224x32xbf16>, vector<224x32xbf16>, vector<224x32xbf16> -> vector<224x288xbf16>
    %c1_88 = arith.constant 1 : index
    %c0_89 = arith.constant 0 : index
    %c0_90 = arith.constant 0 : index
    %103 = vector.load %arg5[%c1_88, %c0_89, %c0_90] : memref<3x288x32xbf16, #tpu.memory_space<vmem>>, vector<1x288x32xbf16>
    %104 = vector.shape_cast %103 : vector<1x288x32xbf16> to vector<288x32xbf16>
    %cst_91 = arith.constant dense<0.000000e+00> : vector<224x32xf32>
    %105 = tpu.matmul %102, %104, %cst_91 {dimension_numbers = #tpu.dot_dimension_numbers<[1], [0], [0], [1], [0, 0, 1, 1], [], []>} : vector<224x288xbf16>, vector<288x32xbf16>, vector<224x32xf32> -> vector<224x32xf32>
    %c1_92 = arith.constant 1 : index
    %c0_93 = arith.constant 0 : index
    %106 = vector.load %arg6[%c1_92, %c0_93] : memref<3x32xf32, #tpu.memory_space<vmem>>, vector<1x32xf32>
    %107 = vector.broadcast %106 : vector<1x32xf32> to vector<224x32xf32>
    %108 = arith.addf %105, %107 : vector<224x32xf32>
    %cst_94 = arith.constant 0.000000e+00 : f32
    %109 = vector.broadcast %cst_94 : f32 to vector<224x32xf32>
    %110 = arith.subf %109, %108 : vector<224x32xf32>
    %111 = math.exp %110 : vector<224x32xf32>
    %cst_95 = arith.constant 1.000000e+00 : f32
    %112 = vector.broadcast %cst_95 : f32 to vector<224x32xf32>
    %113 = arith.addf %112, %111 : vector<224x32xf32>
    %114 = tpu.reciprocal %113 {approx = true} : vector<224x32xf32> -> vector<224x32xf32>
    %115 = arith.mulf %108, %114 : vector<224x32xf32>
    %116 = vector.shape_cast %115 : vector<224x32xf32> to vector<14x16x32xf32>
    %cst_96 = arith.constant 0.000000e+00 : f32
    %117 = vector.shape_cast %32 : vector<14x16x1xi1> to vector<14x16x1xi1>
    %118 = vector.broadcast %117 : vector<14x16x1xi1> to vector<14x16x32xi1>
    %119 = vector.broadcast %cst_96 : f32 to vector<14x16x32xf32>
    %120 = arith.select %118, %116, %119 : vector<14x16x32xi1>, vector<14x16x32xf32>
    %121 = arith.truncf %120 : vector<14x16x32xf32> to vector<14x16x32xbf16>
    %122 = tpu.concatenate %36, %121, %36 in 1 : vector<14x1x32xbf16>, vector<14x16x32xbf16>, vector<14x1x32xbf16> -> vector<14x18x32xbf16>
    %c1_97 = arith.constant 1 : index
    %c0_98 = arith.constant 0 : index
    %c0_99 = arith.constant 0 : index
    %123 = vector.load %arg8[%c1_97, %c0_98, %c0_99] : memref<16x18x32xbf16, #tpu.memory_space<vmem>>, vector<14x18x32xbf16>
    tpu.vector_store %arg8[%c1_97, %c0_98, %c0_99], %122 {strides = array<i32>} : memref<16x18x32xbf16, #tpu.memory_space<vmem>>, vector<14x18x32xbf16>,
    %c0_100 = arith.constant 0 : index
    %c0_101 = arith.constant 0 : index
    %c0_102 = arith.constant 0 : index
    %124 = vector.load %arg8[%c0_100, %c0_101, %c0_102] : memref<16x18x32xbf16, #tpu.memory_space<vmem>>, vector<14x16x32xbf16>
    %125 = vector.shape_cast %124 : vector<14x16x32xbf16> to vector<224x32xbf16>
    %c0_103 = arith.constant 0 : index
    %c1_104 = arith.constant 1 : index
    %c0_105 = arith.constant 0 : index
    %126 = vector.load %arg8[%c0_103, %c1_104, %c0_105] : memref<16x18x32xbf16, #tpu.memory_space<vmem>>, vector<14x16x32xbf16>
    %127 = vector.shape_cast %126 : vector<14x16x32xbf16> to vector<224x32xbf16>
    %c0_106 = arith.constant 0 : index
    %c2_107 = arith.constant 2 : index
    %c0_108 = arith.constant 0 : index
    %128 = vector.load %arg8[%c0_106, %c2_107, %c0_108] : memref<16x18x32xbf16, #tpu.memory_space<vmem>>, vector<14x16x32xbf16>
    %129 = vector.shape_cast %128 : vector<14x16x32xbf16> to vector<224x32xbf16>
    %c1_109 = arith.constant 1 : index
    %c0_110 = arith.constant 0 : index
    %c0_111 = arith.constant 0 : index
    %130 = vector.load %arg8[%c1_109, %c0_110, %c0_111] : memref<16x18x32xbf16, #tpu.memory_space<vmem>>, vector<14x16x32xbf16>
    %131 = vector.shape_cast %130 : vector<14x16x32xbf16> to vector<224x32xbf16>
    %c1_112 = arith.constant 1 : index
    %c1_113 = arith.constant 1 : index
    %c0_114 = arith.constant 0 : index
    %132 = vector.load %arg8[%c1_112, %c1_113, %c0_114] : memref<16x18x32xbf16, #tpu.memory_space<vmem>>, vector<14x16x32xbf16>
    %133 = vector.shape_cast %132 : vector<14x16x32xbf16> to vector<224x32xbf16>
    %c1_115 = arith.constant 1 : index
    %c2_116 = arith.constant 2 : index
    %c0_117 = arith.constant 0 : index
    %134 = vector.load %arg8[%c1_115, %c2_116, %c0_117] : memref<16x18x32xbf16, #tpu.memory_space<vmem>>, vector<14x16x32xbf16>
    %135 = vector.shape_cast %134 : vector<14x16x32xbf16> to vector<224x32xbf16>
    %c2_118 = arith.constant 2 : index
    %c0_119 = arith.constant 0 : index
    %c0_120 = arith.constant 0 : index
    %136 = vector.load %arg8[%c2_118, %c0_119, %c0_120] : memref<16x18x32xbf16, #tpu.memory_space<vmem>>, vector<14x16x32xbf16>
    %137 = vector.shape_cast %136 : vector<14x16x32xbf16> to vector<224x32xbf16>
    %c2_121 = arith.constant 2 : index
    %c1_122 = arith.constant 1 : index
    %c0_123 = arith.constant 0 : index
    %138 = vector.load %arg8[%c2_121, %c1_122, %c0_123] : memref<16x18x32xbf16, #tpu.memory_space<vmem>>, vector<14x16x32xbf16>
    %139 = vector.shape_cast %138 : vector<14x16x32xbf16> to vector<224x32xbf16>
    %c2_124 = arith.constant 2 : index
    %c2_125 = arith.constant 2 : index
    %c0_126 = arith.constant 0 : index
    %140 = vector.load %arg8[%c2_124, %c2_125, %c0_126] : memref<16x18x32xbf16, #tpu.memory_space<vmem>>, vector<14x16x32xbf16>
    %141 = vector.shape_cast %140 : vector<14x16x32xbf16> to vector<224x32xbf16>
    %142 = tpu.concatenate %125, %127, %129, %131, %133, %135, %137, %139, %141 in 1 : vector<224x32xbf16>, vector<224x32xbf16>, vector<224x32xbf16>, vector<224x32xbf16>, vector<224x32xbf16>, vector<224x32xbf16>, vector<224x32xbf16>, vector<224x32xbf16>, vector<224x32xbf16> -> vector<224x288xbf16>
    %c2_127 = arith.constant 2 : index
    %c0_128 = arith.constant 0 : index
    %c0_129 = arith.constant 0 : index
    %143 = vector.load %arg5[%c2_127, %c0_128, %c0_129] : memref<3x288x32xbf16, #tpu.memory_space<vmem>>, vector<1x288x32xbf16>
    %144 = vector.shape_cast %143 : vector<1x288x32xbf16> to vector<288x32xbf16>
    %cst_130 = arith.constant dense<0.000000e+00> : vector<224x32xf32>
    %145 = tpu.matmul %142, %144, %cst_130 {dimension_numbers = #tpu.dot_dimension_numbers<[1], [0], [0], [1], [0, 0, 1, 1], [], []>} : vector<224x288xbf16>, vector<288x32xbf16>, vector<224x32xf32> -> vector<224x32xf32>
    %c2_131 = arith.constant 2 : index
    %c0_132 = arith.constant 0 : index
    %146 = vector.load %arg6[%c2_131, %c0_132] : memref<3x32xf32, #tpu.memory_space<vmem>>, vector<1x32xf32>
    %147 = vector.broadcast %146 : vector<1x32xf32> to vector<224x32xf32>
    %148 = arith.addf %145, %147 : vector<224x32xf32>
    %cst_133 = arith.constant 0.000000e+00 : f32
    %149 = vector.broadcast %cst_133 : f32 to vector<224x32xf32>
    %150 = arith.subf %149, %148 : vector<224x32xf32>
    %151 = math.exp %150 : vector<224x32xf32>
    %cst_134 = arith.constant 1.000000e+00 : f32
    %152 = vector.broadcast %cst_134 : f32 to vector<224x32xf32>
    %153 = arith.addf %152, %151 : vector<224x32xf32>
    %154 = tpu.reciprocal %153 {approx = true} : vector<224x32xf32> -> vector<224x32xf32>
    %155 = arith.mulf %148, %154 : vector<224x32xf32>
    %156 = vector.shape_cast %155 : vector<224x32xf32> to vector<14x16x32xf32>
    %157 = vector.extract_strided_slice %156 {offsets = [3, 0, 0], sizes = [8, 16, 32], strides = [1, 1, 1]} : vector<14x16x32xf32> to vector<8x16x32xf32>
    %158 = vector.shape_cast %157 : vector<8x16x32xf32> to vector<8x512xf32>
    %c0_135 = arith.constant 0 : index
    %c0_136 = arith.constant 0 : index
    %c0_137 = arith.constant 0 : index
    %c0_138 = arith.constant 0 : index
    %159 = vector.load %arg7[%c0_135, %c0_136, %c0_137, %c0_138] : memref<1x1x8x512xf32, #tpu.memory_space<vmem>>, vector<1x1x8x512xf32>
    %160 = vector.shape_cast %159 : vector<1x1x8x512xf32> to vector<8x512xf32>
    %161 = arith.addf %160, %158 : vector<8x512xf32>
    %c0_139 = arith.constant 0 : index
    %c0_140 = arith.constant 0 : index
    %c0_141 = arith.constant 0 : index
    %c0_142 = arith.constant 0 : index
    %162 = vector.load %arg7[%c0_139, %c0_140, %c0_141, %c0_142] : memref<1x1x8x512xf32, #tpu.memory_space<vmem>>, vector<1x1x8x512xf32>
    %163 = vector.shape_cast %162 : vector<1x1x8x512xf32> to vector<8x512xf32>
    %164 = vector.shape_cast %161 : vector<8x512xf32> to vector<1x1x8x512xf32>
    tpu.vector_store %arg7[%c0_139, %c0_140, %c0_141, %c0_142], %164 {strides = array<i32>} : memref<1x1x8x512xf32, #tpu.memory_space<vmem>>, vector<1x1x8x512xf32>,
    return
  }
  func.func @transform_0(%arg0: i32, %arg1: i32) -> (i32, i32, i32, i32) {
    %c0_i32 = arith.constant 0 : i32
    %c0_i32_0 = arith.constant 0 : i32
    %c0_i32_1 = arith.constant 0 : i32
    return %arg0, %arg1, %c0_i32, %c0_i32_0 : i32, i32, i32, i32
  }
  func.func @transform_1(%arg0: i32, %arg1: i32) -> (i32, i32) {
    %c0_i32 = arith.constant 0 : i32
    %c0_i32_0 = arith.constant 0 : i32
    %c0_i32_1 = arith.constant 0 : i32
    return %c0_i32, %c0_i32_0 : i32, i32
  }
  func.func @transform_2(%arg0: i32, %arg1: i32) -> (i32, i32) {
    %c0_i32 = arith.constant 0 : i32
    %c0_i32_0 = arith.constant 0 : i32
    %c0_i32_1 = arith.constant 0 : i32
    return %c0_i32, %c0_i32_0 : i32, i32
  }
  func.func @transform_3(%arg0: i32, %arg1: i32) -> (i32, i32, i32) {
    %c0_i32 = arith.constant 0 : i32
    %c0_i32_0 = arith.constant 0 : i32
    %c0_i32_1 = arith.constant 0 : i32
    %c0_i32_2 = arith.constant 0 : i32
    return %c0_i32, %c0_i32_0, %c0_i32_1 : i32, i32, i32
  }
  func.func @transform_4(%arg0: i32, %arg1: i32) -> (i32, i32) {
    %c0_i32 = arith.constant 0 : i32
    %c0_i32_0 = arith.constant 0 : i32
    %c0_i32_1 = arith.constant 0 : i32
    return %c0_i32, %c0_i32_0 : i32, i32
  }
  func.func @transform_5(%arg0: i32, %arg1: i32) -> (i32, i32, i32, i32) {
    %c0_i32 = arith.constant 0 : i32
    %c0_i32_0 = arith.constant 0 : i32
    %c0_i32_1 = arith.constant 0 : i32
    return %arg0, %arg1, %c0_i32, %c0_i32_0 : i32, i32, i32, i32
  }
}

</mosaic_0001>

<bundles_post_ra>
// kernel: tpu_custom_call.1
= control target key start
LH: loop header
LB: loop body
LE: loop exit
PB: predicated region body
PF: predicated region fallthrough
CT: control target
= control target key end

     0   :  { %10 = vsyncpa [#allocation4], 0  ;;  %s20195_s0 = inlined_call_operand.vmem [shape: bf16[2,2,224,4], index: 0, kind: input, shape index: {}]   ;;  %s20196_s1 = inlined_call_operand.vmem [shape: bf16[4,64], index: 1, kind: input, shape index: {}]   ;;  %s20197_s2 = inlined_call_operand.vmem [shape: f32[1,64], index: 2, kind: input, shape index: {}]   ;;  %s20198_s3 = inlined_call_operand.vmem [shape: bf16[3,288,32], index: 3, kind: input, shape index: {}]   ;;  %s20199_s4 = inlined_call_operand.vmem [shape: f32[3,32], index: 4, kind: input, shape index: {}]   ;;  %s20200_s5 = inlined_call_operand.hbm [shape: f32[2,2,8,512], index: 5, kind: output, shape index: {}]  }
   0x1   :  { %12 = vsyncpa [#allocation4 + $0x1], 0  ;;  %s14263_s18 = smov 0   ;;  %s14265_s19 = smov 0  }
   0x2   :  { %s14267_s20 = smov 0   ;;  %s14269_s21 = smov 0  }
   0x3   :  { %s14271_s22 = smov 0   ;;  %s14273_s23 = smov 0  }
   0x4   :  { %s14275_s24 = smov 0   ;;  %s14277_s25 = smov 0  }
   0x5 LB: > { %s11923_s26 = sadd.s32 4294967295, %s14224_s25   ;;  %s11924_s27 = sadd.s32 4294967294, %s14224_s25   ;;  %s14224_s25 = sphi %s14277_s25, %s18_s25   ;;  %s14220_s24 = sphi %s14275_s24, %s20802_s24   ;;  %s14216_s23 = sphi %s14273_s23, %s20801_s23   ;;  %s14212_s22 = sphi %s14271_s22, %s20800_s22   ;;  %s14208_s21 = sphi %s14269_s21, %s20799_s21   ;;  %s14204_s20 = sphi %s14267_s20, %s20798_s20   ;;  %s14200_s19 = sphi %s14265_s19, %s20797_s19   ;;  %s14196_s18 = sphi %s14263_s18, %s20796_s18  }
   0x6   : > { %s27_s28 = sadd.s32 1, %s14216_s23  ;;  %s30_s29 = sadd.s32 1, %s14220_s24 }
   0x7   : > { %p28_p0 = scmp.ge.s32.totalorder %s27_s28, 2  ;;  %p161_p1 = scmp.ne.s32.totalorder %s14204_s20, %s14200_s19 }
   0x8   : > { %p162_p2 = scmp.eq.s32.totalorder %s11923_s26, 3  ;;  %p167_p5 = scmp.ne.s32.totalorder %s14200_s19, %s14196_s18 }
   0x9   : > { %s20804_s28 = smov (%p28_p0, %s27_s28), 0  ;;  %s20806_s29 = smov (!%p28_p0, %s30_s29), %s14220_s24 }
   0xa   : > { %s147_s30 = ssub.s32 %s14216_s23, %s20804_s28  ;;  %p14314_p3 = por %p162_p2, %p161_p1 }
   0xb   : > { %p32_p4 = scmp.ge.s32.totalorder %s20806_s29, 2  ;;  %p168_p6 = scmp.eq.s32.totalorder %s11924_s27, 3 }
   0xc   : > { %p11927_p7 = scmp.ge.s32.totalorder %s14224_s25, 1  ;;  %p210_p9 = scmp.lt.s32.totalorder %s14224_s25, 5 }
   0xd   : > { %s20808_s29 = smov (%p32_p4, %s20806_s29), 0  ;;  %p14323_p8 = por %p168_p6, %p167_p5 }
   0xe   : > { %s146_s8 = ssub.s32 %s14220_s24, %s20808_s29  ;;  %s151_s9 = sadd.s32 1, %s14204_s20 }
   0xf   : > { %s148_s10 = sor.u32 %s147_s30, %s146_s8  ;;  %p211_p10 = pnand %p11927_p7, %p210_p9 }
  0x10   : > { %p149_p11 = scmp.eq.s32.totalorder %s148_s10, 0 }
  0x11   : > { %214 = sbr.rel (%p211_p10) target bundleno = 2145 (0x861), region = 40 }
  0x12   : > { %s14332_s11 = scalar_select %p149_p11, %s14204_s20, %s151_s9  }
  0x18   : > { %v280_v0 = vld [vmem:[%s20196_s1] sm:$0x3]  ;;  %vm401_vm0 = vcmask 1041408   ;;  %p242_p12 = scmp.lt.s32.totalorder %s14212_s22, 1  ;;  %p244_p13 = scmp.lt.s32.totalorder %s14208_s21, 1  ;;  %vm358_vm1 = vcmask 31744  }
  0x19   : > { %13273 = vmatprep.subr.msk.bf16.mxu0 %vm401_vm0, %v280_v0  ;;  %v403_v1 = vsel %vm401_vm0, %v280_v0, 0  ;;  %vm20202_vm2 = vcmask 257024   ;;  %vm20211_vm3 = vcmask 253952   ;;  %v14226_v16 = vmov 0   ;;  %s14227_s10 = smov 64   ;;  %s14228_s12 = smov 32  }
  0x1a   : > { %13132 = vmatpush3.bf16.msra.mxu0 %v403_v1  ;;  %s243_s14 = scalar_select %p242_p12, %s14212_s22, 1  ;;  %1180 = vst.msk [vmem:[#allocation2] sm:$0xf] %vm20202_vm2, %v14226_v16  ;;  %1181 = vst.msk [vmem:[#allocation2 + $0x4] sm:$0xf] %vm20202_vm2, %v14226_v16  ;;  %vm2049_vm4 = vcmask 1042432  }
  0x1b   : > { %s245_s15 = scalar_select %p244_p13, %s14208_s21, 1  ;;  %1183 = vst.msk [vmem:[#allocation2 + $0x8] sm:$0x1] %vm20211_vm3, %v14226_v16  ;;  %1187 = vst.msk [vmem:[#allocation2 + $0xbc] sm:$0x1] %vm20211_vm3, %v14226_v16  ;;  %vm2050_vm5 = vcmask 1046532  }
  0x1c   : > { %s13275_s16 = smul.u32 56, %s243_s14  ;;  %1185 = vst.msk [vmem:[#allocation2 + $0xb4] sm:$0xf] %vm20202_vm2, %v14226_v16  ;;  %1186 = vst.msk [vmem:[#allocation2 + $0xb8] sm:$0xf] %vm20202_vm2, %v14226_v16  ;;  %vm1384_vm0 = vcmask 1040384  }
  0x1d   : > { %s13274_s17 = smul.u32 28, %s245_s15  ;;  %vm14364_vm6 = vmor %vm2049_vm4, %vm2050_vm5  ;;  %vm1654_vm7 = vsmask.f32 3328  ;;  %vm1655_vm8 = vsmask.f32 7440  ;;  %s11959_s15 = sshll.u32 %s14208_s21, 3 }
  0x1e   : > { %vm14373_vm9 = vmor %vm1654_vm7, %vm1655_vm8  ;;  %v14385_v47 = vld [vmem:[%s20197_s2] ss:$0 sm:$0xff]  ;;  %s12763_s13 = sshll.u32 %s14208_s21, 2  ;;  %s12764_s14 = sshll.u32 %s14212_s22, 3 }
  0x1f   : > { %s248_s26 = sadd.s32 %s13275_s16, %s13274_s17  ;;  %s11960_s16 = sadd.s32 4294967293, %s11959_s15 }
  0x20   : > { %s11929_s27 = sshll.u32 %s248_s26, 2  ;;  %s14229_s17 = smov 96  }
  0x21   : > { %s250_s9 = scalar_lea.vmem %s20195_s0, %s11929_s27  ;;  %v1613_v17 = vld [vmem:[#allocation2 + $0x4] sm:$0xf]  ;;  %v1612_v19 = vld [vmem:[#allocation2] sm:$0xf]  ;;  %s11837_s15 = sadd.s32 %s12764_s14, %s12763_s13 }
  0x22   : > { %v13353_v2 = vld [vmem:[%s250_s9] sm:$0xff]   ;;  %v13354_v3 = vld [vmem:[%s250_s9 + $0x8] sm:$0xff]   ;;  %v13355_v4 = vld [vmem:[%s250_s9 + $0x10] sm:$0xff]   ;;  %v2054_v18 = vrot.slane %v1613_v17, 5  ;;  %v1658_v22 = vshrl.u32 %v1612_v19, 16  ;;  %v1661_v23 = vshll.u32 %v1612_v19, 16 }
  0x23   : > { %13133 = vmatprep.mubr.msk.bf16.mxu0 %vm358_vm1, %v13353_v2  ;;  %v13356_v5 = vld [vmem:[%s250_s9 + $0x18] sm:$0xff]   ;;  %v13357_v6 = vld [vmem:[%s250_s9 + $0x20] sm:$0xff]   ;;  %v13358_v7 = vld [vmem:[%s250_s9 + $0x28] sm:$0xff]   ;;  %v1667_v31 = vshll.u32 %v1613_v17, 16  ;;  %v1671_v32 = vshrl.u32 %v1613_v17, 16  ;;  %s12765_s21 = sshll.u32 %s11837_s15, 7 }
  0x24   : > { %13134 = vmatmul.mubr.msk.bf16.vlgmr.msra.gmra.mrb[0].mxu0 %vm358_vm1, %v13354_v3  ;;  %v13359_v8 = vld [vmem:[%s250_s9 + $0x30] sm:$0xff]   ;;  %v13360_v9 = vld [vmem:[%s250_s9 + $0x38] sm:$0xff]   ;;  %v13361_v10 = vld [vmem:[%s250_s9 + $0x40] sm:$0xff]   ;;  %v2056_v25 = vrot.slane %v2054_v18, 4  ;;  %v1660_v28 = vrot.slane %v1658_v22, 4  ;;  %v1663_v29 = vrot.slane %v1661_v23, 5  ;;  %s20138_s27 = scalar_lea.hbm %s20200_s5, %s12765_s21 }
  0x25   : > { %13137 = vmatprep.mubr.msk.bf16.mxu0 %vm358_vm1, %v13355_v4  ;;  %v13362_v11 = vld [vmem:[%s250_s9 + $0x48] sm:$0xff]   ;;  %v13363_v12 = vld [vmem:[%s250_s9 + $0x50] sm:$0xff]   ;;  %v13364_v13 = vld [vmem:[%s250_s9 + $0x58] sm:$0xff]   ;;  %v1669_v36 = vrot.slane %v1667_v31, 5  ;;  %v1673_v37 = vrot.slane %v1671_v32, 4 }
  0x26   : > { %v13365_v14 = vld [vmem:[%s250_s9 + $0x60] sm:$0xff]   ;;  %v13366_v15 = vld [vmem:[%s250_s9 + $0x68] sm:$0xff]   ;;  %v1664_v34 = vor.u32 %v1663_v29, %v1660_v28  ;;  %s14232_s9 = smov [#allocation3]  }
  0x27   : > { %v1640_v20 = vld [vmem:[#allocation2 + $0x8] sm:$0x1]  ;;  %v1993_v21 = vld [vmem:[#allocation2] sm:$0xe]  ;;  %v1674_v41 = vor.u32 %v1673_v37, %v1669_v36 }
  0x28   : > { %v12003_v24 = vrot.slane %v1993_v21, 9  ;;  %v2057_v27 = vrot.slane %v1640_v20, 5  ;;  %v1677_v38 = vshll.u32 %v1640_v20, 16  ;;  %v1665_v39 = vrot.slane %v1664_v34, 4 }
  0x29   : > { %v1675_v44 = vrot.slane %v1674_v41, 4 }
  0x2a   : > { %v2055_v30 = vsel %vm14364_vm6, %v12003_v24, %v2054_v18  ;;  %v2058_v33 = vsel %vm14364_vm6, %v2056_v25, %v2057_v27  ;;  %v1679_v42 = vrot.slane %v1677_v38, 5  ;;  %v1670_v43 = vsel %vm14373_vm9, %v1665_v39, %v1669_v36 }
  0x2b   : > { %v12073_v35 = vcombine.low %v2055_v30, %v2058_v33 }
  0x2c   : > { %13138 = vmatmul.mubr.msk.bf16.gmra.mrb[4].mxu0 %vm358_vm1, %v13356_v5  ;;  %v1680_v45 = vsel %vm14373_vm9, %v1675_v44, %v1679_v42 }
  0x2d   : > { %13141 = vmatprep.mubr.msk.bf16.mxu0 %vm358_vm1, %v13357_v6  ;;  %3383 = vrot.lane.b32.xlu1 %v12073_v35, %s14227_s10  ;;  %v12059_v46 = vcombine.low %v1670_v43, %v1680_v45 }
  0x2f   : > { %3313 = vrot.lane.b32.xlu0 %v12059_v46, %s14228_s12 }
  0x34   : > { %13142 = vmatmul.mubr.msk.bf16.gmra.mrb[8].mxu0 %vm358_vm1, %v13358_v7 }
  0x35   : > { %13145 = vmatprep.mubr.msk.bf16.mxu0 %vm358_vm1, %v13359_v8  ;;  %v14414_v8 = vstv %s11960_s16 }
  0x36   : > { %vm1137_vm12 = vcmp.ge.s32.totalorder %v14414_v8, 0  ;;  %v14444_v39 = vadd.s32 3, %v14414_v8  ;;  %vm1151_vm13 = vcmp.lt.s32.totalorder %v14414_v8, 16  ;;  %v14449_v43 = vadd.s32 2, %v14414_v8 }
  0x37   : > { %v14452_v45 = vadd.s32 5, %v14414_v8  ;;  %v14455_v46 = vadd.s32 4, %v14414_v8  ;;  %vm14502_vm8 = vmand %vm1137_vm12, %vm1151_vm13 }
  0x38   : > { %vm1140_vm14 = vcmp.ge.s32.totalorder %v14444_v39, 0  ;;  %vm1154_vm15 = vcmp.lt.s32.totalorder %v14444_v39, 16  ;;  %vm1139_vm4 = vcmp.ge.s32.totalorder %v14449_v43, 0  ;;  %vm1153_vm5 = vcmp.lt.s32.totalorder %v14449_v43, 16 }
  0x39   : > { %vm14541_vm12 = vmand %vm1140_vm14, %vm1154_vm15  ;;  %vm1141_vm13 = vcmp.ge.s32.totalorder %v14455_v46, 0  ;;  %vm20320_vm15 = vcmp.lt.s32.totalorder %v14452_v45, 16 }
  0x3a   : > { %vm14560_vm14 = vmand %vm1139_vm4, %vm1153_vm5 }
  0x3c   : > { %13146 = vmatmul.mubr.msk.bf16.gmra.mrb[12].mxu0 %vm358_vm1, %v13360_v9 }
  0x3d   : > { %13149 = vmatprep.mubr.msk.bf16.mxu0 %vm358_vm1, %v13361_v10 }
  0x44   : > { %13150 = vmatmul.mubr.msk.bf16.gmra.mrb[16].mxu0 %vm358_vm1, %v13362_v11 }
  0x45   : > { %13153 = vmatprep.mubr.msk.bf16.mxu0 %vm358_vm1, %v13363_v12 }
  0x4c   : > { %13154 = vmatmul.mubr.msk.bf16.gmra.mrb[20].mxu0 %vm358_vm1, %v13364_v13 }
  0x4d   : > { %13157 = vmatprep.mubr.msk.bf16.mxu0 %vm358_vm1, %v13365_v14 }
  0x54   : > { %13158 = vmatmul.mubr.msk.bf16.gmra.mrb[24].mxu0 %vm358_vm1, %v13366_v15  ;;  %v14423_v15 = vadd.s32 1, %v14414_v8  ;;  %vm1385_vm1 = vsmask.f32 256 }
  0x56   : > { %vm1138_vm10 = vcmp.ge.s32.totalorder %v14423_v15, 0  ;;  %vm1152_vm11 = vcmp.lt.s32.totalorder %v14423_v15, 16  ;;  %v20306_v15 = vmov 0 }
  0x57   : > { %vm14489_vm7 = vmand %vm1138_vm10, %vm1152_vm11  ;;  %v20307_v15 = vsel %vm14502_vm8, 4294967295, %v20306_v15  ;;  %vm1155_vm10 = vcmp.lt.s32.totalorder %v14455_v46, 16 }
  0x58   : > { %20308 = vst [vmem:[#allocation7_spill] sm:$0xff] %v20307_v15  ;;  %vm14549_vm11 = vmand %vm1384_vm0, %vm1385_vm1  ;;  %vm20321_vm0 = vcmp.ge.s32.totalorder %v14452_v45, 0  ;;  %v20326_v45 = vmov 0 }
  0x59   : > { %vm14605_vm1 = vmand %vm20321_vm0, %vm20320_vm15 }
  0x5a   : > { %vm14618_vm4 = vmand %vm1141_vm13, %vm1155_vm10 }
  0x5b   : > { %v20327_v45 = vsel %vm14618_vm4, 4294967295, %v20326_v45 }
  0x5c   : > { %20328 = vst [vmem:[#allocation15_spill] sm:$0xff] %v20327_v45 }
  0xf7   : > { %v13135_v48 = vpop.f32.mrb[0].mxu0 }
  0xf8   : > { %v14388_v49 = vadd.f32 %v13135_v48, %v14385_v47  ;;  %v439_v50 = vpop.f32.mrb[1].mxu0 }
  0xf9   : > { %v14391_v51 = vadd.f32 %v14385_v47, %v439_v50  ;;  %v13136_v52 = vpop.f32.mrb[2].mxu0 }
  0xfa   : > { %v552_v53 = vsub.f32 0.0, %v14388_v49  ;;  %v14395_v54 = vadd.f32 %v13136_v52, %v14385_v47  ;;  %v442_v55 = vpop.f32.mrb[3].mxu0 }
  0xfb   : > { %v550_v56 = vsub.f32 0.0, %v14391_v51  ;;  %v14399_v57 = vadd.f32 %v14385_v47, %v442_v55  ;;  %v14461_v55 = vadd.s32 7, %v14414_v8 }
  0xfc   : > { %v582_v58 = vmul.f32 1.442695, %v552_v53  ;;  %v553_v59 = vsub.f32 0.0, %v14395_v54 }
  0xfd   : > { %v578_v60 = vmul.f32 1.442695, %v550_v56  ;;  %v551_v61 = vsub.f32 0.0, %v14399_v57  ;;  %vm1144_vm5 = vcmp.ge.s32.totalorder %v14461_v55, 0  ;;  %vm1158_vm15 = vcmp.lt.s32.totalorder %v14461_v55, 16 }
  0xfe   : > { %13526 = vpow2.f32 %v582_v58  ;;  %v584_v62 = vmul.f32 1.442695, %v553_v59  ;;  %v14464_v58 = vadd.s32 6, %v14414_v8  ;;  %vm14692_vm0 = vmand %vm1144_vm5, %vm1158_vm15 }
  0xff   : > { %13528 = vpow2.f32 %v578_v60  ;;  %v580_v63 = vmul.f32 1.442695, %v551_v61  ;;  %v13139_v0 = vpop.f32.mrb[4].mxu0 }
 0x100   : > { %13530 = vpow2.f32 %v584_v62  ;;  %v14405_v1 = vadd.f32 %v13139_v0, %v14385_v47  ;;  %v455_v2 = vpop.f32.mrb[5].mxu0  ;;  %vm1157_vm13 = vcmp.lt.s32.totalorder %v14464_v58, 16  ;;  %vm20336_vm5 = vcmp.ge.s32.totalorder %v14464_v58, 0 }
 0x101   : > { %13532 = vpow2.f32 %v580_v63  ;;  %v14408_v3 = vadd.f32 %v14385_v47, %v455_v2  ;;  %v13140_v4 = vpop.f32.mrb[6].mxu0  ;;  %v14472_v63 = vadd.s32 9, %v14414_v8  ;;  %vm14719_vm15 = vmand %vm20336_vm5, %vm1157_vm13 }
 0x102   : > { %v556_v5 = vsub.f32 0.0, %v14405_v1  ;;  %v14412_v6 = vadd.f32 %v13140_v4, %v14385_v47  ;;  %v458_v7 = vpop.f32.mrb[7].mxu0 }
 0x103   : > { %v554_v9 = vsub.f32 0.0, %v14408_v3  ;;  %v14418_v10 = vadd.f32 %v14385_v47, %v458_v7  ;;  %vm1160_vm10 = vcmp.lt.s32.totalorder %v14472_v63, 16  ;;  %vm20343_vm13 = vcmp.ge.s32.totalorder %v14472_v63, 0 }
 0x104   : > { %v590_v11 = vmul.f32 1.442695, %v556_v5  ;;  %v557_v12 = vsub.f32 0.0, %v14412_v6  ;;  %vm14754_vm5 = vmand %vm20343_vm13, %vm1160_vm10  ;;  %vm20348_vm13 = vcmask 257024  }
 0x105   : > { %v586_v13 = vmul.f32 1.442695, %v554_v9  ;;  %v555_v14 = vsub.f32 0.0, %v14418_v10 }
 0x106   : > { %13534 = vpow2.f32 %v590_v11  ;;  %v592_v16 = vmul.f32 1.442695, %v557_v12 }
 0x107   : > { %13536 = vpow2.f32 %v586_v13  ;;  %v588_v17 = vmul.f32 1.442695, %v555_v14  ;;  %v13143_v18 = vpop.f32.mrb[8].mxu0 }
 0x108   : > { %v13527_v19 = vpop.eup %13526  ;;  %13538 = vpow2.f32 %v592_v16  ;;  %v14426_v20 = vadd.f32 %v13143_v18, %v14385_v47  ;;  %v471_v21 = vpop.f32.mrb[9].mxu0 }
 0x109   : > { %v13529_v22 = vpop.eup %13528  ;;  %v636_v23 = vadd.f32 1.0, %v13527_v19  ;;  %13540 = vpow2.f32 %v588_v17  ;;  %v14429_v24 = vadd.f32 %v14385_v47, %v471_v21  ;;  %v13144_v25 = vpop.f32.mrb[10].mxu0  ;;  %v20303_v19 = vmov 0 }
 0x10a   : > { %v13531_v27 = vpop.eup %13530  ;;  %v634_v28 = vadd.f32 1.0, %v13529_v22  ;;  %v560_v29 = vsub.f32 0.0, %v14426_v20  ;;  %v14435_v30 = vadd.f32 %v13144_v25, %v14385_v47  ;;  %v474_v31 = vpop.f32.mrb[11].mxu0  ;;  %v20304_v19 = vsel %vm14489_vm7, 4294967295, %v20303_v19 }
 0x10b   : > { %v13533_v32 = vpop.eup %13532  ;;  %13542 = vrcp.f32 %v636_v23  ;;  %v637_v33 = vadd.f32 1.0, %v13531_v27  ;;  %v558_v34 = vsub.f32 0.0, %v14429_v24  ;;  %v14440_v35 = vadd.f32 %v14385_v47, %v474_v31  ;;  %20305 = vst [vmem:[#allocation6_spill] sm:$0xff] %v20304_v19 }
 0x10c   : > { %13544 = vrcp.f32 %v634_v28  ;;  %v635_v36 = vadd.f32 1.0, %v13533_v32  ;;  %v598_v37 = vmul.f32 1.442695, %v560_v29  ;;  %v561_v38 = vsub.f32 0.0, %v14435_v30 }
 0x10d   : > { %13546 = vrcp.f32 %v637_v33  ;;  %v594_v41 = vmul.f32 1.442695, %v558_v34  ;;  %v559_v42 = vsub.f32 0.0, %v14440_v35  ;;  %v14495_v23 = vadd.s32 8, %v14414_v8 }
 0x10e   : > { %13548 = vrcp.f32 %v635_v36  ;;  %v600_v44 = vmul.f32 1.442695, %v561_v38  ;;  %v14507_v29 = vadd.s32 11, %v14414_v8 }
 0x10f   : > { %13550 = vpow2.f32 %v598_v37  ;;  %v596_v48 = vmul.f32 1.442695, %v559_v42  ;;  %v13147_v50 = vpop.f32.mrb[12].mxu0  ;;  %vm1159_vm10 = vcmp.lt.s32.totalorder %v14495_v23, 16 }
 0x110   : > { %v13535_v52 = vpop.eup %13534  ;;  %13552 = vpow2.f32 %v594_v41  ;;  %v14458_v53 = vadd.f32 %v13147_v50, %v14385_v47  ;;  %v487_v56 = vpop.f32.mrb[13].mxu0 }
 0x111   : > { %v13537_v59 = vpop.eup %13536  ;;  %v640_v60 = vadd.f32 1.0, %v13535_v52  ;;  %13554 = vpow2.f32 %v600_v44  ;;  %v14469_v61 = vadd.f32 %v14385_v47, %v487_v56  ;;  %v13148_v62 = vpop.f32.mrb[14].mxu0 }
 0x112   : > { %v13539_v0 = vpop.eup %13538  ;;  %v638_v2 = vadd.f32 1.0, %v13537_v59  ;;  %13556 = vpow2.f32 %v596_v48  ;;  %v564_v4 = vsub.f32 0.0, %v14458_v53  ;;  %v14476_v5 = vadd.f32 %v13148_v62, %v14385_v47  ;;  %v490_v7 = vpop.f32.mrb[15].mxu0 }
 0x113   : > { %v13541_v9 = vpop.eup %13540  ;;  %13558 = vrcp.f32 %v640_v60  ;;  %v641_v11 = vadd.f32 1.0, %v13539_v0  ;;  %v562_v12 = vsub.f32 0.0, %v14469_v61  ;;  %v14482_v13 = vadd.f32 %v14385_v47, %v490_v7 }
 0x114   : > { %13560 = vrcp.f32 %v638_v2  ;;  %v639_v14 = vadd.f32 1.0, %v13541_v9  ;;  %v606_v16 = vmul.f32 1.442695, %v564_v4  ;;  %v565_v17 = vsub.f32 0.0, %v14476_v5 }
 0x115   : > { %v13543_v18 = vpop.eup %13542  ;;  %13562 = vrcp.f32 %v641_v11  ;;  %v602_v21 = vmul.f32 1.442695, %v562_v12  ;;  %v563_v22 = vsub.f32 0.0, %v14482_v13  ;;  %v20309_v12 = vmov 0 }
 0x116   : > { %v13545_v25 = vpop.eup %13544  ;;  %v692_v27 = vmul.f32 %v13543_v18, %v14388_v49  ;;  %13564 = vrcp.f32 %v639_v14  ;;  %v608_v28 = vmul.f32 1.442695, %v565_v17  ;;  %v14511_v49 = vadd.s32 10, %v14414_v8 }
 0x117   : > { %v13547_v31 = vpop.eup %13546  ;;  %v690_v32 = vmul.f32 %v13545_v25, %v14391_v51  ;;  %13566 = vpow2.f32 %v606_v16  ;;  %v604_v33 = vmul.f32 1.442695, %v563_v22  ;;  %v13151_v34 = vpop.f32.mrb[16].mxu0  ;;  %v20310_v12 = vsel %vm14541_vm12, 4294967295, %v20309_v12 }
 0x118   : > { %v13549_v36 = vpop.eup %13548  ;;  %v1218_v37 = vsel %vm14489_vm7, %v692_v27, 0.0  ;;  %v693_v38 = vmul.f32 %v13547_v31, %v14395_v54  ;;  %13568 = vpow2.f32 %v602_v21  ;;  %v14517_v41 = vadd.f32 %v13151_v34, %v14385_v47  ;;  %v503_v42 = vpop.f32.mrb[17].mxu0  ;;  %20311 = vst [vmem:[#allocation8_spill] sm:$0xff] %v20310_v12 }
 0x119   : > { %v13551_v44 = vpop.eup %13550  ;;  %v1216_v51 = vsel %vm14502_vm8, %v690_v32, 0.0  ;;  %v691_v48 = vmul.f32 %v13549_v36, %v14399_v57  ;;  %13570 = vpow2.f32 %v608_v28  ;;  %v14523_v50 = vadd.f32 %v14385_v47, %v503_v42  ;;  %v14525_v52 = vpop.f32.mrb[18].mxu0 }
 0x11a   : > { %v13553_v56 = vpop.eup %13552  ;;  %v1219_v54 = vsel %vm14489_vm7, %v693_v38, 0.0  ;;  %v644_v59 = vadd.f32 1.0, %v13551_v44  ;;  %13572 = vpow2.f32 %v604_v33  ;;  %v568_v60 = vsub.f32 0.0, %v14517_v41  ;;  %v14530_v62 = vpop.f32.mrb[19].mxu0 }
 0x11b   : > { %v13555_v0 = vpop.eup %13554  ;;  %v1245_v2 = vpack.c.bf16 %v1219_v54, %v1218_v37  ;;  %v1217_v57 = vsel %vm14502_vm8, %v691_v48, 0.0  ;;  %v642_v4 = vadd.f32 1.0, %v13553_v56  ;;  %v566_v7 = vsub.f32 0.0, %v14523_v50 }
 0x11c   : > { %v13557_v9 = vpop.eup %13556  ;;  %v1244_v11 = vpack.c.bf16 %v1217_v57, %v1216_v51  ;;  %13574 = vrcp.f32 %v644_v59  ;;  %v645_v14 = vadd.f32 1.0, %v13555_v0  ;;  %v614_v16 = vmul.f32 1.442695, %v568_v60 }
 0x11d   : > { %v13559_v17 = vpop.eup %13558  ;;  %v1266_v18 = vshrl.u32 %v1245_v2, 16  ;;  %v1269_v21 = vshll.u32 %v1245_v2, 16  ;;  %v20312_v22 = vmov 0  ;;  %13576 = vrcp.f32 %v642_v4 }
 0x11e   : > { %v20313_v22 = vsel %vm14549_vm11, 4294967295, %v20312_v22  ;;  %v643_v39 = vadd.f32 1.0, %v13557_v9  ;;  %v13561_v25 = vpop.eup %13560  ;;  %v1259_v27 = vshrl.u32 %v1244_v11, 16  ;;  %v1262_v28 = vshll.u32 %v1244_v11, 16 }
 0x11f   : > { %20314 = vst [vmem:[#allocation9_spill] sm:$0xff] %v20313_v22  ;;  %v14554_v31 = vmul.f32 %v13559_v17, %v14405_v1  ;;  %v20316_v32 = vmov 0  ;;  %13578 = vrcp.f32 %v645_v14  ;;  %v13563_v33 = vpop.eup %13562  ;;  %v1268_v34 = vrot.slane %v1266_v18, 7  ;;  %v14567_v38 = vpop.f32.mrb[20].mxu0 }
 0x120   : > { %v20317_v32 = vsel %vm14560_vm14, 4294967295, %v20316_v32  ;;  %v694_v36 = vmul.f32 %v13561_v25, %v14408_v3  ;;  %13580 = vrcp.f32 %v643_v39  ;;  %v14565_v37 = vmul.f32 1.442695, %v566_v7  ;;  %v13565_v1 = vpop.eup %13564  ;;  %v14575_v51 = vpop.f32.mrb[21].mxu0 }
 0x121   : > { %20315 = vst [vmem:[#allocation10_spill] sm:$0xff] %v14554_v31  ;;  %20318 = vst [vmem:[#allocation11_spill] sm:$0xff] %v20317_v32  ;;  %v1261_v42 = vrot.slane %v1259_v27, 7  ;;  %v1222_v43 = vsel %vm14541_vm12, %v14554_v31, 0.0  ;;  %v14573_v44 = vmul.f32 %v13563_v33, %v14412_v6  ;;  %13582 = vpow2.f32 %v614_v16  ;;  %v13567_v48 = vpop.eup %13566  ;;  %v14582_v60 = vpop.f32.mrb[22].mxu0 }
 0x122   : > { %v1271_v56 = vor.u32 %v1269_v21, %v1268_v34  ;;  %v1402_v3 = vsel %vm14549_vm11, %v1268_v34, 0  ;;  %v1220_v54 = vsel %vm14560_vm14, %v694_v36, 0.0  ;;  %v695_v59 = vmul.f32 %v13565_v1, %v14418_v10  ;;  %v13569_v0 = vpop.eup %13568  ;;  %v14589_v7 = vpop.f32.mrb[23].mxu0 }
 0x123   : > { %20319 = vst [vmem:[#allocation12_spill] sm:$0xff] %v14573_v44  ;;  %v11966_v2 = vcombine.low %v1402_v3, %v1402_v3  ;;  %v1264_v57 = vor.u32 %v1262_v28, %v1261_v42  ;;  %v1401_v6 = vsel %vm14549_vm11, %v1261_v42, 0  ;;  %v1223_v4 = vsel %vm14541_vm12, %v14573_v44, 0.0  ;;  %v13571_v9 = vpop.eup %13570 }
 0x124   : > { %v1388_v11 = vsel %vm14549_vm11, 0, %v1271_v56  ;;  %v11963_v14 = vcombine.low %v1401_v6, %v1401_v6  ;;  %v1247_v10 = vpack.c.bf16 %v1223_v4, %v1222_v43  ;;  %v1221_v16 = vsel %vm14560_vm14, %v695_v59, 0.0  ;;  %v13573_v17 = vpop.eup %13572 }
 0x125   : > { %v11964_v18 = vcombine.low %v1388_v11, %v1388_v11  ;;  %v11965_v21 = vcombine.high %v1388_v11, %v1388_v11  ;;  %1575 = vst.msk [vmem:[#allocation2 + $0x20] sm:$0x1] %vm20211_vm3, %v11966_v2  ;;  %v1387_v39 = vsel %vm14549_vm11, 0, %v1264_v57  ;;  %v1246_v25 = vpack.c.bf16 %v1221_v16, %v1220_v54 }
 0x126   : > { %v11961_v27 = vcombine.low %v1387_v39, %v1387_v39  ;;  %v11962_v28 = vcombine.high %v1387_v39, %v1387_v39  ;;  %1572 = vst.msk [vmem:[#allocation2 + $0x14] sm:$0x1] %vm20211_vm3, %v11963_v14  ;;  %v1280_v33 = vshrl.u32 %v1247_v10, 16  ;;  %v1283_v34 = vshll.u32 %v1247_v10, 16  ;;  %v13575_v36 = vpop.eup %13574 }
 0x127   : > { %1573 = vst.msk [vmem:[#allocation2 + $0x18] sm:$0xf] %vm20202_vm2, %v11964_v18  ;;  %1574 = vst.msk [vmem:[#allocation2 + $0x1c] sm:$0xf] %vm20202_vm2, %v11965_v21  ;;  %v1273_v1 = vshrl.u32 %v1246_v25, 16  ;;  %v1276_v42 = vshll.u32 %v1246_v25, 16  ;;  %v13577_v54 = vpop.eup %13576  ;;  %v14612_v2 = vmul.f32 %v13575_v36, %v14426_v20  ;;  %v14631_v46 = vadd.f32 %v14525_v52, %v14385_v47 }
 0x128   : > { %v20322_v43 = vmov 0  ;;  %v648_v56 = vadd.f32 1.0, %v13567_v48  ;;  %v646_v3 = vadd.f32 1.0, %v13569_v0  ;;  %1570 = vst.msk [vmem:[#allocation2 + $0xc] sm:$0xf] %vm20202_vm2, %v11961_v27  ;;  %v1282_v59 = vrot.slane %v1280_v33, 7 }
 0x129   : > { %v20323_v43 = vsel %vm14605_vm1, 4294967295, %v20322_v43  ;;  %1571 = vst.msk [vmem:[#allocation2 + $0x10] sm:$0xf] %vm20202_vm2, %v11962_v28  ;;  %20325 = vst [vmem:[#allocation14_spill] sm:$0xff] %v14612_v2  ;;  %v649_v48 = vadd.f32 1.0, %v13571_v9  ;;  %v647_v0 = vadd.f32 1.0, %v13573_v17  ;;  %v13579_v6 = vpop.eup %13578  ;;  %v14627_v20 = vmul.f32 %v13577_v54, %v14429_v24 }
 0x12a   : > { %20324 = vst [vmem:[#allocation13_spill] sm:$0xff] %v20323_v43  ;;  %v14624_v57 = vpop.f32.mrb[24].mxu0  ;;  %v1275_v4 = vrot.slane %v1273_v1, 7  ;;  %13584 = vrcp.f32 %v648_v56  ;;  %v13581_v14 = vpop.eup %13580  ;;  %v1285_v10 = vor.u32 %v1283_v34, %v1282_v59  ;;  %v1404_v9 = vsel %vm14549_vm11, %v1282_v59, 0 }
 0x12b   : > { %20329 = vst [vmem:[#allocation16_spill] sm:$0xff] %v14627_v20  ;;  %v14633_v11 = vpop.f32.mrb[25].mxu0  ;;  %v1226_v16 = vsel %vm14605_vm1, %v14612_v2, 0.0  ;;  %v14641_v17 = vmul.f32 %v13579_v6, %v14435_v30  ;;  %v13583_v24 = vpop.eup %13582  ;;  %v11972_v18 = vcombine.low %v1404_v9, %v1404_v9  ;;  %v1224_v39 = vsel %vm14618_vm4, %v14627_v20, 0.0 }
 0x12c   : > { %v1278_v21 = vor.u32 %v1276_v42, %v1275_v4  ;;  %v1403_v52 = vsel %vm14549_vm11, %v1275_v4, 0  ;;  %v14648_v25 = vpop.f32.mrb[26].mxu0  ;;  %v1390_v27 = vsel %vm14549_vm11, 0, %v1285_v10  ;;  %v14656_v33 = vmul.f32 %v13581_v14, %v14440_v35  ;;  %v14767_v63 = vld [vmem:[#allocation2 + $0x20] sm:$0x1] }
 0x12d   : > { %20330 = vst [vmem:[#allocation17_spill] sm:$0xff] %v14641_v17  ;;  %v11969_v28 = vcombine.low %v1403_v52, %v1403_v52  ;;  %v1227_v30 = vsel %vm14605_vm1, %v14641_v17, 0.0  ;;  %v11970_v34 = vcombine.low %v1390_v27, %v1390_v27  ;;  %v11971_v36 = vcombine.high %v1390_v27, %v1390_v27  ;;  %1581 = vst.msk [vmem:[#allocation2 + $0x38] sm:$0x1] %vm20211_vm3, %v11972_v18 }
 0x12e   : > { %20331 = vst [vmem:[#allocation18_spill] sm:$0xff] %v14656_v33  ;;  %v1389_v1 = vsel %vm14549_vm11, 0, %v1278_v21  ;;  %v1249_v42 = vpack.c.bf16 %v1227_v30, %v1226_v16  ;;  %v1225_v35 = vsel %vm14618_vm4, %v14656_v33, 0.0  ;;  %13586 = vrcp.f32 %v646_v3  ;;  %v14669_v14 = vld [vmem:[#allocation2 + $0x18] sm:$0xf] }
 0x12f   : > { %v11967_v56 = vcombine.low %v1389_v1, %v1389_v1  ;;  %v11968_v54 = vcombine.high %v1389_v1, %v1389_v1  ;;  %1578 = vst.msk [vmem:[#allocation2 + $0x2c] sm:$0x1] %vm20211_vm3, %v11969_v28  ;;  %v1248_v4 = vpack.c.bf16 %v1225_v35, %v1224_v39  ;;  %13588 = vrcp.f32 %v649_v48  ;;  %v14671_v10 = vld [vmem:[#allocation2 + $0x1c] sm:$0xf]  ;;  %v2152_v18 = vld [vmem:[#allocation2 + $0x18] sm:$0xf] }
 0x130   : > { %1579 = vst.msk [vmem:[#allocation2 + $0x30] sm:$0xf] %vm20202_vm2, %v11970_v34  ;;  %1580 = vst.msk [vmem:[#allocation2 + $0x34] sm:$0xf] %vm20202_vm2, %v11971_v36  ;;  %v1294_v59 = vshrl.u32 %v1249_v42, 16  ;;  %v1297_v6 = vshll.u32 %v1249_v42, 16  ;;  %13590 = vrcp.f32 %v647_v0  ;;  %v14678_v16 = vadd.f32 %v14385_v47, %v14530_v62 }
 0x131   : > { %1576 = vst.msk [vmem:[#allocation2 + $0x24] sm:$0xf] %vm20202_vm2, %v11967_v56  ;;  %1577 = vst.msk [vmem:[#allocation2 + $0x28] sm:$0xf] %vm20202_vm2, %v11968_v54  ;;  %v652_v9 = vadd.f32 1.0, %v13583_v24  ;;  %v569_v3 = vsub.f32 0.0, %v14631_v46  ;;  %13592 = vpow2.f32 %v14565_v37  ;;  %v12129_v27 = vcombine.low %v14669_v14, %v14671_v10 }
 0x132   : > { %v2153_v21 = vld [vmem:[#allocation2 + $0x1c] sm:$0xf]  ;;  %v1296_v52 = vrot.slane %v1294_v59, 7  ;;  %v1287_v48 = vshrl.u32 %v1248_v4, 16  ;;  %v1290_v39 = vshll.u32 %v1248_v4, 16  ;;  %v567_v24 = vsub.f32 0.0, %v14678_v16 }
 0x133   : > { %13594 = vrcp.f32 %v652_v9  ;;  %v616_v0 = vmul.f32 1.442695, %v569_v3  ;;  %v2529_v62 = vld [vmem:[#allocation2 + $0x18] sm:$0xe]  ;;  %v20332_v37 = vmov 0  ;;  %v12088_v1 = vcombine.low %v2152_v18, %v2153_v21  ;;  %3663 = vrot.lane.b32.xlu1 %v12129_v27, %s14227_s10 }
 0x134   : > { %v13585_v28 = vpop.eup %13584  ;;  %v1299_v30 = vor.u32 %v1297_v6, %v1296_v52  ;;  %v1406_v34 = vsel %vm14549_vm11, %v1296_v52, 0  ;;  %v1289_v36 = vrot.slane %v1287_v48, 7  ;;  %v20333_v37 = vsel %vm14692_vm0, 4294967295, %v20332_v37  ;;  %v2179_v42 = vld [vmem:[#allocation2 + $0x20] sm:$0x1] }
 0x135   : > { %20334 = vst [vmem:[#allocation19_spill] sm:$0xff] %v20333_v37  ;;  %v11978_v56 = vcombine.low %v1406_v34, %v1406_v34  ;;  %v14697_v54 = vmul.f32 %v13585_v28, %v14458_v53  ;;  %13596 = vpow2.f32 %v616_v0  ;;  %v612_v35 = vmul.f32 1.442695, %v567_v24  ;;  %v2150_v59 = vld [vmem:[#allocation2 + $0xc] sm:$0xf] }
 0x136   : > { %v2151_v6 = vld [vmem:[#allocation2 + $0x10] sm:$0xf]  ;;  %v1392_v4 = vsel %vm14549_vm11, 0, %v1299_v30  ;;  %v1292_v55 = vor.u32 %v1290_v39, %v1289_v36  ;;  %v1405_v9 = vsel %vm14549_vm11, %v1289_v36, 0  ;;  %v12018_v3 = vrot.slane %v2529_v62, 9 }
 0x137   : > { %20335 = vst [vmem:[#allocation20_spill] sm:$0xff] %v14697_v54  ;;  %v2528_v18 = vld [vmem:[#allocation2 + $0xc] sm:$0xe]  ;;  %v11976_v52 = vcombine.low %v1392_v4, %v1392_v4  ;;  %v11977_v48 = vcombine.high %v1392_v4, %v1392_v4  ;;  %1587 = vst.msk [vmem:[#allocation2 + $0x50] sm:$0x1] %vm20211_vm3, %v11978_v56  ;;  %v11975_v53 = vcombine.low %v1405_v9, %v1405_v9  ;;  %v1230_v0 = vsel %vm14692_vm0, %v14697_v54, 0.0 }
 0x138   : > { %v2178_v24 = vld [vmem:[#allocation2 + $0x14] sm:$0x1]  ;;  %v14708_v27 = vld [vmem:[#allocation2 + $0x1c] sm:$0xf]  ;;  %v1391_v39 = vsel %vm14549_vm11, 0, %v1292_v55  ;;  %13598 = vpow2.f32 %v612_v35  ;;  %v2593_v28 = vrot.slane %v2153_v21, 5  ;;  %v13587_v34 = vpop.eup %13586  ;;  %3469 = vrot.lane.b32.xlu1 %v12088_v1, %s14229_s17  ;;  %v12087_v21 = vcombine.low %v2150_v59, %v2151_v6 }
 0x139   : > { %v2596_v30 = vrot.slane %v2179_v42, 5  ;;  %v1995_v62 = vld [vmem:[#allocation2 + $0x18] sm:$0xe]  ;;  %1585 = vst.msk [vmem:[#allocation2 + $0x48] sm:$0xf] %vm20202_vm2, %v11976_v52  ;;  %v11973_v36 = vcombine.low %v1391_v39, %v1391_v39  ;;  %v11974_v56 = vcombine.high %v1391_v39, %v1391_v39  ;;  %v20337_v4 = vmov 0  ;;  %v13589_v55 = vpop.eup %13588 }
 0x13a   : > { %1586 = vst.msk [vmem:[#allocation2 + $0x4c] sm:$0xf] %vm20202_vm2, %v11977_v48  ;;  %v20338_v4 = vsel %vm14719_vm15, 4294967295, %v20337_v4  ;;  %v12017_v42 = vrot.slane %v2528_v18, 9  ;;  %v14724_v35 = vpop.f32.mrb[27].mxu0  ;;  %v14727_v9 = vmul.f32 %v13587_v34, %v14469_v61  ;;  %v2594_v52 = vsel %vm14364_vm6, %v12018_v3, %v2593_v28 }
 0x13b   : > { %1584 = vst.msk [vmem:[#allocation2 + $0x44] sm:$0x1] %vm20211_vm3, %v11975_v53  ;;  %20339 = vst [vmem:[#allocation21_spill] sm:$0xff] %v20338_v4  ;;  %v2595_v48 = vrot.slane %v2593_v28, 4  ;;  %v2586_v58 = vrot.slane %v2151_v6, 5  ;;  %v13591_v53 = vpop.eup %13590  ;;  %v14734_v1 = vmul.f32 %v13589_v55, %v14476_v5  ;;  %v2589_v59 = vrot.slane %v2178_v24, 5 }
 0x13c   : > { %20340 = vst [vmem:[#allocation22_spill] sm:$0xff] %v14727_v9  ;;  %1582 = vst.msk [vmem:[#allocation2 + $0x3c] sm:$0xf] %vm20202_vm2, %v11973_v36  ;;  %v12005_v18 = vrot.slane %v1995_v62, 9  ;;  %v2068_v39 = vrot.slane %v14708_v27, 5  ;;  %v13593_v54 = vpop.eup %13592  ;;  %v1228_v61 = vsel %vm14719_vm15, %v14727_v9, 0.0  ;;  %v14741_v3 = vmul.f32 %v13591_v53, %v14482_v13  ;;  %3467 = vrot.lane.b32.xlu1 %v12087_v21, %s14229_s17 }
 0x13d   : > { %1583 = vst.msk [vmem:[#allocation2 + $0x40] sm:$0xf] %vm20202_vm2, %v11974_v56  ;;  %20341 = vst [vmem:[#allocation23_spill] sm:$0xff] %v14734_v1  ;;  %v2597_v6 = vsel %vm14364_vm6, %v2595_v48, %v2596_v30  ;;  %v2587_v28 = vsel %vm14364_vm6, %v12017_v42, %v2586_v58  ;;  %v13595_v5 = vpop.eup %13594  ;;  %v1231_v24 = vsel %vm14692_vm0, %v14734_v1, 0.0  ;;  %v20344_v62 = vmov 0  ;;  %v13385_v53 = vld [vmem:[%s20198_s3 + $0x40] sm:$0xff]  }
 0x13e   : > { %20342 = vst [vmem:[#allocation24_spill] sm:$0xff] %v14741_v3  ;;  %v20345_v62 = vsel %vm14754_vm5, 4294967295, %v20344_v62  ;;  %v650_v13 = vadd.f32 1.0, %v13593_v54  ;;  %v12116_v34 = vcombine.low %v2594_v52, %v2597_v6  ;;  %v2588_v30 = vrot.slane %v2586_v58, 4  ;;  %v1994_v55 = vld [vmem:[#allocation2 + $0xc] sm:$0xe]  ;;  %12783 = vmatprep.subr.bf16.mxu0 %v13385_v53  ;;  %13257 = vmatprep.subr.bf16.mxu1 %v13385_v53  ;;  %vm20349_vm2 = vmmov %vm20348_vm13 }
 0x13f   : > { %20346 = vst [vmem:[#allocation25_spill] sm:$0xff] %v20345_v62  ;;  %v1251_v36 = vpack.c.bf16 %v1231_v24, %v1230_v0  ;;  %v1229_v56 = vsel %vm14719_vm15, %v14741_v3, 0.0  ;;  %v14763_v42 = vmul.f32 %v13595_v5, %v14517_v41  ;;  %v2069_v54 = vsel %vm14364_vm6, %v12005_v18, %v2068_v39  ;;  %v13597_v21 = vpop.eup %13596  ;;  %v14774_v48 = vld [vmem:[#allocation2 + $0x30] sm:$0xf]  ;;  %v14776_v58 = vld [vmem:[#allocation2 + $0x34] sm:$0xf] }
 0x140   : > { %v1250_v52 = vpack.c.bf16 %v1229_v56, %v1228_v61  ;;  %13600 = vrcp.f32 %v650_v13  ;;  %3581 = vrot.lane.b32.xlu0 %v12116_v34, %s14228_s12  ;;  %v2590_v0 = vsel %vm14364_vm6, %v2588_v30, %v2589_v59  ;;  %v2070_v41 = vrot.slane %v2068_v39, 4  ;;  %v14784_v24 = vld [vmem:[#allocation2 + $0x10] sm:$0xf]  ;;  %v14787_v30 = vld [vmem:[#allocation2 + $0x14] sm:$0x1] }
 0x141   : > { %20347 = vst [vmem:[#allocation26_spill] sm:$0xff] %v14763_v42  ;;  %v1308_v6 = vshrl.u32 %v1251_v36, 16  ;;  %v1311_v18 = vshll.u32 %v1251_v36, 16  ;;  %v653_v5 = vadd.f32 1.0, %v13597_v21  ;;  %v12115_v39 = vcombine.low %v2587_v28, %v2590_v0 }
 0x142   : > { %v1301_v13 = vshrl.u32 %v1250_v52, 16  ;;  %v1304_v59 = vshll.u32 %v1250_v52, 16  ;;  %v2071_v34 = vrot.slane %v14767_v63, 5  ;;  %v13599_v56 = vpop.eup %13598  ;;  %v12131_v36 = vcombine.low %v14774_v48, %v14776_v58 }
 0x143   : > { %v1310_v9 = vrot.slane %v1308_v6, 7  ;;  %13602 = vrcp.f32 %v653_v5  ;;  %v12004_v2 = vrot.slane %v1994_v55, 9  ;;  %v651_v21 = vadd.f32 1.0, %v13599_v56 }
 0x144   : > { %v1303_v61 = vrot.slane %v1301_v13, 7  ;;  %3579 = vrot.lane.b32.xlu0 %v12115_v39, %s14228_s12  ;;  %v2072_v28 = vsel %vm14364_vm6, %v2070_v41, %v2071_v34  ;;  %v2061_v52 = vrot.slane %v14784_v24, 5  ;;  %v2064_v6 = vrot.slane %v14787_v30, 5  ;;  %v13386_v13 = vld [vmem:[%s20198_s3] sm:$0xff]  }
 0x145   : > { %v1313_v0 = vor.u32 %v1311_v18, %v1310_v9  ;;  %v1408_v53 = vsel %vm14549_vm11, %v1310_v9, 0  ;;  %v12075_v20 = vcombine.low %v2069_v54, %v2072_v28  ;;  %13604 = vrcp.f32 %v651_v21  ;;  %v2711_v34 = vld [vmem:[#allocation2 + $0x20] sm:$0x1]  ;;  %12784 = vmatpush3.bf16.msra.mxu0 %v13386_v13  ;;  %13265 = vmatpush3.bf16.msra.mxu1 %v13386_v13 }
 0x146   : > { %v11984_v5 = vcombine.low %v1408_v53, %v1408_v53  ;;  %v1306_v31 = vor.u32 %v1304_v59, %v1303_v61  ;;  %v1407_v55 = vsel %vm14549_vm11, %v1303_v61, 0  ;;  %v2062_v9 = vsel %vm14364_vm6, %v12004_v2, %v2061_v52 }
 0x147   : > { %v1394_v41 = vsel %vm14549_vm11, 0, %v1313_v0  ;;  %v11981_v18 = vcombine.low %v1407_v55, %v1407_v55  ;;  %3387 = vrot.lane.b32.xlu1 %v12075_v20, %s14227_s10  ;;  %v2063_v54 = vrot.slane %v2061_v52, 4  ;;  %v2726_v56 = vshrl.u32 %v14669_v14, 16 }
 0x148   : > { %v11982_v39 = vcombine.low %v1394_v41, %v1394_v41  ;;  %v11983_v59 = vcombine.high %v1394_v41, %v1394_v41  ;;  %1593 = vst.msk [vmem:[#allocation2 + $0x68] sm:$0x1] %vm20211_vm3, %v11984_v5  ;;  %v1393_v61 = vsel %vm14549_vm11, 0, %v1306_v31  ;;  %3667 = vrot.lane.b32.xlu0 %v12131_v36, %s14227_s10  ;;  %v2729_v20 = vshll.u32 %v14669_v14, 16 }
 0x149   : > { %v11979_v21 = vcombine.low %v1393_v61, %v1393_v61  ;;  %v11980_v28 = vcombine.high %v1393_v61, %v1393_v61  ;;  %1590 = vst.msk [vmem:[#allocation2 + $0x5c] sm:$0x1] %vm20211_vm3, %v11981_v18  ;;  %v2065_v2 = vsel %vm14364_vm6, %v2063_v54, %v2064_v6  ;;  %vm20350_vm0 = vcmp.ge.s32.totalorder %v14495_v23, 0  ;;  %v13388_v6 = vld [vmem:[%s20198_s3 + $0x48] sm:$0xff]   ;;  %v14850_v54 = vld [vmem:[#allocation2 + $0x34] sm:$0xf] }
 0x14a   : > { %v13601_v52 = vpop.eup %13600  ;;  %1591 = vst.msk [vmem:[#allocation2 + $0x60] sm:$0xf] %vm20348_vm13, %v11982_v39  ;;  %vm14823_vm15 = vmand %vm20350_vm0, %vm1159_vm10  ;;  %v20351_v31 = vmov 0  ;;  %v12074_v36 = vcombine.low %v2062_v9, %v2065_v2  ;;  %v2728_v0 = vrot.slane %v2726_v56, 4  ;;  %v2735_v53 = vshll.u32 %v14671_v10, 16  ;;  %12785 = vmatprep.subr.bf16.mxu0 %v13388_v6  ;;  %13258 = vmatprep.subr.bf16.mxu1 %v13388_v6 }
 0x14b   : > { %1592 = vst.msk [vmem:[#allocation2 + $0x64] sm:$0xf] %vm20349_vm2, %v11983_v59  ;;  %v20352_v31 = vsel %vm14823_vm15, 4294967295, %v20351_v31  ;;  %v2739_v14 = vshrl.u32 %v14671_v10, 16  ;;  %vm20354_vm13 = vmmov %vm20349_vm2  ;;  %v14835_v23 = vmul.f32 %v13601_v52, %v14523_v50  ;;  %v2731_v5 = vrot.slane %v2729_v20, 5 }
 0x14c   : > { %20353 = vst [vmem:[#allocation27_spill] sm:$0xff] %v20352_v31  ;;  %1588 = vst.msk [vmem:[#allocation2 + $0x54] sm:$0xf] %vm20354_vm13, %v11979_v21  ;;  %v2745_v55 = vshll.u32 %v2711_v34, 16  ;;  %v14839_v13 = vadd.f32 %v14567_v38, %v14385_v47  ;;  %3385 = vrot.lane.b32.xlu1 %v12074_v36, %s14227_s10  ;;  %v2737_v10 = vrot.slane %v2735_v53, 5  ;;  %v14844_v18 = vadd.f32 %v14385_v47, %v14575_v51  ;;  %v13389_v51 = vld [vmem:[%s20198_s3 + $0x8] sm:$0xff]  }
 0x14d   : > { %1589 = vst.msk [vmem:[#allocation2 + $0x58] sm:$0xf] %vm20349_vm2, %v11980_v28  ;;  %20355 = vst [vmem:[#allocation28_spill] sm:$0xff] %v14835_v23  ;;  %v2741_v41 = vrot.slane %v2739_v14, 4  ;;  %v14848_v9 = vadd.f32 %v14582_v60, %v14385_v47  ;;  %v2156_v50 = vld [vmem:[#allocation2 + $0x30] sm:$0xf]  ;;  %v13603_v39 = vpop.eup %13602  ;;  %v2732_v59 = vor.u32 %v2731_v5, %v2728_v0  ;;  %v14869_v0 = vadd.f32 %v14385_v47, %v14589_v7 }
 0x14e   : > { %v1232_v38 = vsel %vm14823_vm15, %v14835_v23, 0.0  ;;  %v2747_v61 = vrot.slane %v2745_v55, 5  ;;  %v572_v34 = vsub.f32 0.0, %v14839_v13  ;;  %v14860_v60 = vmul.f32 %v13603_v39, %v14631_v46  ;;  %v14864_v2 = vld [vmem:[#allocation2 + $0x24] sm:$0xf]  ;;  %12786 = vmatpush3.bf16.msra.mxu0 %v13389_v51  ;;  %13266 = vmatpush3.bf16.msra.mxu1 %v13389_v51  ;;  %vm20359_vm0 = vmmov %vm20349_vm2 }
 0x14f   : > { %v2742_v56 = vor.u32 %v2741_v41, %v2737_v10  ;;  %v570_v21 = vsub.f32 0.0, %v14844_v18  ;;  %v573_v28 = vsub.f32 0.0, %v14848_v9  ;;  %v2733_v20 = vrot.slane %v2732_v59, 4  ;;  %v14871_v53 = vld [vmem:[#allocation2 + $0x28] sm:$0xf]  ;;  %v13605_v46 = vpop.eup %13604  ;;  %vm20360_vm10 = vmmov %vm20359_vm0 }
 0x150   : > { %20356 = vst [vmem:[#allocation29_spill] sm:$0xff] %v14860_v60  ;;  %v622_v52 = vmul.f32 1.442695, %v572_v34  ;;  %v12090_v36 = vcombine.low %v2156_v50, %v14850_v54  ;;  %v1235_v14 = vsel %vm14754_vm5, %v14860_v60, 0.0  ;;  %v20357_v41 = vsel %vm14754_vm5, %v14763_v42, 0.0 }
 0x151   : > { %v2743_v6 = vrot.slane %v2742_v56, 4  ;;  %v618_v5 = vmul.f32 1.442695, %v570_v21  ;;  %v624_v55 = vmul.f32 1.442695, %v573_v28  ;;  %v1253_v50 = vpack.c.bf16 %v1235_v14, %v20357_v41 }
 0x152   : > { %v14881_v47 = vmul.f32 %v13605_v46, %v14678_v16  ;;  %v2738_v7 = vsel %vm14373_vm9, %v2733_v20, %v2737_v10  ;;  %13606 = vpow2.f32 %v622_v52  ;;  %3473 = vrot.lane.b32.xlu1 %v12090_v36, %s14229_s17  ;;  %v1616_v39 = vld [vmem:[#allocation2 + $0x18] sm:$0xf]  ;;  %v571_v34 = vsub.f32 0.0, %v14869_v0 }
 0x153   : > { %v2748_v59 = vsel %vm14373_vm9, %v2743_v6, %v2747_v61  ;;  %13608 = vpow2.f32 %v618_v5  ;;  %v12130_v51 = vcombine.low %v14864_v2, %v14871_v53  ;;  %v1322_v56 = vshrl.u32 %v1253_v50, 16 }
 0x154   : > { %20358 = vst [vmem:[#allocation30_spill] sm:$0xff] %v14881_v47  ;;  %v1325_v21 = vshll.u32 %v1253_v50, 16  ;;  %v1233_v16 = vsel %vm14823_vm15, %v14881_v47, 0.0  ;;  %v12143_v10 = vcombine.low %v2738_v7, %v2748_v59  ;;  %13610 = vpow2.f32 %v624_v55  ;;  %v2531_v50 = vld [vmem:[#allocation2 + $0x30] sm:$0xe] }
 0x155   : > { %v1252_v28 = vpack.c.bf16 %v1233_v16, %v1232_v38  ;;  %v620_v20 = vmul.f32 1.442695, %v571_v34  ;;  %v1706_v52 = vshrl.u32 %v1616_v39, 16  ;;  %v1324_v36 = vrot.slane %v1322_v56, 7  ;;  %v13391_v38 = vld [vmem:[%s20198_s3 + $0x50] sm:$0xff]  }
 0x156   : > { %3733 = vrot.lane.b32.xlu0 %v12143_v10, %s14229_s17  ;;  %v1709_v61 = vshll.u32 %v1616_v39, 16  ;;  %v1715_v46 = vshll.u32 %v14708_v27, 16  ;;  %v1719_v14 = vshrl.u32 %v14708_v27, 16  ;;  %v13392_v27 = vld [vmem:[%s20198_s3 + $0x10] sm:$0xff]   ;;  %v1725_v10 = vshll.u32 %v14767_v63, 16  ;;  %12787 = vmatprep.subr.bf16.mxu0 %v13391_v38 }
 0x157   : > { %v1315_v6 = vshrl.u32 %v1252_v28, 16  ;;  %v1318_v5 = vshll.u32 %v1252_v28, 16  ;;  %13612 = vpow2.f32 %v620_v20  ;;  %v1708_v41 = vrot.slane %v1706_v52, 4  ;;  %13259 = vmatprep.subr.bf16.mxu1 %v13391_v38  ;;  %12788 = vmatpush3.bf16.msra.mxu0 %v13392_v27 }
 0x158   : > { %v1327_v55 = vor.u32 %v1325_v21, %v1324_v36  ;;  %v1410_v7 = vsel %vm14549_vm11, %v1324_v36, 0  ;;  %v1711_v59 = vrot.slane %v1709_v61, 5  ;;  %v14902_v34 = vrot.slane %v1715_v46, 5  ;;  %13267 = vmatpush3.bf16.msra.mxu1 %v13392_v27 }
 0x159   : > { %v11990_v39 = vcombine.low %v1410_v7, %v1410_v7  ;;  %v1317_v56 = vrot.slane %v1315_v6, 7  ;;  %v1721_v16 = vrot.slane %v1719_v14, 4  ;;  %v12020_v20 = vrot.slane %v2531_v50, 9  ;;  %v2181_v14 = vld [vmem:[#allocation2 + $0x38] sm:$0x1] }
 0x15a   : > { %v1396_v21 = vsel %vm14549_vm11, 0, %v1327_v55  ;;  %3665 = vrot.lane.b32.xlu0 %v12130_v51, %s14227_s10  ;;  %v1712_v28 = vor.u32 %v1711_v59, %v1708_v41  ;;  %v2607_v52 = vrot.slane %v14850_v54, 5  ;;  %v1727_v41 = vrot.slane %v1725_v10, 5  ;;  %v14916_v50 = vld [vmem:[#allocation2 + $0x24] sm:$0xf] }
 0x15b   : > { %v11988_v36 = vcombine.low %v1396_v21, %v1396_v21  ;;  %v11989_v61 = vcombine.high %v1396_v21, %v1396_v21  ;;  %1599 = vst.msk [vmem:[#allocation2 + $0x80] sm:$0x1] %vm20211_vm3, %v11990_v39  ;;  %v1320_v46 = vor.u32 %v1318_v5, %v1317_v56  ;;  %v1409_v63 = vsel %vm14549_vm11, %v1317_v56, 0  ;;  %v14918_v54 = vld [vmem:[#allocation2 + $0x28] sm:$0xf] }
 0x15c   : > { %v13607_v6 = vpop.eup %13606  ;;  %v11987_v38 = vcombine.low %v1409_v63, %v1409_v63  ;;  %v1713_v55 = vrot.slane %v1712_v28, 4  ;;  %v1722_v51 = vor.u32 %v1721_v16, %v14902_v34  ;;  %v2608_v27 = vsel %vm14364_vm6, %v12020_v20, %v2607_v52  ;;  %v2530_v56 = vld [vmem:[#allocation2 + $0x24] sm:$0xe]  ;;  %v13393_v16 = vld [vmem:[%s20198_s3 + $0x58] sm:$0xff]   ;;  %v2180_v20 = vld [vmem:[#allocation2 + $0x2c] sm:$0x1] }
 0x15d   : > { %v13609_v7 = vpop.eup %13608  ;;  %1597 = vst.msk [vmem:[#allocation2 + $0x78] sm:$0xf] %vm20359_vm0, %v11988_v36  ;;  %v1395_v5 = vsel %vm14549_vm11, 0, %v1320_v46  ;;  %v656_v59 = vadd.f32 1.0, %v13607_v6  ;;  %v2609_v39 = vrot.slane %v2607_v52, 4  ;;  %vm1162_vm2 = vcmp.lt.s32.totalorder %v14507_v29, 16  ;;  %12789 = vmatprep.subr.bf16.mxu0 %v13393_v16  ;;  %13260 = vmatprep.subr.bf16.mxu1 %v13393_v16 }
 0x15e   : > { %1598 = vst.msk [vmem:[#allocation2 + $0x7c] sm:$0xf] %vm20360_vm10, %v11989_v61  ;;  %v11985_v10 = vcombine.low %v1395_v5, %v1395_v5  ;;  %v11986_v21 = vcombine.high %v1395_v5, %v1395_v5  ;;  %v654_v28 = vadd.f32 1.0, %v13609_v7  ;;  %v1718_v36 = vsel %vm14373_vm9, %v1713_v55, %v14902_v34  ;;  %v1614_v52 = vld [vmem:[#allocation2 + $0xc] sm:$0xf]  ;;  %v13394_v61 = vld [vmem:[%s20198_s3 + $0x18] sm:$0xff]   ;;  %v13611_v46 = vpop.eup %13610 }
 0x15f   : > { %1596 = vst.msk [vmem:[#allocation2 + $0x74] sm:$0x1] %vm20211_vm3, %v11987_v38  ;;  %13614 = vrcp.f32 %v656_v59  ;;  %vm1147_vm0 = vcmp.ge.s32.totalorder %v14511_v49, 0  ;;  %vm1161_vm10 = vcmp.lt.s32.totalorder %v14511_v49, 16  ;;  %v1723_v63 = vrot.slane %v1722_v51, 4  ;;  %vm20361_vm3 = vmmov %vm20354_vm13  ;;  %12790 = vmatpush3.bf16.msra.mxu0 %v13394_v61  ;;  %13268 = vmatpush3.bf16.msra.mxu1 %v13394_v61  ;;  %v13396_v61 = vld [vmem:[%s20198_s3 + $0x60] sm:$0xff]  }
 0x160   : > { %v2610_v6 = vrot.slane %v2181_v14, 5  ;;  %v12089_v38 = vcombine.low %v14916_v50, %v14918_v54  ;;  %1594 = vst.msk [vmem:[#allocation2 + $0x6c] sm:$0xf] %vm20361_vm3, %v11985_v10  ;;  %vm20362_vm13 = vmmov %vm20361_vm3  ;;  %13616 = vrcp.f32 %v654_v28  ;;  %v657_v34 = vadd.f32 1.0, %v13611_v46  ;;  %v14949_v16 = vld [vmem:[#allocation2 + $0x48] sm:$0xf]  ;;  %12791 = vmatprep.subr.bf16.mxu0 %v13396_v61  ;;  %13261 = vmatprep.subr.bf16.mxu1 %v13396_v61 }
 0x161   : > { %1595 = vst.msk [vmem:[#allocation2 + $0x70] sm:$0xf] %vm20362_vm13, %v11986_v21  ;;  %v12019_v55 = vrot.slane %v2530_v56, 9  ;;  %v2600_v7 = vrot.slane %v14918_v54, 5  ;;  %v13613_v5 = vpop.eup %13612  ;;  %v1728_v14 = vsel %vm14373_vm9, %v1723_v63, %v1727_v41  ;;  %v2603_v50 = vrot.slane %v2180_v20, 5 }
 0x162   : > { %v2611_v51 = vsel %vm14364_vm6, %v2609_v39, %v2610_v6  ;;  %v1682_v59 = vshrl.u32 %v1614_v52, 16  ;;  %13618 = vrcp.f32 %v657_v34  ;;  %v655_v10 = vadd.f32 1.0, %v13613_v5  ;;  %v14951_v56 = vld [vmem:[#allocation2 + $0x4c] sm:$0xf]  ;;  %v1997_v54 = vld [vmem:[#allocation2 + $0x30] sm:$0xe] }
 0x163   : > { %v12061_v21 = vcombine.low %v1718_v36, %v1728_v14  ;;  %v12118_v28 = vcombine.low %v2608_v27, %v2611_v51  ;;  %v2601_v41 = vsel %vm14364_vm6, %v12019_v55, %v2600_v7  ;;  %v2602_v46 = vrot.slane %v2600_v7, 4  ;;  %v14958_v63 = vld [vmem:[#allocation2 + $0x34] sm:$0xf]  ;;  %v13397_v36 = vld [vmem:[%s20198_s3 + $0x20] sm:$0xff]   ;;  %v14968_v55 = vld [vmem:[#allocation2 + $0x38] sm:$0x1] }
 0x164   : > { %v1684_v39 = vrot.slane %v1682_v59, 4  ;;  %v1685_v20 = vshll.u32 %v1614_v52, 16  ;;  %13620 = vrcp.f32 %v655_v10  ;;  %v1691_v27 = vshll.u32 %v14784_v24, 16  ;;  %12792 = vmatpush3.bf16.msra.mxu0 %v13397_v36  ;;  %13269 = vmatpush3.bf16.msra.mxu1 %v13397_v36 }
 0x165   : > { %3317 = vrot.lane.b32.xlu1 %v12061_v21, %s14228_s12  ;;  %3585 = vrot.lane.b32.xlu0 %v12118_v28, %s14228_s12  ;;  %v1695_v6 = vshrl.u32 %v14784_v24, 16  ;;  %v1701_v34 = vshll.u32 %v14787_v30, 16  ;;  %v2604_v52 = vsel %vm14364_vm6, %v2602_v46, %v2603_v50  ;;  %v12133_v5 = vcombine.low %v14949_v16, %v14951_v56 }
 0x166   : > { %v1687_v7 = vrot.slane %v1685_v20, 5  ;;  %v12007_v14 = vrot.slane %v1997_v54, 9  ;;  %v12117_v51 = vcombine.low %v2601_v41, %v2604_v52  ;;  %v1693_v59 = vrot.slane %v1691_v27, 5 }
 0x167   : > { %v1697_v10 = vrot.slane %v1695_v6, 4  ;;  %v1703_v21 = vrot.slane %v1701_v34, 5  ;;  %v2082_v30 = vrot.slane %v14958_v63, 5  ;;  %v2085_v28 = vrot.slane %v14968_v55, 5 }
 0x168   : > { %v1688_v24 = vor.u32 %v1687_v7, %v1684_v39  ;;  %v2774_v50 = vshrl.u32 %v14774_v48, 16  ;;  %v2777_v61 = vshll.u32 %v14774_v48, 16  ;;  %v2783_v41 = vshll.u32 %v14776_v58, 16  ;;  %v13398_v39 = vld [vmem:[%s20198_s3 + $0x68] sm:$0xff]  }
 0x169   : > { %3471 = vrot.lane.b32.xlu1 %v12089_v38, %s14229_s17  ;;  %3583 = vrot.lane.b32.xlu0 %v12117_v51, %s14228_s12  ;;  %v1698_v54 = vor.u32 %v1697_v10, %v1693_v59  ;;  %v2787_v46 = vshrl.u32 %v14776_v58, 16  ;;  %v13615_v20 = vpop.eup %13614  ;;  %vm20363_vm3 = vcmp.ge.s32.totalorder %v14507_v29, 0  ;;  %v20364_v38 = vmov 0  ;;  %v13399_v58 = vld [vmem:[%s20198_s3 + $0x28] sm:$0xff]   ;;  %v2713_v51 = vld [vmem:[#allocation2 + $0x38] sm:$0x1] }
 0x16a   : > { %vm14989_vm13 = vmand %vm20363_vm3, %vm1162_vm2  ;;  %v1689_v36 = vrot.slane %v1688_v24, 4  ;;  %v2083_v48 = vsel %vm14364_vm6, %v12007_v14, %v2082_v30  ;;  %v2084_v27 = vrot.slane %v2082_v30, 4  ;;  %v2776_v6 = vrot.slane %v2774_v50, 4  ;;  %v13617_v34 = vpop.eup %13616  ;;  %12793 = vmatprep.subr.bf16.mxu0 %v13398_v39  ;;  %13262 = vmatprep.subr.bf16.mxu1 %v13398_v39  ;;  %v15014_v50 = vld [vmem:[#allocation2 + $0x28] sm:$0xf] }
 0x16b   : > { %v20365_v38 = vsel %vm14989_vm13, 4294967295, %v20364_v38  ;;  %v712_v52 = vmul.f32 %v13615_v20, %v14839_v13  ;;  %vm15003_vm2 = vmand %vm1147_vm0, %vm1161_vm10  ;;  %v20367_v29 = vmov 0  ;;  %v1699_v7 = vrot.slane %v1698_v54, 4  ;;  %v1996_v20 = vld [vmem:[#allocation2 + $0x24] sm:$0xe]  ;;  %12794 = vmatpush3.bf16.msra.mxu0 %v13399_v58  ;;  %13270 = vmatpush3.bf16.msra.mxu1 %v13399_v58 }
 0x16c   : > { %20366 = vst [vmem:[#allocation31_spill] sm:$0xff] %v20365_v38  ;;  %v20368_v29 = vsel %vm15003_vm2, 4294967295, %v20367_v29  ;;  %v2779_v14 = vrot.slane %v2777_v61, 5  ;;  %v2785_v10 = vrot.slane %v2783_v41, 5  ;;  %v15008_v24 = vmul.f32 %v13617_v34, %v14844_v18  ;;  %v13619_v54 = vpop.eup %13618  ;;  %v15021_v39 = vld [vmem:[#allocation2 + $0x2c] sm:$0x1] }
 0x16d   : > { %20369 = vst [vmem:[#allocation32_spill] sm:$0xff] %v20368_v29  ;;  %v1694_v13 = vsel %vm14373_vm9, %v1689_v36, %v1693_v59  ;;  %v2086_v30 = vsel %vm14364_vm6, %v2084_v27, %v2085_v28  ;;  %v2789_v49 = vrot.slane %v2787_v46, 4  ;;  %v1238_v61 = vsel %vm14989_vm13, %v712_v52, 0.0  ;;  %3671 = vrot.lane.b32.xlu0 %v12133_v5, %s14227_s10  ;;  %v15023_v28 = vld [vmem:[#allocation2 + $0x3c] sm:$0xf] }
 0x16e   : > { %20370 = vst [vmem:[#allocation33_spill] sm:$0xff] %v15008_v24  ;;  %v1704_v18 = vsel %vm14373_vm9, %v1699_v7, %v1703_v21  ;;  %v12077_v41 = vcombine.low %v2083_v48, %v2086_v30  ;;  %v2780_v59 = vor.u32 %v2779_v14, %v2776_v6  ;;  %v1236_v46 = vsel %vm15003_vm2, %v15008_v24, 0.0  ;;  %v15029_v34 = vld [vmem:[#allocation2 + $0x40] sm:$0xf]  ;;  %v15031_v52 = vld [vmem:[#allocation2 + $0x48] sm:$0xf]  ;;  %v13621_v21 = vpop.eup %13620 }
 0x16f   : > { %v713_v36 = vmul.f32 %v13619_v54, %v14848_v9  ;;  %v12060_v27 = vcombine.low %v1694_v13, %v1704_v18  ;;  %v2790_v58 = vor.u32 %v2789_v49, %v2785_v10  ;;  %v2793_v48 = vshll.u32 %v2713_v51, 16  ;;  %v15034_v14 = vld [vmem:[#allocation2 + $0x4c] sm:$0xf] }
 0x170   : > { %v2781_v5 = vrot.slane %v2780_v59, 4  ;;  %v12006_v6 = vrot.slane %v1996_v20, 9  ;;  %v2075_v7 = vrot.slane %v15014_v50, 5  ;;  %v15039_v24 = vmul.f32 %v13621_v21, %v14869_v0 }
 0x171   : > { %v1239_v30 = vsel %vm14989_vm13, %v713_v36, 0.0  ;;  %3315 = vrot.lane.b32.xlu1 %v12060_v27, %s14228_s12  ;;  %v2791_v9 = vrot.slane %v2790_v58, 4  ;;  %v2078_v13 = vrot.slane %v15021_v39, 5  ;;  %v2795_v20 = vrot.slane %v2793_v48, 5  ;;  %v2712_v48 = vld [vmem:[#allocation2 + $0x2c] sm:$0x1] }
 0x172   : > { %20371 = vst [vmem:[#allocation34_spill] sm:$0xff] %v15039_v24  ;;  %v1255_v49 = vpack.c.bf16 %v1239_v30, %v1238_v61  ;;  %v2786_v51 = vsel %vm14373_vm9, %v2781_v5, %v2785_v10  ;;  %v2076_v54 = vsel %vm14364_vm6, %v12006_v6, %v2075_v7  ;;  %v1237_v18 = vsel %vm15003_vm2, %v15039_v24, 0.0 }
 0x173   : > { %v2077_v59 = vrot.slane %v2075_v7, 4  ;;  %v12132_v0 = vcombine.low %v15023_v28, %v15029_v34  ;;  %v12092_v36 = vcombine.low %v15031_v52, %v15034_v14  ;;  %v1254_v58 = vpack.c.bf16 %v1237_v18, %v1236_v46  ;;  %v13401_v46 = vld [vmem:[%s20198_s3 + $0x70] sm:$0xff]  }
 0x174   : > { %v1336_v27 = vshrl.u32 %v1255_v49, 16  ;;  %v1339_v61 = vshll.u32 %v1255_v49, 16  ;;  %v2796_v10 = vsel %vm14373_vm9, %v2791_v9, %v2795_v20  ;;  %v2750_v6 = vshrl.u32 %v14864_v2, 16  ;;  %12795 = vmatprep.subr.bf16.mxu0 %v13401_v46  ;;  %13263 = vmatprep.subr.bf16.mxu1 %v13401_v46 }
 0x175   : > { %3391 = vrot.lane.b32.xlu1 %v12077_v41, %s14227_s10  ;;  %v12145_v21 = vcombine.low %v2786_v51, %v2796_v10  ;;  %v2079_v5 = vsel %vm14364_vm6, %v2077_v59, %v2078_v13  ;;  %v2753_v7 = vshll.u32 %v14864_v2, 16  ;;  %v1329_v42 = vshrl.u32 %v1254_v58, 16  ;;  %v13402_v41 = vld [vmem:[%s20198_s3 + $0x30] sm:$0xff]  }
 0x176   : > { %v1338_v30 = vrot.slane %v1336_v27, 7  ;;  %v1332_v52 = vshll.u32 %v1254_v58, 16  ;;  %v12076_v23 = vcombine.low %v2076_v54, %v2079_v5  ;;  %v2752_v9 = vrot.slane %v2750_v6, 4  ;;  %12796 = vmatpush3.bf16.msra.mxu0 %v13402_v41  ;;  %13271 = vmatpush3.bf16.msra.mxu1 %v13402_v41  ;;  %v13404_v41 = vld [vmem:[%s20198_s3 + $0x38] sm:$0xff]  }
 0x177   : > { %3737 = vrot.lane.b32.xlu0 %v12145_v21, %s14229_s17  ;;  %v2755_v13 = vrot.slane %v2753_v7, 5  ;;  %v2759_v49 = vshll.u32 %v14871_v53, 16  ;;  %v2763_v2 = vshrl.u32 %v14871_v53, 16  ;;  %v1331_v54 = vrot.slane %v1329_v42, 7  ;;  %v1620_v21 = vld [vmem:[#allocation2 + $0x30] sm:$0xf] }
 0x178   : > { %v1341_v51 = vor.u32 %v1339_v61, %v1338_v30  ;;  %v1412_v20 = vsel %vm14549_vm11, %v1338_v30, 0  ;;  %v2769_v18 = vshll.u32 %v2712_v48, 16  ;;  %vm20372_vm0 = vcmask 253952   ;;  %v2533_v30 = vld [vmem:[#allocation2 + $0x48] sm:$0xe] }
 0x179   : > { %v11996_v59 = vcombine.low %v1412_v20, %v1412_v20  ;;  %3389 = vrot.lane.b32.xlu1 %v12076_v23, %s14227_s10  ;;  %v2756_v27 = vor.u32 %v2755_v13, %v2752_v9  ;;  %v2761_v58 = vrot.slane %v2759_v49, 5  ;;  %v2765_v10 = vrot.slane %v2763_v2, 4  ;;  %v13403_v49 = vld [vmem:[%s20198_s3 + $0x78] sm:$0xff]  }
 0x17a   : > { %v1398_v5 = vsel %vm14549_vm11, 0, %v1341_v51  ;;  %v1334_v53 = vor.u32 %v1332_v52, %v1331_v54  ;;  %v1411_v61 = vsel %vm14549_vm11, %v1331_v54, 0  ;;  %v2771_v6 = vrot.slane %v2769_v18, 5  ;;  %12797 = vmatprep.subr.bf16.mxu0 %v13403_v49  ;;  %13264 = vmatprep.subr.bf16.mxu1 %v13403_v49 }
 0x17b   : > { %v11994_v42 = vcombine.low %v1398_v5, %v1398_v5  ;;  %v11995_v48 = vcombine.high %v1398_v5, %v1398_v5  ;;  %1605 = vst.msk [vmem:[#allocation2 + $0x98] sm:$0x1] %vm20372_vm0, %v11996_v59  ;;  %v11993_v7 = vcombine.low %v1411_v61, %v1411_v61  ;;  %3669 = vrot.lane.b32.xlu0 %v12132_v0, %s14227_s10  ;;  %v2757_v23 = vrot.slane %v2756_v27, 4 }
 0x17c   : > { %v1397_v46 = vsel %vm14549_vm11, 0, %v1334_v53  ;;  %v2766_v9 = vor.u32 %v2765_v10, %v2761_v58  ;;  %v1754_v13 = vshrl.u32 %v1620_v21, 16  ;;  %v1757_v52 = vshll.u32 %v1620_v21, 16  ;;  %v2183_v10 = vld [vmem:[#allocation2 + $0x50] sm:$0x1]  ;;  %12798 = vmatpush3.bf16.msra.mxu0 %v13404_v41  ;;  %13272 = vmatpush3.bf16.msra.mxu1 %v13404_v41 }
 0x17d   : > { %vm20373_vm10 = vcmask 257024   ;;  %v11991_v0 = vcombine.low %v1397_v46, %v1397_v46  ;;  %v11992_v2 = vcombine.high %v1397_v46, %v1397_v46  ;;  %1602 = vst.msk [vmem:[#allocation2 + $0x8c] sm:$0x1] %vm20372_vm0, %v11993_v7  ;;  %3477 = vrot.lane.b32.xlu1 %v12092_v36, %s14229_s17  ;;  %v2762_v51 = vsel %vm14373_vm9, %v2757_v23, %v2761_v58  ;;  %v15099_v53 = vld [vmem:[#allocation2 + $0x40] sm:$0xf] }
 0x17e   : > { %1603 = vst.msk [vmem:[#allocation2 + $0x90] sm:$0xf] %vm20373_vm10, %v11994_v42  ;;  %vm20374_vm3 = vmmov %vm20373_vm10  ;;  %v1763_v20 = vshll.u32 %v14958_v63, 16  ;;  %v2767_v54 = vrot.slane %v2766_v9, 4  ;;  %v1756_v18 = vrot.slane %v1754_v13, 4  ;;  %v1759_v59 = vrot.slane %v1757_v52, 5 }
 0x17f   : > { %1604 = vst.msk [vmem:[#allocation2 + $0x94] sm:$0xf] %vm20374_vm3, %v11995_v48  ;;  %v1767_v27 = vshrl.u32 %v14958_v63, 16  ;;  %vm20375_vm10 = vmmov %vm20374_vm3  ;;  %v1773_v36 = vshll.u32 %v14968_v55, 16  ;;  %v12022_v5 = vrot.slane %v2533_v30, 9  ;;  %v2621_v58 = vrot.slane %v15034_v14, 5 }
 0x180   : > { %1600 = vst.msk [vmem:[#allocation2 + $0x84] sm:$0xf] %vm20375_vm10, %v11991_v0  ;;  %v1765_v21 = vrot.slane %v1763_v20, 5  ;;  %v2772_v63 = vsel %vm14373_vm9, %v2767_v54, %v2771_v6  ;;  %v1760_v61 = vor.u32 %v1759_v59, %v1756_v18  ;;  %v2532_v48 = vld [vmem:[#allocation2 + $0x3c] sm:$0xe]  ;;  %v13406_v23 = vld [vmem:[%s20198_s3 + $0x80] sm:$0xff]  }
 0x181   : > { %1601 = vst.msk [vmem:[#allocation2 + $0x88] sm:$0xf] %vm20374_vm3, %v11992_v2  ;;  %v1769_v42 = vrot.slane %v1767_v27, 4  ;;  %v1618_v7 = vld [vmem:[#allocation2 + $0x24] sm:$0xf]  ;;  %v12144_v46 = vcombine.low %v2762_v51, %v2772_v63  ;;  %v2623_v55 = vrot.slane %v2621_v58, 4  ;;  %v2622_v49 = vsel %vm14364_vm6, %v12022_v5, %v2621_v58  ;;  %13161 = vmatprep.subr.bf16.mxu0 %v13406_v23 }
 0x182   : > { %v2624_v30 = vrot.slane %v2183_v10, 5  ;;  %v2182_v9 = vld [vmem:[#allocation2 + $0x44] sm:$0x1]  ;;  %v1761_v14 = vrot.slane %v1760_v61, 4  ;;  %v1775_v52 = vrot.slane %v1773_v36, 5  ;;  %v12021_v41 = vrot.slane %v2532_v48, 9 }
 0x183   : > { %v1770_v13 = vor.u32 %v1769_v42, %v1765_v21  ;;  %3735 = vrot.lane.b32.xlu0 %v12144_v46, %s14229_s17  ;;  %v2614_v0 = vrot.slane %v15099_v53, 5  ;;  %v1730_v2 = vshrl.u32 %v1618_v7, 16  ;;  %v2617_v54 = vrot.slane %v2182_v9, 5  ;;  %v2158_v58 = vld [vmem:[#allocation2 + $0x3c] sm:$0xf] }
 0x184   : > { %v2625_v6 = vsel %vm14364_vm6, %v2623_v55, %v2624_v30  ;;  %v1766_v51 = vsel %vm14373_vm9, %v1761_v14, %v1765_v21  ;;  %v1733_v18 = vshll.u32 %v1618_v7, 16  ;;  %v1739_v36 = vshll.u32 %v15014_v50, 16  ;;  %v15118_v42 = vld [vmem:[#allocation2 + $0x4c] sm:$0xf]  ;;  %v15124_v46 = vld [vmem:[#allocation2 + $0x60] sm:$0xf] }
 0x185   : > { %v1771_v20 = vrot.slane %v1770_v13, 4  ;;  %v12120_v59 = vcombine.low %v2622_v49, %v2625_v6  ;;  %v2616_v27 = vrot.slane %v2614_v0, 4  ;;  %v1732_v10 = vrot.slane %v1730_v2, 4  ;;  %v15126_v55 = vld [vmem:[#allocation2 + $0x64] sm:$0xf] }
 0x186   : > { %v1735_v63 = vrot.slane %v1733_v18, 5  ;;  %v1743_v61 = vshrl.u32 %v15014_v50, 16  ;;  %v1741_v7 = vrot.slane %v1739_v36, 5  ;;  %v1749_v23 = vshll.u32 %v15021_v39, 16  ;;  %v1999_v49 = vld [vmem:[#allocation2 + $0x48] sm:$0xe] }
 0x187   : > { %v1776_v5 = vsel %vm14373_vm9, %v1771_v20, %v1775_v52  ;;  %3589 = vrot.lane.b32.xlu0 %v12120_v59, %s14228_s12  ;;  %v2618_v21 = vsel %vm14364_vm6, %v2616_v27, %v2617_v54  ;;  %v2615_v30 = vsel %vm14364_vm6, %v12021_v41, %v2614_v0  ;;  %v12091_v14 = vcombine.low %v2158_v58, %v15099_v53  ;;  %v15132_v52 = vld [vmem:[#allocation2 + $0x50] sm:$0x1]  ;;  %v13926_v39 = vld [vmem:[%s20197_s2] ss:$0 sm:$0xff] }
 0x188   : > { %v12063_v48 = vcombine.low %v1766_v51, %v1776_v5  ;;  %v1736_v9 = vor.u32 %v1735_v63, %v1732_v10  ;;  %v1745_v50 = vrot.slane %v1743_v61, 4  ;;  %v12119_v13 = vcombine.low %v2615_v30, %v2618_v21  ;;  %v2715_v5 = vld [vmem:[#allocation2 + $0x50] sm:$0x1] }
 0x189   : > { %v2096_v6 = vrot.slane %v15118_v42, 5  ;;  %v15139_v2 = vadd.f32 %v13926_v39, %v14624_v57  ;;  %v12135_v51 = vcombine.low %v15124_v46, %v15126_v55  ;;  %v2822_v53 = vshrl.u32 %v14949_v16, 16 }
 0x18a   : > { %3321 = vrot.lane.b32.xlu1 %v12063_v48, %s14228_s12  ;;  %v1737_v41 = vrot.slane %v1736_v9, 4  ;;  %v1746_v0 = vor.u32 %v1745_v50, %v1741_v7  ;;  %v1751_v20 = vrot.slane %v1749_v23, 5  ;;  %v2825_v59 = vshll.u32 %v14949_v16, 16 }
 0x18b   : > { %3587 = vrot.lane.b32.xlu0 %v12119_v13, %s14228_s12  ;;  %v2098_v54 = vrot.slane %v2096_v6, 4  ;;  %v576_v18 = vsub.f32 0.0, %v15139_v2  ;;  %v12009_v10 = vrot.slane %v1999_v49, 9  ;;  %v2099_v36 = vrot.slane %v15132_v52, 5  ;;  %v15163_v13 = vld [vmem:[#allocation2 + $0x44] sm:$0x1] }
 0x18c   : > { %v1742_v27 = vsel %vm14373_vm9, %v1737_v41, %v1741_v7  ;;  %v1747_v57 = vrot.slane %v1746_v0, 4  ;;  %v15152_v63 = vadd.s32 13, %v14414_v8  ;;  %v2824_v61 = vrot.slane %v2822_v53, 4 }
 0x18d   : > { %v630_v58 = vmul.f32 1.442695, %v576_v18  ;;  %v2827_v48 = vrot.slane %v2825_v59, 5  ;;  %v2100_v16 = vsel %vm14364_vm6, %v2098_v54, %v2099_v36  ;;  %v2831_v7 = vshll.u32 %v14951_v56, 16 }
 0x18e   : > { %3475 = vrot.lane.b32.xlu1 %v12091_v14, %s14229_s17  ;;  %v1752_v21 = vsel %vm14373_vm9, %v1747_v57, %v1751_v20  ;;  %v2835_v23 = vshrl.u32 %v14951_v56, 16  ;;  %v2841_v50 = vshll.u32 %v2715_v5, 16  ;;  %v15161_v14 = vld [vmem:[#allocation2 + $0x40] sm:$0xf]  ;;  %v2097_v49 = vsel %vm14364_vm6, %v12009_v10, %v2096_v6  ;;  %v1998_v20 = vld [vmem:[#allocation2 + $0x3c] sm:$0xe] }
 0x18f   : > { %v12062_v30 = vcombine.low %v1742_v27, %v1752_v21  ;;  %3675 = vrot.lane.b32.xlu0 %v12135_v51, %s14227_s10  ;;  %13622 = vpow2.f32 %v630_v58  ;;  %v2828_v9 = vor.u32 %v2827_v48, %v2824_v61  ;;  %v2833_v41 = vrot.slane %v2831_v7, 5  ;;  %v15170_v56 = vld [vmem:[#allocation2 + $0x54] sm:$0xf]  ;;  %v15179_v27 = vld [vmem:[#allocation2 + $0x58] sm:$0xf] }
 0x190   : > { %v2837_v0 = vrot.slane %v2835_v23, 4  ;;  %v15168_v53 = vadd.f32 %v13926_v39, %v14633_v11  ;;  %v12079_v51 = vcombine.low %v2097_v49, %v2100_v16  ;;  %v15174_v18 = vadd.f32 %v13926_v39, %v14648_v25  ;;  %v15181_v6 = vld [vmem:[#allocation2 + $0x60] sm:$0xf]  ;;  %v15187_v5 = vld [vmem:[#allocation2 + $0x64] sm:$0xf] }
 0x191   : > { %v2829_v54 = vrot.slane %v2828_v9, 4  ;;  %v15177_v59 = vadd.f32 %v13926_v39, %v14724_v35  ;;  %v2843_v11 = vrot.slane %v2841_v50, 5  ;;  %v15185_v36 = vadd.s32 12, %v14414_v8 }
 0x192   : > { %3319 = vrot.lane.b32.xlu1 %v12062_v30, %s14228_s12  ;;  %v2838_v57 = vor.u32 %v2837_v0, %v2833_v41  ;;  %v574_v10 = vsub.f32 0.0, %v15168_v53  ;;  %v577_v58 = vsub.f32 0.0, %v15174_v18  ;;  %v12008_v39 = vrot.slane %v1998_v20, 9 }
 0x193   : > { %v2834_v25 = vsel %vm14373_vm9, %v2829_v54, %v2833_v41  ;;  %v575_v35 = vsub.f32 0.0, %v15177_v59  ;;  %v2089_v21 = vrot.slane %v15161_v14, 5  ;;  %v2092_v16 = vrot.slane %v15163_v13, 5  ;;  %v2714_v41 = vld [vmem:[#allocation2 + $0x44] sm:$0x1] }
 0x194   : > { %v2839_v61 = vrot.slane %v2838_v57, 4  ;;  %v626_v48 = vmul.f32 1.442695, %v574_v10  ;;  %v632_v8 = vmul.f32 1.442695, %v577_v58  ;;  %v12134_v23 = vcombine.low %v15170_v56, %v15179_v27 }
 0x195   : > { %v628_v7 = vmul.f32 1.442695, %v575_v35  ;;  %v12094_v30 = vcombine.low %v15181_v6, %v15187_v5  ;;  %v2090_v50 = vsel %vm14364_vm6, %v12008_v39, %v2089_v21  ;;  %v2091_v49 = vrot.slane %v2089_v21, 4  ;;  %v1624_v54 = vld [vmem:[#allocation2 + $0x48] sm:$0xf] }
 0x196   : > { %3395 = vrot.lane.b32.xlu1 %v12079_v51, %s14227_s10  ;;  %v2844_v9 = vsel %vm14373_vm9, %v2839_v61, %v2843_v11  ;;  %13624 = vpow2.f32 %v626_v48  ;;  %v2798_v20 = vshrl.u32 %v15023_v28, 16  ;;  %v2801_v51 = vshll.u32 %v15023_v28, 16 }
 0x197   : > { %v12147_v0 = vcombine.low %v2834_v25, %v2844_v9  ;;  %13626 = vpow2.f32 %v632_v8  ;;  %v2093_v6 = vsel %vm14364_vm6, %v2091_v49, %v2092_v16  ;;  %v2807_v57 = vshll.u32 %v15029_v34, 16  ;;  %v2535_v9 = vld [vmem:[#allocation2 + $0x60] sm:$0xe] }
 0x198   : > { %13628 = vpow2.f32 %v628_v7  ;;  %v2811_v11 = vshrl.u32 %v15029_v34, 16  ;;  %v12078_v58 = vcombine.low %v2090_v50, %v2093_v6  ;;  %v2800_v35 = vrot.slane %v2798_v20, 4 }
 0x199   : > { %v13623_v10 = vpop.eup %13622  ;;  %3741 = vrot.lane.b32.xlu0 %v12147_v0, %s14229_s17  ;;  %v2803_v25 = vrot.slane %v2801_v51, 5  ;;  %v2817_v39 = vshll.u32 %v2714_v41, 16  ;;  %v2809_v48 = vrot.slane %v2807_v57, 5  ;;  %v1802_v28 = vshrl.u32 %v1624_v54, 16  ;;  %v2185_v0 = vld [vmem:[#allocation2 + $0x68] sm:$0x1] }
 0x19a   : > { %v660_v61 = vadd.f32 1.0, %v13623_v10  ;;  %v2813_v21 = vrot.slane %v2811_v11, 4  ;;  %vm1164_vm10 = vcmp.lt.s32.totalorder %v15152_v63, 16  ;;  %3393 = vrot.lane.b32.xlu1 %v12078_v58, %s14227_s10  ;;  %v1805_v34 = vshll.u32 %v1624_v54, 16  ;;  %v15218_v11 = vld [vmem:[#allocation2 + $0x54] sm:$0xf] }
 0x19b   : > { %v2804_v16 = vor.u32 %v2803_v25, %v2800_v35  ;;  %v2819_v8 = vrot.slane %v2817_v39, 5  ;;  %v1811_v7 = vshll.u32 %v15118_v42, 16  ;;  %v1804_v49 = vrot.slane %v1802_v28, 4  ;;  %v15221_v25 = vld [vmem:[#allocation2 + $0x58] sm:$0xf] }
 0x19c   : > { %13630 = vrcp.f32 %v660_v61  ;;  %v2814_v50 = vor.u32 %v2813_v21, %v2809_v48  ;;  %v1815_v41 = vshrl.u32 %v15118_v42, 16  ;;  %v1807_v51 = vrot.slane %v1805_v34, 5  ;;  %v2534_v21 = vld [vmem:[#allocation2 + $0x54] sm:$0xe] }
 0x19d   : > { %3673 = vrot.lane.b32.xlu0 %v12134_v23, %s14227_s10  ;;  %v2805_v20 = vrot.slane %v2804_v16, 4  ;;  %v1813_v6 = vrot.slane %v1811_v7, 5  ;;  %v1821_v57 = vshll.u32 %v15132_v52, 16  ;;  %v12024_v58 = vrot.slane %v2535_v9, 9 }
 0x19e   : > { %v2815_v10 = vrot.slane %v2814_v50, 4  ;;  %v1817_v54 = vrot.slane %v1815_v41, 4  ;;  %v2635_v35 = vrot.slane %v15187_v5, 5  ;;  %3481 = vrot.lane.b32.xlu1 %v12094_v30, %s14229_s17  ;;  %v1808_v23 = vor.u32 %v1807_v51, %v1804_v49  ;;  %v2184_v49 = vld [vmem:[#allocation2 + $0x5c] sm:$0x1] }
 0x19f   : > { %v2810_v42 = vsel %vm14373_vm9, %v2805_v20, %v2809_v48  ;;  %v1823_v39 = vrot.slane %v1821_v57, 5  ;;  %v2638_v61 = vrot.slane %v2185_v0, 5  ;;  %v12093_v48 = vcombine.low %v15218_v11, %v15221_v25  ;;  %v1622_v57 = vld [vmem:[#allocation2 + $0x3c] sm:$0xf] }
 0x1a0   : > { %v13625_v28 = vpop.eup %13624  ;;  %v2820_v52 = vsel %vm14373_vm9, %v2815_v10, %v2819_v8  ;;  %v1818_v16 = vor.u32 %v1817_v54, %v1813_v6  ;;  %v2636_v34 = vsel %vm14364_vm6, %v12024_v58, %v2635_v35  ;;  %v2637_v5 = vrot.slane %v2635_v35, 4 }
 0x1a1   : > { %v13627_v7 = vpop.eup %13626  ;;  %v658_v9 = vadd.f32 1.0, %v13625_v28  ;;  %v12146_v50 = vcombine.low %v2810_v42, %v2820_v52  ;;  %v1809_v30 = vrot.slane %v1808_v23, 4  ;;  %v12023_v51 = vrot.slane %v2534_v21, 9  ;;  %v15242_v28 = vld [vmem:[#allocation2 + $0x64] sm:$0xf] }
 0x1a2   : > { %v13629_v41 = vpop.eup %13628  ;;  %v661_v0 = vadd.f32 1.0, %v13627_v7  ;;  %v1819_v8 = vrot.slane %v1818_v16, 4  ;;  %v2639_v20 = vsel %vm14364_vm6, %v2637_v5, %v2638_v61  ;;  %v2628_v35 = vrot.slane %v15221_v25, 5  ;;  %v15244_v52 = vld [vmem:[#allocation2 + $0x68] sm:$0x1] }
 0x1a3   : > { %13632 = vrcp.f32 %v658_v9  ;;  %v659_v10 = vadd.f32 1.0, %v13629_v41  ;;  %3739 = vrot.lane.b32.xlu0 %v12146_v50, %s14229_s17  ;;  %v1814_v11 = vsel %vm14373_vm9, %v1809_v30, %v1813_v6  ;;  %v12122_v54 = vcombine.low %v2636_v34, %v2639_v20  ;;  %v2001_v16 = vld [vmem:[#allocation2 + $0x60] sm:$0xe]  ;;  %v15258_v9 = vld [vmem:[#allocation2 + $0x78] sm:$0xf] }
 0x1a4   : > { %13634 = vrcp.f32 %v661_v0  ;;  %v1824_v58 = vsel %vm14373_vm9, %v1819_v8, %v1823_v39  ;;  %v2631_v42 = vrot.slane %v2184_v49, 5  ;;  %v1778_v61 = vshrl.u32 %v1622_v57, 16  ;;  %v15264_v41 = vld [vmem:[#allocation2 + $0x7c] sm:$0xf] }
 0x1a5   : > { %13636 = vrcp.f32 %v659_v10  ;;  %v12065_v23 = vcombine.low %v1814_v11, %v1824_v58  ;;  %v1781_v21 = vshll.u32 %v1622_v57, 16  ;;  %vm20376_vm3 = vcmp.ge.s32.totalorder %v15152_v63, 0 }
 0x1a6   : > { %v13631_v5 = vpop.eup %13630  ;;  %vm15250_vm0 = vmand %vm20376_vm3, %vm1164_vm10  ;;  %v20377_v6 = vmov 0  ;;  %v2629_v25 = vsel %vm14364_vm6, %v12023_v51, %v2628_v35  ;;  %v2630_v39 = vrot.slane %v2628_v35, 4  ;;  %v1787_v34 = vshll.u32 %v15161_v14, 16 }
 0x1a7   : > { %v20378_v6 = vsel %vm15250_vm0, 4294967295, %v20377_v6  ;;  %v1791_v7 = vshrl.u32 %v15161_v14, 16  ;;  %v716_v50 = vmul.f32 %v13631_v5, %v15139_v2  ;;  %3325 = vrot.lane.b32.xlu1 %v12065_v23, %s14228_s12  ;;  %3593 = vrot.lane.b32.xlu0 %v12122_v54, %s14228_s12  ;;  %v1780_v63 = vrot.slane %v1778_v61, 4 }
 0x1a8   : > { %20379 = vst [vmem:[#allocation35_spill] sm:$0xff] %v20378_v6  ;;  %v1783_v30 = vrot.slane %v1781_v21, 5  ;;  %v1797_v49 = vshll.u32 %v15163_v13, 16  ;;  %v2632_v0 = vsel %vm14364_vm6, %v2630_v39, %v2631_v42  ;;  %v1789_v8 = vrot.slane %v1787_v34, 5  ;;  %v2717_v34 = vld [vmem:[#allocation2 + $0x68] sm:$0x1] }
 0x1a9   : > { %v1793_v20 = vrot.slane %v1791_v7, 4  ;;  %v12137_v14 = vcombine.low %v15258_v9, %v15264_v41  ;;  %v1242_v2 = vsel %vm15250_vm0, %v716_v50, 0.0  ;;  %v12121_v51 = vcombine.low %v2629_v25, %v2632_v0 }
 0x1aa   : > { %v1784_v57 = vor.u32 %v1783_v30, %v1780_v63  ;;  %v1799_v10 = vrot.slane %v1797_v49, 5  ;;  %v12011_v54 = vrot.slane %v2001_v16, 9  ;;  %v2110_v13 = vrot.slane %v15242_v28, 5 }
 0x1ab   : > { %v1794_v11 = vor.u32 %v1793_v20, %v1789_v8  ;;  %v2113_v58 = vrot.slane %v15244_v52, 5  ;;  %3479 = vrot.lane.b32.xlu1 %v12093_v48, %s14229_s17  ;;  %3591 = vrot.lane.b32.xlu0 %v12121_v51, %s14228_s12  ;;  %v2870_v42 = vshrl.u32 %v15124_v46, 16  ;;  %v2873_v23 = vshll.u32 %v15124_v46, 16  ;;  %v15297_v20 = vld [vmem:[#allocation2 + $0x58] sm:$0xf] }
 0x1ac   : > { %v1785_v35 = vrot.slane %v1784_v57, 4  ;;  %v2879_v61 = vshll.u32 %v15126_v55, 16  ;;  %v2111_v5 = vsel %vm14364_vm6, %v12011_v54, %v2110_v13  ;;  %v2112_v16 = vrot.slane %v2110_v13, 4  ;;  %v2000_v51 = vld [vmem:[#allocation2 + $0x54] sm:$0xe] }
 0x1ad   : > { %v1795_v21 = vrot.slane %v1794_v11, 4  ;;  %v2883_v25 = vshrl.u32 %v15126_v55, 16  ;;  %v13633_v39 = vpop.eup %13632  ;;  %vm20380_vm10 = vcmp.lt.s32.totalorder %v15185_v36, 16  ;;  %vm20381_vm3 = vcmp.ge.s32.totalorder %v15185_v36, 0 }
 0x1ae   : > { %vm15286_vm13 = vmand %vm20381_vm3, %vm20380_vm10  ;;  %v20382_v48 = vmov 0  ;;  %v1790_v46 = vsel %vm14373_vm9, %v1785_v35, %v1789_v8  ;;  %v2872_v7 = vrot.slane %v2870_v42, 4  ;;  %v2875_v50 = vrot.slane %v2873_v23, 5  ;;  %v13635_v30 = vpop.eup %13634 }
 0x1af   : > { %v20383_v48 = vsel %vm15286_vm13, 4294967295, %v20382_v48  ;;  %v2881_v63 = vrot.slane %v2879_v61, 5  ;;  %v714_v49 = vmul.f32 %v13633_v39, %v15168_v53  ;;  %v1800_v55 = vsel %vm14373_vm9, %v1795_v21, %v1799_v10  ;;  %v13637_v57 = vpop.eup %13636  ;;  %3679 = vrot.lane.b32.xlu0 %v12137_v14, %s14227_s10  ;;  %v15307_v61 = vld [vmem:[#allocation2 + $0x5c] sm:$0x1] }
 0x1b0   : > { %20384 = vst [vmem:[#allocation36_spill] sm:$0xff] %v20383_v48  ;;  %v2114_v36 = vsel %vm14364_vm6, %v2112_v16, %v2113_v58  ;;  %v2885_v0 = vrot.slane %v2883_v25, 4  ;;  %v717_v8 = vmul.f32 %v13635_v30, %v15174_v18  ;;  %v12064_v11 = vcombine.low %v1790_v46, %v1800_v55  ;;  %v15321_v55 = vld [vmem:[#allocation2 + $0x70] sm:$0xf]  ;;  %v15513_v48 = vld [vmem:[#allocation2 + $0x98] sm:$0x1] }
 0x1b1   : > { %v12081_v54 = vcombine.low %v2111_v5, %v2114_v36  ;;  %v2876_v13 = vor.u32 %v2875_v50, %v2872_v7  ;;  %v1240_v53 = vsel %vm15286_vm13, %v714_v49, 0.0  ;;  %v715_v10 = vmul.f32 %v13637_v57, %v15177_v59  ;;  %v15316_v7 = vld [vmem:[#allocation2 + $0x6c] sm:$0xf]  ;;  %v15323_v36 = vpop.permute.xlu0 %3313 }
 0x1b2   : > { %v2886_v35 = vor.u32 %v2885_v0, %v2881_v63  ;;  %v2889_v42 = vshll.u32 %v2717_v34, 16  ;;  %v1243_v58 = vsel %vm15250_vm0, %v717_v8, 0.0  ;;  %3323 = vrot.lane.b32.xlu1 %v12064_v11, %s14228_s12  ;;  %v12010_v18 = vrot.slane %v2000_v51, 9  ;;  %v2168_v8 = vld [vmem:[#allocation2 + $0x78] sm:$0xf] }
 0x1b3   : > { %v2877_v23 = vrot.slane %v2876_v13, 4  ;;  %v2103_v14 = vrot.slane %v15297_v20, 5  ;;  %v1257_v21 = vpack.c.bf16 %v1243_v58, %v1242_v2  ;;  %v1241_v5 = vsel %vm15286_vm13, %v715_v10, 0.0  ;;  %v15328_v11 = vld [vmem:[#allocation2 + $0x7c] sm:$0xf]  ;;  %v15330_v13 = vpop.permute.xlu1 %3383 }
 0x1b4   : > { %v2887_v16 = vrot.slane %v2886_v35, 4  ;;  %v2891_v25 = vrot.slane %v2889_v42, 5  ;;  %v1256_v59 = vpack.c.bf16 %v1241_v5, %v1240_v53  ;;  %v2106_v49 = vrot.slane %v15307_v61, 5 }
 0x1b5   : > { %v2882_v39 = vsel %vm14373_vm9, %v2877_v23, %v2881_v63  ;;  %v2104_v46 = vsel %vm14364_vm6, %v12010_v18, %v2103_v14  ;;  %v2105_v34 = vrot.slane %v2103_v14, 4  ;;  %v1350_v50 = vshrl.u32 %v1257_v21, 16 }
 0x1b6   : > { %v1353_v30 = vshll.u32 %v1257_v21, 16  ;;  %v2892_v2 = vsel %vm14373_vm9, %v2887_v16, %v2891_v25  ;;  %v1343_v0 = vshrl.u32 %v1256_v59, 16  ;;  %v1346_v51 = vshll.u32 %v1256_v59, 16  ;;  %3399 = vrot.lane.b32.xlu1 %v12081_v54, %s14227_s10 }
 0x1b7   : > { %v12149_v63 = vcombine.low %v2882_v39, %v2892_v2  ;;  %v12136_v57 = vcombine.low %v15316_v7, %v15321_v55  ;;  %v1352_v53 = vrot.slane %v1350_v50, 7  ;;  %v2107_v10 = vsel %vm14364_vm6, %v2105_v34, %v2106_v49  ;;  %v2716_v34 = vld [vmem:[#allocation2 + $0x5c] sm:$0x1]  ;;  %v1628_v49 = vld [vmem:[#allocation2 + $0x60] sm:$0xf] }
 0x1b8   : > { %v12096_v35 = vcombine.low %v2168_v8, %v15328_v11  ;;  %v2846_v42 = vshrl.u32 %v15170_v56, 16  ;;  %v1345_v58 = vrot.slane %v1343_v0, 7  ;;  %v12080_v54 = vcombine.low %v2104_v46, %v2107_v10  ;;  %v15347_v0 = vpop.permute.xlu0 %3581 }
 0x1b9   : > { %3745 = vrot.lane.b32.xlu0 %v12149_v63, %s14229_s17  ;;  %v2849_v23 = vshll.u32 %v15170_v56, 16  ;;  %v2855_v18 = vshll.u32 %v15179_v27, 16  ;;  %v1355_v14 = vor.u32 %v1353_v30, %v1352_v53  ;;  %v1414_v21 = vsel %vm14549_vm11, %v1352_v53, 0  ;;  %v15353_v53 = vpop.permute.xlu1 %3663 }
 0x1ba   : > { %v2848_v5 = vrot.slane %v2846_v42, 4  ;;  %v2859_v16 = vshrl.u32 %v15179_v27, 16  ;;  %v12002_v25 = vcombine.low %v1414_v21, %v1414_v21  ;;  %v1348_v59 = vor.u32 %v1346_v51, %v1345_v58  ;;  %3397 = vrot.lane.b32.xlu1 %v12080_v54, %s14227_s10  ;;  %v2537_v21 = vld [vmem:[#allocation2 + $0x78] sm:$0xe] }
 0x1bb   : > { %v1413_v39 = vsel %vm14549_vm11, %v1345_v58, 0  ;;  %v2851_v46 = vrot.slane %v2849_v23, 5  ;;  %v1400_v56 = vsel %vm14549_vm11, 0, %v1355_v14  ;;  %v2857_v30 = vrot.slane %v2855_v18, 5 }
 0x1bc   : > { %v11999_v50 = vcombine.low %v1413_v39, %v1413_v39  ;;  %v2861_v2 = vrot.slane %v2859_v16, 4  ;;  %v12000_v63 = vcombine.low %v1400_v56, %v1400_v56  ;;  %v12001_v27 = vcombine.high %v1400_v56, %v1400_v56  ;;  %v2187_v39 = vld [vmem:[#allocation2 + $0x80] sm:$0x1] }
 0x1bd   : > { %vm20385_vm10 = vcmask 253952   ;;  %v1399_v51 = vsel %vm14549_vm11, 0, %v1348_v59  ;;  %3677 = vrot.lane.b32.xlu0 %v12136_v57, %s14227_s10  ;;  %v2852_v8 = vor.u32 %v2851_v46, %v2848_v5  ;;  %v2865_v54 = vshll.u32 %v2716_v34, 16 }
 0x1be   : > { %1611 = vst.msk [vmem:[#allocation2 + $0xb0] sm:$0x1] %vm20385_vm10, %v12002_v25  ;;  %v11997_v10 = vcombine.low %v1399_v51, %v1399_v51  ;;  %v11998_v42 = vcombine.high %v1399_v51, %v1399_v51  ;;  %vm20386_vm3 = vmmov %vm20385_vm10  ;;  %v2862_v58 = vor.u32 %v2861_v2, %v2857_v30  ;;  %vm20387_vm0 = vcmask 257024   ;;  %3485 = vrot.lane.b32.xlu1 %v12096_v35, %s14229_s17  ;;  %v15368_v51 = vpop.permute.xlu0 %3579 }
 0x1bf   : > { %1608 = vst.msk [vmem:[#allocation2 + $0xa4] sm:$0x1] %vm20386_vm3, %v11999_v50  ;;  %vm20388_vm13 = vmmov %vm20387_vm0  ;;  %v2853_v23 = vrot.slane %v2852_v8, 4  ;;  %v1850_v18 = vshrl.u32 %v1628_v49, 16  ;;  %v1853_v14 = vshll.u32 %v1628_v49, 16  ;;  %v1859_v57 = vshll.u32 %v15242_v28, 16 }
 0x1c0   : > { %1609 = vst.msk [vmem:[#allocation2 + $0xa8] sm:$0xf] %vm20387_vm0, %v12000_v63  ;;  %vm20389_vm10 = vmmov %vm20387_vm0  ;;  %v2863_v5 = vrot.slane %v2862_v58, 4  ;;  %v2867_v16 = vrot.slane %v2865_v54, 5  ;;  %v1863_v25 = vshrl.u32 %v15242_v28, 16  ;;  %v1869_v59 = vshll.u32 %v15244_v52, 16 }
 0x1c1   : > { %1610 = vst.msk [vmem:[#allocation2 + $0xac] sm:$0xf] %vm20388_vm13, %v12001_v27  ;;  %vm20390_vm2 = vmmov %vm20387_vm0  ;;  %v2858_v35 = vsel %vm14373_vm9, %v2853_v23, %v2857_v30  ;;  %v1852_v34 = vrot.slane %v1850_v18, 4  ;;  %v1855_v46 = vrot.slane %v1853_v14, 5  ;;  %v1861_v56 = vrot.slane %v1859_v57, 5  ;;  %v15371_v30 = vpop.permute.xlu1 %3469 }
 0x1c2   : > { %1606 = vst.msk [vmem:[#allocation2 + $0x9c] sm:$0xf] %vm20389_vm10, %v11997_v10  ;;  %v2536_v50 = vld [vmem:[#allocation2 + $0x6c] sm:$0xe]  ;;  %v2868_v2 = vsel %vm14373_vm9, %v2863_v5, %v2867_v16  ;;  %v1865_v49 = vrot.slane %v1863_v25, 4  ;;  %v12026_v63 = vrot.slane %v2537_v21, 9 }
 0x1c3   : > { %1607 = vst.msk [vmem:[#allocation2 + $0xa0] sm:$0xf] %vm20390_vm2, %v11998_v42  ;;  %v2186_v27 = vld [vmem:[#allocation2 + $0x74] sm:$0x1]  ;;  %v12148_v8 = vcombine.low %v2858_v35, %v2868_v2  ;;  %v1856_v28 = vor.u32 %v1855_v46, %v1852_v34  ;;  %v2649_v52 = vrot.slane %v15328_v11, 5  ;;  %v2652_v10 = vrot.slane %v2187_v39, 5 }
 0x1c4   : > { %v2167_v42 = vld [vmem:[#allocation2 + $0x70] sm:$0xf]  ;;  %v1626_v58 = vld [vmem:[#allocation2 + $0x54] sm:$0xf]  ;;  %v1866_v54 = vor.u32 %v1865_v49, %v1861_v56  ;;  %v1871_v23 = vrot.slane %v1869_v59, 5  ;;  %v12025_v18 = vrot.slane %v2536_v50, 9 }
 0x1c5   : > { %v2642_v14 = vrot.slane %v2167_v42, 5  ;;  %3743 = vrot.lane.b32.xlu0 %v12148_v8, %s14229_s17  ;;  %v1857_v57 = vrot.slane %v1856_v28, 4  ;;  %v2650_v21 = vsel %vm14364_vm6, %v12026_v63, %v2649_v52  ;;  %v2651_v5 = vrot.slane %v2649_v52, 4  ;;  %v2166_v16 = vld [vmem:[#allocation2 + $0x6c] sm:$0xf]  ;;  %v15385_v52 = vpop.permute.xlu0 %3667 }
 0x1c6   : > { %v2645_v25 = vrot.slane %v2186_v27, 5  ;;  %v1867_v35 = vrot.slane %v1866_v54, 4  ;;  %v12095_v11 = vcombine.low %v2166_v16, %v2167_v42  ;;  %v1826_v34 = vshrl.u32 %v1626_v58, 16  ;;  %v2719_v28 = vld [vmem:[#allocation2 + $0x80] sm:$0x1] }
 0x1c7   : > { %v2644_v39 = vrot.slane %v2642_v14, 4  ;;  %v1862_v46 = vsel %vm14373_vm9, %v1857_v57, %v1861_v56  ;;  %v2653_v59 = vsel %vm14364_vm6, %v2651_v5, %v2652_v10  ;;  %v1829_v50 = vshll.u32 %v1626_v58, 16  ;;  %v15389_v58 = vpop.permute.xlu1 %3467 }
 0x1c8   : > { %v1835_v2 = vshll.u32 %v15297_v20, 16  ;;  %v1872_v49 = vsel %vm14373_vm9, %v1867_v35, %v1871_v23  ;;  %v12124_v63 = vcombine.low %v2650_v21, %v2653_v59  ;;  %v2643_v27 = vsel %vm14364_vm6, %v12025_v18, %v2642_v14  ;;  %v2002_v35 = vld [vmem:[#allocation2 + $0x6c] sm:$0xe] }
 0x1c9   : > { %v1828_v8 = vrot.slane %v1826_v34, 4  ;;  %v12067_v42 = vcombine.low %v1862_v46, %v1872_v49  ;;  %v2646_v56 = vsel %vm14364_vm6, %v2644_v39, %v2645_v25  ;;  %v1831_v54 = vrot.slane %v1829_v50, 5 }
 0x1ca   : > { %v1837_v10 = vrot.slane %v1835_v2, 5  ;;  %3597 = vrot.lane.b32.xlu0 %v12124_v63, %s14228_s12  ;;  %v1839_v23 = vshrl.u32 %v15297_v20, 16  ;;  %v1845_v57 = vshll.u32 %v15307_v61, 16  ;;  %v2918_v18 = vshrl.u32 %v15258_v9, 16  ;;  %v15399_v20 = vld [vmem:[#allocation2 + $0x74] sm:$0x1] }
 0x1cb   : > { %v2921_v14 = vshll.u32 %v15258_v9, 16  ;;  %3329 = vrot.lane.b32.xlu1 %v12067_v42, %s14228_s12  ;;  %v1832_v21 = vor.u32 %v1831_v54, %v1828_v8  ;;  %v2927_v5 = vshll.u32 %v15264_v41, 16  ;;  %v2931_v16 = vshrl.u32 %v15264_v41, 16  ;;  %v15401_v9 = vld [vmem:[#allocation2 + $0x70] sm:$0xf] }
 0x1cc   : > { %v2937_v25 = vshll.u32 %v2719_v28, 16  ;;  %v12123_v39 = vcombine.low %v2643_v27, %v2646_v56  ;;  %v1841_v34 = vrot.slane %v1839_v23, 4  ;;  %v2920_v46 = vrot.slane %v2918_v18, 4  ;;  %v1632_v28 = vld [vmem:[#allocation2 + $0x78] sm:$0xf]  ;;  %v15407_v56 = vpop.permute.xlu0 %3733 }
 0x1cd   : > { %v2923_v59 = vrot.slane %v2921_v14, 5  ;;  %v1833_v61 = vrot.slane %v1832_v21, 4  ;;  %v1847_v50 = vrot.slane %v1845_v57, 5  ;;  %v2929_v2 = vrot.slane %v2927_v5, 5  ;;  %v15405_v27 = vld [vmem:[#allocation2 + $0x7c] sm:$0xf]  ;;  %v15413_v14 = vpop.permute.xlu1 %3387 }
 0x1ce   : > { %v2933_v49 = vrot.slane %v2931_v16, 4  ;;  %3595 = vrot.lane.b32.xlu0 %v12123_v39, %s14228_s12  ;;  %v1842_v63 = vor.u32 %v1841_v34, %v1837_v10  ;;  %v12012_v42 = vrot.slane %v2002_v35, 9  ;;  %v2117_v41 = vrot.slane %v15401_v9, 5 }
 0x1cf   : > { %v2924_v8 = vor.u32 %v2923_v59, %v2920_v46  ;;  %3483 = vrot.lane.b32.xlu1 %v12095_v11, %s14229_s17  ;;  %v1838_v54 = vsel %vm14373_vm9, %v1833_v61, %v1837_v10  ;;  %v2939_v57 = vrot.slane %v2937_v25, 5  ;;  %v2120_v18 = vrot.slane %v15399_v20, 5  ;;  %v1650_v61 = vld [vmem:[#allocation2 + $0x80] sm:$0x1] }
 0x1d0   : > { %v2934_v23 = vor.u32 %v2933_v49, %v2929_v2  ;;  %v1843_v21 = vrot.slane %v1842_v63, 4  ;;  %v2118_v16 = vsel %vm14364_vm6, %v12012_v42, %v2117_v41  ;;  %v2119_v35 = vrot.slane %v2117_v41, 4 }
 0x1d1   : > { %v2925_v5 = vrot.slane %v2924_v8, 4  ;;  %v1898_v34 = vshrl.u32 %v1632_v28, 16  ;;  %v1901_v46 = vshll.u32 %v1632_v28, 16  ;;  %v1907_v11 = vshll.u32 %v15405_v27, 16  ;;  %v2718_v28 = vld [vmem:[#allocation2 + $0x74] sm:$0x1] }
 0x1d2   : > { %v2935_v39 = vrot.slane %v2934_v23, 4  ;;  %v1848_v10 = vsel %vm14373_vm9, %v1843_v21, %v1847_v50  ;;  %v2121_v59 = vsel %vm14364_vm6, %v2119_v35, %v2120_v18  ;;  %v1911_v49 = vshrl.u32 %v15405_v27, 16  ;;  %v15427_v21 = vpop.permute.xlu0 %3665  ;;  %v15433_v35 = vpop.permute.xlu1 %3385 }
 0x1d3   : > { %v2930_v25 = vsel %vm14373_vm9, %v2925_v5, %v2929_v2  ;;  %v12066_v63 = vcombine.low %v1838_v54, %v1848_v10  ;;  %v12082_v42 = vcombine.low %v2118_v16, %v2121_v59  ;;  %v1900_v41 = vrot.slane %v1898_v34, 4  ;;  %v15439_v10 = vld [vmem:[#allocation2 + $0x88] sm:$0xf] }
 0x1d4   : > { %v2940_v8 = vsel %vm14373_vm9, %v2935_v39, %v2939_v57  ;;  %v1903_v24 = vrot.slane %v1901_v46, 5  ;;  %v1909_v60 = vrot.slane %v1907_v11, 5  ;;  %v1913_v50 = vrot.slane %v1911_v49, 4  ;;  %v15436_v57 = vld [vmem:[#allocation2 + $0x84] sm:$0xf] }
 0x1d5   : > { %v12151_v23 = vcombine.low %v2930_v25, %v2940_v8  ;;  %3327 = vrot.lane.b32.xlu1 %v12066_v63, %s14228_s12  ;;  %v1917_v2 = vshll.u32 %v1650_v61, 16  ;;  %v2894_v18 = vshrl.u32 %v15316_v7, 16  ;;  %v2897_v5 = vshll.u32 %v15316_v7, 16  ;;  %v2003_v11 = vld [vmem:[#allocation2 + $0x78] sm:$0xe] }
 0x1d6   : > { %v2903_v54 = vshll.u32 %v15321_v55, 16  ;;  %v1904_v16 = vor.u32 %v1903_v24, %v1900_v41  ;;  %v1914_v39 = vor.u32 %v1913_v50, %v1909_v60  ;;  %v2907_v34 = vshrl.u32 %v15321_v55, 16 }
 0x1d7   : > { %3749 = vrot.lane.b32.xlu0 %v12151_v23, %s14229_s17  ;;  %v2913_v46 = vshll.u32 %v2718_v28, 16  ;;  %v1919_v25 = vrot.slane %v1917_v2, 5  ;;  %v2896_v59 = vrot.slane %v2894_v18, 4  ;;  %v2899_v49 = vrot.slane %v2897_v5, 5  ;;  %v15450_v5 = vpop.permute.xlu0 %3585 }
 0x1d8   : > { %v2905_v7 = vrot.slane %v2903_v54, 5  ;;  %v12138_v63 = vcombine.low %v15436_v57, %v15439_v10  ;;  %v1905_v8 = vrot.slane %v1904_v16, 4  ;;  %v1915_v47 = vrot.slane %v1914_v39, 4 }
 0x1d9   : > { %v2909_v23 = vrot.slane %v2907_v34, 4  ;;  %3401 = vrot.lane.b32.xlu1 %v12082_v42, %s14227_s10  ;;  %v2900_v24 = vor.u32 %v2899_v49, %v2896_v59  ;;  %v2915_v41 = vrot.slane %v2913_v46, 5  ;;  %v12013_v50 = vrot.slane %v2003_v11, 9  ;;  %v15452_v42 = vpop.permute.xlu1 %3473  ;;  %v1630_v59 = vld [vmem:[#allocation2 + $0x6c] sm:$0xf] }
 0x1da   : > { %v1910_v55 = vsel %vm14373_vm9, %v1905_v8, %v1909_v60  ;;  %v1920_v28 = vsel %vm14373_vm9, %v1915_v47, %v1919_v25  ;;  %v2124_v18 = vrot.slane %v15405_v27, 5  ;;  %v2127_v39 = vrot.slane %v1650_v61, 5  ;;  %v13927_v47 = vld [vmem:[#allocation2 + $0x1c] sm:$0xf] }
 0x1db   : > { %3681 = vrot.lane.b32.xlu0 %v12138_v63, %s14227_s10  ;;  %v2910_v2 = vor.u32 %v2909_v23, %v2905_v7  ;;  %v12069_v54 = vcombine.low %v1910_v55, %v1920_v28  ;;  %v2901_v16 = vrot.slane %v2900_v24, 4  ;;  %v2226_v25 = vshll.u32 %v13927_v47, 16  ;;  %v13928_v63 = vld [vmem:[#allocation2 + $0x18] sm:$0xf]  ;;  %v15463_v55 = vld [vmem:[#allocation2 + $0x90] sm:$0xf] }
 0x1dc   : > { %v2125_v46 = vsel %vm14364_vm6, %v12013_v50, %v2124_v18  ;;  %v2126_v11 = vrot.slane %v2124_v18, 4  ;;  %v2230_v27 = vshrl.u32 %v13927_v47, 16  ;;  %v2217_v8 = vshrl.u32 %v13928_v63, 16  ;;  %v15467_v18 = vpop.permute.xlu0 %3583 }
 0x1dd   : > { %v2911_v34 = vrot.slane %v2910_v2, 4  ;;  %3333 = vrot.lane.b32.xlu1 %v12069_v54, %s14228_s12  ;;  %v2906_v60 = vsel %vm14373_vm9, %v2901_v16, %v2905_v7  ;;  %v2220_v23 = vshll.u32 %v13928_v63, 16  ;;  %v15465_v28 = vrot.slane %v2226_v25, 5  ;;  %v2538_v2 = vld [vmem:[#allocation2 + $0x84] sm:$0xe] }
 0x1de   : > { %v2128_v61 = vsel %vm14364_vm6, %v2126_v11, %v2127_v39  ;;  %v2232_v7 = vrot.slane %v2230_v27, 4  ;;  %v13929_v54 = vld [vmem:[#allocation2 + $0x4] sm:$0xf]  ;;  %v13930_v16 = vld [vmem:[#allocation2] sm:$0xf]  ;;  %v1874_v11 = vshrl.u32 %v1630_v59, 16 }
 0x1df   : > { %v2916_v49 = vsel %vm14373_vm9, %v2911_v34, %v2915_v41  ;;  %v12083_v50 = vcombine.low %v2125_v46, %v2128_v61  ;;  %v12045_v47 = vcombine.low %v13930_v16, %v13929_v54  ;;  %v15469_v41 = vld [vmem:[#allocation2 + $0x94] sm:$0xf]  ;;  %v2219_v34 = vrot.slane %v2217_v8, 4  ;;  %v15476_v61 = vpop.permute.xlu1 %3317 }
 0x1e0   : > { %v12150_v24 = vcombine.low %v2906_v60, %v2916_v49  ;;  %v2222_v39 = vrot.slane %v2220_v23, 5  ;;  %v2233_v46 = vor.u32 %v2232_v7, %v15465_v28  ;;  %v1877_v60 = vshll.u32 %v1630_v59, 16  ;;  %v2188_v49 = vld [vmem:[#allocation2 + $0x8c] sm:$0x1]  ;;  %v15481_v59 = vld [vmem:[#allocation2 + $0x88] sm:$0xf] }
 0x1e1   : > { %3403 = vrot.lane.b32.xlu1 %v12083_v50, %s14227_s10  ;;  %v1883_v25 = vshll.u32 %v15401_v9, 16  ;;  %v1887_v27 = vshrl.u32 %v15401_v9, 16  ;;  %v12139_v63 = vcombine.low %v15463_v55, %v15469_v41  ;;  %v1876_v8 = vrot.slane %v1874_v11, 4 }
 0x1e2   : > { %3747 = vrot.lane.b32.xlu0 %v12150_v24, %s14229_s17  ;;  %v1893_v23 = vshll.u32 %v15399_v20, 16  ;;  %v12027_v54 = vrot.slane %v2538_v2, 9  ;;  %v13931_v24 = vld [vmem:[#allocation2 + $0x20] sm:$0x1]  ;;  %v1879_v50 = vrot.slane %v1877_v60, 5  ;;  %vm20274_vm13 = vcmask 261120   ;;  %v15487_v2 = vpop.permute.xlu0 %3671 }
 0x1e3   : > { %v2236_v16 = vshll.u32 %v13931_v24, 16  ;;  %v1885_v1 = vrot.slane %v1883_v25, 5  ;;  %v1889_v7 = vrot.slane %v1887_v27, 4  ;;  %v2223_v3 = vor.u32 %v2222_v39, %v2219_v34  ;;  %20391 = vst [vmem:[#allocation37_spill] sm:$0xff] %v15487_v2 }
 0x1e4   : > { %v2656_v9 = vrot.slane %v15481_v59, 5  ;;  %v2659_v17 = vrot.slane %v2188_v49, 5  ;;  %v15485_v33 = vrot.slane %v2233_v46, 4  ;;  %v1880_v11 = vor.u32 %v1879_v50, %v1876_v8 }
 0x1e5   : > { %v1890_v44 = vor.u32 %v1889_v7, %v1885_v1  ;;  %v1895_v20 = vrot.slane %v1893_v23, 5  ;;  %v15493_v27 = vsel %vm20274_vm13, %v12045_v47, %v15323_v36  ;;  %v15495_v34 = vrot.slane %v2236_v16, 5  ;;  %v13932_v23 = vld [vmem:[#allocation2 + $0x10] sm:$0xf] }
 0x1e6   : > { %3683 = vrot.lane.b32.xlu0 %v12139_v63, %s14227_s10  ;;  %v2657_v60 = vsel %vm14364_vm6, %v12027_v54, %v2656_v9  ;;  %v2658_v25 = vrot.slane %v2656_v9, 4  ;;  %v1881_v39 = vrot.slane %v1880_v11, 4  ;;  %v15497_v63 = vpop.permute.xlu1 %3471  ;;  %v15499_v46 = vrot.slane %v2223_v3, 4  ;;  %v13933_v9 = vld [vmem:[#allocation2 + $0x14] sm:$0x1] }
 0x1e7   : > { %v1891_v49 = vrot.slane %v1890_v44, 4  ;;  %v2202_v24 = vshll.u32 %v13932_v23, 16  ;;  %v2206_v50 = vshrl.u32 %v13932_v23, 16  ;;  %v2170_v11 = vld [vmem:[#allocation2 + $0x84] sm:$0xf]  ;;  %vm20273_vm2 = vcmask 523264  }
 0x1e8   : > { %v2660_v8 = vsel %vm14364_vm6, %v2658_v25, %v2659_v17  ;;  %v1886_v47 = vsel %vm14373_vm9, %v1881_v39, %v1885_v1  ;;  %v2212_v17 = vshll.u32 %v13933_v9, 16  ;;  %v13934_v25 = vld [vmem:[#allocation2 + $0xc] sm:$0xf]  ;;  %v12097_v36 = vcombine.low %v2170_v11, %v15481_v59 }
 0x1e9   : > { %v1896_v44 = vsel %vm14373_vm9, %v1891_v49, %v1895_v20  ;;  %v12125_v54 = vcombine.low %v2657_v60, %v2660_v8  ;;  %v2204_v16 = vrot.slane %v2202_v24, 5  ;;  %v2208_v7 = vrot.slane %v2206_v50, 4  ;;  %v15516_v39 = vpop.permute.xlu0 %3737  ;;  %v2004_v24 = vld [vmem:[#allocation2 + $0x84] sm:$0xe] }
 0x1ea   : > { %v12068_v3 = vcombine.low %v1886_v47, %v1896_v44  ;;  %v2193_v23 = vshrl.u32 %v13934_v25, 16  ;;  %v2196_v6 = vshll.u32 %v13934_v25, 16  ;;  %v2966_v1 = vshrl.u32 %v15463_v55, 16  ;;  %v15524_v9 = vpop.permute.xlu1 %3315 }
 0x1eb   : > { %3599 = vrot.lane.b32.xlu0 %v12125_v54, %s14228_s12  ;;  %v2209_v20 = vor.u32 %v2208_v7, %v2204_v16  ;;  %v2214_v60 = vrot.slane %v2212_v17, 5  ;;  %v2969_v49 = vshll.u32 %v15463_v55, 16  ;;  %v2975_v8 = vshll.u32 %v15469_v41, 16  ;;  %v15522_v54 = vld [vmem:[#allocation2 + $0x8c] sm:$0x1] }
 0x1ec   : > { %3331 = vrot.lane.b32.xlu1 %v12068_v3, %s14228_s12  ;;  %v2195_v50 = vrot.slane %v2193_v23, 4  ;;  %v2198_v47 = vrot.slane %v2196_v6, 5  ;;  %v2968_v44 = vrot.slane %v2966_v1, 4  ;;  %v2979_v59 = vshrl.u32 %v15469_v41, 16  ;;  %v15527_v17 = vld [vmem:[#allocation2 + $0x88] sm:$0xf] }
 0x1ed   : > { %v2210_v11 = vrot.slane %v2209_v20, 4  ;;  %v2971_v25 = vrot.slane %v2969_v49, 5  ;;  %v2977_v3 = vrot.slane %v2975_v8, 5  ;;  %v2985_v7 = vshll.u32 %v15513_v48, 16 }
 0x1ee   : > { %v2199_v55 = vor.u32 %v2198_v47, %v2195_v50  ;;  %v2981_v38 = vrot.slane %v2979_v59, 4  ;;  %v12014_v29 = vrot.slane %v2004_v24, 9  ;;  %v2131_v23 = vrot.slane %v15527_v17, 5  ;;  %v15536_v50 = vpop.permute.xlu0 %3669 }
 0x1ef   : > { %v2215_v6 = vsel %vm14373_vm9, %v2210_v11, %v2214_v60  ;;  %v2972_v41 = vor.u32 %v2971_v25, %v2968_v44  ;;  %v2987_v1 = vrot.slane %v2985_v7, 5  ;;  %v2134_v20 = vrot.slane %v15522_v54, 5  ;;  %v15545_v11 = vld [vmem:[#allocation2 + $0x8c] sm:$0x1]  ;;  %v15548_v25 = vpop.permute.xlu1 %3391 }
 0x1f0   : > { %3487 = vrot.lane.b32.xlu1 %v12097_v36, %s14229_s17  ;;  %v2200_v49 = vrot.slane %v2199_v55, 4  ;;  %v2982_v8 = vor.u32 %v2981_v38, %v2977_v3  ;;  %v2132_v62 = vsel %vm14364_vm6, %v12014_v29, %v2131_v23  ;;  %v2133_v31 = vrot.slane %v2131_v23, 4  ;;  %20392 = vst [vmem:[#allocation38_spill] sm:$0xff] %v15548_v25 }
 0x1f1   : > { %v2973_v24 = vrot.slane %v2972_v41, 4  ;;  %v2942_v47 = vshrl.u32 %v15436_v57, 16  ;;  %v2945_v59 = vshll.u32 %v15436_v57, 16  ;;  %v2951_v60 = vshll.u32 %v15439_v10, 16  ;;  %v2539_v41 = vld [vmem:[#allocation2 + $0x90] sm:$0xe] }
 0x1f2   : > { %v2205_v36 = vsel %vm14373_vm9, %v2200_v49, %v2204_v16  ;;  %v2983_v44 = vrot.slane %v2982_v8, 4  ;;  %v2135_v38 = vsel %vm14364_vm6, %v2133_v31, %v2134_v20  ;;  %v2955_v29 = vshrl.u32 %v15439_v10, 16  ;;  %v2189_v31 = vld [vmem:[#allocation2 + $0x98] sm:$0x1] }
 0x1f3   : > { %v12101_v7 = vcombine.low %v2205_v36, %v2215_v6  ;;  %v2978_v55 = vsel %vm14373_vm9, %v2973_v24, %v2977_v3  ;;  %v12084_v57 = vcombine.low %v2132_v62, %v2135_v38  ;;  %v2944_v23 = vrot.slane %v2942_v47, 4  ;;  %v2173_v3 = vld [vmem:[#allocation2 + $0x94] sm:$0xf]  ;;  %v2172_v47 = vld [vmem:[#allocation2 + $0x90] sm:$0xf] }
 0x1f4   : > { %v2988_v16 = vsel %vm14373_vm9, %v2983_v44, %v2987_v1  ;;  %v2947_v49 = vrot.slane %v2945_v59, 5  ;;  %v2953_v8 = vrot.slane %v2951_v60, 5  ;;  %v2957_v37 = vrot.slane %v2955_v29, 4  ;;  %v3061_v1 = vld [vmem:[#allocation2 + $0x18] sm:$0xe] }
 0x1f5   : > { %vm20266_vm0 = vcmask 785408   ;;  %v3917_v10 = vsel %vm20274_vm13, %v12101_v7, %v15368_v51  ;;  %v12153_v20 = vcombine.low %v2978_v55, %v2988_v16  ;;  %3405 = vrot.lane.b32.xlu1 %v12084_v57, %s14227_s10  ;;  %v2961_v6 = vshll.u32 %v15545_v11, 16  ;;  %v15558_v59 = vpop.permute.xlu0 %3735  ;;  %v1634_v7 = vld [vmem:[#allocation2 + $0x84] sm:$0xf] }
 0x1f6   : > { %v2948_v62 = vor.u32 %v2947_v49, %v2944_v23  ;;  %v2958_v24 = vor.u32 %v2957_v37, %v2953_v8  ;;  %v12028_v36 = vrot.slane %v2539_v41, 9  ;;  %v2663_v38 = vrot.slane %v2173_v3, 5  ;;  %v15566_v41 = vpop.permute.xlu1 %3389  ;;  %v13935_v49 = vld [vmem:[#allocation2 + $0x1c] sm:$0xf] }
 0x1f7   : > { %v3846_v60 = vsel %vm20273_vm2, %v15493_v27, %v15330_v13  ;;  %3753 = vrot.lane.b32.xlu0 %v12153_v20, %s14229_s17  ;;  %v2963_v51 = vrot.slane %v2961_v6, 5  ;;  %v12098_v44 = vcombine.low %v2172_v47, %v2173_v3  ;;  %v2666_v29 = vrot.slane %v2189_v31, 5  ;;  %v13408_v20 = vld [vmem:[%s20198_s3 + $0x88] sm:$0xff]   ;;  %v13936_v47 = vld [vmem:[#allocation2 + $0x20] sm:$0x1] }
 0x1f8   : > { %v2949_v55 = vrot.slane %v2948_v62, 4  ;;  %v2959_v57 = vrot.slane %v2958_v24, 4  ;;  %v2665_v23 = vrot.slane %v2663_v38, 4  ;;  %v3958_v37 = vsel %vm20273_vm2, %v3917_v10, %v15353_v53 }
 0x1f9   : > { %v3874_v16 = vsel %vm20266_vm0, %v3846_v60, %v15389_v58  ;;  %3489 = vrot.lane.b32.xlu1 %v12098_v44, %s14229_s17  ;;  %v3986_v13 = vsel %vm20266_vm0, %v3958_v37, %v15407_v56  ;;  %v12031_v27 = vrot.slane %v3061_v1, 9  ;;  %v3119_v31 = vrot.slane %v13935_v49, 5  ;;  %v15582_v3 = vpop.permute.xlu0 %3589 }
 0x1fa   : > { %v2954_v53 = vsel %vm14373_vm9, %v2949_v55, %v2953_v8  ;;  %v2964_v10 = vsel %vm14373_vm9, %v2959_v57, %v2963_v51  ;;  %v2664_v58 = vsel %vm14364_vm6, %v12028_v36, %v2663_v38  ;;  %4250 = vmatprep.mubr.bf16.mxu0 %v3986_v13  ;;  %v1922_v6 = vshrl.u32 %v1634_v7, 16  ;;  %v13937_v8 = vld [vmem:[%s20198_s3 + $0x80] sm:$0xff]   ;;  %v15601_v13 = vpop.permute.xlu1 %3477 }
 0x1fb   : > { %v12152_v56 = vcombine.low %v2954_v53, %v2964_v10  ;;  %v2667_v62 = vsel %vm14364_vm6, %v2665_v23, %v2666_v29  ;;  %4251 = vmatmul.mubr.bf16.vlgmr.msra.gmra.mrb[28].mxu0 %v3874_v16  ;;  %v3121_v24 = vrot.slane %v3119_v31, 4  ;;  %v3122_v1 = vrot.slane %v13936_v47, 5  ;;  %v1636_v16 = vld [vmem:[#allocation2 + $0x90] sm:$0xf]  ;;  %20393 = vst [vmem:[#allocation39_spill] sm:$0xff] %v15601_v13 }
 0x1fc   : > { %13162 = vmatpush3.bf16.msra.mxu0 %v13937_v8  ;;  %v1924_v60 = vrot.slane %v1922_v6, 4  ;;  %v1925_v51 = vshll.u32 %v1634_v7, 16  ;;  %v1931_v36 = vshll.u32 %v15527_v17, 16  ;;  %v1935_v38 = vshrl.u32 %v15527_v17, 16  ;;  %v13939_v6 = vld [vmem:[#allocation2 + $0x34] sm:$0xf] }
 0x1fd   : > { %v2229_v44 = vsel %vm14373_vm9, %v15499_v46, %v15465_v28  ;;  %3751 = vrot.lane.b32.xlu0 %v12152_v56, %s14229_s17  ;;  %v3120_v29 = vsel %vm14364_vm6, %v12031_v27, %v3119_v31  ;;  %v3123_v55 = vsel %vm14364_vm6, %v3121_v24, %v3122_v1  ;;  %v1941_v57 = vshll.u32 %v15522_v54, 16  ;;  %13163 = vmatprep.subr.bf16.mxu0 %v13408_v20  ;;  %v13938_v46 = vld [vmem:[#allocation2 + $0x30] sm:$0xf]  ;;  %v15604_v24 = vld [vmem:[#allocation2 + $0x94] sm:$0xf]  ;;  %v15606_v47 = vpop.permute.xlu0 %3587 }
 0x1fe   : > { %v12157_v7 = vcombine.low %v3120_v29, %v3123_v55  ;;  %v1927_v23 = vrot.slane %v1925_v51, 5  ;;  %v1933_v37 = vrot.slane %v1931_v36, 5  ;;  %v1937_v17 = vrot.slane %v1935_v38, 4  ;;  %v15614_v1 = vld [vmem:[#allocation2 + $0x9c] sm:$0xf] }
 0x1ff   : > { %v12126_v49 = vcombine.low %v2664_v58, %v2667_v62  ;;  %v1943_v28 = vrot.slane %v1941_v57, 5  ;;  %v2265_v53 = vshrl.u32 %v13938_v46, 16  ;;  %v2268_v10 = vshll.u32 %v13938_v46, 16  ;;  %v15616_v51 = vld [vmem:[#allocation2 + $0x98] sm:$0x1] }
 0x200   : > { %13165 = vmatprep.mubr.msk.bf16.mxu0 %vm20274_vm13, %v12157_v7  ;;  %v1928_v27 = vor.u32 %v1927_v23, %v1924_v60  ;;  %v1938_v31 = vor.u32 %v1937_v17, %v1933_v37  ;;  %v2274_v56 = vshll.u32 %v13939_v6, 16  ;;  %v2278_v54 = vshrl.u32 %v13939_v6, 16  ;;  %13164 = vmatpush3.bf16.msra.mxu0 %v13408_v20  ;;  %v15618_v29 = vld [vmem:[#allocation2 + $0xa0] sm:$0xf]  ;;  %v2540_v17 = vld [vmem:[#allocation2 + $0x9c] sm:$0xe] }
 0x201   : > { %v20394_v58 = vsel %vm14373_vm9, %v15485_v33, %v15495_v34  ;;  %3601 = vrot.lane.b32.xlu0 %v12126_v49, %s14228_s12  ;;  %v2267_v8 = vrot.slane %v2265_v53, 4  ;;  %v2270_v60 = vrot.slane %v2268_v10, 5  ;;  %v1946_v36 = vshrl.u32 %v1636_v16, 16  ;;  %v13940_v34 = vld [vmem:[#allocation2 + $0x38] sm:$0x1] }
 0x202   : > { %v12102_v62 = vcombine.low %v2229_v44, %v20394_v58  ;;  %v1929_v20 = vrot.slane %v1928_v27, 4  ;;  %v1939_v38 = vrot.slane %v1938_v31, 4  ;;  %v15620_v55 = vrot.slane %v2274_v56, 5  ;;  %v15629_v27 = vpop.permute.xlu1 %3321  ;;  %v3062_v58 = vld [vmem:[#allocation2 + $0x24] sm:$0xe] }
 0x203   : > { %v2280_v57 = vrot.slane %v2278_v54, 4  ;;  %v12140_v33 = vcombine.low %v15614_v1, %v15618_v29  ;;  %v2284_v44 = vshll.u32 %v13940_v34, 16  ;;  %v1948_v7 = vrot.slane %v1946_v36, 4  ;;  %v2190_v54 = vld [vmem:[#allocation2 + $0xa4] sm:$0x1] }
 0x204   : > { %v1949_v23 = vshll.u32 %v1636_v16, 16  ;;  %v1934_v49 = vsel %vm14373_vm9, %v1929_v20, %v1933_v37  ;;  %v1944_v46 = vsel %vm14373_vm9, %v1939_v38, %v1943_v28  ;;  %v2271_v53 = vor.u32 %v2270_v60, %v2267_v8  ;;  %v15637_v8 = vld [vmem:[#allocation2 + $0xa0] sm:$0xf]  ;;  %v15639_v20 = vpop.permute.xlu0 %3675  ;;  %v15729_v13 = vld [vmem:[#allocation2 + $0xa4] sm:$0x1] }
 0x205   : > { %v1955_v10 = vshll.u32 %v15604_v24, 16  ;;  %v12070_v31 = vcombine.low %v1934_v49, %v1944_v46  ;;  %3685 = vrot.lane.b32.xlu0 %v12140_v33, %s14227_s10  ;;  %v2281_v6 = vor.u32 %v2280_v57, %v15620_v55  ;;  %v1959_v16 = vshrl.u32 %v15604_v24, 16  ;;  %20395 = vst [vmem:[#allocation40_spill] sm:$0xff] %v15639_v20 }
 0x206   : > { %v1951_v56 = vrot.slane %v1949_v23, 5  ;;  %v3920_v37 = vsel %vm20274_vm13, %v12102_v62, %v15347_v0  ;;  %v1965_v28 = vshll.u32 %v15616_v51, 16  ;;  %v12029_v60 = vrot.slane %v2540_v17, 9  ;;  %v15655_v43 = vpop.permute.xlu1 %3475 }
 0x207   : > { %v1957_v36 = vrot.slane %v1955_v10, 5  ;;  %v15643_v38 = vsel %vm20273_vm2, %v3920_v37, %v15427_v21  ;;  %3335 = vrot.lane.b32.xlu1 %v12070_v31, %s14228_s12  ;;  %v1961_v33 = vrot.slane %v1959_v16, 4  ;;  %v2670_v34 = vrot.slane %v15637_v8, 5  ;;  %v13941_v31 = vld [vmem:[#allocation2 + $0x28] sm:$0xf]  ;;  %20396 = vst [vmem:[#allocation41_spill] sm:$0xff] %v15655_v43 }
 0x208   : > { %v1952_v57 = vor.u32 %v1951_v56, %v1948_v7  ;;  %v15647_v23 = vrot.slane %v2271_v53, 4  ;;  %v15649_v0 = vrot.slane %v2284_v44, 5  ;;  %v2673_v62 = vrot.slane %v2190_v54, 5  ;;  %v13942_v56 = vld [vmem:[#allocation2 + $0x24] sm:$0xf] }
 0x209   : > { %v12032_v49 = vrot.slane %v3062_v58, 9  ;;  %v15651_v46 = vrot.slane %v2281_v6, 4  ;;  %v1962_v10 = vor.u32 %v1961_v33, %v1957_v36  ;;  %v1967_v4 = vrot.slane %v1965_v28, 5  ;;  %v13943_v54 = vld [vmem:[#allocation2 + $0x2c] sm:$0x1] }
 0x20a   : > { %v1953_v17 = vrot.slane %v1952_v57, 4  ;;  %v2671_v21 = vsel %vm14364_vm6, %v12029_v60, %v2670_v34  ;;  %v2672_v37 = vrot.slane %v2670_v34, 4  ;;  %v3126_v7 = vrot.slane %v13941_v31, 5  ;;  %v3063_v34 = vld [vmem:[#allocation2 + $0x30] sm:$0xe] }
 0x20b   : > { %v2241_v16 = vshrl.u32 %v13942_v56, 16  ;;  %v1963_v53 = vrot.slane %v1962_v10, 4  ;;  %v3129_v6 = vrot.slane %v13943_v54, 5  ;;  %v2244_v58 = vshll.u32 %v13942_v56, 16  ;;  %v15663_v31 = vpop.permute.xlu0 %3741 }
 0x20c   : > { %v1958_v44 = vsel %vm14373_vm9, %v1953_v17, %v1957_v36  ;;  %v2674_v28 = vsel %vm14364_vm6, %v2672_v37, %v2673_v62  ;;  %v3127_v60 = vsel %vm14364_vm6, %v12032_v49, %v3126_v7  ;;  %v3128_v57 = vrot.slane %v3126_v7, 4  ;;  %20397 = vst [vmem:[#allocation42_spill] sm:$0xff] %v15663_v31  ;;  %v13944_v17 = vld [vmem:[#allocation2 + $0x28] sm:$0xf]  ;;  %v13945_v37 = vld [vmem:[#allocation2 + $0x2c] sm:$0x1] }
 0x20d   : > { %v2243_v33 = vrot.slane %v2241_v16, 4  ;;  %v1968_v45 = vsel %vm14373_vm9, %v1963_v53, %v1967_v4  ;;  %v12127_v12 = vcombine.low %v2671_v21, %v2674_v28  ;;  %v2246_v36 = vrot.slane %v2244_v58, 5  ;;  %v2005_v49 = vld [vmem:[#allocation2 + $0x90] sm:$0xe]  ;;  %v13946_v53 = vld [vmem:[#allocation2 + $0x34] sm:$0xf]  ;;  %v15671_v28 = vpop.permute.xlu1 %3319 }
 0x20e   : > { %v2250_v10 = vshll.u32 %v13944_v17, 16  ;;  %v12071_v54 = vcombine.low %v1958_v44, %v1968_v45  ;;  %v3130_v56 = vsel %vm14364_vm6, %v3128_v57, %v3129_v6  ;;  %v2254_v62 = vshrl.u32 %v13944_v17, 16  ;;  %v13947_v45 = vld [vmem:[#allocation2 + $0x38] sm:$0x1] }
 0x20f   : > { %v2260_v32 = vshll.u32 %v13945_v37, 16  ;;  %3603 = vrot.lane.b32.xlu0 %v12127_v12, %s14228_s12  ;;  %v12158_v7 = vcombine.low %v3127_v60, %v3130_v56  ;;  %v2247_v16 = vor.u32 %v2246_v36, %v2243_v33  ;;  %v12033_v22 = vrot.slane %v3063_v34, 9  ;;  %v15673_v6 = vpop.permute.xlu0 %3673 }
 0x210   : > { %v2252_v19 = vrot.slane %v2250_v10, 5  ;;  %3337 = vrot.lane.b32.xlu1 %v12071_v54, %s14228_s12  ;;  %v2256_v4 = vrot.slane %v2254_v62, 4  ;;  %v3133_v58 = vrot.slane %v13946_v53, 5  ;;  %v3136_v44 = vrot.slane %v13947_v45, 5  ;;  %v15685_v62 = vld [vmem:[#allocation2 + $0xa4] sm:$0x1] }
 0x211   : > { %v2262_v21 = vrot.slane %v2260_v32, 5  ;;  %13166 = vmatmul.mubr.msk.bf16.vlgmr.msra.gmra.mrb[32].mxu0 %vm20274_vm13, %v12158_v7  ;;  %v2248_v57 = vrot.slane %v2247_v16, 4  ;;  %v12015_v12 = vrot.slane %v2005_v49, 9  ;;  %v2138_v60 = vrot.slane %v15604_v24, 5  ;;  %v3064_v53 = vld [vmem:[#allocation2 + $0x3c] sm:$0xe] }
 0x212   : > { %v2141_v33 = vrot.slane %v15616_v51, 5  ;;  %v2257_v34 = vor.u32 %v2256_v4, %v2252_v19  ;;  %v3134_v32 = vsel %vm14364_vm6, %v12033_v22, %v3133_v58  ;;  %v3135_v36 = vrot.slane %v3133_v58, 4 }
 0x213   : > { %v2990_v17 = vshrl.u32 %v15614_v1, 16  ;;  %v2253_v10 = vsel %vm14373_vm9, %v2248_v57, %v2252_v19  ;;  %v2139_v54 = vsel %vm14364_vm6, %v12015_v12, %v2138_v60  ;;  %v2140_v56 = vrot.slane %v2138_v60, 4  ;;  %v15697_v12 = vpop.permute.xlu1 %3395  ;;  %v15701_v60 = vld [vmem:[#allocation2 + $0x1c] sm:$0xf] }
 0x214   : > { %v2993_v24 = vshll.u32 %v15614_v1, 16  ;;  %v2258_v37 = vrot.slane %v2257_v34, 4  ;;  %v3137_v51 = vsel %vm14364_vm6, %v3135_v36, %v3136_v44  ;;  %v2999_v22 = vshll.u32 %v15618_v29, 16  ;;  %20398 = vst [vmem:[#allocation43_spill] sm:$0xff] %v15697_v12  ;;  %v15703_v34 = vld [vmem:[#allocation2 + $0x18] sm:$0xf] }
 0x215   : > { %v2992_v49 = vrot.slane %v2990_v17, 4  ;;  %v12159_v7 = vcombine.low %v3134_v32, %v3137_v51  ;;  %v2142_v16 = vsel %vm14364_vm6, %v2140_v56, %v2141_v33  ;;  %v3003_v4 = vshrl.u32 %v15618_v29, 16  ;;  %v15699_v44 = vpop.permute.xlu0 %3739  ;;  %v3065_v17 = vld [vmem:[#allocation2 + $0x48] sm:$0xe]  ;;  %v13954_v12 = vld [vmem:[#allocation2 + $0x4c] sm:$0xf] }
 0x216   : > { %v2995_v19 = vrot.slane %v2993_v24, 5  ;;  %v2263_v58 = vsel %vm14373_vm9, %v2258_v37, %v2262_v21  ;;  %v12085_v45 = vcombine.low %v2139_v54, %v2142_v16  ;;  %v3001_v1 = vrot.slane %v2999_v22, 5  ;;  %v15719_v24 = vld [vmem:[#allocation2 + $0x10] sm:$0xf]  ;;  %v15721_v37 = vld [vmem:[#allocation2 + $0xc] sm:$0xf] }
 0x217   : > { %v3009_v57 = vshll.u32 %v15685_v62, 16  ;;  %13169 = vmatprep.mubr.msk.bf16.mxu0 %vm20274_vm13, %v12159_v7  ;;  %v3005_v36 = vrot.slane %v3003_v4, 4  ;;  %v15716_v56 = vcombine.low %v2253_v10, %v2263_v58  ;;  %v15725_v22 = vld [vmem:[#allocation2 + $0x9c] sm:$0xf]  ;;  %v2707_v58 = vld [vmem:[#allocation2 + $0xa8] sm:$0xf] }
 0x218   : > { %v2996_v32 = vor.u32 %v2995_v19, %v2992_v49  ;;  %3407 = vrot.lane.b32.xlu1 %v12085_v45, %s14227_s10  ;;  %20399 = vst [vmem:[#allocation44_spill] sm:$0xff] %v15725_v22  ;;  %v12034_v49 = vrot.slane %v3064_v53, 9  ;;  %v2006_v7 = vld [vmem:[#allocation2 + $0x9c] sm:$0xe]  ;;  %v12099_v10 = vcombine.low %v15725_v22, %v15637_v8  ;;  %v13952_v21 = vld [vmem:[#allocation2 + $0x40] sm:$0xf]  ;;  %v15742_v22 = vpop.permute.xlu1 %3393 }
 0x219   : > { %v3006_v19 = vor.u32 %v3005_v36, %v3001_v1  ;;  %v3011_v4 = vrot.slane %v3009_v57, 5  ;;  %v3140_v45 = vrot.slane %v13952_v21, 5  ;;  %v13953_v54 = vld [vmem:[#allocation2 + $0x44] sm:$0x1]  ;;  %v12035_v15 = vrot.slane %v3065_v17, 9  ;;  %v15733_v43 = vpop.permute.xlu0 %3593  ;;  %20402 = vst [vmem:[#allocation47_spill] sm:$0xff] %v15742_v22 }
 0x21a   : > { %v2997_v16 = vrot.slane %v2996_v32, 4  ;;  %v3143_v33 = vrot.slane %v13953_v54, 5  ;;  %v3147_v20 = vrot.slane %v13954_v12, 5  ;;  %v13955_v32 = vld [vmem:[#allocation2 + $0x50] sm:$0x1]  ;;  %v12016_v57 = vrot.slane %v2006_v7, 9 }
 0x21b   : > { %v3007_v51 = vrot.slane %v3006_v19, 4  ;;  %v3150_v36 = vrot.slane %v13955_v32, 5  ;;  %20400 = vst [vmem:[#allocation45_spill] sm:$0xff] %v15733_v43  ;;  %v3141_v8 = vsel %vm14364_vm6, %v12034_v49, %v3140_v45  ;;  %v3142_v21 = vrot.slane %v3140_v45, 4  ;;  %v15740_v54 = vld [vmem:[#allocation2 + $0xa0] sm:$0xf] }
 0x21c   : > { %v3002_v53 = vsel %vm14373_vm9, %v2997_v16, %v3001_v1  ;;  %3491 = vrot.lane.b32.xlu1 %v12099_v10, %s14229_s17  ;;  %v3148_v12 = vsel %vm14364_vm6, %v12035_v15, %v3147_v20  ;;  %v3149_v17 = vrot.slane %v3147_v20, 4  ;;  %20401 = vst [vmem:[#allocation46_spill] sm:$0xff] %v15740_v54  ;;  %v15746_v7 = vld [vmem:[#allocation2 + $0xac] sm:$0xf]  ;;  %v2145_v16 = vrot.slane %v15740_v54, 5 }
 0x21d   : > { %v3012_v1 = vsel %vm14373_vm9, %v3007_v51, %v3011_v4  ;;  %v2148_v19 = vrot.slane %v15729_v13, 5  ;;  %v3014_v10 = vshrl.u32 %v2707_v58, 16  ;;  %v3144_v45 = vsel %vm14364_vm6, %v3142_v21, %v3143_v33  ;;  %v15754_v20 = vld [vmem:[#allocation2 + $0xb0] sm:$0x1]  ;;  %v15756_v43 = vld [vmem:[#allocation2 + $0x9c] sm:$0xf] }
 0x21e   : > { %v12154_v49 = vcombine.low %v3002_v53, %v3012_v1  ;;  %v3151_v15 = vsel %vm14364_vm6, %v3149_v17, %v3150_v36  ;;  %v3017_v32 = vshll.u32 %v2707_v58, 16  ;;  %20403 = vst [vmem:[#allocation48_spill] sm:$0xff] %v15756_v43  ;;  %v12160_v51 = vcombine.low %v3141_v8, %v3144_v45  ;;  %v15769_v17 = vpop.permute.xlu0 %3591 }
 0x21f   : > { %v12161_v4 = vcombine.low %v3148_v12, %v3151_v15  ;;  %v2146_v22 = vsel %vm14364_vm6, %v12016_v57, %v2145_v16  ;;  %v2147_v25 = vrot.slane %v2145_v16, 4  ;;  %v3016_v53 = vrot.slane %v3014_v10, 4  ;;  %20404 = vst [vmem:[#allocation49_spill] sm:$0xff] %v15769_v17  ;;  %v2541_v15 = vld [vmem:[#allocation2 + $0xa8] sm:$0xe] }
 0x220   : > { %3755 = vrot.lane.b32.xlu0 %v12154_v49, %s14229_s17  ;;  %v3019_v1 = vrot.slane %v3017_v32, 5  ;;  %v3023_v33 = vshll.u32 %v15746_v7, 16  ;;  %v3027_v21 = vshrl.u32 %v15746_v7, 16  ;;  %v12141_v36 = vcombine.low %v2707_v58, %v15746_v7  ;;  %13170 = vmatmul.mubr.msk.bf16.gmra.mrb[36].mxu0 %vm20274_vm13, %v12160_v51  ;;  %v15772_v32 = vpop.permute.xlu1 %3481 }
 0x221   : > { %v2149_v8 = vsel %vm14364_vm6, %v2147_v25, %v2148_v19  ;;  %v3033_v12 = vshll.u32 %v15754_v20, 16  ;;  %v1970_v57 = vshrl.u32 %v15756_v43, 16  ;;  %13173 = vmatprep.mubr.msk.bf16.mxu0 %vm20274_vm13, %v12161_v4  ;;  %20405 = vst [vmem:[#allocation50_spill] sm:$0xff] %v15772_v32  ;;  %v1973_v31 = vshll.u32 %v15756_v43, 16  ;;  %v15776_v19 = vld [vmem:[#allocation2 + $0xb0] sm:$0x1] }
 0x222   : > { %v12086_v16 = vcombine.low %v2146_v22, %v2149_v8  ;;  %v3020_v10 = vor.u32 %v3019_v1, %v3016_v53  ;;  %v3025_v49 = vrot.slane %v3023_v33, 5  ;;  %v3029_v45 = vrot.slane %v3027_v21, 4  ;;  %20406 = vst [vmem:[#allocation51_spill] sm:$0xff] %v15776_v19  ;;  %v15782_v33 = vld [vmem:[#allocation2 + $0xac] sm:$0xf] }
 0x223   : > { %v3035_v58 = vrot.slane %v3033_v12, 5  ;;  %v1972_v51 = vrot.slane %v1970_v57, 4  ;;  %v1979_v25 = vshll.u32 %v15740_v54, 16  ;;  %v1983_v53 = vshrl.u32 %v15740_v54, 16 }
 0x224   : > { %3687 = vrot.lane.b32.xlu0 %v12141_v36, %s14227_s10  ;;  %3409 = vrot.lane.b32.xlu1 %v12086_v16, %s14227_s10  ;;  %v3021_v4 = vrot.slane %v3020_v10, 4  ;;  %v3030_v22 = vor.u32 %v3029_v45, %v3025_v49  ;;  %v1989_v1 = vshll.u32 %v15729_v13, 16  ;;  %v1975_v21 = vrot.slane %v1973_v31, 5  ;;  %v3066_v45 = vld [vmem:[#allocation2 + $0x54] sm:$0xe] }
 0x225   : > { %v1981_v8 = vrot.slane %v1979_v25, 5  ;;  %v12030_v12 = vrot.slane %v2541_v15, 9  ;;  %v2677_v57 = vrot.slane %v15782_v33, 5  ;;  %v15788_v43 = vsel %vm20274_vm13, %v15716_v56, %v15467_v18  ;;  %v15793_v25 = vpop.permute.xlu0 %3679  ;;  %v13956_v56 = vld [vmem:[#allocation2 + $0x58] sm:$0xf] }
 0x226   : > { %v3026_v36 = vsel %vm14373_vm9, %v3021_v4, %v3025_v49  ;;  %v3031_v16 = vrot.slane %v3030_v22, 4  ;;  %v1985_v10 = vrot.slane %v1983_v53, 4  ;;  %v1976_v54 = vor.u32 %v1975_v21, %v1972_v51  ;;  %v3067_v49 = vld [vmem:[#allocation2 + $0x60] sm:$0xe]  ;;  %v15799_v4 = vpop.permute.xlu1 %3325  ;;  %v2709_v21 = vld [vmem:[#allocation2 + $0xb4] sm:$0xf] }
 0x227   : > { %v1991_v13 = vrot.slane %v1989_v1, 5  ;;  %v2679_v32 = vrot.slane %v2677_v57, 4  ;;  %v2680_v31 = vrot.slane %v15776_v19, 5  ;;  %v2678_v18 = vsel %vm14364_vm6, %v12030_v12, %v2677_v57  ;;  %v13957_v57 = vld [vmem:[#allocation2 + $0x5c] sm:$0x1] }
 0x228   : > { %v3036_v15 = vsel %vm14373_vm9, %v3031_v16, %v3035_v58  ;;  %v1986_v17 = vor.u32 %v1985_v10, %v1981_v8  ;;  %v3154_v2 = vrot.slane %v13956_v56, 5  ;;  %v1977_v51 = vrot.slane %v1976_v54, 4 }
 0x229   : > { %v12155_v22 = vcombine.low %v3026_v36, %v3036_v15  ;;  %v2681_v53 = vsel %vm14364_vm6, %v2679_v32, %v2680_v31  ;;  %v12036_v1 = vrot.slane %v3066_v45, 9  ;;  %v20407_v58 = vcombine.low %v15721_v37, %v15719_v24  ;;  %v13958_v15 = vld [vmem:[#allocation2 + $0x64] sm:$0xf]  ;;  %v13959_v45 = vld [vmem:[#allocation2 + $0x68] sm:$0x1] }
 0x22a   : > { %v1987_v10 = vrot.slane %v1986_v17, 4  ;;  %v3156_v12 = vrot.slane %v3154_v2, 4  ;;  %v3157_v56 = vrot.slane %v13957_v57, 5  ;;  %v1982_v54 = vsel %vm14373_vm9, %v1977_v51, %v1981_v8  ;;  %v15819_v51 = vld [vmem:[#allocation2 + $0xa8] sm:$0xf] }
 0x22b   : > { %v3808_v16 = vsel %vm20274_vm13, %v20407_v58, %v15524_v9  ;;  %3757 = vrot.lane.b32.xlu0 %v12155_v22, %s14229_s17  ;;  %v12037_v36 = vrot.slane %v3067_v49, 9  ;;  %v3161_v32 = vrot.slane %v13958_v15, 5  ;;  %v3164_v31 = vrot.slane %v13959_v45, 5  ;;  %v15821_v58 = vld [vmem:[#allocation2 + $0xb8] sm:$0xf]  ;;  %v15823_v57 = vpop.permute.xlu0 %3745 }
 0x22c   : > { %v1992_v19 = vsel %vm14373_vm9, %v1987_v10, %v1991_v13  ;;  %v12128_v24 = vcombine.low %v2678_v18, %v2681_v53  ;;  %v3158_v9 = vsel %vm14364_vm6, %v3156_v12, %v3157_v56  ;;  %v3038_v37 = vshrl.u32 %v2709_v21, 16  ;;  %v13960_v56 = vld [vmem:[#allocation2 + $0x48] sm:$0xf] }
 0x22d   : > { %v12072_v17 = vcombine.low %v1982_v54, %v1992_v19  ;;  %v3155_v22 = vsel %vm14364_vm6, %v12036_v1, %v3154_v2  ;;  %v3162_v8 = vsel %vm14364_vm6, %v12037_v36, %v3161_v32  ;;  %v3163_v49 = vrot.slane %v3161_v32, 4  ;;  %v15827_v19 = vpop.permute.xlu1 %3479 }
 0x22e   : > { %v12162_v13 = vcombine.low %v3155_v22, %v3158_v9  ;;  %v12100_v18 = vcombine.low %v15819_v51, %v15782_v33  ;;  %v3040_v53 = vrot.slane %v3038_v37, 4  ;;  %v3041_v10 = vshll.u32 %v2709_v21, 16  ;;  %v13961_v9 = vld [vmem:[#allocation2 + $0x4c] sm:$0xf] }
 0x22f   : > { %3339 = vrot.lane.b32.xlu1 %v12072_v17, %s14228_s12  ;;  %3605 = vrot.lane.b32.xlu0 %v12128_v24, %s14228_s12  ;;  %v3165_v2 = vsel %vm14364_vm6, %v3163_v49, %v3164_v31  ;;  %v12142_v1 = vcombine.low %v2709_v21, %v15821_v58  ;;  %v3989_v12 = vsel %vm20266_vm0, %v15643_v38, %v15558_v59  ;;  %v2313_v54 = vshrl.u32 %v13960_v56, 16  ;;  %v15872_v22 = vpop.permute.xlu0 %3677  ;;  %v13962_v49 = vld [vmem:[#allocation2 + $0x50] sm:$0x1] }
 0x230   : > { %13174 = vmatmul.mubr.msk.bf16.gmra.mrb[40].mxu0 %vm20274_vm13, %v12162_v13  ;;  %v12163_v36 = vcombine.low %v3162_v8, %v3165_v2  ;;  %v3043_v15 = vrot.slane %v3041_v10, 5  ;;  %v3051_v32 = vshrl.u32 %v15821_v58, 16  ;;  %4258 = vmatprep.mubr.bf16.mxu1 %v3989_v12  ;;  %v3848_v45 = vsel %vm20273_vm2, %v3808_v16, %v15433_v35 }
 0x231   : > { %v3877_v31 = vsel %vm20266_vm0, %v3848_v45, %v15371_v30  ;;  %v2315_v21 = vrot.slane %v2313_v54, 4  ;;  %v2316_v24 = vshll.u32 %v13960_v56, 16  ;;  %v2322_v37 = vshll.u32 %v13961_v9, 16  ;;  %v13963_v54 = vld [vmem:[#allocation2 + $0x70] sm:$0xf] }
 0x232   : > { %v20408_v59 = vcombine.low %v15703_v34, %v15701_v60  ;;  %v20409_v17 = vsel %vm14373_vm9, %v15651_v46, %v15649_v0  ;;  %v20410_v30 = vsel %vm14373_vm9, %v15647_v23, %v15620_v55  ;;  %13177 = vmatprep.mubr.msk.bf16.mxu0 %vm20274_vm13, %v12163_v36  ;;  %4259 = vmatmul.mubr.bf16.vlgmr.msra.gmra.mrb[0].mxu1 %v3877_v31  ;;  %v2326_v16 = vshrl.u32 %v13961_v9, 16  ;;  %v15864_v60 = vld [vmem:[#allocation2 + $0xbc] sm:$0x1]  ;;  %v3068_v34 = vld [vmem:[#allocation2 + $0x6c] sm:$0xe] }
 0x233   : > { %v12104_v35 = vcombine.low %v20410_v30, %v20409_v17  ;;  %3493 = vrot.lane.b32.xlu1 %v12100_v18, %s14229_s17  ;;  %3689 = vrot.lane.b32.xlu0 %v12142_v1, %s14227_s10  ;;  %v2318_v0 = vrot.slane %v2316_v24, 5  ;;  %v15868_v46 = vrot.slane %v2322_v37, 5  ;;  %v3044_v23 = vor.u32 %v3043_v15, %v3040_v53  ;;  %v15875_v18 = vpop.permute.xlu1 %3323  ;;  %v13964_v45 = vld [vmem:[#allocation2 + $0x74] sm:$0x1]  ;;  %v13965_v24 = vld [vmem:[#allocation2 + $0x3c] sm:$0xf] }
 0x234   : > { %v15848_v38 = vsel %vm20274_vm13, %v20408_v59, %v15476_v61  ;;  %v3962_v61 = vsel %vm20273_vm2, %v15788_v43, %v15385_v52  ;;  %v2328_v8 = vrot.slane %v2326_v16, 4  ;;  %v2332_v13 = vshll.u32 %v13962_v49, 16 }
 0x235   : > { %v3992_v55 = vsel %vm20266_vm0, %v3962_v61, %v15516_v39  ;;  %v3047_v43 = vshll.u32 %v15821_v58, 16  ;;  %v3053_v52 = vrot.slane %v3051_v32, 4  ;;  %v3926_v10 = vsel %vm20274_vm13, %v12104_v35, %v15450_v5 }
 0x236   : > { %4266 = vmatprep.mubr.bf16.mxu1 %v3992_v55  ;;  %v2319_v2 = vor.u32 %v2318_v0, %v2315_v21  ;;  %v3045_v1 = vrot.slane %v3044_v23, 4  ;;  %v3057_v39 = vshll.u32 %v15864_v60, 16  ;;  %v2329_v53 = vor.u32 %v2328_v8, %v15868_v46  ;;  %v13966_v55 = vld [vmem:[#allocation2 + $0x40] sm:$0xf] }
 0x237   : > { %v3049_v12 = vrot.slane %v3047_v43, 5  ;;  %v12038_v56 = vrot.slane %v3068_v34, 9  ;;  %v3168_v36 = vrot.slane %v13963_v54, 5  ;;  %v15883_v15 = vsel %vm20273_vm2, %v3926_v10, %v15536_v50  ;;  %v15887_v61 = vpop.permute.xlu0 %3743  ;;  %v15891_v8 = vpop.permute.xlu1 %3399  ;;  %v3069_v10 = vld [vmem:[#allocation2 + $0x78] sm:$0xe] }
 0x238   : > { %v2320_v32 = vrot.slane %v2319_v2, 4  ;;  %v3171_v31 = vrot.slane %v13964_v45, 5  ;;  %v2289_v9 = vshrl.u32 %v13965_v24, 16  ;;  %v2330_v5 = vrot.slane %v2329_v53, 4  ;;  %v15904_v54 = vld [vmem:[#allocation2 + $0x30] sm:$0xf] }
 0x239   : > { %v2334_v21 = vrot.slane %v2332_v13, 5  ;;  %v3054_v37 = vor.u32 %v3053_v52, %v3049_v12  ;;  %v3059_v59 = vrot.slane %v3057_v39, 5  ;;  %v3169_v17 = vsel %vm14364_vm6, %v12038_v56, %v3168_v36  ;;  %v15902_v56 = vld [vmem:[#allocation2 + $0x34] sm:$0xf]  ;;  %v13969_v45 = vld [vmem:[#allocation2 + $0x44] sm:$0x1] }
 0x23a   : > { %v3170_v30 = vrot.slane %v3168_v36, 4  ;;  %v2291_v35 = vrot.slane %v2289_v9, 4  ;;  %v2292_v16 = vshll.u32 %v13965_v24, 16  ;;  %v3050_v50 = vsel %vm14373_vm9, %v3045_v1, %v3049_v12  ;;  %v3070_v12 = vld [vmem:[#allocation2 + $0x84] sm:$0xe] }
 0x23b   : > { %v3055_v0 = vrot.slane %v3054_v37, 4  ;;  %v2298_v23 = vshll.u32 %v13966_v55, 16  ;;  %v2302_v34 = vshrl.u32 %v13966_v55, 16  ;;  %v2325_v49 = vsel %vm14373_vm9, %v2320_v32, %v15868_v46  ;;  %v13971_v37 = vld [vmem:[#allocation2 + $0x80] sm:$0x1] }
 0x23c   : > { %v2335_v13 = vsel %vm14373_vm9, %v2330_v5, %v2334_v21  ;;  %v3172_v43 = vsel %vm14364_vm6, %v3170_v30, %v3171_v31  ;;  %v2294_v52 = vrot.slane %v2292_v16, 5  ;;  %v12049_v46 = vcombine.low %v15904_v54, %v15902_v56  ;;  %v13970_v5 = vld [vmem:[#allocation2 + $0x7c] sm:$0xf] }
 0x23d   : > { %v3060_v2 = vsel %vm14373_vm9, %v3055_v0, %v3059_v59  ;;  %v12164_v1 = vcombine.low %v3169_v17, %v3172_v43  ;;  %v2300_v39 = vrot.slane %v2298_v23, 5  ;;  %v2304_v53 = vrot.slane %v2302_v34, 4  ;;  %v15913_v0 = vpop.permute.xlu0 %3597 }
 0x23e   : > { %v12156_v36 = vcombine.low %v3050_v50, %v3060_v2  ;;  %v2295_v32 = vor.u32 %v2294_v52, %v2291_v35  ;;  %v2308_v31 = vshll.u32 %v13969_v45, 16  ;;  %v12039_v9 = vrot.slane %v3069_v10, 9  ;;  %v3071_v35 = vld [vmem:[#allocation2 + $0x90] sm:$0xe]  ;;  %v13972_v52 = vld [vmem:[#allocation2 + $0x28] sm:$0xf] }
 0x23f   : > { %13178 = vmatmul.mubr.msk.bf16.gmra.mrb[44].mxu0 %vm20274_vm13, %v12164_v1  ;;  %v2305_v24 = vor.u32 %v2304_v53, %v2300_v39  ;;  %v3175_v21 = vrot.slane %v13970_v5, 5  ;;  %v3178_v59 = vrot.slane %v13971_v37, 5  ;;  %v12106_v17 = vcombine.low %v2325_v49, %v2335_v13  ;;  %v15919_v49 = vpop.permute.xlu1 %3397  ;;  %v13973_v10 = vld [vmem:[#allocation2 + $0x24] sm:$0xf]  ;;  %v3072_v45 = vld [vmem:[#allocation2 + $0x9c] sm:$0xe] }
 0x240   : > { %3759 = vrot.lane.b32.xlu0 %v12156_v36, %s14229_s17  ;;  %v2296_v30 = vrot.slane %v2295_v32, 4  ;;  %v3850_v16 = vsel %vm20273_vm2, %v15848_v38, %v15413_v14  ;;  %v12040_v50 = vrot.slane %v3070_v12, 9  ;;  %v2310_v13 = vrot.slane %v2308_v31, 5  ;;  %v13974_v14 = vld [vmem:[#allocation2 + $0x88] sm:$0xf] }
 0x241   : > { %v2306_v55 = vrot.slane %v2305_v24, 4  ;;  %v3176_v23 = vsel %vm14364_vm6, %v12039_v9, %v3175_v21  ;;  %v3177_v34 = vrot.slane %v3175_v21, 4  ;;  %v3880_v43 = vsel %vm20266_vm0, %v3850_v16, %v15497_v63  ;;  %v13975_v32 = vld [vmem:[#allocation2 + $0x94] sm:$0xf] }
 0x242   : > { %4267 = vmatmul.mubr.bf16.gmra.mrb[4].mxu1 %v3880_v43  ;;  %v12048_v2 = vcombine.low %v13973_v10, %v13972_v52  ;;  %v3182_v38 = vrot.slane %v13974_v14, 5  ;;  %v3185_v1 = vrot.slane %v15545_v11, 5  ;;  %v2301_v53 = vsel %vm14373_vm9, %v2296_v30, %v2300_v39 }
 0x243   : > { %v3179_v12 = vsel %vm14364_vm6, %v3177_v34, %v3178_v59  ;;  %v12041_v36 = vrot.slane %v3071_v35, 9  ;;  %v3189_v63 = vrot.slane %v13975_v32, 5  ;;  %v2311_v31 = vsel %vm14373_vm9, %v2306_v55, %v2310_v13  ;;  %v3073_v59 = vld [vmem:[#allocation2 + $0xa8] sm:$0xe]  ;;  %v15941_v55 = vpop.permute.xlu0 %3595  ;;  %v15946_v34 = vpop.permute.xlu1 %3485 }
 0x244   : > { %v12165_v24 = vcombine.low %v3176_v23, %v3179_v12  ;;  %v3183_v9 = vsel %vm14364_vm6, %v12040_v50, %v3182_v38  ;;  %v3184_v5 = vrot.slane %v3182_v38, 4  ;;  %v3932_v11 = vsel %vm20274_vm13, %v12106_v17, %v15582_v3 }
 0x245   : > { %v3190_v39 = vsel %vm14364_vm6, %v12041_v36, %v3189_v63  ;;  %v3191_v21 = vrot.slane %v3189_v63, 4  ;;  %v3192_v37 = vrot.slane %v15513_v48, 5  ;;  %v3814_v30 = vsel %vm20274_vm13, %v12048_v2, %v15671_v28  ;;  %v13977_v36 = vld [vmem:[#allocation2 + $0x64] sm:$0xf] }
 0x246   : > { %13181 = vmatprep.mubr.msk.bf16.mxu0 %vm20274_vm13, %v12165_v24  ;;  %v3186_v16 = vsel %vm14364_vm6, %v3184_v5, %v3185_v1  ;;  %v12042_v50 = vrot.slane %v3072_v45, 9  ;;  %v3196_v35 = vrot.slane %v15618_v29, 5  ;;  %v12105_v3 = vcombine.low %v2301_v53, %v2311_v31 }
 0x247   : > { %v12166_v17 = vcombine.low %v3183_v9, %v3186_v16  ;;  %v3193_v23 = vsel %vm14364_vm6, %v3191_v21, %v3192_v37  ;;  %v3199_v48 = vrot.slane %v15685_v62, 5  ;;  %v12043_v28 = vrot.slane %v3073_v59, 9  ;;  %v15980_v45 = vpop.permute.xlu1 %3329  ;;  %v13978_v9 = vld [vmem:[#allocation2 + $0x68] sm:$0x1]  ;;  %v13979_v37 = vld [vmem:[#allocation2 + $0x54] sm:$0xf] }
 0x248   : > { %v12167_v43 = vcombine.low %v3190_v39, %v3193_v23  ;;  %v3198_v13 = vrot.slane %v3196_v35, 4  ;;  %v3203_v52 = vrot.slane %v15746_v7, 5  ;;  %v3197_v29 = vsel %vm14364_vm6, %v12042_v50, %v3196_v35  ;;  %v13980_v16 = vld [vmem:[#allocation2 + $0x58] sm:$0xf]  ;;  %v13981_v23 = vld [vmem:[#allocation2 + $0x5c] sm:$0x1] }
 0x249   : > { %13182 = vmatmul.mubr.msk.bf16.gmra.mrb[48].mxu0 %vm20274_vm13, %v12166_v17  ;;  %v3206_v10 = vrot.slane %v15754_v20, 5  ;;  %v3995_v2 = vsel %vm20266_vm0, %v15883_v15, %v15699_v44  ;;  %v3852_v62 = vsel %vm20273_vm2, %v3814_v30, %v15566_v41  ;;  %v3929_v14 = vsel %vm20274_vm13, %v12105_v3, %v15606_v47  ;;  %v13976_v47 = vld [vmem:[#allocation2 + $0x60] sm:$0xf]  ;;  %v15974_v63 = vpop.permute.xlu0 %3749 }
 0x24a   : > { %13185 = vmatprep.mubr.msk.bf16.mxu0 %vm20274_vm13, %v12167_v43  ;;  %v3200_v7 = vsel %vm14364_vm6, %v3198_v13, %v3199_v48  ;;  %v3205_v38 = vrot.slane %v3203_v52, 4  ;;  %4274 = vmatprep.mubr.bf16.mxu1 %v3995_v2  ;;  %v3883_v20 = vsel %vm20266_vm0, %v3852_v62, %v15452_v42  ;;  %v3817_v44 = vsel %vm20274_vm13, %v12049_v46, %v15629_v27  ;;  %v20411_v46 = vld [vmem:[#allocation37_spill] sm:$0xff] }
 0x24b   : > { %v3968_v41 = vsel %vm20273_vm2, %v3932_v11, %v15673_v6  ;;  %4275 = vmatmul.mubr.bf16.gmra.mrb[8].mxu1 %v3883_v20  ;;  %v2361_v15 = vshrl.u32 %v13976_v47, 16  ;;  %v2364_v1 = vshll.u32 %v13976_v47, 16  ;;  %v12168_v53 = vcombine.low %v3197_v29, %v3200_v7  ;;  %v20412_v11 = vld [vmem:[#allocation42_spill] sm:$0xff] }
 0x24c   : > { %v3204_v12 = vsel %vm14364_vm6, %v12043_v28, %v3203_v52  ;;  %v2370_v32 = vshll.u32 %v13977_v36, 16  ;;  %v2374_v42 = vshrl.u32 %v13977_v36, 16  ;;  %v3207_v56 = vsel %vm14364_vm6, %v3205_v38, %v3206_v10  ;;  %v20413_v52 = vld [vmem:[#allocation38_spill] sm:$0xff] }
 0x24d   : > { %v2363_v27 = vrot.slane %v2361_v15, 4  ;;  %v2366_v54 = vrot.slane %v2364_v1, 5  ;;  %v3966_v6 = vsel %vm20273_vm2, %v3929_v14, %v20411_v46  ;;  %v2380_v5 = vshll.u32 %v13978_v9, 16  ;;  %v20414_v14 = vld [vmem:[#allocation41_spill] sm:$0xff]  ;;  %v15990_v38 = vpop.permute.xlu0 %3681  ;;  %v13982_v47 = vld [vmem:[#allocation2 + $0x40] sm:$0xf] }
 0x24e   : > { %v2372_v31 = vrot.slane %v2370_v32, 5  ;;  %v2376_v24 = vrot.slane %v2374_v42, 4  ;;  %v3998_v39 = vsel %vm20266_vm0, %v3966_v6, %v20412_v11  ;;  %v2337_v59 = vshrl.u32 %v13979_v37, 16  ;;  %v13983_v15 = vld [vmem:[#allocation2 + $0x3c] sm:$0xf] }
 0x24f   : > { %v2367_v21 = vor.u32 %v2366_v54, %v2363_v27  ;;  %4282 = vmatprep.mubr.bf16.mxu1 %v3998_v39  ;;  %v2340_v30 = vshll.u32 %v13979_v37, 16  ;;  %v2346_v50 = vshll.u32 %v13980_v16, 16  ;;  %v12169_v35 = vcombine.low %v3204_v12, %v3207_v56  ;;  %v15994_v12 = vpop.permute.xlu1 %3483  ;;  %v13985_v11 = vld [vmem:[#allocation2 + $0x7c] sm:$0xf]  ;;  %v13986_v37 = vld [vmem:[#allocation2 + $0x4c] sm:$0xf] }
 0x250   : > { %v2377_v3 = vor.u32 %v2376_v24, %v2372_v31  ;;  %v2350_v17 = vshrl.u32 %v13980_v16, 16  ;;  %v2356_v48 = vshll.u32 %v13981_v23, 16  ;;  %v2339_v43 = vrot.slane %v2337_v59, 4  ;;  %v13984_v24 = vld [vmem:[#allocation2 + $0x78] sm:$0xf]  ;;  %v20416_v23 = vld [vmem:[#allocation39_spill] sm:$0xff] }
 0x251   : > { %13186 = vmatmul.mubr.msk.bf16.gmra.mrb[52].mxu0 %vm20274_vm13, %v12168_v53  ;;  %v2342_v13 = vrot.slane %v2340_v30, 5  ;;  %v2348_v28 = vrot.slane %v2346_v50, 5  ;;  %v3854_v29 = vsel %vm20273_vm2, %v3817_v44, %v20413_v52  ;;  %v2368_v10 = vrot.slane %v2367_v21, 4  ;;  %v13987_v59 = vld [vmem:[#allocation2 + $0x48] sm:$0xf]  ;;  %v20417_v52 = vld [vmem:[#allocation49_spill] sm:$0xff] }
 0x252   : > { %13189 = vmatprep.mubr.msk.bf16.mxu0 %vm20274_vm13, %v12169_v35  ;;  %v2378_v2 = vrot.slane %v2377_v3, 4  ;;  %v2352_v62 = vrot.slane %v2350_v17, 4  ;;  %v3886_v7 = vsel %vm20266_vm0, %v3854_v29, %v20414_v14  ;;  %v12050_v1 = vcombine.low %v13983_v15, %v13982_v47  ;;  %v13988_v50 = vld [vmem:[#allocation2 + $0x6c] sm:$0xf] }
 0x253   : > { %v2343_v20 = vor.u32 %v2342_v13, %v2339_v43  ;;  %4283 = vmatmul.mubr.bf16.gmra.mrb[12].mxu1 %v3886_v7  ;;  %v4001_v53 = vsel %vm20266_vm0, %v3968_v41, %v15887_v61  ;;  %v2382_v44 = vrot.slane %v2380_v5, 5  ;;  %v2373_v56 = vsel %vm14373_vm9, %v2368_v10, %v2372_v31  ;;  %v20415_v41 = vld [vmem:[#allocation47_spill] sm:$0xff]  ;;  %v3328_v3 = vpop.permute.xlu1 %3327  ;;  %v13989_v13 = vld [vmem:[#allocation2 + $0x70] sm:$0xf] }
 0x254   : > { %v2353_v36 = vor.u32 %v2352_v62, %v2348_v28  ;;  %4290 = vmatprep.mubr.bf16.mxu1 %v4001_v53  ;;  %v3820_v42 = vsel %vm20274_vm13, %v12050_v1, %v15875_v18  ;;  %v2358_v46 = vrot.slane %v2356_v48, 5  ;;  %v2409_v9 = vshrl.u32 %v13984_v24, 16  ;;  %v3748_v21 = vpop.permute.xlu0 %3747 }
 0x255   : > { %v2344_v32 = vrot.slane %v2343_v20, 4  ;;  %v2383_v27 = vsel %vm14373_vm9, %v2378_v2, %v2382_v44  ;;  %v3856_v6 = vsel %vm20273_vm2, %v3820_v42, %v20415_v41  ;;  %v2412_v5 = vshll.u32 %v13984_v24, 16  ;;  %v20418_v20 = vld [vmem:[#allocation40_spill] sm:$0xff] }
 0x256   : > { %v2354_v54 = vrot.slane %v2353_v36, 4  ;;  %v2418_v39 = vshll.u32 %v13985_v11, 16  ;;  %v2422_v31 = vshrl.u32 %v13985_v11, 16  ;;  %v12051_v30 = vcombine.low %v13987_v59, %v13986_v37  ;;  %v13990_v36 = vld [vmem:[#allocation2 + $0x74] sm:$0x1]  ;;  %v20420_v59 = vld [vmem:[#allocation43_spill] sm:$0xff] }
 0x257   : > { %v2349_v61 = vsel %vm14373_vm9, %v2344_v32, %v2348_v28  ;;  %v2385_v35 = vshrl.u32 %v13988_v50, 16  ;;  %v12108_v17 = vcombine.low %v2373_v56, %v2383_v27  ;;  %v3889_v48 = vsel %vm20266_vm0, %v3856_v6, %v20416_v23  ;;  %v20419_v56 = vld [vmem:[#allocation45_spill] sm:$0xff]  ;;  %v13993_v11 = vld [vmem:[#allocation2 + $0x54] sm:$0xf]  ;;  %v13994_v23 = vld [vmem:[#allocation2 + $0x84] sm:$0xf] }
 0x258   : > { %v2359_v18 = vsel %vm14373_vm9, %v2354_v54, %v2358_v46  ;;  %v2388_v43 = vshll.u32 %v13988_v50, 16  ;;  %v2394_v28 = vshll.u32 %v13989_v13, 16  ;;  %v2411_v10 = vrot.slane %v2409_v9, 4  ;;  %v16022_v46 = vpop.permute.xlu0 %3683  ;;  %v13991_v9 = vld [vmem:[#allocation2 + $0x80] sm:$0x1] }
 0x259   : > { %v12107_v16 = vcombine.low %v2349_v61, %v2359_v18  ;;  %v2414_v2 = vrot.slane %v2412_v5, 5  ;;  %v2387_v62 = vrot.slane %v2385_v35, 4  ;;  %v16012_v14 = vrot.slane %v2418_v39, 5 }
 0x25a   : > { %v2424_v7 = vrot.slane %v2422_v31, 4  ;;  %v2390_v15 = vrot.slane %v2388_v43, 5  ;;  %v2396_v53 = vrot.slane %v2394_v28, 5  ;;  %v2398_v44 = vshrl.u32 %v13989_v13, 16 }
 0x25b   : > { %v3935_v29 = vsel %vm20274_vm13, %v12107_v16, %v20417_v52  ;;  %4291 = vmatmul.mubr.bf16.gmra.mrb[16].mxu1 %v3889_v48  ;;  %v2404_v32 = vshll.u32 %v13990_v36, 16  ;;  %v3823_v42 = vsel %vm20274_vm13, %v12051_v30, %v15799_v4  ;;  %v3938_v27 = vsel %vm20274_vm13, %v12108_v17, %v20419_v56  ;;  %v13992_v4 = vld [vmem:[#allocation2 + $0x58] sm:$0xf]  ;;  %v13995_v52 = vld [vmem:[#allocation2 + $0x88] sm:$0xf] }
 0x25c   : > { %v3970_v47 = vsel %vm20273_vm2, %v3935_v29, %v20418_v20  ;;  %v2391_v54 = vor.u32 %v2390_v15, %v2387_v62  ;;  %v3972_v61 = vsel %vm20273_vm2, %v3938_v27, %v15872_v22  ;;  %v2415_v41 = vor.u32 %v2414_v2, %v2411_v10 }
 0x25d   : > { %v4004_v1 = vsel %vm20266_vm0, %v3970_v47, %v15823_v57  ;;  %v2400_v6 = vrot.slane %v2398_v44, 4  ;;  %v16026_v57 = vpop.permute.xlu1 %3401  ;;  %v2425_v24 = vor.u32 %v2424_v7, %v16012_v14  ;;  %v2428_v5 = vshll.u32 %v13991_v9, 16 }
 0x25e   : > { %4298 = vmatprep.mubr.bf16.mxu1 %v4004_v1  ;;  %v2392_v18 = vrot.slane %v2391_v54, 4  ;;  %v12052_v39 = vcombine.low %v13993_v11, %v13992_v4  ;;  %v2406_v37 = vrot.slane %v2404_v32, 5  ;;  %v3858_v30 = vsel %vm20273_vm2, %v3823_v42, %v20420_v59  ;;  %v20421_v32 = vld [vmem:[#allocation50_spill] sm:$0xff]  ;;  %v13996_v54 = vld [vmem:[#allocation2 + $0x8c] sm:$0x1] }
 0x25f   : > { %v2401_v31 = vor.u32 %v2400_v6, %v2396_v53  ;;  %v4007_v16 = vsel %vm20266_vm0, %v3972_v61, %v3748_v21  ;;  %v3892_v22 = vsel %vm20266_vm0, %v3858_v30, %v15827_v19  ;;  %v2433_v48 = vshrl.u32 %v13994_v23, 16  ;;  %v3600_v21 = vpop.permute.xlu0 %3599 }
 0x260   : > { %v3826_v50 = vsel %vm20274_vm13, %v12052_v39, %v3328_v3  ;;  %v2397_v35 = vsel %vm14373_vm9, %v2392_v18, %v2396_v53  ;;  %v2436_v43 = vshll.u32 %v13994_v23, 16  ;;  %v2416_v13 = vrot.slane %v2415_v41, 4 }
 0x261   : > { %v2402_v17 = vrot.slane %v2401_v31, 4  ;;  %v2430_v28 = vrot.slane %v2428_v5, 5  ;;  %v2442_v29 = vshll.u32 %v13995_v52, 16  ;;  %v2446_v10 = vshrl.u32 %v13995_v52, 16  ;;  %v16039_v3 = vpop.permute.xlu1 %3333 }
 0x262   : > { %v2426_v2 = vrot.slane %v2425_v24, 4  ;;  %v3860_v62 = vsel %vm20273_vm2, %v3826_v50, %v15919_v49  ;;  %v2435_v7 = vrot.slane %v2433_v48, 4  ;;  %v2438_v47 = vrot.slane %v2436_v43, 5  ;;  %v13998_v24 = vld [vmem:[#allocation2 + $0x60] sm:$0xf] }
 0x263   : > { %4299 = vmatmul.mubr.bf16.gmra.mrb[20].mxu1 %v3892_v22  ;;  %v2407_v19 = vsel %vm14373_vm9, %v2402_v17, %v2406_v37  ;;  %v2444_v15 = vrot.slane %v2442_v29, 5  ;;  %v2448_v1 = vrot.slane %v2446_v10, 4  ;;  %v2421_v44 = vsel %vm14373_vm9, %v2416_v13, %v16012_v14  ;;  %v13997_v14 = vld [vmem:[#allocation2 + $0x64] sm:$0xf]  ;;  %v14000_v22 = vld [vmem:[#allocation2 + $0x6c] sm:$0xf] }
 0x264   : > { %4306 = vmatprep.mubr.bf16.mxu1 %v4007_v16  ;;  %v12109_v20 = vcombine.low %v2397_v35, %v2407_v19  ;;  %v2431_v36 = vsel %vm14373_vm9, %v2426_v2, %v2430_v28  ;;  %v3895_v42 = vsel %vm20266_vm0, %v3860_v62, %v20421_v32  ;;  %v2439_v56 = vor.u32 %v2438_v47, %v2435_v7  ;;  %v13999_v16 = vld [vmem:[#allocation2 + $0x70] sm:$0xf]  ;;  %v14002_v19 = vld [vmem:[#allocation2 + $0x7c] sm:$0xf] }
 0x265   : > { %v2449_v27 = vor.u32 %v2448_v1, %v2444_v15  ;;  %v2452_v61 = vshll.u32 %v13996_v54, 16  ;;  %v12053_v9 = vcombine.low %v13998_v24, %v13997_v14  ;;  %v12110_v5 = vcombine.low %v2421_v44, %v2431_v36  ;;  %v14003_v7 = vld [vmem:[#allocation2 + $0x90] sm:$0xf] }
 0x266   : > { %v3941_v53 = vsel %vm20274_vm13, %v12109_v20, %v15941_v55  ;;  %v3404_v55 = vpop.permute.xlu1 %3403  ;;  %v2440_v4 = vrot.slane %v2439_v56, 4  ;;  %v12054_v50 = vcombine.low %v14000_v22, %v13999_v16  ;;  %v3213_v48 = vrot.slane %v15864_v60, 5 }
 0x267   : > { %v3974_v49 = vsel %vm20273_vm2, %v3941_v53, %v15793_v25  ;;  %v3829_v18 = vsel %vm20274_vm13, %v12053_v9, %v15980_v45  ;;  %v2450_v25 = vrot.slane %v2449_v27, 4  ;;  %v2454_v11 = vrot.slane %v2452_v61, 5  ;;  %v20422_v9 = vld [vmem:[#allocation44_spill] sm:$0xff] }
 0x268   : > { %v4010_v6 = vsel %vm20266_vm0, %v3974_v49, %v15974_v63  ;;  %v3944_v39 = vsel %vm20274_vm13, %v12110_v5, %v15913_v0  ;;  %v3862_v63 = vsel %vm20273_vm2, %v3829_v18, %v15891_v8  ;;  %v2445_v45 = vsel %vm14373_vm9, %v2440_v4, %v2444_v15  ;;  %v3074_v8 = vld [vmem:[#allocation2 + $0xb4] sm:$0xe]  ;;  %v14006_v18 = vld [vmem:[#allocation2 + $0xa0] sm:$0xf] }
 0x269   : > { %v3754_v41 = vpop.permute.xlu0 %3753  ;;  %v3976_v31 = vsel %vm20273_vm2, %v3944_v39, %v15990_v38  ;;  %v2455_v35 = vsel %vm14373_vm9, %v2450_v25, %v2454_v11  ;;  %v3898_v0 = vsel %vm20266_vm0, %v3862_v63, %v15994_v12  ;;  %v3210_v38 = vrot.slane %v15821_v58, 5  ;;  %v14004_v15 = vld [vmem:[#allocation2 + $0x94] sm:$0xf] }
 0x26a   : > { %v3332_v59 = vpop.permute.xlu1 %3331  ;;  %v12111_v23 = vcombine.low %v2445_v45, %v2455_v35  ;;  %v12044_v28 = vrot.slane %v3074_v8, 9  ;;  %v2457_v20 = vshrl.u32 %v14003_v7, 16  ;;  %v2460_v47 = vshll.u32 %v14003_v7, 16  ;;  %v14008_v45 = vld [vmem:[#allocation2 + $0x84] sm:$0xf] }
 0x26b   : > { %4307 = vmatmul.mubr.bf16.gmra.mrb[24].mxu1 %v3895_v42  ;;  %v3832_v17 = vsel %vm20274_vm13, %v12054_v50, %v3332_v59  ;;  %v3212_v52 = vrot.slane %v3210_v38, 4  ;;  %v2466_v1 = vshll.u32 %v14004_v15, 16  ;;  %v2481_v5 = vshrl.u32 %v20422_v9, 16  ;;  %v14007_v50 = vld [vmem:[#allocation2 + $0x88] sm:$0xf] }
 0x26c   : > { %4314 = vmatprep.mubr.bf16.mxu1 %v4010_v6  ;;  %v3947_v43 = vsel %vm20274_vm13, %v12111_v23, %v3600_v21  ;;  %v3864_v13 = vsel %vm20273_vm2, %v3832_v17, %v16026_v57  ;;  %v3211_v12 = vsel %vm14364_vm6, %v12044_v28, %v3210_v38  ;;  %v14001_v57 = vld [vmem:[#allocation2 + $0x78] sm:$0xf]  ;;  %v2459_v36 = vrot.slane %v2457_v20, 4 }
 0x26d   : > { %v3901_v58 = vsel %vm20266_vm0, %v3864_v13, %v15946_v34  ;;  %v3978_v10 = vsel %vm20273_vm2, %v3947_v43, %v16022_v46  ;;  %v3214_v60 = vsel %vm14364_vm6, %v3212_v52, %v3213_v48  ;;  %v12055_v62 = vcombine.low %v14001_v57, %v14002_v19  ;;  %v14005_v6 = vld [vmem:[#allocation2 + $0x98] sm:$0x1]  ;;  %v14009_v48 = vld [vmem:[#allocation2 + $0xa4] sm:$0x1] }
 0x26e   : > { %v3488_v29 = vpop.permute.xlu1 %3487  ;;  %v4016_v21 = vsel %vm20266_vm0, %v3978_v10, %v3754_v41  ;;  %v12170_v2 = vcombine.low %v3211_v12, %v3214_v60  ;;  %v2470_v34 = vshrl.u32 %v14004_v15, 16  ;;  %v2462_v32 = vrot.slane %v2460_v47, 5  ;;  %v14010_v15 = vld [vmem:[#allocation2 + $0x90] sm:$0xf] }
 0x26f   : > { %v3752_v37 = vpop.permute.xlu0 %3751  ;;  %v3835_v46 = vsel %vm20274_vm13, %v12055_v62, %v16039_v3  ;;  %v2468_v42 = vrot.slane %v2466_v1, 5  ;;  %v2476_v14 = vshll.u32 %v14005_v6, 16  ;;  %v2484_v3 = vshll.u32 %v20422_v9, 16  ;;  %v14011_v1 = vld [vmem:[#allocation2 + $0x94] sm:$0xf]  ;;  %v20423_v9 = vld [vmem:[#allocation51_spill] sm:$0xff] }
 0x270   : > { %v4013_v30 = vsel %vm20266_vm0, %v3976_v31, %v3752_v37  ;;  %13190 = vmatmul.mubr.msk.bf16.gmra.mrb[56].mxu0 %vm20274_vm13, %v12170_v2  ;;  %v3866_v44 = vsel %vm20273_vm2, %v3835_v46, %v3404_v55  ;;  %v2472_v49 = vrot.slane %v2470_v34, 4  ;;  %v2463_v61 = vor.u32 %v2462_v32, %v2459_v36 }
 0x271   : > { %v3904_v27 = vsel %vm20266_vm0, %v3866_v44, %v3488_v29  ;;  %v2490_v55 = vshll.u32 %v14006_v18, 16  ;;  %v2494_v4 = vshrl.u32 %v14006_v18, 16  ;;  %v2478_v39 = vrot.slane %v2476_v14, 5 }
 0x272   : > { %v3406_v53 = vpop.permute.xlu1 %3405  ;;  %v2473_v41 = vor.u32 %v2472_v49, %v2468_v42  ;;  %v2464_v25 = vrot.slane %v2463_v61, 4  ;;  %v2483_v37 = vrot.slane %v2481_v5, 4  ;;  %v2486_v59 = vrot.slane %v2484_v3, 5 }
 0x273   : > { %4315 = vmatmul.mubr.bf16.gmra.mrb[28].mxu1 %v3898_v0  ;;  %v3602_v56 = vpop.permute.xlu0 %3601  ;;  %v2492_v63 = vrot.slane %v2490_v55, 5  ;;  %v12056_v35 = vcombine.low %v14008_v45, %v14007_v50  ;;  %v2500_v43 = vshll.u32 %v14009_v48, 16  ;;  %v2505_v47 = vshrl.u32 %v15819_v51, 16 }
 0x274   : > { %4322 = vmatprep.mubr.bf16.mxu1 %v4013_v30  ;;  %v2474_v11 = vrot.slane %v2473_v41, 4  ;;  %v2496_v30 = vrot.slane %v2494_v4, 4  ;;  %v2469_v16 = vsel %vm14373_vm9, %v2464_v25, %v2468_v42  ;;  %v2487_v8 = vor.u32 %v2486_v59, %v2483_v37  ;;  %v20424_v59 = vld [vmem:[#allocation46_spill] sm:$0xff] }
 0x275   : > { %v2502_v60 = vrot.slane %v2500_v43, 5  ;;  %v12057_v34 = vcombine.low %v14010_v15, %v14011_v1  ;;  %v2508_v46 = vshll.u32 %v15819_v51, 16  ;;  %v2518_v44 = vshrl.u32 %v15782_v33, 16 }
 0x276   : > { %v3490_v54 = vpop.permute.xlu1 %3489  ;;  %v2479_v22 = vsel %vm14373_vm9, %v2474_v11, %v2478_v39  ;;  %v2497_v23 = vor.u32 %v2496_v30, %v2492_v63  ;;  %v2507_v61 = vrot.slane %v2505_v47, 4  ;;  %v2524_v5 = vshll.u32 %v20423_v9, 16 }
 0x277   : > { %v3686_v24 = vpop.permute.xlu0 %3685  ;;  %v12112_v17 = vcombine.low %v2469_v16, %v2479_v22  ;;  %v2510_v41 = vrot.slane %v2508_v46, 5  ;;  %v2520_v14 = vrot.slane %v2518_v44, 4 }
 0x278   : > { %v2498_v10 = vrot.slane %v2497_v23, 4  ;;  %v2526_v25 = vrot.slane %v2524_v5, 5 }
 0x279   : > { %v3950_v28 = vsel %vm20274_vm13, %v12112_v17, %v3602_v56 }
 0x27a   : > { %v3336_v31 = vpop.permute.xlu1 %3335  ;;  %v3980_v29 = vsel %vm20273_vm2, %v3950_v28, %v3686_v24  ;;  %v2503_v62 = vsel %vm14373_vm9, %v2498_v10, %v2502_v60 }
 0x27b   : > { %4323 = vmatmul.mubr.bf16.gmra.mrb[32].mxu1 %v3901_v58  ;;  %v3838_v38 = vsel %vm20274_vm13, %v12056_v35, %v3336_v31  ;;  %v2488_v58 = vrot.slane %v2487_v8, 4 }
 0x27c   : > { %4330 = vmatprep.mubr.bf16.mxu1 %v4016_v21  ;;  %v3868_v52 = vsel %vm20273_vm2, %v3838_v38, %v3406_v53  ;;  %v2514_v53 = vshll.u32 %v15782_v33, 16  ;;  %v2511_v33 = vor.u32 %v2510_v41, %v2507_v61  ;;  %v16142_v41 = vld [vmem:[%s20199_s4] ss:$0 sm:$0xff] }
 0x27d   : > { %v3907_v2 = vsel %vm20266_vm0, %v3868_v52, %v3490_v54  ;;  %v2493_v19 = vsel %vm14373_vm9, %v2488_v58, %v2492_v63  ;;  %v20425_v63 = vld [vmem:[#allocation48_spill] sm:$0xff]  ;;  %v5068_v52 = vld [vmem:[#allocation2] sm:$0xf]  ;;  %v5096_v58 = vld [vmem:[#allocation2 + $0x8] sm:$0x1] }
 0x27e   : > { %v12113_v20 = vcombine.low %v2493_v19, %v2503_v62  ;;  %v2516_v6 = vrot.slane %v2514_v53, 5  ;;  %v2512_v55 = vrot.slane %v2511_v33, 4  ;;  %v12058_v30 = vcombine.low %v20425_v63, %v20424_v59  ;;  %v5446_v19 = vld [vmem:[#allocation2] sm:$0xe] }
 0x27f   : > { %v5111_v10 = vshrl.u32 %v5068_v52, 16  ;;  %v5114_v60 = vshll.u32 %v5068_v52, 16 }
 0x280   : > { %v2521_v24 = vor.u32 %v2520_v14, %v2516_v6  ;;  %v2517_v39 = vsel %vm14373_vm9, %v2512_v55, %v2516_v6 }
 0x281   : > { %v3604_v0 = vpop.permute.xlu0 %3603  ;;  %v5113_v62 = vrot.slane %v5111_v10, 4 }
 0x282   : > { %v3338_v13 = vpop.permute.xlu1 %3337  ;;  %v3953_v36 = vsel %vm20274_vm13, %v12113_v20, %v3604_v0  ;;  %v2522_v4 = vrot.slane %v2521_v24, 4 }
 0x283   : > { %4331 = vmatmul.mubr.bf16.gmra.mrb[36].mxu1 %v3904_v27  ;;  %v3841_v42 = vsel %vm20274_vm13, %v12057_v34, %v3338_v13  ;;  %v12246_v34 = vrot.slane %v5446_v19, 9 }
 0x284   : > { %v2527_v31 = vsel %vm14373_vm9, %v2522_v4, %v2526_v25 }
 0x285   : > { %v12114_v16 = vcombine.low %v2517_v39, %v2527_v31  ;;  %v13425_v31 = vld [vmem:[%s20198_s3 + $0x118] sm:$0xff]  }
 0x28a   : > { %v3408_v57 = vpop.permute.xlu1 %3407 }
 0x28b   : > { %v3870_v27 = vsel %vm20273_vm2, %v3841_v42, %v3408_v57  ;;  %v5130_v57 = vshll.u32 %v5096_v58, 16 }
 0x28d   : > { %v5132_v53 = vrot.slane %v5130_v57, 5 }
 0x28e   : > { %v3492_v32 = vpop.permute.xlu1 %3491 }
 0x28f   : > { %v3910_v51 = vsel %vm20266_vm0, %v3870_v27, %v3492_v32 }
 0x292   : > { %v3756_v12 = vpop.permute.xlu0 %3755 }
 0x293   : > { %v4019_v21 = vsel %vm20266_vm0, %v3980_v29, %v3756_v12  ;;  %v5069_v29 = vld [vmem:[#allocation2 + $0x4] sm:$0xf] }
 0x294   : > { %4338 = vmatprep.mubr.bf16.mxu1 %v4019_v21  ;;  %v5120_v21 = vshll.u32 %v5069_v29, 16  ;;  %v5504_v20 = vrot.slane %v5069_v29, 5 }
 0x295   : > { %4339 = vmatmul.mubr.bf16.gmra.mrb[40].mxu1 %v3907_v2  ;;  %v5124_v2 = vshrl.u32 %v5069_v29, 16 }
 0x296   : > { %v3688_v7 = vpop.permute.xlu0 %3687  ;;  %v3410_v3 = vpop.permute.xlu1 %3409  ;;  %v5122_v47 = vrot.slane %v5120_v21, 5  ;;  %v5506_v44 = vrot.slane %v5504_v20, 4  ;;  %v5505_v27 = vsel %vm14364_vm6, %v12246_v34, %v5504_v20 }
 0x297   : > { %v3982_v49 = vsel %vm20273_vm2, %v3953_v36, %v3688_v7  ;;  %v5116_v7 = vrot.slane %v5114_v60, 5  ;;  %v5126_v15 = vrot.slane %v5124_v2, 4  ;;  %v5507_v36 = vrot.slane %v5096_v58, 5 }
 0x299   : > { %v5117_v1 = vor.u32 %v5116_v7, %v5113_v62  ;;  %v5127_v46 = vor.u32 %v5126_v15, %v5122_v47 }
 0x29b   : > { %v5118_v32 = vrot.slane %v5117_v1, 4  ;;  %v5128_v42 = vrot.slane %v5127_v46, 4 }
 0x29d   : > { %v3758_v56 = vpop.permute.xlu0 %3757 }
 0x29e   : > { %v4022_v54 = vsel %vm20266_vm0, %v3982_v49, %v3758_v56  ;;  %v5123_v49 = vsel %vm14373_vm9, %v5118_v32, %v5122_v47  ;;  %v5133_v56 = vsel %vm14373_vm9, %v5128_v42, %v5132_v53 }
 0x29f   : > { %4346 = vmatprep.mubr.bf16.mxu1 %v4022_v54  ;;  %v5508_v54 = vsel %vm14364_vm6, %v5506_v44, %v5507_v36  ;;  %v12302_v61 = vcombine.low %v5123_v49, %v5133_v56 }
 0x2a0   : > { %4347 = vmatmul.mubr.bf16.gmra.mrb[44].mxu1 %v3910_v51  ;;  %v12316_v51 = vcombine.low %v5505_v27, %v5508_v54 }
 0x2a1   : > { %v3606_v18 = vpop.permute.xlu0 %3605  ;;  %v3340_v11 = vpop.permute.xlu1 %3339  ;;  %6762 = vrot.lane.b32.xlu1 %v12302_v61, %s14228_s12 }
 0x2a2   : > { %v3844_v22 = vsel %vm20274_vm13, %v12058_v30, %v3340_v11  ;;  %v3956_v50 = vsel %vm20274_vm13, %v12114_v16, %v3606_v18  ;;  %v13424_v11 = vld [vmem:[%s20198_s3 + $0x110] sm:$0xff]  }
 0x2a3   : > { %v3872_v17 = vsel %vm20273_vm2, %v3844_v22, %v3410_v3  ;;  %13193 = vmatprep.subr.bf16.mxu1 %v13424_v11 }
 0x2a4   : > { %13194 = vmatpush3.bf16.msra.mxu1 %v13424_v11 }
 0x2a5   : > { %v3690_v37 = vpop.permute.xlu0 %3689  ;;  %v3494_v45 = vpop.permute.xlu1 %3493  ;;  %6832 = vrot.lane.b32.xlu1 %v12316_v51, %s14227_s10  ;;  %13195 = vmatprep.subr.bf16.mxu1 %v13425_v31 }
 0x2a6   : > { %v3984_v35 = vsel %vm20273_vm2, %v3956_v50, %v3690_v37  ;;  %v3913_v8 = vsel %vm20266_vm0, %v3872_v17, %v3494_v45 }
 0x2a8   : > { %13196 = vmatpush3.bf16.msra.mxu1 %v13425_v31 }
 0x2b2   : > { %v3760_v0 = vpop.permute.xlu0 %3759 }
 0x2b3   : > { %v4025_v38 = vsel %vm20266_vm0, %v3984_v35, %v3760_v0  ;;  %vm20428_vm0 = vmmov %vm20389_vm10 }
 0x2b4   : > { %4354 = vmatprep.mubr.bf16.mxu1 %v4025_v38 }
 0x2b5   : > { %4355 = vmatmul.mubr.bf16.gmra.mrb[48].mxu1 %v3913_v8 }
 0x2ce   : > { %v12799_v23 = vpop.f32.mrb[28].mxu0 }
 0x2cf   : > { %v12800_v48 = vpop.f32.mrb[29].mxu0 }
 0x2d0   : > { %v12801_v43 = vadd.f32 %v12800_v48, %v12799_v23  ;;  %v12802_v13 = vpop.f32.mrb[30].mxu0 }
 0x2d1   : > { %v12803_v28 = vpop.f32.mrb[31].mxu0 }
 0x2d2   : > { %v12804_v12 = vadd.f32 %v12803_v28, %v12802_v13  ;;  %v4253_v14 = vadd.f32 %v12801_v43, %v16142_v41 }
 0x2d4   : > { %v4256_v5 = vadd.f32 %v12804_v12, %v16142_v41 }
 0x2e4   : > { %v13167_v6 = vpop.f32.mrb[32].mxu0 }
 0x2e5   : > { %v4397_v33 = vpop.f32.mrb[33].mxu0 }
 0x2e6   : > { %v4398_v24 = vadd.f32 %v4397_v33, %v4253_v14  ;;  %v13168_v9 = vpop.f32.mrb[34].mxu0 }
 0x2e7   : > { %v4400_v3 = vpop.f32.mrb[35].mxu0 }
 0x2e8   : > { %v4508_v18 = vsub.f32 0.0, %v4398_v24  ;;  %v4401_v55 = vadd.f32 %v4400_v3, %v4256_v5 }
 0x2ea   : > { %v4536_v4 = vmul.f32 1.442695, %v4508_v18  ;;  %v4509_v25 = vsub.f32 0.0, %v4401_v55 }
 0x2ec   : > { %13638 = vpow2.f32 %v4536_v4  ;;  %v4538_v39 = vmul.f32 1.442695, %v4509_v25 }
 0x2ee   : > { %13640 = vpow2.f32 %v4538_v39 }
 0x2f3   : > { %v16153_v37 = vpop.f32.mrb[36].mxu0 }
 0x2f4   : > { %v4413_v59 = vpop.f32.mrb[37].mxu0 }
 0x2f5   : > { %v16155_v30 = vpop.f32.mrb[38].mxu0 }
 0x2f6   : > { %v13639_v63 = vpop.eup %13638  ;;  %v16157_v22 = vpop.f32.mrb[39].mxu0 }
 0x2f7   : > { %v4592_v16 = vadd.f32 1.0, %v13639_v63 }
 0x2f8   : > { %v13641_v50 = vpop.eup %13640 }
 0x2f9   : > { %13642 = vrcp.f32 %v4592_v16  ;;  %v4593_v45 = vadd.f32 1.0, %v13641_v50 }
 0x2fb   : > { %13644 = vrcp.f32 %v4593_v45 }
 0x303   : > { %v13643_v35 = vpop.eup %13642  ;;  %v16159_v0 = vpop.f32.mrb[40].mxu0 }
 0x304   : > { %v4648_v38 = vmul.f32 %v13643_v35, %v4398_v24  ;;  %v16161_v17 = vpop.f32.mrb[41].mxu0 }
 0x305   : > { %v13645_v8 = vpop.eup %13644  ;;  %v16163_v23 = vpop.f32.mrb[42].mxu0 }
 0x306   : > { %v12805_v48 = vpop.f32.mrb[0].mxu1  ;;  %v4649_v43 = vmul.f32 %v13645_v8, %v4401_v55  ;;  %v16165_v13 = vpop.f32.mrb[43].mxu0  ;;  %v4676_v58 = vsel %vm14502_vm8, %v4648_v38, 0.0 }
 0x307   : > { %v12806_v28 = vpop.f32.mrb[1].mxu1 }
 0x308   : > { %v12807_v52 = vadd.f32 %v12806_v28, %v12805_v48  ;;  %v12808_v29 = vpop.f32.mrb[2].mxu1  ;;  %v4677_v10 = vsel %vm14502_vm8, %v4649_v43, 0.0 }
 0x309   : > { %v12809_v60 = vpop.f32.mrb[3].mxu1  ;;  %v4704_v21 = vpack.c.bf16 %v4677_v10, %v4676_v58 }
 0x30a   : > { %v4261_v2 = vadd.f32 %v12807_v52, %v16142_v41  ;;  %v12810_v57 = vadd.f32 %v12809_v60, %v12808_v29 }
 0x30b   : > { %v4719_v19 = vshrl.u32 %v4704_v21, 16  ;;  %v4722_v47 = vshll.u32 %v4704_v21, 16 }
 0x30c   : > { %v16172_v62 = vadd.f32 %v13167_v6, %v4261_v2  ;;  %v4264_v7 = vadd.f32 %v12810_v57, %v16142_v41 }
 0x30d   : > { %v4721_v20 = vrot.slane %v4719_v19, 7 }
 0x30e   : > { %v4510_v15 = vsub.f32 0.0, %v16172_v62  ;;  %v16176_v1 = vadd.f32 %v13168_v9, %v4264_v7 }
 0x30f   : > { %v4724_v34 = vor.u32 %v4722_v47, %v4721_v20  ;;  %v4858_v53 = vsel %vm14549_vm11, %v4721_v20, 0 }
 0x310   : > { %v4540_v44 = vmul.f32 1.442695, %v4510_v15  ;;  %v4511_v36 = vsub.f32 0.0, %v16176_v1  ;;  %v12206_v32 = vcombine.low %v4858_v53, %v4858_v53 }
 0x311   : > { %v4844_v42 = vsel %vm14549_vm11, 0, %v4724_v34 }
 0x312   : > { %13646 = vpow2.f32 %v4540_v44  ;;  %v4542_v49 = vmul.f32 1.442695, %v4511_v36  ;;  %v16183_v56 = vpop.f32.mrb[44].mxu0  ;;  %v12204_v27 = vcombine.low %v4844_v42, %v4844_v42  ;;  %v12205_v54 = vcombine.high %v4844_v42, %v4844_v42  ;;  %5028 = vst.msk [vmem:[#allocation2 + $0x14] sm:$0x1] %vm20386_vm3, %v12206_v32 }
 0x313   : > { %v16186_v61 = vpop.f32.mrb[45].mxu0 }
 0x314   : > { %13648 = vpow2.f32 %v4542_v49  ;;  %v16188_v51 = vpop.f32.mrb[46].mxu0  ;;  %5026 = vst.msk [vmem:[#allocation2 + $0xc] sm:$0xf] %vm20389_vm10, %v12204_v27 }
 0x315   : > { %5027 = vst.msk [vmem:[#allocation2 + $0x10] sm:$0xf] %vm20428_vm0, %v12205_v54  ;;  %v16192_v6 = vpop.f32.mrb[47].mxu0  ;;  %v12811_v14 = vpop.f32.mrb[4].mxu1  ;;  %vm20430_vm0 = vmmov %vm20386_vm3 }
 0x316   : > { %v12812_v33 = vpop.f32.mrb[5].mxu1  ;;  %vm20431_vm3 = vmmov %vm20389_vm10 }
 0x317   : > { %v12813_v24 = vadd.f32 %v12812_v33, %v12811_v14  ;;  %v12814_v9 = vpop.f32.mrb[6].mxu1  ;;  %vm20432_vm10 = vmmov %vm20431_vm3 }
 0x318   : > { %v12815_v5 = vpop.f32.mrb[7].mxu1 }
 0x319   : > { %v4269_v3 = vadd.f32 %v12813_v24, %v16142_v41  ;;  %v12816_v18 = vadd.f32 %v12815_v5, %v12814_v9  ;;  %v5628_v25 = vld [vmem:[#allocation2 + $0x14] sm:$0x1] }
 0x31a   : > { %v6039_v57 = vrot.slane %v5628_v25, 5  ;;  %v16220_v36 = vld [vmem:[#allocation2 + $0x14] sm:$0x1] }
 0x31b   : > { %v16195_v55 = vadd.f32 %v4413_v59, %v4269_v3  ;;  %v4272_v4 = vadd.f32 %v12816_v18, %v16142_v41  ;;  %v16200_v31 = vld [vmem:[#allocation2 + $0xc] sm:$0xf]  ;;  %v5514_v5 = vrot.slane %v16220_v36, 5 }
 0x31c   : > { %v13647_v11 = vpop.eup %13646  ;;  %v16198_v39 = vpop.f32.mrb[48].mxu0  ;;  %v5601_v63 = vld [vmem:[#allocation2 + $0x10] sm:$0xf]  ;;  %v5978_v38 = vld [vmem:[#allocation2 + $0xc] sm:$0xe] }
 0x31d   : > { %v4594_v16 = vadd.f32 1.0, %v13647_v11  ;;  %v4512_v50 = vsub.f32 0.0, %v16195_v55  ;;  %v16204_v45 = vadd.f32 %v16157_v22, %v4272_v4  ;;  %v16206_v35 = vpop.f32.mrb[49].mxu0  ;;  %v12330_v43 = vcombine.low %v16200_v31, %v5601_v63  ;;  %v16215_v19 = vld [vmem:[#allocation2 + $0x10] sm:$0xf] }
 0x31e   : > { %v13649_v59 = vpop.eup %13648  ;;  %v16208_v8 = vpop.f32.mrb[50].mxu0  ;;  %v12260_v28 = vrot.slane %v5978_v38, 9  ;;  %v6036_v52 = vrot.slane %v5601_v63, 5  ;;  %v5447_v15 = vld [vmem:[#allocation2 + $0xc] sm:$0xe]  ;;  %v5511_v49 = vrot.slane %v16215_v19, 5 }
 0x31f   : > { %v12817_v48 = vpop.f32.mrb[8].mxu1  ;;  %13650 = vrcp.f32 %v4594_v16  ;;  %v4595_v29 = vadd.f32 1.0, %v13649_v59  ;;  %v4544_v58 = vmul.f32 1.442695, %v4512_v50  ;;  %v4513_v10 = vsub.f32 0.0, %v16204_v45  ;;  %v16212_v60 = vpop.f32.mrb[51].mxu0  ;;  %6916 = vrot.lane.b32.xlu1 %v12330_v43, %s14229_s17 }
 0x320   : > { %v12818_v22 = vpop.f32.mrb[9].mxu1  ;;  %v6038_v47 = vrot.slane %v6036_v52, 4  ;;  %v6037_v44 = vsel %vm14364_vm6, %v12260_v28, %v6036_v52  ;;  %v12247_v42 = vrot.slane %v5447_v15, 9  ;;  %v5513_v9 = vrot.slane %v5511_v49, 4  ;;  %v5070_v52 = vld [vmem:[#allocation2 + $0xc] sm:$0xf] }
 0x321   : > { %v12819_v21 = vadd.f32 %v12818_v22, %v12817_v48  ;;  %v12820_v2 = vpop.f32.mrb[10].mxu1  ;;  %13652 = vrcp.f32 %v4595_v29  ;;  %v4546_v7 = vmul.f32 1.442695, %v4513_v10 }
 0x322   : > { %v12821_v20 = vpop.f32.mrb[11].mxu1  ;;  %13654 = vpow2.f32 %v4544_v58  ;;  %v6040_v32 = vsel %vm14364_vm6, %v6038_v47, %v6039_v57  ;;  %v5512_v63 = vsel %vm14364_vm6, %v12247_v42, %v5511_v49  ;;  %v5515_v16 = vsel %vm14364_vm6, %v5513_v9, %v5514_v5 }
 0x323   : > { %v4277_v34 = vadd.f32 %v12819_v21, %v16142_v41  ;;  %v12822_v53 = vadd.f32 %v12821_v20, %v12820_v2  ;;  %13656 = vpow2.f32 %v4546_v7  ;;  %v12358_v33 = vcombine.low %v6037_v44, %v6040_v32 }
 0x324   : > { %v16225_v27 = vpop.f32.mrb[52].mxu0  ;;  %v12317_v43 = vcombine.low %v5512_v63, %v5515_v16  ;;  %v5135_v20 = vshrl.u32 %v5070_v52, 16  ;;  %v5148_v5 = vshrl.u32 %v16215_v19, 16 }
 0x325   : > { %v16228_v54 = vadd.f32 %v16153_v37, %v4277_v34  ;;  %v4280_v14 = vadd.f32 %v12822_v53, %v16142_v41  ;;  %v16231_v24 = vpop.f32.mrb[53].mxu0  ;;  %7028 = vrot.lane.b32.xlu0 %v12358_v33, %s14228_s12  ;;  %v5138_v34 = vshll.u32 %v5070_v52, 16  ;;  %v5144_v53 = vshll.u32 %v16215_v19, 16 }
 0x326   : > { %v16234_v3 = vpop.f32.mrb[54].mxu0  ;;  %v12823_v25 = vpop.f32.mrb[12].mxu1  ;;  %6834 = vrot.lane.b32.xlu1 %v12317_v43, %s14227_s10  ;;  %v5150_v19 = vrot.slane %v5148_v5, 4  ;;  %v5643_v5 = vshrl.u32 %v16200_v31, 16 }
 0x327   : > { %v4514_v18 = vsub.f32 0.0, %v16228_v54  ;;  %v16238_v4 = vadd.f32 %v16155_v30, %v4280_v14  ;;  %v16241_v37 = vpop.f32.mrb[55].mxu0  ;;  %v12824_v11 = vpop.f32.mrb[13].mxu1 }
 0x328   : > { %v12825_v59 = vadd.f32 %v12824_v11, %v12823_v25  ;;  %v12826_v48 = vpop.f32.mrb[14].mxu1 }
 0x329   : > { %v4548_v50 = vmul.f32 1.442695, %v4514_v18  ;;  %v4515_v38 = vsub.f32 0.0, %v16238_v4  ;;  %v13651_v30 = vpop.eup %13650  ;;  %v12827_v28 = vpop.f32.mrb[15].mxu1 }
 0x32a   : > { %v4650_v29 = vmul.f32 %v13651_v30, %v16172_v62  ;;  %v4285_v10 = vadd.f32 %v12825_v59, %v16142_v41  ;;  %v12828_v21 = vadd.f32 %v12827_v28, %v12826_v48  ;;  %v5140_v59 = vrot.slane %v5138_v34, 5 }
 0x32b   : > { %13658 = vpow2.f32 %v4548_v50  ;;  %v4550_v58 = vmul.f32 1.442695, %v4515_v38  ;;  %v13653_v22 = vpop.eup %13652  ;;  %v5137_v38 = vrot.slane %v5135_v20, 4  ;;  %v16268_v30 = vrot.slane %v5144_v53, 5 }
 0x32c   : > { %v13655_v2 = vpop.eup %13654  ;;  %v4651_v57 = vmul.f32 %v13653_v22, %v16176_v1  ;;  %v16253_v7 = vadd.f32 %v16161_v17, %v4285_v10  ;;  %v4288_v62 = vadd.f32 %v12828_v21, %v16142_v41  ;;  %v4678_v32 = vsel %vm14489_vm7, %v4650_v29, 0.0 }
 0x32d   : > { %13660 = vpow2.f32 %v4550_v58  ;;  %v13657_v47 = vpop.eup %13656  ;;  %v4596_v15 = vadd.f32 1.0, %v13655_v2  ;;  %v5154_v22 = vshll.u32 %v16220_v36, 16 }
 0x32e   : > { %v4679_v42 = vsel %vm14489_vm7, %v4651_v57, 0.0  ;;  %v4597_v49 = vadd.f32 1.0, %v13657_v47  ;;  %v4516_v1 = vsub.f32 0.0, %v16253_v7  ;;  %v12829_v14 = vpop.f32.mrb[16].mxu1  ;;  %v16263_v33 = vadd.f32 %v16165_v13, %v4288_v62 }
 0x32f   : > { %v4705_v17 = vpack.c.bf16 %v4679_v42, %v4678_v32  ;;  %13662 = vrcp.f32 %v4596_v15  ;;  %v12830_v9 = vpop.f32.mrb[17].mxu1  ;;  %v5151_v42 = vor.u32 %v5150_v19, %v16268_v30 }
 0x330   : > { %13664 = vrcp.f32 %v4597_v49  ;;  %v4552_v18 = vmul.f32 1.442695, %v4516_v1  ;;  %v12831_v25 = vadd.f32 %v12830_v9, %v12829_v14  ;;  %v12832_v11 = vpop.f32.mrb[18].mxu1  ;;  %v4517_v16 = vsub.f32 0.0, %v16263_v33 }
 0x331   : > { %v4726_v63 = vshrl.u32 %v4705_v17, 16  ;;  %v12833_v50 = vpop.f32.mrb[19].mxu1  ;;  %v4729_v28 = vshll.u32 %v4705_v17, 16 }
 0x332   : > { %13666 = vpow2.f32 %v4552_v18  ;;  %v4293_v48 = vadd.f32 %v12831_v25, %v16142_v41  ;;  %v12834_v43 = vadd.f32 %v12833_v50, %v12832_v11  ;;  %v4554_v52 = vmul.f32 1.442695, %v4517_v16 }
 0x333   : > { %v4728_v13 = vrot.slane %v4726_v63, 7 }
 0x334   : > { %v16271_v58 = vadd.f32 %v16159_v0, %v4293_v48  ;;  %v4296_v10 = vadd.f32 %v12834_v43, %v16142_v41  ;;  %13668 = vpow2.f32 %v4554_v52  ;;  %v5141_v0 = vor.u32 %v5140_v59, %v5137_v38 }
 0x335   : > { %v13659_v29 = vpop.eup %13658  ;;  %v4731_v21 = vor.u32 %v4729_v28, %v4728_v13  ;;  %v4859_v2 = vsel %vm14549_vm11, %v4728_v13, 0  ;;  %v5152_v43 = vrot.slane %v5151_v42, 4  ;;  %v5156_v52 = vrot.slane %v5154_v22, 5 }
 0x336   : > { %v4598_v57 = vadd.f32 1.0, %v13659_v29  ;;  %v12209_v47 = vcombine.low %v4859_v2, %v4859_v2  ;;  %v4518_v15 = vsub.f32 0.0, %v16271_v58  ;;  %v16279_v62 = vadd.f32 %v16163_v23, %v4296_v10  ;;  %v12835_v34 = vpop.f32.mrb[20].mxu1 }
 0x337   : > { %v13661_v20 = vpop.eup %13660  ;;  %v4845_v53 = vsel %vm14549_vm11, 0, %v4731_v21  ;;  %v12836_v32 = vpop.f32.mrb[21].mxu1  ;;  %v5142_v48 = vrot.slane %v5141_v0, 4  ;;  %v16300_v2 = vrot.slane %v5643_v5, 4 }
 0x338   : > { %13670 = vrcp.f32 %v4598_v57  ;;  %v4599_v36 = vadd.f32 1.0, %v13661_v20  ;;  %v12207_v49 = vcombine.low %v4845_v53, %v4845_v53  ;;  %v12208_v1 = vcombine.high %v4845_v53, %v4845_v53  ;;  %5031 = vst.msk [vmem:[#allocation2 + $0x20] sm:$0x1] %vm20430_vm0, %v12209_v47  ;;  %v12838_v9 = vpop.f32.mrb[22].mxu1 }
 0x339   : > { %v4556_v14 = vmul.f32 1.442695, %v4518_v15  ;;  %v4519_v17 = vsub.f32 0.0, %v16279_v62  ;;  %v13663_v23 = vpop.eup %13662  ;;  %v12837_v18 = vadd.f32 %v12836_v32, %v12835_v34  ;;  %v12839_v25 = vpop.f32.mrb[23].mxu1  ;;  %20434 = vst [vmem:[#allocation37_spill] sm:$0xff] %v16300_v2  ;;  %v5646_v57 = vshll.u32 %v16200_v31, 16 }
 0x33a   : > { %13672 = vrcp.f32 %v4599_v36  ;;  %v13665_v11 = vpop.eup %13664  ;;  %5030 = vst.msk [vmem:[#allocation2 + $0x1c] sm:$0xf] %vm20431_vm3, %v12208_v1  ;;  %v4652_v63 = vmul.f32 %v13663_v23, %v16195_v55  ;;  %v12840_v50 = vadd.f32 %v12839_v25, %v12838_v9  ;;  %v5147_v34 = vsel %vm14373_vm9, %v5142_v48, %v16268_v30 }
 0x33b   : > { %5029 = vst.msk [vmem:[#allocation2 + $0x18] sm:$0xf] %vm20432_vm10, %v12207_v49  ;;  %13674 = vpow2.f32 %v4556_v14  ;;  %v4558_v16 = vmul.f32 1.442695, %v4519_v17  ;;  %v4653_v38 = vmul.f32 %v13665_v11, %v16204_v45  ;;  %v4301_v59 = vadd.f32 %v12837_v18, %v16142_v41  ;;  %vm20437_vm10 = vmmov %vm20431_vm3 }
 0x33c   : > { %v13667_v13 = vpop.eup %13666  ;;  %v4304_v28 = vadd.f32 %v12840_v50, %v16142_v41  ;;  %v4680_v29 = vsel %vm14560_vm14, %v4652_v63, 0.0  ;;  %v16324_v25 = vrot.slane %v5646_v57, 5 }
 0x33d   : > { %13676 = vpow2.f32 %v4558_v16  ;;  %v4681_v55 = vsel %vm14560_vm14, %v4653_v38, 0.0  ;;  %v4600_v10 = vadd.f32 1.0, %v13667_v13  ;;  %v16298_v21 = vadd.f32 %v16186_v61, %v4301_v59 }
 0x33e   : > { %v4706_v45 = vpack.c.bf16 %v4681_v55, %v4680_v29  ;;  %v16304_v20 = vadd.f32 %v16192_v6, %v4304_v28  ;;  %v12841_v47 = vpop.f32.mrb[24].mxu1  ;;  %v13669_v22 = vpop.eup %13668  ;;  %v5157_v61 = vsel %vm14373_vm9, %v5152_v43, %v5156_v52  ;;  %20435 = vst [vmem:[#allocation42_spill] sm:$0xff] %v16324_v25 }
 0x33f   : > { %13678 = vrcp.f32 %v4600_v10  ;;  %v4520_v15 = vsub.f32 0.0, %v16298_v21  ;;  %v12842_v0 = vpop.f32.mrb[25].mxu1  ;;  %v4601_v32 = vadd.f32 1.0, %v13669_v22  ;;  %v12303_v16 = vcombine.low %v5147_v34, %v5157_v61  ;;  %v5629_v52 = vld [vmem:[#allocation2 + $0x20] sm:$0x1] }
 0x340   : > { %v4733_v53 = vshrl.u32 %v4706_v45, 16  ;;  %v4736_v36 = vshll.u32 %v4706_v45, 16  ;;  %v4521_v31 = vsub.f32 0.0, %v16304_v20  ;;  %v16317_v14 = vadd.f32 %v12842_v0, %v12841_v47  ;;  %v16322_v5 = vpop.f32.mrb[26].mxu1 }
 0x341   : > { %v4560_v42 = vmul.f32 1.442695, %v4520_v15  ;;  %v16315_v1 = vld [vmem:[#allocation2 + $0x1c] sm:$0xf]  ;;  %13680 = vrcp.f32 %v4601_v32  ;;  %v16334_v55 = vpop.f32.mrb[27].mxu1 }
 0x342   : > { %v13671_v6 = vpop.eup %13670  ;;  %v16313_v49 = vld [vmem:[#allocation2 + $0x18] sm:$0xf]  ;;  %v4735_v17 = vrot.slane %v4733_v53, 7  ;;  %v4562_v9 = vmul.f32 1.442695, %v4521_v31 }
 0x343   : > { %v4654_v30 = vmul.f32 %v13671_v6, %v16228_v54  ;;  %v16320_v23 = vld [vmem:[#allocation2 + $0x18] sm:$0xf]  ;;  %13682 = vpow2.f32 %v4560_v42  ;;  %v12372_v11 = vcombine.low %v16313_v49, %v16315_v1  ;;  %v5603_v63 = vld [vmem:[#allocation2 + $0x1c] sm:$0xf]  ;;  %v16347_v53 = vld [vmem:[#allocation2 + $0x20] sm:$0x1] }
 0x344   : > { %v13673_v18 = vpop.eup %13672  ;;  %v4738_v38 = vor.u32 %v4736_v36, %v4735_v17  ;;  %v4860_v54 = vsel %vm14549_vm11, %v4735_v17, 0  ;;  %13684 = vpow2.f32 %v4562_v9  ;;  %v12331_v28 = vcombine.low %v16320_v23, %v5603_v63  ;;  %v5979_v29 = vld [vmem:[#allocation2 + $0x18] sm:$0xe]  ;;  %v16423_v42 = vpop.f32.mrb[56].mxu0 }
 0x345   : > { %v13675_v50 = vpop.eup %13674  ;;  %v4655_v59 = vmul.f32 %v13673_v18, %v16238_v4  ;;  %v12212_v43 = vcombine.low %v4860_v54, %v4860_v54  ;;  %7112 = vrot.lane.b32.xlu0 %v12372_v11, %s14227_s10  ;;  %v4682_v4 = vsel %vm14541_vm12, %v4654_v30, 0.0  ;;  %v6510_v36 = vld [vmem:[#allocation2 + $0x18] sm:$0xe]  ;;  %v5667_v6 = vshrl.u32 %v16320_v23, 16 }
 0x346   : > { %v4602_v13 = vadd.f32 1.0, %v13675_v50  ;;  %v4846_v45 = vsel %vm14549_vm11, 0, %v4738_v38  ;;  %v16343_v15 = vpop.f32.mrb[28].mxu1  ;;  %6918 = vrot.lane.b32.xlu1 %v12331_v28, %s14229_s17  ;;  %v12261_v17 = vrot.slane %v5979_v29, 9  ;;  %v6043_v50 = vrot.slane %v5603_v63, 5 }
 0x347   : > { %v13677_v10 = vpop.eup %13676  ;;  %v4683_v47 = vsel %vm14541_vm12, %v4655_v59, 0.0  ;;  %v12210_v34 = vcombine.low %v4846_v45, %v4846_v45  ;;  %v12211_v61 = vcombine.high %v4846_v45, %v4846_v45  ;;  %5034 = vst.msk [vmem:[#allocation2 + $0x2c] sm:$0x1] %vm20430_vm0, %v12212_v43  ;;  %v16349_v32 = vpop.f32.mrb[29].mxu1  ;;  %v6046_v38 = vrot.slane %v5629_v52, 5 }
 0x348   : > { %v4707_v0 = vpack.c.bf16 %v4683_v47, %v4682_v4  ;;  %13686 = vrcp.f32 %v4602_v13  ;;  %v4603_v31 = vadd.f32 1.0, %v13677_v10  ;;  %v16353_v30 = vpop.f32.mrb[30].mxu1  ;;  %v12274_v43 = vrot.slane %v6510_v36, 9 }
 0x349   : > { %v13679_v9 = vpop.eup %13678  ;;  %5033 = vst.msk [vmem:[#allocation2 + $0x28] sm:$0xf] %vm20431_vm3, %v12211_v61  ;;  %v16357_v54 = vpop.f32.mrb[31].mxu1  ;;  %v6568_v13 = vrot.slane %v16315_v1, 5  ;;  %v6044_v29 = vsel %vm14364_vm6, %v12261_v17, %v6043_v50  ;;  %v6045_v10 = vrot.slane %v6043_v50, 4  ;;  %v6571_v45 = vrot.slane %v16347_v53, 5 }
 0x34a   : > { %5032 = vst.msk [vmem:[#allocation2 + $0x24] sm:$0xf] %vm20437_vm10, %v12210_v34  ;;  %v4740_v18 = vshrl.u32 %v4707_v0, 16  ;;  %v4743_v11 = vshll.u32 %v4707_v0, 16  ;;  %v4656_v59 = vmul.f32 %v13679_v9, %v16253_v7  ;;  %13688 = vrcp.f32 %v4603_v31  ;;  %6764 = vrot.lane.b32.xlu1 %v12303_v16, %s14228_s12  ;;  %vm20439_vm10 = vmmov %vm20431_vm3 }
 0x34b   : > { %v13681_v4 = vpop.eup %13680  ;;  %v6569_v7 = vsel %vm14364_vm6, %v12274_v43, %v6568_v13  ;;  %v6570_v47 = vrot.slane %v6568_v13, 4  ;;  %v4309_v34 = vadd.f32 %v16317_v14, %v16142_v41  ;;  %v6047_v31 = vsel %vm14364_vm6, %v6045_v10, %v6046_v38  ;;  %v5448_v43 = vld [vmem:[#allocation2 + $0x18] sm:$0xe] }
 0x34c   : > { %v4742_v28 = vrot.slane %v4740_v18, 7  ;;  %v4684_v52 = vsel %vm14618_vm4, %v4656_v59, 0.0  ;;  %v4657_v36 = vmul.f32 %v13681_v4, %v16263_v33  ;;  %v12359_v18 = vcombine.low %v6044_v29, %v6047_v31  ;;  %v16378_v59 = vld [vmem:[#allocation2 + $0x1c] sm:$0xf] }
 0x34d   : > { %v13683_v61 = vpop.eup %13682  ;;  %v6572_v50 = vsel %vm14364_vm6, %v6570_v47, %v6571_v45  ;;  %v16387_v38 = vadd.f32 %v16183_v56, %v4309_v34  ;;  %v16393_v47 = vld [vmem:[#allocation2 + $0x20] sm:$0x1]  ;;  %v12248_v56 = vrot.slane %v5448_v43, 9  ;;  %v5518_v34 = vrot.slane %v16378_v59, 5 }
 0x34e   : > { %v4745_v0 = vor.u32 %v4743_v11, %v4742_v28  ;;  %v4861_v16 = vsel %vm14549_vm11, %v4742_v28, 0  ;;  %v4604_v9 = vadd.f32 1.0, %v13683_v61  ;;  %v16380_v14 = vpop.f32.mrb[32].mxu1  ;;  %v13685_v11 = vpop.eup %13684  ;;  %v4685_v33 = vsel %vm14618_vm4, %v4657_v36, 0.0  ;;  %7030 = vrot.lane.b32.xlu0 %v12359_v18, %s14228_s12 }
 0x34f   : > { %v12215_v17 = vcombine.low %v4861_v16, %v4861_v16  ;;  %v12400_v28 = vcombine.low %v6569_v7, %v6572_v50  ;;  %v16389_v29 = vpop.f32.mrb[33].mxu1  ;;  %v4708_v4 = vpack.c.bf16 %v4685_v33, %v4684_v52  ;;  %v4522_v7 = vsub.f32 0.0, %v16387_v38 }
 0x350   : > { %v4847_v13 = vsel %vm14549_vm11, 0, %v4745_v0  ;;  %13690 = vrcp.f32 %v4604_v9  ;;  %v4605_v0 = vadd.f32 1.0, %v13685_v11  ;;  %v16407_v9 = vld [vmem:[#allocation2 + $0x28] sm:$0xf]  ;;  %v16409_v18 = vpop.f32.mrb[34].mxu1  ;;  %v5520_v43 = vrot.slane %v5518_v34, 4 }
 0x351   : > { %v12213_v10 = vcombine.low %v4847_v13, %v4847_v13  ;;  %v12214_v45 = vcombine.high %v4847_v13, %v4847_v13  ;;  %5037 = vst.msk [vmem:[#allocation2 + $0x38] sm:$0x1] %vm20430_vm0, %v12215_v17  ;;  %13197 = vmatprep.mubr.msk.bf16.mxu1 %vm20274_vm13, %v12400_v28  ;;  %v16398_v16 = vld [vmem:[#allocation2 + $0x24] sm:$0xf]  ;;  %v4747_v52 = vshrl.u32 %v4708_v4, 16  ;;  %v4750_v36 = vshll.u32 %v4708_v4, 16 }
 0x352   : > { %v13687_v61 = vpop.eup %13686  ;;  %v16405_v17 = vrot.slane %v5667_v6, 4  ;;  %13692 = vrcp.f32 %v4605_v0  ;;  %v4564_v50 = vmul.f32 1.442695, %v4522_v7  ;;  %v5521_v11 = vrot.slane %v16393_v47, 5  ;;  %v16412_v13 = vpop.f32.mrb[35].mxu1 }
 0x353   : > { %5036 = vst.msk [vmem:[#allocation2 + $0x34] sm:$0xf] %vm20431_vm3, %v12214_v45  ;;  %v4658_v31 = vmul.f32 %v13687_v61, %v16271_v58  ;;  %v4749_v28 = vrot.slane %v4747_v52, 7  ;;  %v5519_v6 = vsel %vm14364_vm6, %v12248_v56, %v5518_v34  ;;  %v6199_v45 = vshrl.u32 %v16398_v16, 16  ;;  %v5604_v7 = vld [vmem:[#allocation2 + $0x24] sm:$0xf] }
 0x354   : > { %5035 = vst.msk [vmem:[#allocation2 + $0x30] sm:$0xf] %vm20439_vm10, %v12213_v10  ;;  %20440 = vst [vmem:[#allocation38_spill] sm:$0xff] %v16405_v17  ;;  %v13689_v33 = vpop.eup %13688  ;;  %13694 = vpow2.f32 %v4564_v50  ;;  %v5522_v61 = vsel %vm14364_vm6, %v5520_v43, %v5521_v11  ;;  %v6575_v0 = vrot.slane %v16407_v9, 5  ;;  %v16428_v34 = vld [vmem:[#allocation2 + $0x28] sm:$0xf] }
 0x355   : > { %v4686_v58 = vsel %vm14605_vm1, %v4658_v31, 0.0  ;;  %v4659_v4 = vmul.f32 %v13689_v33, %v16279_v62  ;;  %v4752_v52 = vor.u32 %v4750_v36, %v4749_v28  ;;  %v4862_v31 = vsel %vm14549_vm11, %v4749_v28, 0  ;;  %v16432_v62 = vpop.f32.mrb[57].mxu0  ;;  %vm20444_vm10 = vmmov %vm20431_vm3 }
 0x356   : > { %v12318_v22 = vcombine.low %v5519_v6, %v5522_v61  ;;  %v16430_v48 = vpop.f32.mrb[36].mxu1  ;;  %v12218_v50 = vcombine.low %v4862_v31, %v4862_v31  ;;  %v16436_v11 = vrot.slane %v6199_v45, 4  ;;  %v16438_v33 = vrot.slane %v6575_v0, 4  ;;  %v16461_v44 = vpop.f32.mrb[58].mxu0  ;;  %vm20448_vm2 = vmmov %vm20444_vm10 }
 0x357   : > { %v4687_v43 = vsel %vm14605_vm1, %v4659_v4, 0.0  ;;  %v16440_v36 = vpop.f32.mrb[37].mxu1  ;;  %v4848_v28 = vsel %vm14549_vm11, 0, %v4752_v52  ;;  %v12373_v61 = vcombine.low %v16398_v16, %v16407_v9  ;;  %v12846_v31 = vadd.f32 %v16334_v55, %v16322_v5 }
 0x358   : > { %v4709_v6 = vpack.c.bf16 %v4687_v43, %v4686_v58  ;;  %6836 = vrot.lane.b32.xlu1 %v12318_v22, %s14227_s10  ;;  %v16449_v56 = vpop.f32.mrb[38].mxu1  ;;  %v12216_v45 = vcombine.low %v4848_v28, %v4848_v28  ;;  %v12217_v4 = vcombine.high %v4848_v28, %v4848_v28  ;;  %5040 = vst.msk [vmem:[#allocation2 + $0x44] sm:$0x1] %vm20430_vm0, %v12218_v50  ;;  %v20442_v63 = vshrl.u32 %v16313_v49, 16  ;;  %v6511_v58 = vld [vmem:[#allocation2 + $0x24] sm:$0xe] }
 0x359   : > { %v12332_v10 = vcombine.low %v5604_v7, %v16428_v34  ;;  %v16455_v43 = vpop.f32.mrb[39].mxu1  ;;  %7114 = vrot.lane.b32.xlu0 %v12373_v61, %s14227_s10  ;;  %v4312_v5 = vadd.f32 %v12846_v31, %v16142_v41  ;;  %v20443_v55 = vshll.u32 %v16313_v49, 16  ;;  %v6184_v7 = vshll.u32 %v16315_v1, 16  ;;  %v16469_v61 = vpop.f32.mrb[59].mxu0 }
 0x35a   : > { %v6177_v52 = vrot.slane %v20442_v63, 4  ;;  %v13691_v22 = vpop.eup %13690  ;;  %v4754_v57 = vshrl.u32 %v4709_v6, 16  ;;  %v4757_v19 = vshll.u32 %v4709_v6, 16  ;;  %5039 = vst.msk [vmem:[#allocation2 + $0x40] sm:$0xf] %vm20431_vm3, %v12217_v4  ;;  %v6188_v50 = vshrl.u32 %v16315_v1, 16 }
 0x35b   : > { %v6180_v28 = vrot.slane %v20443_v55, 5  ;;  %5038 = vst.msk [vmem:[#allocation2 + $0x3c] sm:$0xf] %vm20444_vm10, %v12216_v45  ;;  %v4660_v63 = vmul.f32 %v13691_v22, %v16298_v21  ;;  %v6194_v6 = vshll.u32 %v16347_v53, 16  ;;  %v16472_v49 = vadd.f32 %v16188_v51, %v4312_v5  ;;  %v20445_v45 = vld [vmem:[#allocation21_spill] sm:$0xff] }
 0x35c   : > { %v4756_v31 = vrot.slane %v4754_v57, 7  ;;  %6920 = vrot.lane.b32.xlu1 %v12332_v10, %s14229_s17  ;;  %v12275_v4 = vrot.slane %v6511_v58, 9  ;;  %v13693_v12 = vpop.eup %13692  ;;  %vm20446_vm0 = vnez %v20445_v45  ;;  %v6186_v22 = vrot.slane %v6184_v7, 5  ;;  %v16481_v58 = vld [vmem:[#allocation2 + $0x2c] sm:$0x1] }
 0x35d   : > { %v6181_v55 = vor.u32 %v6180_v28, %v6177_v52  ;;  %v4688_v21 = vsel %vm20446_vm0, %v4660_v63, 0.0  ;;  %v6190_v17 = vrot.slane %v6188_v50, 4  ;;  %v6196_v25 = vrot.slane %v6194_v6, 5  ;;  %v5072_v63 = vld [vmem:[#allocation2 + $0x18] sm:$0xf] }
 0x35e   : > { %v4759_v1 = vor.u32 %v4757_v19, %v4756_v31  ;;  %v4863_v53 = vsel %vm14549_vm11, %v4756_v31, 0  ;;  %v4661_v57 = vmul.f32 %v13693_v12, %v16304_v20  ;;  %v4523_v51 = vsub.f32 0.0, %v16472_v49  ;;  %v13695_v5 = vpop.eup %13694 }
 0x35f   : > { %v12221_v2 = vcombine.low %v4863_v53, %v4863_v53  ;;  %v6182_v10 = vrot.slane %v6181_v55, 4  ;;  %v6191_v52 = vor.u32 %v6190_v17, %v6186_v22  ;;  %v6576_v28 = vsel %vm14364_vm6, %v12275_v4, %v6575_v0 }
 0x360   : > { %v4849_v19 = vsel %vm14549_vm11, 0, %v4759_v1  ;;  %v4689_v7 = vsel %vm20446_vm0, %v4661_v57, 0.0  ;;  %v4606_v50 = vadd.f32 1.0, %v13695_v5  ;;  %v4566_v12 = vmul.f32 1.442695, %v4523_v51 }
 0x361   : > { %v12219_v20 = vcombine.low %v4849_v19, %v4849_v19  ;;  %v12220_v6 = vcombine.high %v4849_v19, %v4849_v19  ;;  %vm20447_vm3 = vcmask 253952   ;;  %v4710_v31 = vpack.c.bf16 %v4689_v7, %v4688_v21  ;;  %v5980_v5 = vld [vmem:[#allocation2 + $0x24] sm:$0xe] }
 0x362   : > { %5043 = vst.msk [vmem:[#allocation2 + $0x50] sm:$0x1] %vm20447_vm3, %v12221_v2  ;;  %v6187_v17 = vsel %vm14373_vm9, %v6182_v10, %v6186_v22  ;;  %13696 = vrcp.f32 %v4606_v50  ;;  %v6192_v55 = vrot.slane %v6191_v52, 4  ;;  %v6578_v0 = vrot.slane %v16481_v58, 5 }
 0x363   : > { %v12849_v4 = vadd.f32 %v16349_v32, %v16343_v15  ;;  %5042 = vst.msk [vmem:[#allocation2 + $0x4c] sm:$0xf] %vm20444_vm10, %v12220_v6  ;;  %v4761_v1 = vshrl.u32 %v4710_v31, 16  ;;  %v4764_v53 = vshll.u32 %v4710_v31, 16  ;;  %13698 = vpow2.f32 %v4566_v12  ;;  %v5630_v31 = vld [vmem:[#allocation2 + $0x2c] sm:$0x1] }
 0x364   : > { %5041 = vst.msk [vmem:[#allocation2 + $0x48] sm:$0xf] %vm20448_vm2, %v12219_v20  ;;  %v5159_v57 = vshrl.u32 %v5072_v63, 16  ;;  %v6197_v2 = vsel %vm14373_vm9, %v6192_v55, %v6196_v25  ;;  %v6579_v21 = vsel %vm14364_vm6, %v16438_v33, %v6578_v0  ;;  %v5162_v51 = vshll.u32 %v5072_v63, 16  ;;  %vm20449_vm2 = vmmov %vm20447_vm3 }
 0x365   : > { %v4317_v22 = vadd.f32 %v12849_v4, %v16142_v41  ;;  %v4763_v15 = vrot.slane %v4761_v1, 7  ;;  %v12386_v32 = vcombine.low %v6187_v17, %v6197_v2  ;;  %v12401_v10 = vcombine.low %v6576_v28, %v6579_v21  ;;  %v5449_v17 = vld [vmem:[#allocation2 + $0x24] sm:$0xe]  ;;  %v16520_v21 = vld [vmem:[#allocation2 + $0x28] sm:$0xf]  ;;  %vm20450_vm3 = vmmov %vm20444_vm10 }
 0x366   : > { %v5161_v52 = vrot.slane %v5159_v57, 4  ;;  %v5164_v7 = vrot.slane %v5162_v51, 5  ;;  %v5168_v50 = vshll.u32 %v16378_v59, 16  ;;  %v5172_v25 = vshrl.u32 %v16378_v59, 16  ;;  %vm20451_vm10 = vmmov %vm20450_vm3 }
 0x367   : > { %v16504_v19 = vadd.f32 %v16206_v35, %v4317_v22  ;;  %v4766_v12 = vor.u32 %v4764_v53, %v4763_v15  ;;  %v4864_v33 = vsel %vm14549_vm11, %v4763_v15, 0  ;;  %7182 = vrot.lane.b32.xlu0 %v12386_v32, %s14229_s17  ;;  %13198 = vmatmul.mubr.msk.bf16.vlgmr.msra.gmra.mrb[52].mxu1 %vm20274_vm13, %v12401_v10  ;;  %v5178_v41 = vshll.u32 %v16393_v47, 16 }
 0x368   : > { %v12262_v28 = vrot.slane %v5980_v5, 9  ;;  %v12224_v63 = vcombine.low %v4864_v33, %v4864_v33  ;;  %v5165_v20 = vor.u32 %v5164_v7, %v5161_v52  ;;  %v5170_v6 = vrot.slane %v5168_v50, 5  ;;  %v16517_v1 = vpop.f32.mrb[40].mxu1 }
 0x369   : > { %v4524_v35 = vsub.f32 0.0, %v16504_v19  ;;  %v4850_v59 = vsel %vm14549_vm11, 0, %v4766_v12  ;;  %v5174_v55 = vrot.slane %v5172_v25, 4  ;;  %v5180_v0 = vrot.slane %v5178_v41, 5  ;;  %v16522_v22 = vpop.f32.mrb[41].mxu1 }
 0x36a   : > { %v6050_v4 = vrot.slane %v16428_v34, 5  ;;  %v12222_v53 = vcombine.low %v4850_v59, %v4850_v59  ;;  %v12223_v57 = vcombine.high %v4850_v59, %v4850_v59  ;;  %5046 = vst.msk [vmem:[#allocation2 + $0x5c] sm:$0x1] %vm20449_vm2, %v12224_v63  ;;  %v5166_v2 = vrot.slane %v5165_v20, 4  ;;  %v16526_v10 = vpop.f32.mrb[42].mxu1  ;;  %v13438_v34 = vld [vmem:[%s20198_s3 + $0xd0] sm:$0xff]  }
 0x36b   : > { %v4568_v47 = vmul.f32 1.442695, %v4524_v35  ;;  %v5175_v51 = vor.u32 %v5174_v55, %v5170_v6  ;;  %v6053_v32 = vrot.slane %v5630_v31, 5  ;;  %v12852_v50 = vadd.f32 %v16357_v54, %v16353_v30  ;;  %v16537_v25 = vld [vmem:[#allocation2 + $0x2c] sm:$0x1]  ;;  %v16539_v33 = vpop.f32.mrb[43].mxu1  ;;  %12899 = vmatprep.subr.bf16.mxu0 %v13438_v34 }
 0x36c   : > { %v6051_v5 = vsel %vm14364_vm6, %v12262_v28, %v6050_v4  ;;  %v6052_v15 = vrot.slane %v6050_v4, 4  ;;  %v13697_v52 = vpop.eup %13696  ;;  %5045 = vst.msk [vmem:[#allocation2 + $0x58] sm:$0xf] %vm20450_vm3, %v12223_v57  ;;  %v5171_v7 = vsel %vm14373_vm9, %v5166_v2, %v5170_v6  ;;  %v12249_v12 = vrot.slane %v5449_v17, 9  ;;  %v16552_v17 = vld [vmem:[%s20199_s4] ss:$0 sm:$0xff] }
 0x36d   : > { %5044 = vst.msk [vmem:[#allocation2 + $0x54] sm:$0xf] %vm20451_vm10, %v12222_v53  ;;  %13700 = vpow2.f32 %v4568_v47  ;;  %v13699_v41 = vpop.eup %13698  ;;  %v16542_v28 = vmul.f32 %v13697_v52, %v16387_v38  ;;  %v5176_v63 = vrot.slane %v5175_v51, 4  ;;  %v5525_v20 = vrot.slane %v16520_v21, 5  ;;  %v16555_v59 = vld [vmem:[#allocation2 + $0x30] sm:$0xf] }
 0x36e   : > { %v6054_v35 = vsel %vm14364_vm6, %v6052_v15, %v6053_v32  ;;  %v20452_v6 = vshll.u32 %v16398_v16, 16  ;;  %v4607_v30 = vadd.f32 1.0, %v13699_v41  ;;  %v4320_v38 = vadd.f32 %v16552_v17, %v12852_v50  ;;  %v16557_v55 = vld [vmem:[#allocation2 + $0x34] sm:$0xf]  ;;  %v20453_v4 = vld [vmem:[#allocation19_spill] sm:$0xff] }
 0x36f   : > { %v12360_v54 = vcombine.low %v6051_v5, %v6054_v35  ;;  %vm20454_vm2 = vnez %v20453_v4  ;;  %v5181_v16 = vsel %vm14373_vm9, %v5176_v63, %v5180_v0  ;;  %v5527_v57 = vrot.slane %v5525_v20, 4  ;;  %v5606_v15 = vld [vmem:[#allocation2 + $0x30] sm:$0xf]  ;;  %v16571_v32 = vld [vmem:[#allocation2 + $0x34] sm:$0xf] }
 0x370   : > { %v6204_v31 = vrot.slane %v20452_v6, 5  ;;  %v4690_v53 = vsel %vm20454_vm2, %v16542_v28, 0.0  ;;  %v5528_v47 = vrot.slane %v16537_v25, 5  ;;  %13702 = vrcp.f32 %v4607_v30  ;;  %v13439_v0 = vld [vmem:[%s20198_s3 + $0x90] sm:$0xff]   ;;  %v5074_v63 = vld [vmem:[#allocation2 + $0x24] sm:$0xf] }
 0x371   : > { %v12304_v2 = vcombine.low %v5171_v7, %v5181_v16  ;;  %7032 = vrot.lane.b32.xlu0 %v12360_v54, %s14228_s12  ;;  %v16567_v51 = vadd.f32 %v16212_v60, %v4320_v38  ;;  %v12855_v5 = vadd.f32 %v16389_v29, %v16380_v14  ;;  %v5526_v34 = vsel %vm14364_vm6, %v12249_v12, %v5525_v20 }
 0x372   : > { %v5529_v52 = vsel %vm14364_vm6, %v5527_v57, %v5528_v47  ;;  %v12374_v60 = vcombine.low %v16555_v59, %v16557_v55  ;;  %v6223_v7 = vshrl.u32 %v16555_v59, 16  ;;  %12900 = vmatpush3.bf16.msra.mxu0 %v13439_v0  ;;  %v12333_v35 = vcombine.low %v5606_v15, %v16571_v32 }
 0x373   : > { %6766 = vrot.lane.b32.xlu1 %v12304_v2, %s14228_s12  ;;  %v4525_v14 = vsub.f32 0.0, %v16567_v51  ;;  %v12319_v29 = vcombine.low %v5526_v34, %v5529_v52  ;;  %v4325_v50 = vadd.f32 %v16552_v17, %v12855_v5  ;;  %v12858_v20 = vadd.f32 %v16412_v13, %v16409_v18  ;;  %v16599_v57 = vpop.f32.mrb[44].mxu1 }
 0x374   : > { %v16587_v12 = vrot.slane %v6223_v7, 4  ;;  %v6205_v6 = vor.u32 %v6204_v31, %v16436_v11  ;;  %v6208_v38 = vshll.u32 %v16407_v9, 16  ;;  %v6212_v16 = vshrl.u32 %v16407_v9, 16  ;;  %v16603_v13 = vpop.f32.mrb[45].mxu1 }
 0x375   : > { %v4570_v30 = vmul.f32 1.442695, %v4525_v14  ;;  %v16594_v54 = vadd.f32 %v16198_v39, %v4325_v50  ;;  %7116 = vrot.lane.b32.xlu0 %v12374_v60, %s14227_s10  ;;  %v4328_v47 = vadd.f32 %v16552_v17, %v12858_v20  ;;  %v6218_v5 = vshll.u32 %v16481_v58, 16  ;;  %v16607_v0 = vpop.f32.mrb[46].mxu1  ;;  %v13442_v20 = vld [vmem:[%s20198_s3 + $0xd8] sm:$0xff]  }
 0x376   : > { %v6206_v2 = vrot.slane %v6205_v6, 4  ;;  %v5183_v18 = vshrl.u32 %v5074_v63, 16  ;;  %v6210_v31 = vrot.slane %v6208_v38, 5  ;;  %v6214_v15 = vrot.slane %v6212_v16, 4  ;;  %v16612_v58 = vpop.f32.mrb[47].mxu1  ;;  %v13443_v16 = vld [vmem:[%s20198_s3 + $0x98] sm:$0xff]   ;;  %12901 = vmatprep.subr.bf16.mxu0 %v13442_v20 }
 0x377   : > { %v13701_v11 = vpop.eup %13700  ;;  %13704 = vpow2.f32 %v4570_v30  ;;  %6838 = vrot.lane.b32.xlu1 %v12319_v29, %s14227_s10  ;;  %v4526_v39 = vsub.f32 0.0, %v16594_v54  ;;  %v16610_v34 = vadd.f32 %v16208_v8, %v4328_v47  ;;  %v6220_v52 = vrot.slane %v6218_v5, 5  ;;  %v6512_v38 = vld [vmem:[#allocation2 + $0x30] sm:$0xe]  ;;  %12902 = vmatpush3.bf16.msra.mxu0 %v13443_v16 }
 0x378   : > { %v4608_v9 = vadd.f32 1.0, %v13701_v11  ;;  %v5185_v60 = vrot.slane %v5183_v18, 4  ;;  %v6211_v14 = vsel %vm14373_vm9, %v6206_v2, %v6210_v31  ;;  %v6215_v50 = vor.u32 %v6214_v15, %v6210_v31 }
 0x379   : > { %v4572_v7 = vmul.f32 1.442695, %v4526_v39  ;;  %v5186_v29 = vshll.u32 %v5074_v63, 16  ;;  %v4527_v6 = vsub.f32 0.0, %v16610_v34  ;;  %v5192_v8 = vshll.u32 %v16520_v21, 16 }
 0x37a   : > { %13706 = vrcp.f32 %v4608_v9  ;;  %v5196_v30 = vshrl.u32 %v16520_v21, 16  ;;  %v13703_v47 = vpop.eup %13702  ;;  %v6216_v63 = vrot.slane %v6215_v50, 4  ;;  %v5202_v5 = vshll.u32 %v16537_v25, 16  ;;  %v16628_v21 = vld [vmem:[#allocation2 + $0x38] sm:$0x1] }
 0x37b   : > { %13708 = vpow2.f32 %v4572_v7  ;;  %6922 = vrot.lane.b32.xlu1 %v12333_v35, %s14229_s17  ;;  %v5188_v2 = vrot.slane %v5186_v29, 5  ;;  %v4663_v18 = vmul.f32 %v13703_v47, %v16472_v49  ;;  %v4574_v11 = vmul.f32 1.442695, %v4527_v6  ;;  %v5981_v35 = vld [vmem:[#allocation2 + $0x30] sm:$0xe] }
 0x37c   : > { %v5194_v39 = vrot.slane %v5192_v8, 5  ;;  %v5198_v31 = vrot.slane %v5196_v30, 4  ;;  %v6221_v15 = vsel %vm14373_vm9, %v6216_v63, %v6220_v52  ;;  %v5204_v7 = vrot.slane %v5202_v5, 5  ;;  %v5631_v63 = vld [vmem:[#allocation2 + $0x38] sm:$0x1] }
 0x37d   : > { %v5189_v9 = vor.u32 %v5188_v2, %v5185_v60  ;;  %v12276_v41 = vrot.slane %v6512_v38, 9  ;;  %v4691_v50 = vsel %vm20454_vm2, %v4663_v18, 0.0  ;;  %13710 = vpow2.f32 %v4574_v11  ;;  %v13446_v2 = vld [vmem:[%s20198_s3 + $0xe0] sm:$0xff]  }
 0x37e   : > { %v12387_v25 = vcombine.low %v6211_v14, %v6221_v15  ;;  %v5199_v29 = vor.u32 %v5198_v31, %v5194_v39  ;;  %v4711_v49 = vpack.c.bf16 %v4691_v50, %v4690_v53  ;;  %v6582_v6 = vrot.slane %v16557_v55, 5  ;;  %v13447_v18 = vld [vmem:[%s20198_s3 + $0xa0] sm:$0xff]   ;;  %12903 = vmatprep.subr.bf16.mxu0 %v13446_v2  ;;  %v5450_v50 = vld [vmem:[#allocation2 + $0x30] sm:$0xe] }
 0x37f   : > { %v5190_v20 = vrot.slane %v5189_v9, 4  ;;  %v6585_v52 = vrot.slane %v16628_v21, 5  ;;  %v12861_v8 = vadd.f32 %v16440_v36, %v16430_v48  ;;  %v12263_v30 = vrot.slane %v5981_v35, 9  ;;  %12904 = vmatpush3.bf16.msra.mxu0 %v13447_v18  ;;  %v16686_v2 = vld [vmem:[#allocation2 + $0x44] sm:$0x1] }
 0x380   : > { %7184 = vrot.lane.b32.xlu0 %v12387_v25, %s14229_s17  ;;  %v5200_v60 = vrot.slane %v5199_v29, 4  ;;  %v6057_v14 = vrot.slane %v16571_v32, 5  ;;  %v4768_v16 = vshrl.u32 %v4711_v49, 16  ;;  %v4771_v47 = vshll.u32 %v4711_v49, 16  ;;  %v16689_v18 = vld [vmem:[#allocation2 + $0x3c] sm:$0xf] }
 0x381   : > { %v13705_v38 = vpop.eup %13704  ;;  %v5195_v28 = vsel %vm14373_vm9, %v5190_v20, %v5194_v39  ;;  %v6583_v53 = vsel %vm14364_vm6, %v12276_v41, %v6582_v6  ;;  %v6584_v36 = vrot.slane %v6582_v6, 4  ;;  %v4333_v32 = vadd.f32 %v16552_v17, %v12861_v8 }
 0x382   : > { %v4609_v5 = vadd.f32 1.0, %v13705_v38  ;;  %v5205_v48 = vsel %vm14373_vm9, %v5200_v60, %v5204_v7  ;;  %v4770_v11 = vrot.slane %v4768_v16, 7  ;;  %v6058_v41 = vsel %vm14364_vm6, %v12263_v30, %v6057_v14  ;;  %v16670_v60 = vld [vmem:[#allocation2 + $0x38] sm:$0x1]  ;;  %v16677_v38 = vld [vmem:[#allocation2 + $0x3c] sm:$0xf] }
 0x383   : > { %v12305_v39 = vcombine.low %v5195_v28, %v5205_v48  ;;  %v6059_v31 = vrot.slane %v6057_v14, 4  ;;  %v6586_v9 = vsel %vm14364_vm6, %v6584_v36, %v6585_v52  ;;  %v16662_v7 = vadd.f32 %v16231_v24, %v4333_v32  ;;  %v16675_v14 = vld [vmem:[#allocation2 + $0x34] sm:$0xf] }
 0x384   : > { %v13707_v15 = vpop.eup %13706  ;;  %13712 = vrcp.f32 %v4609_v5  ;;  %v6060_v35 = vrot.slane %v5631_v63, 5  ;;  %v4773_v29 = vor.u32 %v4771_v47, %v4770_v11  ;;  %v4865_v49 = vsel %vm14549_vm11, %v4770_v11, 0  ;;  %v16684_v63 = vld [vmem:[#allocation2 + $0x40] sm:$0xf] }
 0x385   : > { %v13709_v25 = vpop.eup %13708  ;;  %v16667_v20 = vmul.f32 %v13707_v15, %v16504_v19  ;;  %6768 = vrot.lane.b32.xlu1 %v12305_v39, %s14228_s12  ;;  %v12402_v6 = vcombine.low %v6583_v53, %v6586_v9  ;;  %v12227_v52 = vcombine.low %v4865_v49, %v4865_v49  ;;  %v4528_v24 = vsub.f32 0.0, %v16662_v7  ;;  %v16691_v11 = vld [vmem:[#allocation2 + $0x40] sm:$0xf]  ;;  %v6513_v9 = vld [vmem:[#allocation2 + $0x3c] sm:$0xe] }
 0x386   : > { %v4610_v8 = vadd.f32 1.0, %v13709_v25  ;;  %v6061_v30 = vsel %vm14364_vm6, %v6059_v31, %v6060_v35  ;;  %v4851_v19 = vsel %vm14549_vm11, 0, %v4773_v29  ;;  %v20455_v16 = vshll.u32 %v16555_v59, 16 }
 0x387   : > { %13201 = vmatprep.mubr.msk.bf16.mxu1 %vm20274_vm13, %v12402_v6  ;;  %v12361_v28 = vcombine.low %v6058_v41, %v6061_v30  ;;  %v12250_v53 = vrot.slane %v5450_v50, 9  ;;  %v13711_v5 = vpop.eup %13710  ;;  %v12225_v48 = vcombine.low %v4851_v19, %v4851_v19  ;;  %v12226_v36 = vcombine.high %v4851_v19, %v4851_v19 }
 0x388   : > { %v6228_v47 = vrot.slane %v20455_v16, 5  ;;  %vm20456_vm3 = vcmask 253952   ;;  %13714 = vrcp.f32 %v4610_v8  ;;  %v4576_v32 = vmul.f32 1.442695, %v4528_v24  ;;  %v16700_v35 = vpop.f32.mrb[48].mxu1  ;;  %v13448_v16 = vld [vmem:[%s20198_s3 + $0xe8] sm:$0xff]  }
 0x389   : > { %5049 = vst.msk [vmem:[#allocation2 + $0x68] sm:$0x1] %vm20456_vm3, %v12227_v52  ;;  %v4692_v39 = vsel %vm14823_vm15, %v16667_v20, 0.0  ;;  %v4611_v41 = vadd.f32 1.0, %v13711_v5  ;;  %7034 = vrot.lane.b32.xlu0 %v12361_v28, %s14228_s12  ;;  %v5532_v31 = vrot.slane %v16675_v14, 5  ;;  %v12864_v15 = vadd.f32 %v16455_v43, %v16449_v56  ;;  %vm20458_vm3 = vmmov %vm20451_vm10  ;;  %v16708_v49 = vpop.f32.mrb[49].mxu1  ;;  %12905 = vmatprep.subr.bf16.mxu0 %v13448_v16 }
 0x38a   : > { %5048 = vst.msk [vmem:[#allocation2 + $0x64] sm:$0xf] %vm20451_vm10, %v12226_v36  ;;  %13716 = vpow2.f32 %v4576_v32  ;;  %v5535_v50 = vrot.slane %v16670_v60, 5  ;;  %v6247_v25 = vshrl.u32 %v16677_v38, 16  ;;  %v12375_v29 = vcombine.low %v16677_v38, %v16684_v63  ;;  %v16713_v6 = vpop.f32.mrb[50].mxu1 }
 0x38b   : > { %5047 = vst.msk [vmem:[#allocation2 + $0x60] sm:$0xf] %vm20458_vm3, %v12225_v48  ;;  %13718 = vrcp.f32 %v4611_v41  ;;  %v5533_v56 = vsel %vm14364_vm6, %v12250_v53, %v5532_v31  ;;  %v5534_v43 = vrot.slane %v5532_v31, 4  ;;  %v4336_v20 = vadd.f32 %v16552_v17, %v12864_v15  ;;  %v16719_v19 = vpop.f32.mrb[51].mxu1 }
 0x38c   : > { %v12334_v52 = vcombine.low %v16689_v18, %v16691_v11  ;;  %v12277_v8 = vrot.slane %v6513_v9, 9  ;;  %v6589_v24 = vrot.slane %v16684_v63, 5  ;;  %v6592_v30 = vrot.slane %v16686_v2, 5 }
 0x38d   : > { %v5536_v28 = vsel %vm14364_vm6, %v5534_v43, %v5535_v50  ;;  %v16727_v53 = vadd.f32 %v16241_v37, %v4336_v20  ;;  %7118 = vrot.lane.b32.xlu0 %v12375_v29, %s14227_s10  ;;  %v12867_v5 = vadd.f32 %v16522_v22, %v16517_v1  ;;  %v6229_v48 = vor.u32 %v6228_v47, %v16587_v12  ;;  %v5076_v29 = vld [vmem:[#allocation2 + $0x30] sm:$0xf] }
 0x38e   : > { %v13713_v36 = vpop.eup %13712  ;;  %v12320_v32 = vcombine.low %v5533_v56, %v5536_v28  ;;  %v6590_v18 = vsel %vm14364_vm6, %v12277_v8, %v6589_v24  ;;  %v6591_v41 = vrot.slane %v6589_v24, 4  ;;  %v6232_v31 = vshll.u32 %v16557_v55, 16 }
 0x38f   : > { %v4665_v15 = vmul.f32 %v13713_v36, %v16567_v51  ;;  %v4529_v37 = vsub.f32 0.0, %v16727_v53  ;;  %v4341_v9 = vadd.f32 %v16552_v17, %v12867_v5  ;;  %v6230_v50 = vrot.slane %v6229_v48, 4  ;;  %v13449_v51 = vld [vmem:[%s20198_s3 + $0xa8] sm:$0xff]  }
 0x390   : > { %6840 = vrot.lane.b32.xlu1 %v12320_v32, %s14227_s10  ;;  %v6593_v1 = vsel %vm14364_vm6, %v6591_v41, %v6592_v30  ;;  %v6234_v22 = vrot.slane %v6232_v31, 5  ;;  %v6236_v12 = vshrl.u32 %v16557_v55, 16  ;;  %v6242_v47 = vshll.u32 %v16628_v21, 16  ;;  %12906 = vmatpush3.bf16.msra.mxu0 %v13449_v51  ;;  %v13452_v41 = vld [vmem:[%s20198_s3 + $0xf0] sm:$0xff]  }
 0x391   : > { %v4693_v56 = vsel %vm14823_vm15, %v4665_v15, 0.0  ;;  %v4578_v43 = vmul.f32 1.442695, %v4529_v37  ;;  %v12403_v20 = vcombine.low %v6590_v18, %v6593_v1  ;;  %v16750_v8 = vadd.f32 %v16225_v27, %v4341_v9  ;;  %v13453_v1 = vld [vmem:[%s20198_s3 + $0xb0] sm:$0xff]   ;;  %12907 = vmatprep.subr.bf16.mxu0 %v13452_v41 }
 0x392   : > { %v13715_v24 = vpop.eup %13714  ;;  %v4712_v30 = vpack.c.bf16 %v4693_v56, %v4692_v39  ;;  %v6235_v55 = vsel %vm14373_vm9, %v6230_v50, %v6234_v22  ;;  %v6238_v16 = vrot.slane %v6236_v12, 4  ;;  %v6244_v21 = vrot.slane %v6242_v47, 5 }
 0x393   : > { %v4666_v28 = vmul.f32 %v13715_v24, %v16594_v54  ;;  %13720 = vpow2.f32 %v4578_v43  ;;  %13202 = vmatmul.mubr.msk.bf16.gmra.mrb[56].mxu1 %vm20274_vm13, %v12403_v20  ;;  %v4530_v5 = vsub.f32 0.0, %v16750_v8  ;;  %v5207_v48 = vshrl.u32 %v5076_v29, 16  ;;  %vm20461_vm13 = vmmov %vm20458_vm3 }
 0x394   : > { %v13717_v36 = vpop.eup %13716  ;;  %v4775_v32 = vshrl.u32 %v4712_v30, 16  ;;  %v4778_v27 = vshll.u32 %v4712_v30, 16  ;;  %6924 = vrot.lane.b32.xlu1 %v12334_v52, %s14229_s17  ;;  %v6239_v39 = vor.u32 %v6238_v16, %v6234_v22  ;;  %v5210_v18 = vshll.u32 %v5076_v29, 16  ;;  %12908 = vmatpush3.bf16.msra.mxu0 %v13453_v1 }
 0x395   : > { %v13719_v31 = vpop.eup %13718  ;;  %v4694_v54 = vsel %vm14754_vm5, %v4666_v28, 0.0  ;;  %v4612_v37 = vadd.f32 1.0, %v13717_v36  ;;  %v4580_v9 = vmul.f32 1.442695, %v4530_v5  ;;  %v5209_v50 = vrot.slane %v5207_v48, 4 }
 0x396   : > { %v4777_v12 = vrot.slane %v4775_v32, 7  ;;  %v4667_v52 = vmul.f32 %v13719_v31, %v16610_v34  ;;  %v6240_v22 = vrot.slane %v6239_v39, 4  ;;  %v5212_v47 = vrot.slane %v5210_v18, 5  ;;  %v5632_v5 = vld [vmem:[#allocation2 + $0x44] sm:$0x1] }
 0x397   : > { %13722 = vrcp.f32 %v4612_v37  ;;  %v5216_v29 = vshll.u32 %v16675_v14, 16  ;;  %v5220_v51 = vshrl.u32 %v16675_v14, 16  ;;  %v5226_v56 = vshll.u32 %v16670_v60, 16  ;;  %v5982_v32 = vld [vmem:[#allocation2 + $0x3c] sm:$0xe] }
 0x398   : > { %v4780_v43 = vor.u32 %v4778_v27, %v4777_v12  ;;  %v4866_v20 = vsel %vm14549_vm11, %v4777_v12, 0  ;;  %v4695_v24 = vsel %vm14754_vm5, %v4667_v52, 0.0  ;;  %13724 = vpow2.f32 %v4580_v9 }
 0x399   : > { %v12230_v34 = vcombine.low %v4866_v20, %v4866_v20  ;;  %v4713_v30 = vpack.c.bf16 %v4695_v24, %v4694_v54  ;;  %v6245_v16 = vsel %vm14373_vm9, %v6240_v22, %v6244_v21  ;;  %v5213_v28 = vor.u32 %v5212_v47, %v5209_v50 }
 0x39a   : > { %v4852_v14 = vsel %vm14549_vm11, 0, %v4780_v43  ;;  %v12388_v60 = vcombine.low %v6235_v55, %v6245_v16  ;;  %v5218_v48 = vrot.slane %v5216_v29, 5  ;;  %v5222_v36 = vrot.slane %v5220_v51, 4  ;;  %v5451_v51 = vld [vmem:[#allocation2 + $0x3c] sm:$0xe] }
 0x39b   : > { %v12228_v27 = vcombine.low %v4852_v14, %v4852_v14  ;;  %v12229_v39 = vcombine.high %v4852_v14, %v4852_v14  ;;  %vm20460_vm10 = vcmask 253952   ;;  %v4782_v18 = vshrl.u32 %v4713_v30, 16  ;;  %v16803_v14 = vld [vmem:[#allocation2 + $0x44] sm:$0x1] }
 0x39c   : > { %5052 = vst.msk [vmem:[#allocation2 + $0x74] sm:$0x1] %vm20460_vm10, %v12230_v34  ;;  %v4785_v41 = vshll.u32 %v4713_v30, 16  ;;  %7186 = vrot.lane.b32.xlu0 %v12388_v60, %s14229_s17  ;;  %v5214_v31 = vrot.slane %v5213_v28, 4  ;;  %v5223_v54 = vor.u32 %v5222_v36, %v5218_v48  ;;  %v5228_v21 = vrot.slane %v5226_v56, 5 }
 0x39d   : > { %v12870_v37 = vadd.f32 %v16539_v33, %v16526_v10  ;;  %v13721_v9 = vpop.eup %13720  ;;  %5051 = vst.msk [vmem:[#allocation2 + $0x70] sm:$0xf] %vm20458_vm3, %v12229_v39  ;;  %v4784_v55 = vrot.slane %v4782_v18, 7  ;;  %v12264_v50 = vrot.slane %v5982_v32, 9  ;;  %v6064_v1 = vrot.slane %v16691_v11, 5 }
 0x39e   : > { %5050 = vst.msk [vmem:[#allocation2 + $0x6c] sm:$0xf] %vm20461_vm13, %v12228_v27  ;;  %v6067_v12 = vrot.slane %v5632_v5, 5  ;;  %v4613_v52 = vadd.f32 1.0, %v13721_v9  ;;  %v5219_v22 = vsel %vm14373_vm9, %v5214_v31, %v5218_v48  ;;  %v5224_v47 = vrot.slane %v5223_v54, 4  ;;  %vm20462_vm13 = vmmov %vm20460_vm10 }
 0x39f   : > { %v4344_v29 = vadd.f32 %v16552_v17, %v12870_v37  ;;  %v4787_v56 = vor.u32 %v4785_v41, %v4784_v55  ;;  %v4867_v10 = vsel %vm14549_vm11, %v4784_v55, 0  ;;  %v6065_v33 = vsel %vm14364_vm6, %v12264_v50, %v6064_v1  ;;  %v16797_v34 = vld [vmem:[#allocation2 + $0x40] sm:$0xf]  ;;  %v16805_v48 = vld [vmem:[#allocation2 + $0x48] sm:$0xf]  ;;  %vm20464_vm10 = vmmov %vm20458_vm3 }
 0x3a0   : > { %v6066_v43 = vrot.slane %v6064_v1, 4  ;;  %v12233_v20 = vcombine.low %v4867_v10, %v4867_v10  ;;  %13726 = vrcp.f32 %v4613_v52  ;;  %v5229_v11 = vsel %vm14373_vm9, %v5224_v47, %v5228_v21  ;;  %v16812_v18 = vld [vmem:[#allocation2 + $0x4c] sm:$0xf]  ;;  %v16814_v41 = vld [vmem:[#allocation2 + $0x48] sm:$0xf]  ;;  %v20465_v47 = vld [vmem:[#allocation32_spill] sm:$0xff] }
 0x3a1   : > { %v16795_v24 = vadd.f32 %v16234_v3, %v4344_v29  ;;  %v13723_v30 = vpop.eup %13722  ;;  %v4853_v16 = vsel %vm14549_vm11, 0, %v4787_v56  ;;  %v12306_v28 = vcombine.low %v5219_v22, %v5229_v11  ;;  %v12251_v60 = vrot.slane %v5451_v51, 9  ;;  %v16819_v9 = vld [vmem:[#allocation2 + $0x4c] sm:$0xf]  ;;  %v13455_v22 = vld [vmem:[%s20198_s3 + $0xb8] sm:$0xff]  }
 0x3a2   : > { %v6068_v5 = vsel %vm14364_vm6, %v6066_v43, %v6067_v12  ;;  %v13725_v36 = vpop.eup %13724  ;;  %v12231_v32 = vcombine.low %v4853_v16, %v4853_v16  ;;  %v12232_v27 = vcombine.high %v4853_v16, %v4853_v16  ;;  %5055 = vst.msk [vmem:[#allocation2 + $0x80] sm:$0x1] %vm20462_vm13, %v12233_v20  ;;  %v16809_v3 = vmul.f32 %v13723_v30, %v16662_v7  ;;  %v13454_v7 = vld [vmem:[%s20198_s3 + $0xf8] sm:$0xff]  }
 0x3a3   : > { %v4531_v39 = vsub.f32 0.0, %v16795_v24  ;;  %v6250_v31 = vshll.u32 %v16677_v38, 16  ;;  %v4614_v54 = vadd.f32 1.0, %v13725_v36  ;;  %6770 = vrot.lane.b32.xlu1 %v12306_v28, %s14228_s12  ;;  %v12362_v21 = vcombine.low %v6065_v33, %v6068_v5  ;;  %12909 = vmatprep.subr.bf16.mxu0 %v13454_v7  ;;  %v5078_v10 = vld [vmem:[#allocation2 + $0x3c] sm:$0xf] }
 0x3a4   : > { %v5539_v37 = vrot.slane %v16797_v34, 5  ;;  %v20463_v55 = vshll.u32 %v16320_v23, 16  ;;  %5054 = vst.msk [vmem:[#allocation2 + $0x7c] sm:$0xf] %vm20464_vm10, %v12232_v27  ;;  %v5542_v12 = vrot.slane %v16803_v14, 5  ;;  %v12873_v52 = vadd.f32 %v16603_v13, %v16599_v57  ;;  %12910 = vmatpush3.bf16.msra.mxu0 %v13455_v22 }
 0x3a5   : > { %5053 = vst.msk [vmem:[#allocation2 + $0x78] sm:$0xf] %vm20458_vm3, %v12231_v32  ;;  %v4582_v1 = vmul.f32 1.442695, %v4531_v39  ;;  %vm20466_vm13 = vnez %v20465_v47  ;;  %13728 = vrcp.f32 %v4614_v54  ;;  %7036 = vrot.lane.b32.xlu0 %v12362_v21, %s14228_s12  ;;  %v12376_v51 = vcombine.low %v16805_v48, %v16812_v18 }
 0x3a6   : > { %v16826_v50 = vrot.slane %v20463_v55, 5  ;;  %v4696_v23 = vsel %vm20466_vm13, %v16809_v3, 0.0  ;;  %v5541_v29 = vrot.slane %v5539_v37, 4  ;;  %v5540_v57 = vsel %vm14364_vm6, %v12251_v60, %v5539_v37 }
 0x3a7   : > { %13730 = vpow2.f32 %v4582_v1  ;;  %v12335_v13 = vcombine.low %v16814_v41, %v16819_v9  ;;  %v12876_v56 = vadd.f32 %v16612_v58, %v16607_v0  ;;  %v4349_v43 = vadd.f32 %v16552_v17, %v12873_v52  ;;  %v13457_v0 = vld [vmem:[%s20198_s3 + $0x100] sm:$0xff]   ;;  %v6514_v52 = vld [vmem:[#allocation2 + $0x48] sm:$0xe] }
 0x3a8   : > { %v5543_v33 = vsel %vm14364_vm6, %v5541_v29, %v5542_v12  ;;  %v6249_v20 = vrot.slane %v6247_v25, 4  ;;  %v6252_v11 = vrot.slane %v6250_v31, 5  ;;  %v6256_v16 = vshll.u32 %v16684_v63, 16  ;;  %12911 = vmatprep.subr.bf16.mxu0 %v13457_v0  ;;  %v16882_v0 = vld [vmem:[#allocation2 + $0x50] sm:$0x1] }
 0x3a9   : > { %v12321_v30 = vcombine.low %v5540_v57, %v5543_v33  ;;  %v6260_v28 = vshrl.u32 %v16684_v63, 16  ;;  %v6266_v5 = vshll.u32 %v16686_v2, 16  ;;  %7120 = vrot.lane.b32.xlu0 %v12376_v51, %s14227_s10  ;;  %v16861_v58 = vadd.f32 %v16432_v62, %v4349_v43  ;;  %v13458_v62 = vld [vmem:[%s20198_s3 + $0xc0] sm:$0xff]  }
 0x3aa   : > { %v6253_v60 = vor.u32 %v6252_v11, %v6249_v20  ;;  %v5231_v38 = vshrl.u32 %v5078_v10, 16  ;;  %v5234_v25 = vshll.u32 %v5078_v10, 16  ;;  %v13727_v36 = vpop.eup %13726  ;;  %v6258_v32 = vrot.slane %v6256_v16, 5  ;;  %12912 = vmatpush3.bf16.msra.mxu0 %v13458_v62 }
 0x3ab   : > { %6842 = vrot.lane.b32.xlu1 %v12321_v30, %s14227_s10  ;;  %v6262_v27 = vrot.slane %v6260_v28, 4  ;;  %v6268_v63 = vrot.slane %v6266_v5, 5  ;;  %v5240_v2 = vshll.u32 %v16797_v34, 16  ;;  %v4669_v3 = vmul.f32 %v13727_v36, %v16727_v53 }
 0x3ac   : > { %v4532_v39 = vsub.f32 0.0, %v16861_v58  ;;  %v6254_v41 = vrot.slane %v6253_v60, 4  ;;  %v5233_v31 = vrot.slane %v5231_v38, 4  ;;  %v5236_v21 = vrot.slane %v5234_v25, 5  ;;  %v13460_v60 = vld [vmem:[%s20198_s3 + $0x108] sm:$0xff]  }
 0x3ad   : > { %v6263_v54 = vor.u32 %v6262_v27, %v6258_v32  ;;  %v5242_v37 = vrot.slane %v5240_v2, 5  ;;  %v5244_v7 = vshrl.u32 %v16797_v34, 16  ;;  %v4697_v55 = vsel %vm20466_vm13, %v4669_v3, 0.0  ;;  %v5983_v27 = vld [vmem:[#allocation2 + $0x48] sm:$0xe]  ;;  %12913 = vmatprep.subr.bf16.mxu0 %v13460_v60 }
 0x3ae   : > { %v4584_v1 = vmul.f32 1.442695, %v4532_v39  ;;  %v6259_v53 = vsel %vm14373_vm9, %v6254_v41, %v6258_v32  ;;  %v5250_v12 = vshll.u32 %v16803_v14, 16  ;;  %v4714_v22 = vpack.c.bf16 %v4697_v55, %v4696_v23  ;;  %v16906_v55 = vld [vmem:[#allocation2 + $0x4c] sm:$0xf] }
 0x3af   : > { %6926 = vrot.lane.b32.xlu1 %v12335_v13, %s14229_s17  ;;  %v6264_v29 = vrot.slane %v6263_v54, 4  ;;  %v5237_v51 = vor.u32 %v5236_v21, %v5233_v31  ;;  %v5246_v57 = vrot.slane %v5244_v7, 4  ;;  %v13729_v10 = vpop.eup %13728  ;;  %v6271_v34 = vshrl.u32 %v16805_v48, 16  ;;  %v5633_v21 = vld [vmem:[#allocation2 + $0x50] sm:$0x1] }
 0x3b0   : > { %v6274_v33 = vshll.u32 %v16805_v48, 16  ;;  %13732 = vpow2.f32 %v4584_v1  ;;  %v4352_v43 = vadd.f32 %v16552_v17, %v12876_v56  ;;  %v4789_v11 = vshrl.u32 %v4714_v22, 16  ;;  %v13461_v56 = vld [vmem:[%s20198_s3 + $0xc8] sm:$0xff]  }
 0x3b1   : > { %v13731_v20 = vpop.eup %13730  ;;  %v6269_v14 = vsel %vm14373_vm9, %v6264_v29, %v6268_v63  ;;  %v5252_v30 = vrot.slane %v5250_v12, 5  ;;  %v12278_v23 = vrot.slane %v6514_v52, 9  ;;  %v5238_v28 = vrot.slane %v5237_v51, 4  ;;  %12914 = vmatpush3.bf16.msra.mxu0 %v13461_v56  ;;  %v5452_v52 = vld [vmem:[#allocation2 + $0x48] sm:$0xe] }
 0x3b2   : > { %v4615_v16 = vadd.f32 1.0, %v13731_v20  ;;  %v12389_v13 = vcombine.low %v6259_v53, %v6269_v14  ;;  %v5247_v5 = vor.u32 %v5246_v57, %v5242_v37  ;;  %v4791_v38 = vrot.slane %v4789_v11, 7  ;;  %v16921_v14 = vld [vmem:[#allocation2 + $0x58] sm:$0xf] }
 0x3b3   : > { %v4792_v25 = vshll.u32 %v4714_v22, 16  ;;  %v16891_v36 = vadd.f32 %v16469_v61, %v4352_v43  ;;  %v6596_v32 = vrot.slane %v16812_v18, 5  ;;  %v16895_v63 = vmul.f32 %v13729_v10, %v16750_v8  ;;  %v16916_v10 = vld [vmem:[#allocation2 + $0x50] sm:$0x1]  ;;  %v16918_v43 = vld [vmem:[#allocation2 + $0x54] sm:$0xf] }
 0x3b4   : > { %13734 = vrcp.f32 %v4615_v16  ;;  %7188 = vrot.lane.b32.xlu0 %v12389_v13, %s14229_s17  ;;  %v5243_v2 = vsel %vm14373_vm9, %v5238_v28, %v5242_v37  ;;  %v5248_v3 = vrot.slane %v5247_v5, 4  ;;  %v4868_v41 = vsel %vm14549_vm11, %v4791_v38, 0  ;;  %v16931_v56 = vld [vmem:[#allocation2 + $0x58] sm:$0xf] }
 0x3b5   : > { %v4794_v39 = vor.u32 %v4792_v25, %v4791_v38  ;;  %v4533_v61 = vsub.f32 0.0, %v16891_v36  ;;  %v6599_v31 = vrot.slane %v16882_v0, 5  ;;  %v12236_v62 = vcombine.low %v4868_v41, %v4868_v41 }
 0x3b6   : > { %v5253_v8 = vsel %vm14373_vm9, %v5248_v3, %v5252_v30  ;;  %v6598_v54 = vrot.slane %v6596_v32, 4  ;;  %v12265_v7 = vrot.slane %v5983_v27, 9  ;;  %v6071_v12 = vrot.slane %v16819_v9, 5  ;;  %v5612_v30 = vld [vmem:[#allocation2 + $0x54] sm:$0xf] }
 0x3b7   : > { %v4854_v37 = vsel %vm14549_vm11, 0, %v4794_v39  ;;  %v12307_v1 = vcombine.low %v5243_v2, %v5253_v8  ;;  %v4586_v53 = vmul.f32 1.442695, %v4533_v61  ;;  %vm20467_vm10 = vcmask 253952  }
 0x3b8   : > { %v12234_v22 = vcombine.low %v4854_v37, %v4854_v37  ;;  %v12235_v29 = vcombine.high %v4854_v37, %v4854_v37  ;;  %5058 = vst.msk [vmem:[#allocation2 + $0x8c] sm:$0x1] %vm20467_vm10, %v12236_v62  ;;  %v6597_v51 = vsel %vm14364_vm6, %v12278_v23, %v6596_v32  ;;  %v6600_v57 = vsel %vm14364_vm6, %v6598_v54, %v6599_v31  ;;  %vm20468_vm10 = vmmov %vm20458_vm3  ;;  %v20469_v23 = vld [vmem:[#allocation31_spill] sm:$0xff] }
 0x3b9   : > { %6772 = vrot.lane.b32.xlu1 %v12307_v1, %s14228_s12  ;;  %13736 = vpow2.f32 %v4586_v53  ;;  %v12404_v20 = vcombine.low %v6597_v51, %v6600_v57  ;;  %v6073_v9 = vrot.slane %v6071_v12, 4  ;;  %v6074_v11 = vrot.slane %v5633_v21, 5 }
 0x3ba   : > { %v13733_v16 = vpop.eup %13732  ;;  %5057 = vst.msk [vmem:[#allocation2 + $0x88] sm:$0xf] %vm20458_vm3, %v12235_v29  ;;  %vm20470_vm13 = vnez %v20469_v23  ;;  %v12252_v28 = vrot.slane %v5452_v52, 9  ;;  %v5546_v5 = vrot.slane %v16906_v55, 5  ;;  %v12879_v60 = vadd.f32 %v16708_v49, %v16700_v35  ;;  %v16942_v49 = vld [vmem:[#allocation2 + $0x5c] sm:$0x1] }
 0x3bb   : > { %5056 = vst.msk [vmem:[#allocation2 + $0x84] sm:$0xf] %vm20468_vm10, %v12234_v22  ;;  %v4698_v13 = vsel %vm20470_vm13, %v16895_v63, 0.0  ;;  %v4616_v38 = vadd.f32 1.0, %v13733_v16  ;;  %vm20471_vm5 = vcmask 261120   ;;  %v6072_v25 = vsel %vm14364_vm6, %v12265_v7, %v6071_v12 }
 0x3bc   : > { %13205 = vmatprep.mubr.msk.bf16.mxu1 %vm20471_vm5, %v12404_v20  ;;  %v6075_v32 = vsel %vm14364_vm6, %v6073_v9, %v6074_v11  ;;  %v5549_v27 = vrot.slane %v16916_v10, 5  ;;  %v6515_v63 = vld [vmem:[#allocation2 + $0x54] sm:$0xe]  ;;  %v5547_v3 = vsel %vm14364_vm6, %v12252_v28, %v5546_v5  ;;  %v5548_v39 = vrot.slane %v5546_v5, 4  ;;  %v5080_v28 = vld [vmem:[#allocation2 + $0x48] sm:$0xf] }
 0x3bd   : > { %v12363_v2 = vcombine.low %v6072_v25, %v6075_v32  ;;  %v4357_v35 = vadd.f32 %v16552_v17, %v12879_v60  ;;  %13738 = vrcp.f32 %v4616_v38  ;;  %v12377_v41 = vcombine.low %v16918_v43, %v16921_v14 }
 0x3be   : > { %v12336_v61 = vcombine.low %v5612_v30, %v16931_v56  ;;  %v12882_v31 = vadd.f32 %v16719_v19, %v16713_v6  ;;  %v13735_v62 = vpop.eup %13734  ;;  %v5550_v8 = vsel %vm14364_vm6, %v5548_v39, %v5549_v27  ;;  %v12279_v21 = vrot.slane %v6515_v63, 9 }
 0x3bf   : > { %7038 = vrot.lane.b32.xlu0 %v12363_v2, %s14228_s12  ;;  %v16953_v54 = vadd.f32 %v16423_v42, %v4357_v35  ;;  %v6603_v7 = vrot.slane %v16921_v14, 5  ;;  %v4671_v37 = vmul.f32 %v13735_v62, %v16795_v24  ;;  %v12322_v1 = vcombine.low %v5547_v3, %v5550_v8 }
 0x3c0   : > { %v4360_v53 = vadd.f32 %v16552_v17, %v12882_v31  ;;  %v6606_v12 = vrot.slane %v16942_v49, 5  ;;  %v6273_v42 = vrot.slane %v6271_v34, 4  ;;  %v6276_v17 = vrot.slane %v6274_v33, 5 }
 0x3c1   : > { %v4534_v6 = vsub.f32 0.0, %v16953_v54  ;;  %v6604_v19 = vsel %vm14364_vm6, %v12279_v21, %v6603_v7  ;;  %v6605_v52 = vrot.slane %v6603_v7, 4  ;;  %v4699_v22 = vsel %vm20470_vm13, %v4671_v37, 0.0  ;;  %6844 = vrot.lane.b32.xlu1 %v12322_v1, %s14227_s10 }
 0x3c2   : > { %v16968_v24 = vadd.f32 %v16461_v44, %v4360_v53  ;;  %v6280_v29 = vshll.u32 %v16812_v18, 16  ;;  %v4715_v51 = vpack.c.bf16 %v4699_v22, %v4698_v13  ;;  %v6284_v20 = vshrl.u32 %v16812_v18, 16  ;;  %v16997_v22 = vld [vmem:[#allocation2 + $0x58] sm:$0xf] }
 0x3c3   : > { %v4588_v57 = vmul.f32 1.442695, %v4534_v6  ;;  %7122 = vrot.lane.b32.xlu0 %v12377_v41, %s14227_s10  ;;  %v6607_v34 = vsel %vm14364_vm6, %v6605_v52, %v6606_v12  ;;  %v13737_v9 = vpop.eup %13736  ;;  %v6277_v44 = vor.u32 %v6276_v17, %v6273_v42  ;;  %v6290_v18 = vshll.u32 %v16882_v0, 16  ;;  %v5984_v12 = vld [vmem:[#allocation2 + $0x54] sm:$0xe] }
 0x3c4   : > { %v4535_v11 = vsub.f32 0.0, %v16968_v24  ;;  %v12405_v30 = vcombine.low %v6604_v19, %v6607_v34  ;;  %v6282_v16 = vrot.slane %v6280_v29, 5  ;;  %v4796_v48 = vshrl.u32 %v4715_v51, 16  ;;  %v5634_v42 = vld [vmem:[#allocation2 + $0x5c] sm:$0x1] }
 0x3c5   : > { %v4799_v33 = vshll.u32 %v4715_v51, 16  ;;  %v4617_v5 = vadd.f32 1.0, %v13737_v9  ;;  %13740 = vpow2.f32 %v4588_v57  ;;  %6928 = vrot.lane.b32.xlu1 %v12336_v61, %s14229_s17  ;;  %v6278_v60 = vrot.slane %v6277_v44, 4  ;;  %v5453_v17 = vld [vmem:[#allocation2 + $0x54] sm:$0xe] }
 0x3c6   : > { %v4590_v13 = vmul.f32 1.442695, %v4535_v11  ;;  %13206 = vmatmul.mubr.msk.bf16.gmra.mrb[60].mxu1 %vm20471_vm5, %v12405_v30  ;;  %v6286_v38 = vrot.slane %v6284_v20, 4  ;;  %v4798_v25 = vrot.slane %v4796_v48, 7  ;;  %v5255_v32 = vshrl.u32 %v5080_v28, 16  ;;  %vm20473_vm5 = vmmov %vm20468_vm10 }
 0x3c7   : > { %13742 = vrcp.f32 %v4617_v5  ;;  %v5258_v27 = vshll.u32 %v5080_v28, 16  ;;  %v13739_v63 = vpop.eup %13738  ;;  %v6283_v2 = vsel %vm14373_vm9, %v6278_v60, %v6282_v16  ;;  %v6292_v39 = vrot.slane %v6290_v18, 5  ;;  %v17000_v34 = vld [vmem:[#allocation2 + $0x5c] sm:$0x1] }
 0x3c8   : > { %13744 = vpow2.f32 %v4590_v13  ;;  %v6287_v3 = vor.u32 %v6286_v38, %v6282_v16  ;;  %v4801_v35 = vor.u32 %v4799_v33, %v4798_v25  ;;  %v4869_v41 = vsel %vm14549_vm11, %v4798_v25, 0 }
 0x3c9   : > { %v16986_v61 = vmul.f32 %v13739_v63, %v16861_v58  ;;  %v5257_v31 = vrot.slane %v5255_v32, 4  ;;  %v12239_v0 = vcombine.low %v4869_v41, %v4869_v41  ;;  %v5260_v8 = vrot.slane %v5258_v27, 5  ;;  %v17015_v63 = vld [vmem:[#allocation2 + $0x60] sm:$0xf] }
 0x3ca   : > { %v6288_v62 = vrot.slane %v6287_v3, 4  ;;  %v5264_v21 = vshll.u32 %v16906_v55, 16  ;;  %v4855_v7 = vsel %vm14549_vm11, 0, %v4801_v35  ;;  %v6295_v37 = vshrl.u32 %v16918_v43, 16 }
 0x3cb   : > { %v5268_v1 = vshrl.u32 %v16906_v55, 16  ;;  %v5274_v53 = vshll.u32 %v16916_v10, 16  ;;  %v12237_v6 = vcombine.low %v4855_v7, %v4855_v7  ;;  %v12238_v19 = vcombine.high %v4855_v7, %v4855_v7  ;;  %v20474_v10 = vld [vmem:[#allocation36_spill] sm:$0xff] }
 0x3cc   : > { %vm20472_vm3 = vcmask 253952   ;;  %v6293_v58 = vsel %vm14373_vm9, %v6288_v62, %v6292_v39  ;;  %v5261_v52 = vor.u32 %v5260_v8, %v5257_v31  ;;  %v6298_v29 = vshll.u32 %v16918_v43, 16  ;;  %v17024_v31 = vld [vmem:[#allocation2 + $0x64] sm:$0xf] }
 0x3cd   : > { %5061 = vst.msk [vmem:[#allocation2 + $0x98] sm:$0x1] %vm20472_vm3, %v12239_v0  ;;  %v12390_v51 = vcombine.low %v6283_v2, %v6293_v58  ;;  %v5266_v57 = vrot.slane %v5264_v21, 5  ;;  %v5270_v55 = vrot.slane %v5268_v1, 4  ;;  %vm20475_vm3 = vnez %v20474_v10  ;;  %v17017_v2 = vld [vmem:[#allocation2 + $0x64] sm:$0xf] }
 0x3ce   : > { %5060 = vst.msk [vmem:[#allocation2 + $0x94] sm:$0xf] %vm20468_vm10, %v12238_v19  ;;  %v4700_v20 = vsel %vm20475_vm3, %v16986_v61, 0.0  ;;  %v5262_v9 = vrot.slane %v5261_v52, 4  ;;  %v12266_v11 = vrot.slane %v5984_v12, 9  ;;  %v6078_v30 = vrot.slane %v16931_v56, 5 }
 0x3cf   : > { %5059 = vst.msk [vmem:[#allocation2 + $0x90] sm:$0xf] %vm20473_vm5, %v12237_v6  ;;  %v13741_v44 = vpop.eup %13740  ;;  %7190 = vrot.lane.b32.xlu0 %v12390_v51, %s14229_s17  ;;  %v5271_v16 = vor.u32 %v5270_v55, %v5266_v57  ;;  %v5276_v28 = vrot.slane %v5274_v53, 5  ;;  %v12253_v48 = vrot.slane %v5453_v17, 9  ;;  %v5553_v33 = vrot.slane %v16997_v22, 5 }
 0x3d0   : > { %v4618_v5 = vadd.f32 1.0, %v13741_v44  ;;  %v6080_v13 = vrot.slane %v6078_v30, 4  ;;  %v6081_v60 = vrot.slane %v5634_v42, 5  ;;  %v5556_v38 = vrot.slane %v17000_v34, 5  ;;  %v5614_v61 = vld [vmem:[#allocation2 + $0x60] sm:$0xf] }
 0x3d1   : > { %v13743_v18 = vpop.eup %13742  ;;  %v5267_v25 = vsel %vm14373_vm9, %v5262_v9, %v5266_v57  ;;  %v5272_v32 = vrot.slane %v5271_v16, 4  ;;  %v6079_v56 = vsel %vm14364_vm6, %v12266_v11, %v6078_v30  ;;  %v5555_v27 = vrot.slane %v5553_v33, 4  ;;  %v6516_v0 = vld [vmem:[#allocation2 + $0x60] sm:$0xe]  ;;  %v5082_v55 = vld [vmem:[#allocation2 + $0x54] sm:$0xf] }
 0x3d2   : > { %v13745_v3 = vpop.eup %13744  ;;  %v4673_v39 = vmul.f32 %v13743_v18, %v16891_v36  ;;  %13746 = vrcp.f32 %v4618_v5  ;;  %v6082_v35 = vsel %vm14364_vm6, %v6080_v13, %v6081_v60  ;;  %v5554_v41 = vsel %vm14364_vm6, %v12253_v48, %v5553_v33  ;;  %v17030_v36 = vld [vmem:[#allocation2 + $0x68] sm:$0x1] }
 0x3d3   : > { %v4619_v62 = vadd.f32 1.0, %v13745_v3  ;;  %v5277_v8 = vsel %vm14373_vm9, %v5272_v32, %v5276_v28  ;;  %v12364_v21 = vcombine.low %v6079_v56, %v6082_v35  ;;  %v5557_v7 = vsel %vm14364_vm6, %v5555_v27, %v5556_v38 }
 0x3d4   : > { %v4701_v1 = vsel %vm20475_vm3, %v4673_v39, 0.0  ;;  %v12308_v53 = vcombine.low %v5267_v25, %v5277_v8  ;;  %v12323_v12 = vcombine.low %v5554_v41, %v5557_v7  ;;  %v12378_v6 = vcombine.low %v17015_v63, %v17017_v2  ;;  %v17424_v23 = vld [vmem:[#allocation2 + $0x98] sm:$0x1] }
 0x3d5   : > { %v4716_v19 = vpack.c.bf16 %v4701_v1, %v4700_v20  ;;  %13748 = vrcp.f32 %v4619_v62  ;;  %7040 = vrot.lane.b32.xlu0 %v12364_v21, %s14228_s12  ;;  %v12337_v58 = vcombine.low %v5614_v61, %v17024_v31  ;;  %v12280_v52 = vrot.slane %v6516_v0, 9  ;;  %v5635_v1 = vld [vmem:[#allocation2 + $0x68] sm:$0x1] }
 0x3d6   : > { %6774 = vrot.lane.b32.xlu1 %v12308_v53, %s14228_s12  ;;  %v6610_v42 = vrot.slane %v17017_v2, 5  ;;  %v6613_v17 = vrot.slane %v17030_v36, 5  ;;  %v6297_v51 = vrot.slane %v6295_v37, 4  ;;  %v6300_v57 = vrot.slane %v6298_v29, 5  ;;  %v5985_v53 = vld [vmem:[#allocation2 + $0x60] sm:$0xe] }
 0x3d7   : > { %v4803_v9 = vshrl.u32 %v4716_v19, 16  ;;  %v4806_v11 = vshll.u32 %v4716_v19, 16  ;;  %v6304_v20 = vshll.u32 %v16921_v14, 16  ;;  %v6308_v30 = vshrl.u32 %v16921_v14, 16 }
 0x3d8   : > { %v6611_v44 = vsel %vm14364_vm6, %v12280_v52, %v6610_v42  ;;  %v6612_v16 = vrot.slane %v6610_v42, 4  ;;  %v6301_v28 = vor.u32 %v6300_v57, %v6297_v51  ;;  %v6314_v48 = vshll.u32 %v16942_v49, 16  ;;  %v17068_v42 = vld [vmem:[#allocation2 + $0x64] sm:$0xf]  ;;  %v5454_v57 = vld [vmem:[#allocation2 + $0x60] sm:$0xe] }
 0x3d9   : > { %v4805_v33 = vrot.slane %v4803_v9, 7  ;;  %7124 = vrot.lane.b32.xlu0 %v12378_v6, %s14227_s10  ;;  %v6306_v43 = vrot.slane %v6304_v20, 5  ;;  %v6310_v37 = vrot.slane %v6308_v30, 4  ;;  %v5279_v29 = vshrl.u32 %v5082_v55, 16  ;;  %v20480_v9 = vld [vmem:[#allocation35_spill] sm:$0xff] }
 0x3da   : > { %6846 = vrot.lane.b32.xlu1 %v12323_v12, %s14227_s10  ;;  %v6614_v5 = vsel %vm14364_vm6, %v6612_v16, %v6613_v17  ;;  %v6302_v13 = vrot.slane %v6301_v28, 4  ;;  %v6316_v14 = vrot.slane %v6314_v48, 5  ;;  %v5282_v60 = vshll.u32 %v5082_v55, 16  ;;  %v17073_v55 = vld [vmem:[#allocation2 + $0x70] sm:$0xf]  ;;  %v6763_v16 = vpop.permute.xlu1 %6762 }
 0x3db   : > { %v4808_v38 = vor.u32 %v4806_v11, %v4805_v33  ;;  %v4870_v18 = vsel %vm14549_vm11, %v4805_v33, 0  ;;  %v12406_v25 = vcombine.low %v6611_v44, %v6614_v5  ;;  %v6311_v49 = vor.u32 %v6310_v37, %v6306_v43  ;;  %v6517_v44 = vld [vmem:[#allocation2 + $0x6c] sm:$0xe] }
 0x3dc   : > { %v13747_v32 = vpop.eup %13746  ;;  %v12242_v56 = vcombine.low %v4870_v18, %v4870_v18  ;;  %v6307_v27 = vsel %vm14373_vm9, %v6302_v13, %v6306_v43  ;;  %v5281_v3 = vrot.slane %v5279_v29, 4  ;;  %v5284_v39 = vrot.slane %v5282_v60, 5  ;;  %v17082_v43 = vld [vmem:[#allocation2 + $0x68] sm:$0x1]  ;;  %v17087_v60 = vld [vmem:[#allocation2 + $0x74] sm:$0x1] }
 0x3dd   : > { %v4856_v35 = vsel %vm14549_vm11, 0, %v4808_v38  ;;  %v4674_v41 = vmul.f32 %v13747_v32, %v16953_v54  ;;  %vm20476_vm10 = vcmask 261120   ;;  %v6312_v61 = vrot.slane %v6311_v49, 4 }
 0x3de   : > { %13209 = vmatprep.mubr.msk.bf16.mxu1 %vm20476_vm10, %v12406_v25  ;;  %v5288_v0 = vshll.u32 %v16997_v22, 16  ;;  %v12240_v62 = vcombine.low %v4856_v35, %v4856_v35  ;;  %v12241_v8 = vcombine.high %v4856_v35, %v4856_v35  ;;  %vm20477_vm5 = vcmask 253952   ;;  %6930 = vrot.lane.b32.xlu1 %v12337_v58, %s14229_s17 }
 0x3df   : > { %5064 = vst.msk [vmem:[#allocation2 + $0xa4] sm:$0x1] %vm20477_vm5, %v12242_v56  ;;  %v5285_v21 = vor.u32 %v5284_v39, %v5281_v3  ;;  %v5292_v7 = vshrl.u32 %v16997_v22, 16  ;;  %v13749_v12 = vpop.eup %13748  ;;  %v6319_v6 = vshrl.u32 %v17015_v63, 16  ;;  %v6317_v54 = vsel %vm14373_vm9, %v6312_v61, %v6316_v14 }
 0x3e0   : > { %v5290_v19 = vrot.slane %v5288_v0, 5  ;;  %v5298_v52 = vshll.u32 %v17000_v34, 16  ;;  %vm20478_vm10 = vcmask 257024   ;;  %v4675_v58 = vmul.f32 %v13749_v12, %v16968_v24  ;;  %v14013_v12 = vld [vmem:[#allocation2] sm:$0xf] }
 0x3e1   : > { %5063 = vst.msk [vmem:[#allocation2 + $0xa0] sm:$0xf] %vm20478_vm10, %v12241_v8  ;;  %vm20479_vm5 = vmmov %vm20478_vm10  ;;  %v12391_v22 = vcombine.low %v6307_v27, %v6317_v54  ;;  %v5286_v17 = vrot.slane %v5285_v21, 4  ;;  %v5294_v51 = vrot.slane %v5292_v7, 4  ;;  %vm20481_vm3 = vnez %v20480_v9  ;;  %v17100_v21 = vpop.permute.xlu1 %6832  ;;  %v14014_v54 = vld [vmem:[#allocation2 + $0x4] sm:$0xf] }
 0x3e2   : > { %5062 = vst.msk [vmem:[#allocation2 + $0x9c] sm:$0xf] %vm20479_vm5, %v12240_v62  ;;  %v4702_v11 = vsel %vm20481_vm3, %v4674_v41, 0.0  ;;  %v6322_v20 = vshll.u32 %v17015_v63, 16  ;;  %v12267_v34 = vrot.slane %v5985_v53, 9  ;;  %v6085_v30 = vrot.slane %v17024_v31, 5 }
 0x3e3   : > { %v4703_v28 = vsel %vm20481_vm3, %v4675_v58, 0.0  ;;  %7192 = vrot.lane.b32.xlu0 %v12391_v22, %s14229_s17  ;;  %v5295_v24 = vor.u32 %v5294_v51, %v5290_v19  ;;  %v5300_v48 = vrot.slane %v5298_v52, 5  ;;  %v6088_v33 = vrot.slane %v5635_v1, 5  ;;  %v17097_v41 = vld [vmem:[#allocation2 + $0x6c] sm:$0xf] }
 0x3e4   : > { %v4717_v37 = vpack.c.bf16 %v4703_v28, %v4702_v11  ;;  %v5291_v29 = vsel %vm14373_vm9, %v5286_v17, %v5290_v19  ;;  %v6087_v5 = vrot.slane %v6085_v30, 4  ;;  %v5560_v13 = vrot.slane %v17068_v42, 5 }
 0x3e5   : > { %v5296_v31 = vrot.slane %v5295_v24, 4  ;;  %v12254_v14 = vrot.slane %v5454_v57, 9  ;;  %v12281_v38 = vrot.slane %v6517_v44, 9  ;;  %v6617_v18 = vrot.slane %v17073_v55, 5  ;;  %v17118_v44 = vpop.permute.xlu0 %7028 }
 0x3e6   : > { %v4810_v25 = vshrl.u32 %v4717_v37, 16  ;;  %v6086_v49 = vsel %vm14364_vm6, %v12267_v34, %v6085_v30  ;;  %v6089_v32 = vsel %vm14364_vm6, %v6087_v5, %v6088_v33  ;;  %v5563_v56 = vrot.slane %v17082_v43, 5  ;;  %v5084_v30 = vld [vmem:[#allocation2 + $0x60] sm:$0xf]  ;;  %v5616_v5 = vld [vmem:[#allocation2 + $0x6c] sm:$0xf] }
 0x3e7   : > { %v4813_v27 = vshll.u32 %v4717_v37, 16  ;;  %v5301_v3 = vsel %vm14373_vm9, %v5296_v31, %v5300_v48  ;;  %v12365_v39 = vcombine.low %v6086_v49, %v6089_v32  ;;  %v5562_v35 = vrot.slane %v5560_v13, 4 }
 0x3e8   : > { %v4812_v61 = vrot.slane %v4810_v25, 7  ;;  %v12309_v0 = vcombine.low %v5291_v29, %v5301_v3  ;;  %v6619_v62 = vrot.slane %v6617_v18, 4  ;;  %v6620_v8 = vrot.slane %v17087_v60, 5  ;;  %v17136_v25 = vpop.permute.xlu1 %6916 }
 0x3e9   : > { %7042 = vrot.lane.b32.xlu0 %v12365_v39, %s14228_s12  ;;  %v5561_v7 = vsel %vm14364_vm6, %v12254_v14, %v5560_v13  ;;  %v5564_v1 = vsel %vm14364_vm6, %v5562_v35, %v5563_v56  ;;  %v6618_v53 = vsel %vm14364_vm6, %v12281_v38, %v6617_v18  ;;  %v12288_v19 = vcombine.low %v14013_v12, %v14014_v54  ;;  %v17128_v13 = vld [vmem:[#allocation2 + $0x70] sm:$0xf]  ;;  %v17134_v18 = vld [vmem:[#allocation2 + $0x7c] sm:$0xf]  ;;  %v5986_v54 = vld [vmem:[#allocation2 + $0x6c] sm:$0xe] }
 0x3ea   : > { %v4815_v52 = vor.u32 %v4813_v27, %v4812_v61  ;;  %v4871_v58 = vsel %vm14549_vm11, %v4812_v61, 0  ;;  %6776 = vrot.lane.b32.xlu1 %v12309_v0, %s14228_s12  ;;  %v6621_v22 = vsel %vm14364_vm6, %v6619_v62, %v6620_v8  ;;  %v6343_v17 = vshrl.u32 %v17097_v41, 16  ;;  %v6518_v27 = vld [vmem:[#allocation2 + $0x78] sm:$0xe]  ;;  %v5990_v45 = vld [vmem:[#allocation2 + $0x9c] sm:$0xe] }
 0x3eb   : > { %v12245_v51 = vcombine.low %v4871_v58, %v4871_v58  ;;  %v12407_v57 = vcombine.low %v6618_v53, %v6621_v22  ;;  %v6346_v11 = vshll.u32 %v17097_v41, 16  ;;  %v12379_v34 = vcombine.low %v17097_v41, %v17073_v55 }
 0x3ec   : > { %v4857_v28 = vsel %vm14549_vm11, 0, %v4815_v52  ;;  %v12324_v24 = vcombine.low %v5561_v7, %v5564_v1  ;;  %vm20482_vm10 = vcmask 261120   ;;  %v6321_v33 = vrot.slane %v6319_v6, 4  ;;  %v17146_v7 = vld [vmem:[#allocation2 + $0x80] sm:$0x1] }
 0x3ed   : > { %v7254_v48 = vsel %vm20482_vm10, %v12288_v19, %v6763_v16  ;;  %v12243_v37 = vcombine.low %v4857_v28, %v4857_v28  ;;  %v12244_v29 = vcombine.high %v4857_v28, %v4857_v28  ;;  %vm20483_vm5 = vcmask 253952   ;;  %vm20484_vm3 = vmmov %vm20482_vm10  ;;  %7126 = vrot.lane.b32.xlu0 %v12379_v34, %s14227_s10  ;;  %v17155_v28 = vld [vmem:[#allocation2 + $0x70] sm:$0xf] }
 0x3ee   : > { %5067 = vst.msk [vmem:[#allocation2 + $0xb0] sm:$0x1] %vm20483_vm5, %v12245_v51  ;;  %13210 = vmatmul.mubr.msk.bf16.gmra.mrb[64].mxu1 %vm20484_vm3, %v12407_v57  ;;  %v6324_v31 = vrot.slane %v6322_v20, 5  ;;  %v6328_v14 = vshll.u32 %v17017_v2, 16  ;;  %6848 = vrot.lane.b32.xlu1 %v12324_v24, %s14227_s10  ;;  %v6332_v16 = vshrl.u32 %v17017_v2, 16  ;;  %v6338_v63 = vshll.u32 %v17030_v36, 16  ;;  %v17142_v2 = vpop.permute.xlu0 %7112  ;;  %v17157_v24 = vpop.permute.xlu1 %6834 }
 0x3ef   : > { %v5303_v6 = vshrl.u32 %v5084_v30, 16  ;;  %v5306_v38 = vshll.u32 %v5084_v30, 16  ;;  %vm20485_vm3 = vcmask 257024   ;;  %v5312_v32 = vshll.u32 %v17068_v42, 16  ;;  %v5636_v51 = vld [vmem:[#allocation2 + $0x74] sm:$0x1] }
 0x3f0   : > { %5065 = vst.msk [vmem:[#allocation2 + $0xa8] sm:$0xf] %vm20485_vm3, %v12243_v37  ;;  %vm20486_vm10 = vmmov %vm20485_vm3  ;;  %v6325_v49 = vor.u32 %v6324_v31, %v6321_v33  ;;  %v6330_v20 = vrot.slane %v6328_v14, 5  ;;  %v5316_v56 = vshrl.u32 %v17068_v42, 16  ;;  %v12338_v36 = vcombine.low %v5616_v5, %v17128_v13 }
 0x3f1   : > { %5066 = vst.msk [vmem:[#allocation2 + $0xac] sm:$0xf] %vm20486_vm10, %v12244_v29  ;;  %v6334_v3 = vrot.slane %v6332_v16, 4  ;;  %v5305_v39 = vrot.slane %v5303_v6, 4  ;;  %v5308_v35 = vrot.slane %v5306_v38, 5  ;;  %v5314_v0 = vrot.slane %v5312_v32, 5 }
 0x3f2   : > { %v6326_v61 = vrot.slane %v6325_v49, 4  ;;  %v5318_v62 = vrot.slane %v5316_v56, 4  ;;  %v5322_v8 = vshll.u32 %v17082_v43, 16  ;;  %6932 = vrot.lane.b32.xlu1 %v12338_v36, %s14229_s17  ;;  %v12282_v42 = vrot.slane %v6518_v27, 9  ;;  %v17160_v5 = vpop.permute.xlu0 %7030 }
 0x3f3   : > { %v6335_v1 = vor.u32 %v6334_v3, %v6330_v20  ;;  %v5309_v53 = vor.u32 %v5308_v35, %v5305_v39  ;;  %v6624_v12 = vrot.slane %v17134_v18, 5  ;;  %vm20487_vm5 = vcmask 523264   ;;  %v17175_v3 = vpop.permute.xlu1 %6918  ;;  %v14015_v35 = vld [vmem:[#allocation2 + $0x10] sm:$0xf] }
 0x3f4   : > { %v7295_v19 = vsel %vm20487_vm5, %v7254_v48, %v17100_v21  ;;  %v6331_v52 = vsel %vm14373_vm9, %v6326_v61, %v6330_v20  ;;  %v6340_v58 = vrot.slane %v6338_v63, 5  ;;  %v5319_v22 = vor.u32 %v5318_v62, %v5314_v0  ;;  %v5455_v48 = vld [vmem:[#allocation2 + $0x6c] sm:$0xe]  ;;  %v17172_v20 = vld [vmem:[#allocation2 + $0x74] sm:$0x1] }
 0x3f5   : > { %v6336_v43 = vrot.slane %v6335_v1, 4  ;;  %v5310_v57 = vrot.slane %v5309_v53, 4  ;;  %v6626_v34 = vrot.slane %v6624_v12, 4  ;;  %v6627_v30 = vrot.slane %v17146_v7, 5  ;;  %v14016_v62 = vld [vmem:[#allocation2 + $0x14] sm:$0x1] }
 0x3f6   : > { %v5320_v33 = vrot.slane %v5319_v22, 4  ;;  %v5324_v37 = vrot.slane %v5322_v8, 5  ;;  %v12268_v29 = vrot.slane %v5986_v54, 9  ;;  %v6092_v21 = vrot.slane %v17128_v13, 5  ;;  %v17181_v1 = vld [vmem:[#allocation2 + $0x78] sm:$0xf] }
 0x3f7   : > { %v6341_v31 = vsel %vm14373_vm9, %v6336_v43, %v6340_v58  ;;  %v5315_v14 = vsel %vm14373_vm9, %v5310_v57, %v5314_v0  ;;  %v6625_v16 = vsel %vm14364_vm6, %v12282_v42, %v6624_v12  ;;  %v6628_v63 = vsel %vm14364_vm6, %v6626_v34, %v6627_v30  ;;  %v20489_v54 = vld [vmem:[#allocation37_spill] sm:$0xff] }
 0x3f8   : > { %v12392_v6 = vcombine.low %v6331_v52, %v6341_v31  ;;  %v5325_v38 = vsel %vm14373_vm9, %v5320_v33, %v5324_v37  ;;  %v12408_v13 = vcombine.low %v6625_v16, %v6628_v63  ;;  %v6095_v49 = vrot.slane %v5636_v51, 5  ;;  %v20490_v52 = vld [vmem:[#allocation42_spill] sm:$0xff]  ;;  %v5618_v22 = vld [vmem:[#allocation2 + $0x78] sm:$0xf]  ;;  %v17189_v51 = vld [vmem:[#allocation2 + $0x7c] sm:$0xf] }
 0x3f9   : > { %v12310_v32 = vcombine.low %v5315_v14, %v5325_v38  ;;  %v6094_v56 = vrot.slane %v6092_v21, 4  ;;  %v12255_v27 = vrot.slane %v5455_v48, 9  ;;  %v5567_v36 = vrot.slane %v17155_v28, 5  ;;  %v17195_v33 = vld [vmem:[#allocation2 + $0x88] sm:$0xf] }
 0x3fa   : > { %7194 = vrot.lane.b32.xlu0 %v12392_v6, %s14229_s17  ;;  %vm20488_vm3 = vcmask 261120   ;;  %v6093_v39 = vsel %vm14364_vm6, %v12268_v29, %v6092_v21  ;;  %v5652_v61 = vshll.u32 %v14015_v35, 16  ;;  %v5656_v0 = vshrl.u32 %v14015_v35, 16  ;;  %v6519_v37 = vld [vmem:[#allocation2 + $0x84] sm:$0xe]  ;;  %v17197_v29 = vpop.permute.xlu0 %7114 }
 0x3fb   : > { %13213 = vmatprep.mubr.msk.bf16.mxu1 %vm20488_vm3, %v12408_v13  ;;  %v5662_v8 = vshll.u32 %v14016_v62, 16  ;;  %6778 = vrot.lane.b32.xlu1 %v12310_v32, %s14228_s12  ;;  %v6096_v53 = vsel %vm14364_vm6, %v6094_v56, %v6095_v49  ;;  %v5569_v42 = vrot.slane %v5567_v36, 4  ;;  %v5570_v12 = vrot.slane %v17172_v20, 5  ;;  %v17207_v6 = vld [vmem:[#allocation2 + $0x8c] sm:$0x1]  ;;  %vm20492_vm5 = vmmov %vm20488_vm3 }
 0x3fc   : > { %v5649_v58 = vor.u32 %v20490_v52, %v20489_v54  ;;  %vm20491_vm10 = vcmask 785408   ;;  %v12366_v57 = vcombine.low %v6093_v39, %v6096_v53  ;;  %v5654_v34 = vrot.slane %v5652_v61, 5  ;;  %v5086_v56 = vld [vmem:[#allocation2 + $0x6c] sm:$0xf] }
 0x3fd   : > { %v17193_v43 = vsel %vm20491_vm10, %v7295_v19, %v17136_v25  ;;  %v5658_v30 = vrot.slane %v5656_v0, 4  ;;  %v5568_v21 = vsel %vm14364_vm6, %v12255_v27, %v5567_v36  ;;  %v5571_v48 = vsel %vm14364_vm6, %v5569_v42, %v5570_v12  ;;  %v17213_v27 = vpop.permute.xlu1 %6764  ;;  %vm20493_vm10 = vmmov %vm20488_vm3 }
 0x3fe   : > { %v5664_v31 = vrot.slane %v5662_v8, 5  ;;  %v5650_v14 = vrot.slane %v5649_v58, 4  ;;  %7044 = vrot.lane.b32.xlu0 %v12366_v57, %s14228_s12  ;;  %v12325_v25 = vcombine.low %v5568_v21, %v5571_v48  ;;  %v12380_v16 = vcombine.low %v17181_v1, %v17134_v18  ;;  %v17227_v52 = vpop.permute.xlu0 %7182 }
 0x3ff   : > { %v5659_v19 = vor.u32 %v5658_v30, %v5654_v34  ;;  %v6367_v63 = vshrl.u32 %v17181_v1, 16  ;;  %v12339_v13 = vcombine.low %v5618_v22, %v17189_v51  ;;  %v12283_v49 = vrot.slane %v6519_v37, 9 }
 0x400   : > { %v5655_v38 = vsel %vm14373_vm9, %v5650_v14, %v5654_v34  ;;  %v6631_v32 = vrot.slane %v17195_v33, 5  ;;  %6850 = vrot.lane.b32.xlu1 %v12325_v25, %s14227_s10  ;;  %v6345_v39 = vrot.slane %v6343_v17, 4  ;;  %v6348_v35 = vrot.slane %v6346_v11, 5  ;;  %v5987_v14 = vld [vmem:[#allocation2 + $0x78] sm:$0xe] }
 0x401   : > { %v5660_v36 = vrot.slane %v5659_v19, 4  ;;  %v6352_v61 = vshll.u32 %v17073_v55, 16  ;;  %v6634_v62 = vrot.slane %v17207_v6, 5  ;;  %v6356_v8 = vshrl.u32 %v17073_v55, 16  ;;  %v17237_v25 = vpop.permute.xlu1 %6836 }
 0x402   : > { %v6633_v0 = vrot.slane %v6631_v32, 4  ;;  %v6362_v53 = vshll.u32 %v17087_v60, 16  ;;  %7128 = vrot.lane.b32.xlu0 %v12380_v16, %s14227_s10  ;;  %v6349_v12 = vor.u32 %v6348_v35, %v6345_v39  ;;  %v5327_v17 = vshrl.u32 %v5086_v56, 16  ;;  %v5456_v39 = vld [vmem:[#allocation2 + $0x78] sm:$0xe] }
 0x403   : > { %v5665_v42 = vsel %vm14373_vm9, %v5660_v36, %v5664_v31  ;;  %v6354_v54 = vrot.slane %v6352_v61, 5  ;;  %v6370_v41 = vshll.u32 %v17181_v1, 16  ;;  %v6632_v11 = vsel %vm14364_vm6, %v12283_v49, %v6631_v32  ;;  %v5637_v31 = vld [vmem:[#allocation2 + $0x80] sm:$0x1]  ;;  %v17243_v32 = vld [vmem:[#allocation2 + $0x7c] sm:$0xf] }
 0x404   : > { %v6635_v55 = vsel %vm14364_vm6, %v6633_v0, %v6634_v62  ;;  %v6358_v58 = vrot.slane %v6356_v8, 4  ;;  %6934 = vrot.lane.b32.xlu1 %v12339_v13, %s14229_s17  ;;  %v6350_v22 = vrot.slane %v6349_v12, 4  ;;  %v5329_v57 = vrot.slane %v5327_v17, 4  ;;  %v17250_v8 = vld [vmem:[#allocation2 + $0x94] sm:$0xf] }
 0x405   : > { %v12409_v60 = vcombine.low %v6632_v11, %v6635_v55  ;;  %v5330_v34 = vshll.u32 %v5086_v56, 16  ;;  %v12344_v30 = vcombine.low %v5655_v38, %v5665_v42  ;;  %v5336_v21 = vshll.u32 %v17155_v28, 16  ;;  %v17252_v42 = vpop.permute.xlu0 %7032 }
 0x406   : > { %v6359_v37 = vor.u32 %v6358_v58, %v6354_v54  ;;  %v5340_v48 = vshrl.u32 %v17155_v28, 16  ;;  %v6355_v19 = vsel %vm14373_vm9, %v6350_v22, %v6354_v54  ;;  %v6364_v16 = vrot.slane %v6362_v53, 5  ;;  %v6520_v53 = vld [vmem:[#allocation2 + $0x90] sm:$0xe] }
 0x407   : > { %13214 = vmatmul.mubr.msk.bf16.gmra.mrb[68].mxu1 %vm20492_vm5, %v12409_v60  ;;  %v5332_v13 = vrot.slane %v5330_v34, 5  ;;  %v5346_v49 = vshll.u32 %v17172_v20, 16  ;;  %v5338_v56 = vrot.slane %v5336_v21, 5  ;;  %v6099_v28 = vrot.slane %v17189_v51, 5  ;;  %v17256_v51 = vld [vmem:[#allocation2 + $0x80] sm:$0x1]  ;;  %vm20494_vm5 = vmmov %vm20488_vm3 }
 0x408   : > { %v6360_v38 = vrot.slane %v6359_v37, 4  ;;  %v5342_v36 = vrot.slane %v5340_v48, 4  ;;  %v17248_v35 = vsel %vm20488_vm3, %v12344_v30, %v17118_v44  ;;  %v12269_v62 = vrot.slane %v5987_v14, 9  ;;  %v17259_v60 = vld [vmem:[#allocation2 + $0x98] sm:$0x1]  ;;  %v17264_v37 = vpop.permute.xlu1 %6920 }
 0x409   : > { %v5333_v61 = vor.u32 %v5332_v13, %v5329_v57  ;;  %v5348_v0 = vrot.slane %v5346_v49, 5  ;;  %v6101_v54 = vrot.slane %v6099_v28, 4  ;;  %v6102_v17 = vrot.slane %v5637_v31, 5 }
 0x40a   : > { %v6365_v20 = vsel %vm14373_vm9, %v6360_v38, %v6364_v16  ;;  %v5343_v12 = vor.u32 %v5342_v36, %v5338_v56  ;;  %v12256_v44 = vrot.slane %v5456_v39, 9  ;;  %v5574_v58 = vrot.slane %v17243_v32, 5  ;;  %v17274_v16 = vpop.permute.xlu0 %7116 }
 0x40b   : > { %v12393_v11 = vcombine.low %v6355_v19, %v6365_v20  ;;  %v5334_v55 = vrot.slane %v5333_v61, 4  ;;  %v6103_v57 = vsel %vm14364_vm6, %v6101_v54, %v6102_v17  ;;  %v12284_v34 = vrot.slane %v6520_v53, 9  ;;  %v17272_v19 = vld [vmem:[#allocation2 + $0x84] sm:$0xf] }
 0x40c   : > { %v5344_v22 = vrot.slane %v5343_v12, 4  ;;  %v6638_v30 = vrot.slane %v17250_v8, 5  ;;  %v6100_v48 = vsel %vm14364_vm6, %v12269_v62, %v6099_v28  ;;  %v5576_v31 = vrot.slane %v5574_v58, 4  ;;  %v5088_v62 = vld [vmem:[#allocation2 + $0x78] sm:$0xf] }
 0x40d   : > { %7196 = vrot.lane.b32.xlu0 %v12393_v11, %s14229_s17  ;;  %v5339_v21 = vsel %vm14373_vm9, %v5334_v55, %v5338_v56  ;;  %v5577_v14 = vrot.slane %v17256_v51, 5  ;;  %v12367_v49 = vcombine.low %v6100_v48, %v6103_v57  ;;  %v6641_v36 = vrot.slane %v17259_v60, 5 }
 0x40e   : > { %v5349_v13 = vsel %vm14373_vm9, %v5344_v22, %v5348_v0  ;;  %v6640_v38 = vrot.slane %v6638_v30, 4  ;;  %v5575_v56 = vsel %vm14364_vm6, %v12256_v44, %v5574_v58  ;;  %v6639_v61 = vsel %vm14364_vm6, %v12284_v34, %v6638_v30  ;;  %v5620_v44 = vld [vmem:[#allocation2 + $0x84] sm:$0xf]  ;;  %v17299_v30 = vld [vmem:[#allocation2 + $0xa0] sm:$0xf] }
 0x40f   : > { %v12311_v39 = vcombine.low %v5339_v21, %v5349_v13  ;;  %v5578_v28 = vsel %vm14364_vm6, %v5576_v31, %v5577_v14  ;;  %v12381_v0 = vcombine.low %v17272_v19, %v17195_v33  ;;  %v6369_v17 = vrot.slane %v6367_v63, 4  ;;  %v17301_v21 = vpop.permute.xlu1 %6766  ;;  %v6521_v31 = vld [vmem:[#allocation2 + $0x9c] sm:$0xe]  ;;  %v17306_v14 = vpop.permute.xlu0 %7184 }
 0x410   : > { %v12326_v53 = vcombine.low %v5575_v56, %v5578_v28  ;;  %v6642_v20 = vsel %vm14364_vm6, %v6640_v38, %v6641_v36  ;;  %v6372_v11 = vrot.slane %v6370_v41, 5  ;;  %v6376_v55 = vshll.u32 %v17134_v18, 16 }
 0x411   : > { %6780 = vrot.lane.b32.xlu1 %v12311_v39, %s14228_s12  ;;  %7046 = vrot.lane.b32.xlu0 %v12367_v49, %s14228_s12  ;;  %v12410_v54 = vcombine.low %v6639_v61, %v6642_v20  ;;  %v6380_v58 = vshrl.u32 %v17134_v18, 16  ;;  %v6386_v22 = vshll.u32 %v17146_v7, 16  ;;  %v5351_v57 = vshrl.u32 %v5088_v62, 16  ;;  %v5621_v7 = vld [vmem:[#allocation2 + $0x88] sm:$0xf] }
 0x412   : > { %v5354_v34 = vshll.u32 %v5088_v62, 16  ;;  %v6373_v48 = vor.u32 %v6372_v11, %v6369_v17  ;;  %v6378_v63 = vrot.slane %v6376_v55, 5  ;;  %v5360_v1 = vshll.u32 %v17243_v32, 16  ;;  %v17312_v61 = vld [vmem:[#allocation2 + $0xa4] sm:$0x1] }
 0x413   : > { %13217 = vmatprep.mubr.msk.bf16.mxu1 %vm20493_vm10, %v12410_v54  ;;  %v5364_v41 = vshrl.u32 %v17243_v32, 16  ;;  %v6382_v13 = vrot.slane %v6380_v58, 4  ;;  %v5353_v49 = vrot.slane %v5351_v57, 4  ;;  %v5370_v28 = vshll.u32 %v17256_v51, 16  ;;  %v5988_v17 = vld [vmem:[#allocation2 + $0x84] sm:$0xe]  ;;  %vm20497_vm10 = vmmov %vm20494_vm5 }
 0x414   : > { %v5356_v38 = vrot.slane %v5354_v34, 5  ;;  %v6374_v36 = vrot.slane %v6373_v48, 4  ;;  %v5362_v39 = vrot.slane %v5360_v1, 5  ;;  %v12285_v20 = vrot.slane %v6521_v31, 9  ;;  %v5638_v51 = vld [vmem:[#allocation2 + $0x8c] sm:$0x1]  ;;  %v17318_v1 = vpop.permute.xlu1 %6838 }
 0x415   : > { %6852 = vrot.lane.b32.xlu1 %v12326_v53, %s14227_s10  ;;  %7130 = vrot.lane.b32.xlu0 %v12381_v0, %s14227_s10  ;;  %v5366_v56 = vrot.slane %v5364_v41, 4  ;;  %v6383_v32 = vor.u32 %v6382_v13, %v6378_v63  ;;  %v6645_v54 = vrot.slane %v17299_v30, 5  ;;  %v12340_v11 = vcombine.low %v5620_v44, %v5621_v7  ;;  %v5090_v44 = vld [vmem:[#allocation2 + $0x84] sm:$0xf] }
 0x416   : > { %v5357_v62 = vor.u32 %v5356_v38, %v5353_v49  ;;  %v6379_v55 = vsel %vm14373_vm9, %v6374_v36, %v6378_v63  ;;  %v6388_v53 = vrot.slane %v6386_v22, 5  ;;  %v6648_v48 = vrot.slane %v17312_v61, 5  ;;  %v17321_v38 = vpop.permute.xlu0 %7034 }
 0x417   : > { %v5367_v58 = vor.u32 %v5366_v56, %v5362_v39  ;;  %v6384_v0 = vrot.slane %v6383_v32, 4  ;;  %v6647_v34 = vrot.slane %v6645_v54, 4  ;;  %v5372_v31 = vrot.slane %v5370_v28, 5  ;;  %v5091_v32 = vld [vmem:[#allocation2 + $0x88] sm:$0xf] }
 0x418   : > { %v5358_v57 = vrot.slane %v5357_v62, 4  ;;  %v12270_v13 = vrot.slane %v5988_v17, 9  ;;  %v6106_v49 = vrot.slane %v5621_v7, 5  ;;  %v6646_v36 = vsel %vm14364_vm6, %v12285_v20, %v6645_v54  ;;  %v17331_v62 = vld [vmem:[#allocation2 + $0x8c] sm:$0x1] }
 0x419   : > { %6936 = vrot.lane.b32.xlu1 %v12340_v11, %s14229_s17  ;;  %v5368_v41 = vrot.slane %v5367_v58, 4  ;;  %v6389_v22 = vsel %vm14373_vm9, %v6384_v0, %v6388_v53  ;;  %v6649_v56 = vsel %vm14364_vm6, %v6647_v34, %v6648_v48  ;;  %v6109_v11 = vrot.slane %v5638_v51, 5  ;;  %v14017_v51 = vld [vmem:[#allocation2 + $0x1c] sm:$0xf] }
 0x41a   : > { %v5363_v63 = vsel %vm14373_vm9, %v5358_v57, %v5362_v39  ;;  %v12394_v28 = vcombine.low %v6379_v55, %v6389_v22  ;;  %v12411_v17 = vcombine.low %v6646_v36, %v6649_v56  ;;  %v6108_v53 = vrot.slane %v6106_v49, 4  ;;  %v17350_v36 = vpop.permute.xlu0 %7118 }
 0x41b   : > { %v5373_v7 = vsel %vm14373_vm9, %v5368_v41, %v5372_v31  ;;  %v5375_v0 = vshrl.u32 %v5090_v44, 16  ;;  %v5378_v18 = vshll.u32 %v5090_v44, 16  ;;  %v6107_v39 = vsel %vm14364_vm6, %v12270_v13, %v6106_v49  ;;  %v5457_v31 = vld [vmem:[#allocation2 + $0x84] sm:$0xe]  ;;  %v17343_v44 = vpop.permute.xlu1 %6922 }
 0x41c   : > { %v12312_v58 = vcombine.low %v5363_v63, %v5373_v7  ;;  %7198 = vrot.lane.b32.xlu0 %v12394_v28, %s14229_s17  ;;  %13218 = vmatmul.mubr.msk.bf16.gmra.mrb[72].mxu1 %vm20494_vm5, %v12411_v17  ;;  %v5384_v20 = vshll.u32 %v5091_v32, 16  ;;  %v5388_v54 = vshrl.u32 %v5091_v32, 16  ;;  %v5394_v55 = vshll.u32 %v17331_v62, 16  ;;  %v14018_v28 = vld [vmem:[#allocation2 + $0x10] sm:$0xf] }
 0x41d   : > { %v6110_v57 = vsel %vm14364_vm6, %v6108_v53, %v6109_v11  ;;  %v5377_v34 = vrot.slane %v5375_v0, 4  ;;  %v5380_v48 = vrot.slane %v5378_v18, 5  ;;  %v5676_v41 = vshll.u32 %v14017_v51, 16  ;;  %v14019_v7 = vld [vmem:[#allocation2 + $0xc] sm:$0xf] }
 0x41e   : > { %6782 = vrot.lane.b32.xlu1 %v12312_v58, %s14228_s12  ;;  %vm20495_vm3 = vcmask 523264   ;;  %v12368_v49 = vcombine.low %v6107_v39, %v6110_v57  ;;  %v5386_v22 = vrot.slane %v5384_v20, 5  ;;  %v5390_v63 = vrot.slane %v5388_v54, 4  ;;  %v17352_v58 = vld [vmem:[#allocation2 + $0x90] sm:$0xf] }
 0x41f   : > { %v17348_v13 = vsel %vm20495_vm3, %v17248_v35, %v17142_v2  ;;  %v5381_v56 = vor.u32 %v5380_v48, %v5377_v34  ;;  %v12289_v17 = vcombine.low %v14019_v7, %v14018_v28  ;;  %v5678_v18 = vrot.slane %v5676_v41, 5  ;;  %v14020_v0 = vld [vmem:[#allocation2 + $0x20] sm:$0x1]  ;;  %vm20500_vm3 = vmmov %vm20494_vm5 }
 0x420   : > { %v5680_v11 = vshrl.u32 %v14017_v51, 16  ;;  %7048 = vrot.lane.b32.xlu0 %v12368_v49, %s14228_s12  ;;  %v5391_v53 = vor.u32 %v5390_v63, %v5386_v22  ;;  %v5686_v12 = vshll.u32 %v14020_v0, 16  ;;  %v20496_v2 = vld [vmem:[#allocation38_spill] sm:$0xff]  ;;  %v12257_v39 = vrot.slane %v5457_v31, 9  ;;  %v17366_v31 = vpop.permute.xlu1 %6768 }
 0x421   : > { %v5673_v35 = vor.u32 %v16826_v50, %v20496_v2  ;;  %v5382_v20 = vrot.slane %v5381_v56, 4  ;;  %v5396_v54 = vrot.slane %v5394_v55, 5  ;;  %v5581_v34 = vrot.slane %v5091_v32, 5 }
 0x422   : > { %v5682_v57 = vrot.slane %v5680_v11, 4  ;;  %v5392_v48 = vrot.slane %v5391_v53, 4  ;;  %v17359_v41 = vsel %vm20497_vm10, %v12289_v17, %v17213_v27  ;;  %v12382_v49 = vcombine.low %v17352_v58, %v17250_v8  ;;  %v6522_v17 = vld [vmem:[#allocation2 + $0xa8] sm:$0xe] }
 0x423   : > { %v5674_v51 = vrot.slane %v5673_v35, 4  ;;  %v5387_v63 = vsel %vm14373_vm9, %v5382_v20, %v5386_v22  ;;  %v5583_v7 = vrot.slane %v5581_v34, 4  ;;  %v5584_v50 = vrot.slane %v17331_v62, 5  ;;  %v17375_v22 = vpop.permute.xlu0 %7186  ;;  %v17383_v35 = vld [vmem:[#allocation2 + $0x94] sm:$0xf] }
 0x424   : > { %v5683_v28 = vor.u32 %v5682_v57, %v5678_v18  ;;  %v5397_v32 = vsel %vm14373_vm9, %v5392_v48, %v5396_v54  ;;  %v5688_v55 = vrot.slane %v5686_v12, 5  ;;  %v5582_v56 = vsel %vm14364_vm6, %v12257_v39, %v5581_v34  ;;  %7132 = vrot.lane.b32.xlu0 %v12382_v49, %s14227_s10  ;;  %v17381_v12 = vld [vmem:[#allocation2 + $0x90] sm:$0xf]  ;;  %v17390_v34 = vld [vmem:[#allocation2 + $0xac] sm:$0xf] }
 0x425   : > { %v5679_v27 = vsel %vm14373_vm9, %v5674_v51, %v5678_v18  ;;  %v12313_v11 = vcombine.low %v5387_v63, %v5397_v32  ;;  %v5585_v62 = vsel %vm14364_vm6, %v5583_v7, %v5584_v50  ;;  %v20498_v0 = vshrl.u32 %v17272_v19, 16  ;;  %v17397_v63 = vld [vmem:[#allocation2 + $0xb0] sm:$0x1]  ;;  %v17404_v51 = vpop.permute.xlu1 %6840 }
 0x426   : > { %v5684_v53 = vrot.slane %v5683_v28, 4  ;;  %v20499_v39 = vshll.u32 %v17272_v19, 16  ;;  %v6400_v54 = vshll.u32 %v17195_v33, 16  ;;  %v6404_v57 = vshrl.u32 %v17195_v33, 16 }
 0x427   : > { %v6393_v2 = vrot.slane %v20498_v0, 4  ;;  %6784 = vrot.lane.b32.xlu1 %v12313_v11, %s14228_s12  ;;  %v6410_v49 = vshll.u32 %v17207_v6, 16  ;;  %v12286_v28 = vrot.slane %v6522_v17, 9  ;;  %v12327_v19 = vcombine.low %v5582_v56, %v5585_v62  ;;  %v5989_v0 = vld [vmem:[#allocation2 + $0x90] sm:$0xe] }
 0x428   : > { %v6396_v20 = vrot.slane %v20499_v39, 5  ;;  %v5689_v48 = vsel %vm14373_vm9, %v5684_v53, %v5688_v55  ;;  %v6402_v50 = vrot.slane %v6400_v54, 5  ;;  %v6406_v32 = vrot.slane %v6404_v57, 4  ;;  %v17402_v55 = vld [vmem:[#allocation2 + $0x98] sm:$0x1] }
 0x429   : > { %v12345_v33 = vcombine.low %v5679_v27, %v5689_v48  ;;  %v6412_v39 = vrot.slane %v6410_v49, 5  ;;  %v12341_v11 = vcombine.low %v17381_v12, %v17383_v35  ;;  %v6652_v18 = vrot.slane %v17390_v34, 5  ;;  %v5092_v53 = vld [vmem:[#allocation2 + $0x90] sm:$0xf]  ;;  %v17408_v62 = vld [vmem:[#allocation2 + $0x94] sm:$0xf]  ;;  %v17410_v27 = vpop.permute.xlu0 %7036 }
 0x42a   : > { %v6397_v7 = vor.u32 %v6396_v20, %v6393_v2  ;;  %v6407_v9 = vor.u32 %v6406_v32, %v6402_v50  ;;  %v6655_v56 = vrot.slane %v17397_v63, 5  ;;  %v6113_v17 = vrot.slane %v17383_v35, 5 }
 0x42b   : > { %v17414_v2 = vsel %vm20494_vm5, %v12345_v33, %v17160_v5  ;;  %6854 = vrot.lane.b32.xlu1 %v12327_v19, %s14227_s10  ;;  %v6653_v20 = vsel %vm14364_vm6, %v12286_v28, %v6652_v18  ;;  %v6654_v54 = vrot.slane %v6652_v18, 4  ;;  %v12271_v57 = vrot.slane %v5989_v0, 9 }
 0x42c   : > { %v6398_v6 = vrot.slane %v6397_v7, 4  ;;  %v6408_v49 = vrot.slane %v6407_v9, 4  ;;  %v6115_v7 = vrot.slane %v6113_v17, 4  ;;  %v6116_v32 = vrot.slane %v17402_v55, 5 }
 0x42d   : > { %v6656_v10 = vsel %vm14364_vm6, %v6654_v54, %v6655_v56  ;;  %v5399_v5 = vshrl.u32 %v5092_v53, 16  ;;  %v5402_v33 = vshll.u32 %v5092_v53, 16  ;;  %v5408_v19 = vshll.u32 %v17408_v62, 16  ;;  %v17435_v53 = vpop.permute.xlu1 %6924 }
 0x42e   : > { %v6403_v48 = vsel %vm14373_vm9, %v6398_v6, %v6402_v50  ;;  %v6413_v18 = vsel %vm14373_vm9, %v6408_v49, %v6412_v39  ;;  %v12412_v28 = vcombine.low %v6653_v20, %v6656_v10  ;;  %v6117_v50 = vsel %vm14364_vm6, %v6115_v7, %v6116_v32 }
 0x42f   : > { %v5412_v9 = vshrl.u32 %v17408_v62, 16  ;;  %v12395_v0 = vcombine.low %v6403_v48, %v6413_v18  ;;  %6938 = vrot.lane.b32.xlu1 %v12341_v11, %s14229_s17  ;;  %v6114_v6 = vsel %vm14364_vm6, %v12271_v57, %v6113_v17  ;;  %v5401_v56 = vrot.slane %v5399_v5, 4  ;;  %v17442_v48 = vpop.permute.xlu0 %7120  ;;  %v14021_v57 = vld [vmem:[#allocation2 + $0x24] sm:$0xf]  ;;  %v14022_v5 = vld [vmem:[#allocation2 + $0x1c] sm:$0xf] }
 0x430   : > { %v5404_v54 = vrot.slane %v5402_v33, 5  ;;  %13221 = vmatprep.mubr.msk.bf16.mxu1 %vm20500_vm3, %v12412_v28  ;;  %v5410_v47 = vrot.slane %v5408_v19, 5  ;;  %v5418_v10 = vshll.u32 %v17424_v23, 16  ;;  %vm20501_vm10 = vcmask 785408   ;;  %v14023_v33 = vld [vmem:[#allocation2 + $0x18] sm:$0xf] }
 0x431   : > { %v5414_v39 = vrot.slane %v5412_v9, 4  ;;  %v7435_v20 = vsel %vm20501_vm10, %v17348_v13, %v17227_v52  ;;  %7200 = vrot.lane.b32.xlu0 %v12395_v0, %s14229_s17  ;;  %v12369_v11 = vcombine.low %v6114_v6, %v6117_v50  ;;  %v5691_v49 = vshrl.u32 %v14021_v57, 16  ;;  %v14024_v18 = vld [vmem:[#allocation2 + $0x28] sm:$0xf]  ;;  %vm20505_vm10 = vmmov %vm20500_vm3 }
 0x432   : > { %v5405_v17 = vor.u32 %v5404_v54, %v5401_v56  ;;  %7700 = vmatprep.mubr.bf16.mxu0 %v7435_v20  ;;  %v5694_v7 = vshll.u32 %v14021_v57, 16  ;;  %v12290_v19 = vcombine.low %v14023_v33, %v14022_v5  ;;  %v5700_v28 = vshll.u32 %v14024_v18, 16  ;;  %v14025_v56 = vld [vmem:[#allocation2 + $0x2c] sm:$0x1] }
 0x433   : > { %v5415_v32 = vor.u32 %v5414_v39, %v5410_v47  ;;  %7701 = vmatmul.mubr.bf16.vlgmr.msra.gmra.mrb[60].mxu0 %v17193_v43  ;;  %v5704_v9 = vshrl.u32 %v14024_v18, 16  ;;  %v5420_v13 = vrot.slane %v5418_v10, 5  ;;  %v5693_v15 = vrot.slane %v5691_v49, 4  ;;  %v5458_v10 = vld [vmem:[#allocation2 + $0x90] sm:$0xe]  ;;  %v17453_v49 = vpop.permute.xlu1 %6770  ;;  %v17458_v18 = vpop.permute.xlu0 %7188 }
 0x434   : > { %v5406_v52 = vrot.slane %v5405_v17, 4  ;;  %v5696_v59 = vrot.slane %v5694_v7, 5  ;;  %v5702_v50 = vrot.slane %v5700_v28, 5  ;;  %v5710_v54 = vshll.u32 %v14025_v56, 16 }
 0x435   : > { %v5416_v0 = vrot.slane %v5415_v32, 4  ;;  %v5706_v6 = vrot.slane %v5704_v9, 4  ;;  %7050 = vrot.lane.b32.xlu0 %v12369_v11, %s14228_s12  ;;  %v20502_v20 = vshrl.u32 %v17352_v58, 16  ;;  %v20503_v5 = vshll.u32 %v17352_v58, 16 }
 0x436   : > { %v5411_v43 = vsel %vm14373_vm9, %v5406_v52, %v5410_v47  ;;  %v5697_v39 = vor.u32 %v5696_v59, %v5693_v15  ;;  %v5712_v33 = vrot.slane %v5710_v54, 5  ;;  %v6424_v11 = vshll.u32 %v17250_v8, 16 }
 0x437   : > { %v6417_v57 = vrot.slane %v20502_v20, 4  ;;  %v6420_v17 = vrot.slane %v20503_v5, 5  ;;  %v5421_v7 = vsel %vm14373_vm9, %v5416_v0, %v5420_v13  ;;  %v5707_v32 = vor.u32 %v5706_v6, %v5702_v50  ;;  %v17466_v20 = vld [vmem:[#allocation2 + $0x9c] sm:$0xf] }
 0x438   : > { %v12314_v47 = vcombine.low %v5411_v43, %v5421_v7  ;;  %v5698_v59 = vrot.slane %v5697_v39, 4  ;;  %v6428_v28 = vshrl.u32 %v17250_v8, 16  ;;  %v6426_v58 = vrot.slane %v6424_v11, 5 }
 0x439   : > { %v6421_v15 = vor.u32 %v6420_v17, %v6417_v57  ;;  %v5708_v9 = vrot.slane %v5707_v32, 4  ;;  %v6434_v52 = vshll.u32 %v17259_v60, 16  ;;  %v12258_v56 = vrot.slane %v5458_v10, 9  ;;  %v17481_v57 = vld [vmem:[#allocation2 + $0xa0] sm:$0xf]  ;;  %v17492_v32 = vpop.permute.xlu0 %7038 }
 0x43a   : > { %6786 = vrot.lane.b32.xlu1 %v12314_v47, %s14228_s12  ;;  %v5703_v13 = vsel %vm14373_vm9, %v5698_v59, %v5702_v50  ;;  %v6430_v6 = vrot.slane %v6428_v28, 4  ;;  %v5588_v54 = vrot.slane %v17408_v62, 5  ;;  %vm20504_vm5 = vcmask 523264   ;;  %v17479_v50 = vld [vmem:[#allocation2 + $0x9c] sm:$0xf] }
 0x43b   : > { %v6422_v0 = vrot.slane %v6421_v15, 4  ;;  %v17471_v8 = vsel %vm20504_vm5, %v17414_v2, %v17197_v29  ;;  %v17475_v60 = vsel %vm20500_vm3, %v12290_v19, %v17301_v21  ;;  %v5713_v43 = vsel %vm14373_vm9, %v5708_v9, %v5712_v33  ;;  %v17486_v2 = vpop.permute.xlu1 %6842  ;;  %v17498_v59 = vld [vmem:[#allocation2 + $0x9c] sm:$0xf] }
 0x43c   : > { %v6436_v39 = vrot.slane %v6434_v52, 5  ;;  %v12346_v62 = vcombine.low %v5703_v13, %v5713_v43  ;;  %v6431_v17 = vor.u32 %v6430_v6, %v6426_v58  ;;  %v5591_v29 = vrot.slane %v17424_v23, 5  ;;  %v17504_v52 = vld [vmem:[#allocation2 + $0xa0] sm:$0xf]  ;;  %v17510_v43 = vpop.f32.mrb[52].mxu1 }
 0x43d   : > { %v6427_v5 = vsel %vm14373_vm9, %v6422_v0, %v6426_v58  ;;  %v5589_v21 = vsel %vm14364_vm6, %v12258_v56, %v5588_v54  ;;  %v5590_v19 = vrot.slane %v5588_v54, 4  ;;  %v6439_v10 = vshrl.u32 %v17466_v20, 16  ;;  %v17508_v54 = vld [vmem:[#allocation2 + $0xa4] sm:$0x1]  ;;  %20506 = vst [vmem:[#allocation41_spill] sm:$0xff] %v17510_v43 }
 0x43e   : > { %v6442_v7 = vshll.u32 %v17466_v20, 16  ;;  %v6432_v33 = vrot.slane %v6431_v17, 4  ;;  %v12342_v11 = vcombine.low %v17479_v50, %v17481_v57  ;;  %v6448_v47 = vshll.u32 %v17299_v30, 16  ;;  %v17538_v43 = vld [vmem:[#allocation2 + $0xa4] sm:$0x1] }
 0x43f   : > { %v6452_v23 = vshrl.u32 %v17299_v30, 16  ;;  %v7372_v15 = vsel %vm20505_vm10, %v12346_v62, %v17252_v42  ;;  %v5592_v28 = vsel %vm14364_vm6, %v5590_v19, %v5591_v29  ;;  %v6441_v9 = vrot.slane %v6439_v10, 4  ;;  %v17514_v29 = vpop.f32.mrb[53].mxu1 }
 0x440   : > { %v6444_v58 = vrot.slane %v6442_v7, 5  ;;  %v6437_v56 = vsel %vm14373_vm9, %v6432_v33, %v6436_v39  ;;  %v12328_v13 = vcombine.low %v5589_v21, %v5592_v28  ;;  %v6450_v0 = vrot.slane %v6448_v47, 5  ;;  %v17520_v7 = vpop.permute.xlu1 %6926  ;;  %v17522_v33 = vpop.f32.mrb[54].mxu1 }
 0x441   : > { %v6454_v6 = vrot.slane %v6452_v23, 4  ;;  %v12396_v17 = vcombine.low %v6427_v5, %v6437_v56  ;;  %v6458_v42 = vshll.u32 %v17312_v61, 16  ;;  %v5423_v62 = vshrl.u32 %v17498_v59, 16  ;;  %20507 = vst [vmem:[#allocation47_spill] sm:$0xff] %v17522_v33  ;;  %v17526_v28 = vpop.permute.xlu0 %7122 }
 0x442   : > { %v6445_v4 = vor.u32 %v6444_v58, %v6441_v9  ;;  %6856 = vrot.lane.b32.xlu1 %v12328_v13, %s14227_s10  ;;  %v5426_v39 = vshll.u32 %v17498_v59, 16  ;;  %v5432_v21 = vshll.u32 %v17504_v52, 16  ;;  %v5436_v10 = vshrl.u32 %v17504_v52, 16  ;;  %v17528_v9 = vpop.f32.mrb[55].mxu1 }
 0x443   : > { %v6455_v19 = vor.u32 %v6454_v6, %v6450_v0  ;;  %7202 = vrot.lane.b32.xlu0 %v12396_v17, %s14229_s17  ;;  %v6460_v5 = vrot.slane %v6458_v42, 5  ;;  %v5425_v47 = vrot.slane %v5423_v62, 4  ;;  %v5442_v23 = vshll.u32 %v17508_v54, 16  ;;  %20508 = vst [vmem:[#allocation39_spill] sm:$0xff] %v17528_v9  ;;  %v14026_v42 = vld [vmem:[#allocation2 + $0x28] sm:$0xf] }
 0x444   : > { %v6446_v61 = vrot.slane %v6445_v4, 4  ;;  %v5428_v56 = vrot.slane %v5426_v39, 5  ;;  %v5434_v13 = vrot.slane %v5432_v21, 5  ;;  %v5438_v6 = vrot.slane %v5436_v10, 4  ;;  %v14027_v62 = vld [vmem:[#allocation2 + $0x24] sm:$0xf] }
 0x445   : > { %v6456_v58 = vrot.slane %v6455_v19, 4  ;;  %v12383_v46 = vcombine.low %v17466_v20, %v17299_v30  ;;  %v17534_v17 = vsel %vm20504_vm5, %v7372_v15, %v17274_v16  ;;  %v12291_v33 = vcombine.low %v14027_v62, %v14026_v42  ;;  %v5459_v20 = vld [vmem:[#allocation2 + $0x9c] sm:$0xe]  ;;  %v17595_v9 = vld [vmem:[#allocation2 + $0xb0] sm:$0x1] }
 0x446   : > { %v6451_v4 = vsel %vm14373_vm9, %v6446_v61, %v6450_v0  ;;  %6940 = vrot.lane.b32.xlu1 %v12342_v11, %s14229_s17  ;;  %v5429_v39 = vor.u32 %v5428_v56, %v5425_v47  ;;  %v5439_v21 = vor.u32 %v5438_v6, %v5434_v13  ;;  %v6120_v30 = vrot.slane %v17481_v57, 5 }
 0x447   : > { %v6461_v19 = vsel %vm14373_vm9, %v6456_v58, %v6460_v5  ;;  %7134 = vrot.lane.b32.xlu0 %v12383_v46, %s14227_s10  ;;  %v5444_v15 = vrot.slane %v5442_v23, 5  ;;  %v17547_v0 = vsel %vm20500_vm3, %v12291_v33, %v17366_v31  ;;  %v12272_v10 = vrot.slane %v5990_v45, 9  ;;  %v17550_v5 = vpop.permute.xlu1 %6772  ;;  %v17559_v33 = vpop.permute.xlu0 %7190 }
 0x448   : > { %v12397_v16 = vcombine.low %v6451_v4, %v6461_v19  ;;  %v5430_v61 = vrot.slane %v5429_v39, 4  ;;  %v5440_v42 = vrot.slane %v5439_v21, 4  ;;  %v6122_v11 = vrot.slane %v6120_v30, 4  ;;  %v14028_v19 = vld [vmem:[#allocation2 + $0x34] sm:$0xf] }
 0x449   : > { %v6123_v62 = vrot.slane %v17538_v43, 5  ;;  %v12259_v47 = vrot.slane %v5459_v20, 9  ;;  %v5595_v58 = vrot.slane %v17504_v52, 5  ;;  %vm20509_vm10 = vcmask 785408   ;;  %v14029_v20 = vld [vmem:[#allocation2 + $0x30] sm:$0xf] }
 0x44a   : > { %v7438_v46 = vsel %vm20509_vm10, %v17471_v8, %v17306_v14  ;;  %v7297_v31 = vsel %vm20504_vm5, %v17359_v41, %v17157_v24  ;;  %v5435_v45 = vsel %vm14373_vm9, %v5430_v61, %v5434_v13  ;;  %v5445_v23 = vsel %vm14373_vm9, %v5440_v42, %v5444_v15  ;;  %vm20510_vm3 = vmmov %vm20509_vm10  ;;  %v6156_v14 = vld [vmem:[#allocation2 + $0xa8] sm:$0xf] }
 0x44b   : > { %v6124_v56 = vsel %vm14364_vm6, %v6122_v11, %v6123_v62  ;;  %7708 = vmatprep.mubr.bf16.mxu0 %v7438_v46  ;;  %v7326_v6 = vsel %vm20510_vm3, %v7297_v31, %v17175_v3  ;;  %7204 = vrot.lane.b32.xlu0 %v12397_v16, %s14229_s17  ;;  %v12315_v8 = vcombine.low %v5435_v45, %v5445_v23  ;;  %v5597_v41 = vrot.slane %v5595_v58, 4  ;;  %v14030_v16 = vld [vmem:[#allocation2 + $0x38] sm:$0x1]  ;;  %v17579_v46 = vld [vmem:[#allocation2 + $0xa8] sm:$0xf]  ;;  %v17581_v31 = vpop.permute.xlu1 %6844  ;;  %vm20511_vm10 = vmmov %vm20510_vm3 }
 0x44c   : > { %v6121_v24 = vsel %vm14364_vm6, %v12272_v10, %v6120_v30  ;;  %v5598_v13 = vrot.slane %v17508_v54, 5  ;;  %7709 = vmatmul.mubr.bf16.gmra.mrb[64].mxu0 %v7326_v6  ;;  %v5724_v39 = vshll.u32 %v14028_v19, 16  ;;  %v5728_v21 = vshrl.u32 %v14028_v19, 16  ;;  %v5991_v19 = vld [vmem:[#allocation2 + $0xa8] sm:$0xe] }
 0x44d   : > { %v12370_v4 = vcombine.low %v6121_v24, %v6124_v56  ;;  %v5715_v15 = vshrl.u32 %v14029_v20, 16  ;;  %6788 = vrot.lane.b32.xlu1 %v12315_v8, %s14228_s12  ;;  %v5734_v61 = vshll.u32 %v14030_v16, 16  ;;  %v5718_v42 = vshll.u32 %v14029_v20, 16  ;;  %v17584_v8 = vld [vmem:[#allocation2 + $0xac] sm:$0xf]  ;;  %v17586_v24 = vpop.permute.xlu0 %7040 }
 0x44e   : > { %v5599_v3 = vsel %vm14364_vm6, %v5597_v41, %v5598_v13  ;;  %v6463_v11 = vshrl.u32 %v6156_v14, 16  ;;  %v5596_v30 = vsel %vm14364_vm6, %v12259_v47, %v5595_v58  ;;  %v5726_v54 = vrot.slane %v5724_v39, 5 }
 0x44f   : > { %v5730_v10 = vrot.slane %v5728_v21, 4  ;;  %v12384_v62 = vcombine.low %v6156_v14, %v17390_v34  ;;  %7052 = vrot.lane.b32.xlu0 %v12370_v4, %s14228_s12  ;;  %v12329_v45 = vcombine.low %v5596_v30, %v5599_v3  ;;  %v5717_v23 = vrot.slane %v5715_v15, 4  ;;  %v14031_v30 = vld [vmem:[#allocation2 + $0x34] sm:$0xf] }
 0x450   : > { %v5720_v56 = vrot.slane %v5718_v42, 5  ;;  %v6466_v6 = vshll.u32 %v6156_v14, 16  ;;  %v6465_v47 = vrot.slane %v6463_v11, 4  ;;  %v6472_v58 = vshll.u32 %v17390_v34, 16 }
 0x451   : > { %v5731_v41 = vor.u32 %v5730_v10, %v5726_v54  ;;  %v6476_v13 = vshrl.u32 %v17390_v34, 16  ;;  %6858 = vrot.lane.b32.xlu1 %v12329_v45, %s14227_s10  ;;  %v5736_v39 = vrot.slane %v5734_v61, 5  ;;  %v6482_v20 = vshll.u32 %v17397_v63, 16  ;;  %v14032_v34 = vld [vmem:[#allocation2 + $0x30] sm:$0xf] }
 0x452   : > { %v5721_v21 = vor.u32 %v5720_v56, %v5717_v23  ;;  %v6468_v4 = vrot.slane %v6466_v6, 5  ;;  %v12343_v14 = vcombine.low %v17579_v46, %v17584_v8  ;;  %v6474_v3 = vrot.slane %v6472_v58, 5  ;;  %v17600_v6 = vpop.permute.xlu1 %6928 }
 0x453   : > { %v5732_v15 = vrot.slane %v5731_v41, 4  ;;  %v6478_v16 = vrot.slane %v6476_v13, 4  ;;  %7136 = vrot.lane.b32.xlu0 %v12384_v62, %s14227_s10  ;;  %v12292_v10 = vcombine.low %v14032_v34, %v14031_v30  ;;  %v12273_v61 = vrot.slane %v5991_v19, 9  ;;  %v17611_v13 = vpop.permute.xlu0 %7124 }
 0x454   : > { %v5722_v42 = vrot.slane %v5721_v21, 4  ;;  %v6469_v11 = vor.u32 %v6468_v4, %v6465_v47  ;;  %v6484_v23 = vrot.slane %v6482_v20, 5  ;;  %v6127_v56 = vrot.slane %v17584_v8, 5 }
 0x455   : > { %v5737_v45 = vsel %vm14373_vm9, %v5732_v15, %v5736_v39  ;;  %v6479_v63 = vor.u32 %v6478_v16, %v6474_v3  ;;  %6942 = vrot.lane.b32.xlu1 %v12343_v14, %s14229_s17  ;;  %v7441_v47 = vsel %vm20511_vm10, %v17534_v17, %v17375_v22  ;;  %v7299_v58 = vsel %vm20504_vm5, %v17475_v60, %v17237_v25  ;;  %v14033_v15 = vld [vmem:[#allocation2 + $0x3c] sm:$0xf]  ;;  %v14034_v16 = vld [vmem:[#allocation2 + $0x40] sm:$0xf] }
 0x456   : > { %v5727_v41 = vsel %vm14373_vm9, %v5722_v42, %v5726_v54  ;;  %v6470_v62 = vrot.slane %v6469_v11, 4  ;;  %v6129_v21 = vrot.slane %v6127_v56, 4  ;;  %v6130_v4 = vrot.slane %v17595_v9, 5  ;;  %7716 = vmatprep.mubr.bf16.mxu0 %v7441_v47  ;;  %v17626_v11 = vld [vmem:[#allocation2 + $0xb8] sm:$0xf] }
 0x457   : > { %v12347_v19 = vcombine.low %v5727_v41, %v5737_v45  ;;  %v6480_v39 = vrot.slane %v6479_v63, 4  ;;  %v7329_v20 = vsel %vm20510_vm3, %v7299_v58, %v17264_v37  ;;  %v5739_v22 = vshrl.u32 %v14033_v15, 16  ;;  %v14035_v41 = vld [vmem:[#allocation2 + $0x44] sm:$0x1] }
 0x458   : > { %v6475_v54 = vsel %vm14373_vm9, %v6470_v62, %v6474_v3  ;;  %v5742_v17 = vshll.u32 %v14033_v15, 16  ;;  %vm20512_vm10 = vcmask 261120   ;;  %v6128_v14 = vsel %vm14364_vm6, %v12273_v61, %v6127_v56  ;;  %7717 = vmatmul.mubr.bf16.gmra.mrb[68].mxu0 %v7329_v20  ;;  %v6158_v3 = vld [vmem:[#allocation2 + $0xb4] sm:$0xf]  ;;  %v17636_v56 = vpop.permute.xlu1 %6774 }
 0x459   : > { %v6485_v25 = vsel %vm14373_vm9, %v6480_v39, %v6484_v23  ;;  %v17622_v60 = vsel %vm20512_vm10, %v12292_v10, %v17453_v49  ;;  %v5748_v42 = vshll.u32 %v14034_v16, 16  ;;  %vm20513_vm5 = vmmov %vm20512_vm10  ;;  %v6131_v34 = vsel %vm14364_vm6, %v6129_v21, %v6130_v4  ;;  %v17634_v23 = vld [vmem:[#allocation2 + $0xbc] sm:$0x1] }
 0x45a   : > { %v7375_v37 = vsel %vm20513_vm5, %v12347_v19, %v17321_v38  ;;  %v12398_v30 = vcombine.low %v6475_v54, %v6485_v25  ;;  %v5741_v45 = vrot.slane %v5739_v22, 4  ;;  %vm20514_vm3 = vcmask 523264   ;;  %v17640_v19 = vpop.permute.xlu0 %7192 }
 0x45b   : > { %v7413_v49 = vsel %vm20514_vm3, %v7375_v37, %v17350_v36  ;;  %v5744_v10 = vrot.slane %v5742_v17, 5  ;;  %v5750_v63 = vrot.slane %v5748_v42, 5  ;;  %v5752_v61 = vshrl.u32 %v14034_v16, 16  ;;  %vm20516_vm5 = vmmov %vm20514_vm3 }
 0x45c   : > { %7206 = vrot.lane.b32.xlu0 %v12398_v30, %s14229_s17  ;;  %v5758_v62 = vshll.u32 %v14035_v41, 16  ;;  %v6487_v38 = vshrl.u32 %v6158_v3, 16  ;;  %v6490_v47 = vshll.u32 %v6158_v3, 16  ;;  %v6500_v58 = vshrl.u32 %v17626_v11, 16 }
 0x45d   : > { %v12371_v39 = vcombine.low %v6128_v14, %v6131_v34  ;;  %v5745_v21 = vor.u32 %v5744_v10, %v5741_v45  ;;  %v5754_v36 = vrot.slane %v5752_v61, 4  ;;  %v6496_v4 = vshll.u32 %v17626_v11, 16 }
 0x45e   : > { %v6489_v54 = vrot.slane %v6487_v38, 4  ;;  %v6492_v20 = vrot.slane %v6490_v47, 5  ;;  %v6502_v15 = vrot.slane %v6500_v58, 4  ;;  %v6506_v22 = vshll.u32 %v17634_v23, 16  ;;  %v14036_v47 = vld [vmem:[#allocation2 + $0x4c] sm:$0xf] }
 0x45f   : > { %v5746_v17 = vrot.slane %v5745_v21, 4  ;;  %v5755_v25 = vor.u32 %v5754_v36, %v5750_v63  ;;  %v12385_v16 = vcombine.low %v6158_v3, %v17626_v11  ;;  %v6498_v42 = vrot.slane %v6496_v4, 5  ;;  %v17653_v3 = vpop.permute.xlu1 %6846  ;;  %v14038_v21 = vld [vmem:[#allocation2 + $0x48] sm:$0xf] }
 0x460   : > { %7054 = vrot.lane.b32.xlu0 %v12371_v39, %s14228_s12  ;;  %v5760_v37 = vrot.slane %v5758_v62, 5  ;;  %v6493_v30 = vor.u32 %v6492_v20, %v6489_v54  ;;  %vm20515_vm10 = vcmask 785408   ;;  %v7301_v34 = vsel %vm20516_vm5, %v17547_v0, %v17318_v1 }
 0x461   : > { %v7444_v14 = vsel %vm20515_vm10, %v7413_v49, %v17458_v18  ;;  %v5751_v45 = vsel %vm14373_vm9, %v5746_v17, %v5750_v63  ;;  %v5756_v10 = vrot.slane %v5755_v25, 4  ;;  %v6503_v61 = vor.u32 %v6502_v15, %v6498_v42  ;;  %vm20517_vm3 = vmmov %vm20515_vm10  ;;  %v17657_v49 = vpop.permute.xlu0 %7042  ;;  %v14037_v63 = vld [vmem:[#allocation2 + $0x50] sm:$0x1] }
 0x462   : > { %v6508_v41 = vrot.slane %v6506_v22, 5  ;;  %7724 = vmatprep.mubr.bf16.mxu0 %v7444_v14  ;;  %v6494_v38 = vrot.slane %v6493_v30, 4  ;;  %v7332_v62 = vsel %vm20517_vm3, %v7301_v34, %v17343_v44  ;;  %v5772_v58 = vshll.u32 %v14036_v47, 16  ;;  %vm20519_vm3 = vmmov %vm20516_vm5 }
 0x463   : > { %v5776_v18 = vshrl.u32 %v14036_v47, 16  ;;  %v5761_v1 = vsel %vm14373_vm9, %v5756_v10, %v5760_v37  ;;  %v6504_v0 = vrot.slane %v6503_v61, 4  ;;  %7725 = vmatmul.mubr.bf16.gmra.mrb[72].mxu0 %v7332_v62  ;;  %v5782_v39 = vshll.u32 %v14037_v63, 16  ;;  %v17673_v10 = vpop.permute.xlu1 %6930  ;;  %v14040_v61 = vld [vmem:[#allocation2 + $0x40] sm:$0xf] }
 0x464   : > { %v5763_v36 = vshrl.u32 %v14038_v21, 16  ;;  %v12348_v4 = vcombine.low %v5751_v45, %v5761_v1  ;;  %7138 = vrot.lane.b32.xlu0 %v12385_v16, %s14227_s10  ;;  %v6499_v44 = vsel %vm14373_vm9, %v6494_v38, %v6498_v42  ;;  %v5774_v54 = vrot.slane %v5772_v58, 5  ;;  %v14039_v42 = vld [vmem:[#allocation2 + $0x54] sm:$0xf] }
 0x465   : > { %v5778_v20 = vrot.slane %v5776_v18, 4  ;;  %v6509_v15 = vsel %vm14373_vm9, %v6504_v0, %v6508_v41  ;;  %v5766_v17 = vshll.u32 %v14038_v21, 16  ;;  %vm20518_vm10 = vcmask 261120   ;;  %v14041_v41 = vld [vmem:[#allocation2 + $0x3c] sm:$0xf] }
 0x466   : > { %v5765_v22 = vrot.slane %v5763_v36, 4  ;;  %v7378_v25 = vsel %vm20518_vm10, %v12348_v4, %v17410_v27  ;;  %v12399_v37 = vcombine.low %v6499_v44, %v6509_v15  ;;  %v7303_v16 = vsel %vm20519_vm3, %v17622_v60, %v17404_v51  ;;  %v14042_v60 = vld [vmem:[#allocation2 + $0x58] sm:$0xf] }
 0x467   : > { %v5779_v30 = vor.u32 %v5778_v20, %v5774_v54  ;;  %v7415_v14 = vsel %vm20516_vm5, %v7378_v25, %v17442_v48  ;;  %v5768_v34 = vrot.slane %v5766_v17, 5  ;;  %v5787_v45 = vshrl.u32 %v14039_v42, 16  ;;  %v17678_v48 = vpop.permute.xlu0 %7126  ;;  %v14043_v20 = vld [vmem:[#allocation2 + $0x5c] sm:$0x1]  ;;  %v17690_v25 = vpop.permute.xlu1 %6776 }
 0x468   : > { %7208 = vrot.lane.b32.xlu0 %v12399_v37, %s14229_s17  ;;  %v12293_v38 = vcombine.low %v14041_v41, %v14040_v61  ;;  %v5784_v62 = vrot.slane %v5782_v39, 5  ;;  %vm20520_vm10 = vcmask 785408   ;;  %v5790_v51 = vshll.u32 %v14039_v42, 16 }
 0x469   : > { %v5780_v27 = vrot.slane %v5779_v30, 4  ;;  %v7447_v47 = vsel %vm20520_vm10, %v7415_v14, %v17559_v33  ;;  %v5769_v58 = vor.u32 %v5768_v34, %v5765_v22  ;;  %v5789_v18 = vrot.slane %v5787_v45, 4  ;;  %vm20522_vm3 = vmmov %vm20520_vm10  ;;  %v17686_v22 = vpop.f32.mrb[56].mxu1  ;;  %v14045_v45 = vld [vmem:[#allocation2 + $0x60] sm:$0xf] }
 0x46a   : > { %7732 = vmatprep.mubr.bf16.mxu0 %v7447_v47  ;;  %v5796_v1 = vshll.u32 %v14042_v60, 16  ;;  %vm20521_vm5 = vcmask 261120   ;;  %v7335_v63 = vsel %vm20522_vm3, %v7303_v16, %v17435_v53  ;;  %v5800_v21 = vshrl.u32 %v14042_v60, 16  ;;  %v14044_v53 = vld [vmem:[#allocation2 + $0x64] sm:$0xf]  ;;  %v17692_v14 = vpop.f32.mrb[57].mxu1 }
 0x46b   : > { %v7269_v0 = vsel %vm20521_vm5, %v12293_v38, %v17550_v5  ;;  %v5785_v39 = vsel %vm14373_vm9, %v5780_v27, %v5784_v62  ;;  %v5770_v36 = vrot.slane %v5769_v58, 4  ;;  %7733 = vmatmul.mubr.bf16.gmra.mrb[76].mxu0 %v7335_v63  ;;  %v5792_v33 = vrot.slane %v5790_v51, 5  ;;  %v17696_v38 = vpop.f32.mrb[58].mxu1 }
 0x46c   : > { %v5798_v4 = vrot.slane %v5796_v1, 5  ;;  %v5802_v44 = vrot.slane %v5800_v21, 4  ;;  %v5806_v15 = vshll.u32 %v14043_v20, 16  ;;  %v5820_v37 = vshll.u32 %v14044_v53, 16  ;;  %v7195_v41 = vpop.permute.xlu0 %7194  ;;  %v17698_v58 = vpop.f32.mrb[59].mxu1 }
 0x46d   : > { %v5775_v17 = vsel %vm14373_vm9, %v5770_v36, %v5774_v54  ;;  %v5793_v5 = vor.u32 %v5792_v33, %v5789_v18  ;;  %v5824_v30 = vshrl.u32 %v14044_v53, 16  ;;  %vm20523_vm10 = vcmask 523264   ;;  %v14046_v33 = vld [vmem:[#allocation2 + $0x4c] sm:$0xf] }
 0x46e   : > { %v12349_v34 = vcombine.low %v5775_v17, %v5785_v39  ;;  %v5803_v16 = vor.u32 %v5802_v44, %v5798_v4  ;;  %v7305_v42 = vsel %vm20523_vm10, %v7269_v0, %v17486_v2  ;;  %v5811_v61 = vshrl.u32 %v14045_v45, 16  ;;  %vm20524_vm3 = vmmov %vm20523_vm10  ;;  %v14047_v44 = vld [vmem:[#allocation2 + $0x48] sm:$0xf]  ;;  %v17712_v17 = vpop.permute.xlu1 %6848 }
 0x46f   : > { %v5794_v27 = vrot.slane %v5793_v5, 4  ;;  %v5822_v54 = vrot.slane %v5820_v37, 5  ;;  %v5826_v62 = vrot.slane %v5824_v30, 4  ;;  %v5814_v47 = vshll.u32 %v14045_v45, 16 }
 0x470   : > { %v7381_v18 = vsel %vm20521_vm5, %v12349_v34, %v17492_v32  ;;  %v5804_v51 = vrot.slane %v5803_v16, 4  ;;  %v5808_v60 = vrot.slane %v5806_v15, 5  ;;  %v5813_v1 = vrot.slane %v5811_v61, 4  ;;  %v17714_v53 = vpop.permute.xlu0 %7044 }
 0x471   : > { %v7417_v2 = vsel %vm20524_vm3, %v7381_v18, %v17526_v28  ;;  %v5799_v0 = vsel %vm14373_vm9, %v5794_v27, %v5798_v4  ;;  %v5816_v63 = vrot.slane %v5814_v47, 5  ;;  %vm20525_vm10 = vcmask 785408   ;;  %v14048_v4 = vld [vmem:[#allocation2 + $0x68] sm:$0x1]  ;;  %v14049_v27 = vld [vmem:[#allocation2 + $0x6c] sm:$0xf] }
 0x472   : > { %v5809_v21 = vsel %vm14373_vm9, %v5804_v51, %v5808_v60  ;;  %v7450_v39 = vsel %vm20525_vm10, %v7417_v2, %v17640_v19  ;;  %v5827_v36 = vor.u32 %v5826_v62, %v5822_v54  ;;  %v12294_v32 = vcombine.low %v14047_v44, %v14046_v33  ;;  %vm20526_vm5 = vmmov %vm20525_vm10  ;;  %v17725_v61 = vpop.permute.xlu1 %6932  ;;  %v14050_v47 = vld [vmem:[#allocation2 + $0x70] sm:$0xf]  ;;  %v14051_v60 = vld [vmem:[#allocation2 + $0x58] sm:$0xf] }
 0x473   : > { %v12350_v20 = vcombine.low %v5799_v0, %v5809_v21  ;;  %7740 = vmatprep.mubr.bf16.mxu0 %v7450_v39  ;;  %v7338_v15 = vsel %vm20526_vm5, %v7305_v42, %v17520_v7  ;;  %v5817_v28 = vor.u32 %v5816_v63, %v5813_v1  ;;  %v5830_v5 = vshll.u32 %v14048_v4, 16  ;;  %v14052_v1 = vld [vmem:[#allocation2 + $0x54] sm:$0xf] }
 0x474   : > { %7741 = vmatmul.mubr.bf16.gmra.mrb[80].mxu0 %v7338_v15  ;;  %vm20527_vm3 = vcmask 261120   ;;  %vm20529_vm13 = vcmask 523264   ;;  %v5828_v34 = vrot.slane %v5827_v36, 4  ;;  %v5835_v62 = vshrl.u32 %v14049_v27, 16 }
 0x475   : > { %v7272_v19 = vsel %vm20527_vm3, %v12294_v32, %v17636_v56  ;;  %vm20528_vm10 = vmmov %vm20527_vm3  ;;  %v5818_v16 = vrot.slane %v5817_v28, 4  ;;  %v5832_v42 = vrot.slane %v5830_v5, 5  ;;  %v5838_v56 = vshll.u32 %v14049_v27, 16  ;;  %v14053_v5 = vld [vmem:[#allocation2 + $0x74] sm:$0x1] }
 0x476   : > { %v7384_v37 = vsel %vm20528_vm10, %v12350_v20, %v17586_v24  ;;  %vm20530_vm15 = vmmov %vm20529_vm13  ;;  %v5844_v18 = vshll.u32 %v14050_v47, 16  ;;  %v5848_v51 = vshrl.u32 %v14050_v47, 16  ;;  %v12295_v2 = vcombine.low %v14052_v1, %v14051_v60  ;;  %v6779_v44 = vpop.permute.xlu1 %6778  ;;  %v14057_v60 = vld [vmem:[#allocation2 + $0x78] sm:$0xf] }
 0x477   : > { %v7419_v30 = vsel %vm20529_vm13, %v7384_v37, %v17611_v13  ;;  %v7307_v45 = vsel %vm20530_vm15, %v7272_v19, %v17581_v31  ;;  %v5833_v24 = vsel %vm14373_vm9, %v5828_v34, %v5832_v42  ;;  %v5823_v13 = vsel %vm14373_vm9, %v5818_v16, %v5822_v54  ;;  %vm20531_vm15 = vmmov %vm20526_vm5  ;;  %v14054_v16 = vld [vmem:[#allocation2 + $0x64] sm:$0xf] }
 0x478   : > { %v7453_v7 = vsel %vm20526_vm5, %v7419_v30, %v7195_v41  ;;  %v7129_v41 = vpop.permute.xlu0 %7128  ;;  %v7341_v31 = vsel %vm20531_vm15, %v7307_v45, %v17600_v6  ;;  %vm20532_vm13 = vmmov %vm20527_vm3  ;;  %v12351_v63 = vcombine.low %v5823_v13, %v5833_v24  ;;  %v5837_v21 = vrot.slane %v5835_v62, 4  ;;  %v14056_v24 = vld [vmem:[#allocation2 + $0x7c] sm:$0xf] }
 0x479   : > { %7748 = vmatprep.mubr.bf16.mxu0 %v7453_v7  ;;  %v7275_v0 = vsel %vm20532_vm13, %v12295_v2, %v17690_v25  ;;  %v5840_v39 = vrot.slane %v5838_v56, 5  ;;  %v5846_v36 = vrot.slane %v5844_v18, 5  ;;  %v5850_v33 = vrot.slane %v5848_v51, 4  ;;  %vm20535_vm13 = vmmov %vm20531_vm15  ;;  %v6523_v18 = vld [vmem:[#allocation2 + $0xb4] sm:$0xe] }
 0x47a   : > { %v7387_v54 = vsel %vm20527_vm3, %v12351_v63, %v17657_v49  ;;  %vm20533_vm10 = vcmask 523264   ;;  %v5854_v19 = vshll.u32 %v14053_v5, 16  ;;  %v17746_v37 = vpop.permute.xlu1 %6850  ;;  %v5868_v13 = vshll.u32 %v14056_v24, 16  ;;  %v14058_v5 = vld [vmem:[#allocation2 + $0x80] sm:$0x1] }
 0x47b   : > { %v7421_v32 = vsel %vm20533_vm10, %v7387_v54, %v17678_v48  ;;  %vm20534_vm5 = vmmov %vm20533_vm10  ;;  %v5841_v28 = vor.u32 %v5840_v39, %v5837_v21  ;;  %v5851_v25 = vor.u32 %v5850_v33, %v5846_v36  ;;  %v5872_v47 = vshrl.u32 %v14056_v24, 16  ;;  %v14061_v24 = vld [vmem:[#allocation2 + $0x88] sm:$0xf] }
 0x47c   : > { %7749 = vmatmul.mubr.bf16.gmra.mrb[84].mxu0 %v7341_v31  ;;  %v7309_v6 = vsel %vm20534_vm5, %v7275_v0, %v17653_v3  ;;  %v5856_v34 = vrot.slane %v5854_v19, 5  ;;  %v14055_v3 = vld [vmem:[#allocation2 + $0x60] sm:$0xf]  ;;  %vm20536_vm10 = vmmov %vm20527_vm3  ;;  %v5859_v1 = vshrl.u32 %v14057_v60, 16  ;;  %v5862_v2 = vshll.u32 %v14057_v60, 16 }
 0x47d   : > { %v7344_v4 = vsel %vm20535_vm13, %v7309_v6, %v17673_v10  ;;  %v5842_v48 = vrot.slane %v5841_v28, 4  ;;  %v5852_v30 = vrot.slane %v5851_v25, 4  ;;  %v12296_v7 = vcombine.low %v14055_v3, %v14054_v16  ;;  %v14059_v3 = vld [vmem:[#allocation2 + $0x70] sm:$0xf]  ;;  %v14062_v60 = vld [vmem:[#allocation2 + $0x84] sm:$0xf] }
 0x47e   : > { %v17754_v27 = vpop.permute.xlu1 %6934  ;;  %v5870_v33 = vrot.slane %v5868_v13, 5  ;;  %v5878_v19 = vshll.u32 %v14058_v5, 16  ;;  %v5892_v13 = vshll.u32 %v14061_v24, 16 }
 0x47f   : > { %v7197_v20 = vpop.permute.xlu0 %7196  ;;  %v5847_v42 = vsel %vm14373_vm9, %v5842_v48, %v5846_v36  ;;  %v5857_v45 = vsel %vm14373_vm9, %v5852_v30, %v5856_v34  ;;  %v7278_v62 = vsel %vm20527_vm3, %v12296_v7, %v6779_v44  ;;  %v12287_v36 = vrot.slane %v6523_v18, 9  ;;  %vm20538_vm3 = vmmov %vm20535_vm13  ;;  %v14060_v7 = vld [vmem:[#allocation2 + $0x6c] sm:$0xf] }
 0x480   : > { %v7456_v15 = vsel %vm20531_vm15, %v7421_v32, %v7197_v20  ;;  %v12352_v56 = vcombine.low %v5847_v42, %v5857_v45  ;;  %v7311_v31 = vsel %vm20534_vm5, %v7278_v62, %v17712_v17  ;;  %vm20537_vm15 = vmmov %vm20534_vm5  ;;  %v5874_v44 = vrot.slane %v5872_v47, 4 }
 0x481   : > { %7756 = vmatprep.mubr.bf16.mxu0 %v7456_v15  ;;  %v7347_v54 = vsel %vm20538_vm3, %v7311_v31, %v17725_v61  ;;  %v5864_v32 = vrot.slane %v5862_v2, 5  ;;  %v6659_v20 = vrot.slane %v17626_v11, 5  ;;  %v6662_v17 = vrot.slane %v17634_v23, 5  ;;  %vm20539_vm5 = vmmov %vm20536_vm10 }
 0x482   : > { %v7390_v51 = vsel %vm20536_vm10, %v12352_v56, %v17714_v53  ;;  %v5861_v53 = vrot.slane %v5859_v1, 4  ;;  %v5875_v15 = vor.u32 %v5874_v44, %v5870_v33  ;;  %v5880_v30 = vrot.slane %v5878_v19, 5 }
 0x483   : > { %v17744_v49 = vpop.permute.xlu0 %7046  ;;  %v7423_v0 = vsel %vm20537_vm15, %v7390_v51, %v7129_v41  ;;  %v6781_v21 = vpop.permute.xlu1 %6780  ;;  %v6660_v41 = vsel %vm14364_vm6, %v12287_v36, %v6659_v20  ;;  %v6661_v6 = vrot.slane %v6659_v20, 4  ;;  %v12297_v42 = vcombine.low %v14060_v7, %v14059_v3  ;;  %vm20540_vm15 = vmmov %vm20539_vm5 }
 0x484   : > { %7757 = vmatmul.mubr.bf16.gmra.mrb[88].mxu0 %v7344_v4  ;;  %v5865_v28 = vor.u32 %v5864_v32, %v5861_v53  ;;  %v5876_v11 = vrot.slane %v5875_v15, 4  ;;  %v5896_v47 = vshrl.u32 %v14061_v24, 16  ;;  %v5883_v1 = vshrl.u32 %v14062_v60, 16 }
 0x485   : > { %v6663_v4 = vsel %vm14364_vm6, %v6661_v6, %v6662_v17  ;;  %v5886_v2 = vshll.u32 %v14062_v60, 16  ;;  %v5894_v36 = vrot.slane %v5892_v13, 5  ;;  %v5916_v15 = vshll.u32 %v17383_v35, 16 }
 0x486   : > { %v12413_v61 = vcombine.low %v6660_v41, %v6663_v4  ;;  %v5866_v23 = vrot.slane %v5865_v28, 4  ;;  %v5881_v62 = vsel %vm14373_vm9, %v5876_v11, %v5880_v30  ;;  %v5885_v44 = vrot.slane %v5883_v1, 4 }
 0x487   : > { %v17752_v10 = vpop.permute.xlu0 %7130  ;;  %v17769_v25 = vpop.permute.xlu1 %6852  ;;  %v5888_v53 = vrot.slane %v5886_v2, 5  ;;  %v5907_v4 = vshrl.u32 %v17381_v12, 16  ;;  %v5918_v11 = vrot.slane %v5916_v15, 5  ;;  %v5926_v2 = vshll.u32 %v17402_v55, 16  ;;  %v14066_v15 = vld [vmem:[#allocation2 + $0x84] sm:$0xf] }
 0x488   : > { %13222 = vmatmul.mubr.msk.bf16.gmra.mrb[76].mxu1 %vm20536_vm10, %v12413_v61  ;;  %v5871_v56 = vsel %vm14373_vm9, %v5866_v23, %v5870_v33  ;;  %vm20543_vm10 = vcmask 785408   ;;  %v5944_v55 = vshrl.u32 %v17481_v57, 16 }
 0x489   : > { %v5889_v28 = vor.u32 %v5888_v53, %v5885_v44  ;;  %v5909_v3 = vrot.slane %v5907_v4, 4 }
 0x48b   : > { %v17776_v34 = vpop.permute.xlu1 %6936  ;;  %v5890_v23 = vrot.slane %v5889_v28, 4  ;;  %v14067_v28 = vld [vmem:[#allocation2 + $0x88] sm:$0xf] }
 0x48e   : > { %v7199_v63 = vpop.permute.xlu0 %7198 }
 0x48f   : > { %v7459_v39 = vsel %vm20535_vm13, %v7423_v0, %v7199_v63  ;;  %v7281_v0 = vsel %vm20539_vm5, %v12297_v42, %v6781_v21  ;;  %v12353_v63 = vcombine.low %v5871_v56, %v5881_v62  ;;  %vm20541_vm13 = vcmask 523264   ;;  %vm20544_vm5 = vmmov %vm20543_vm10  ;;  %v14064_v42 = vld [vmem:[#allocation2 + $0x7c] sm:$0xf]  ;;  %v14065_v62 = vld [vmem:[#allocation2 + $0x78] sm:$0xf] }
 0x490   : > { %7764 = vmatprep.mubr.bf16.mxu0 %v7459_v39  ;;  %v6783_v39 = vpop.permute.xlu1 %6782  ;;  %v7313_v32 = vsel %vm20541_vm13, %v7281_v0, %v17746_v37  ;;  %vm20542_vm3 = vmmov %vm20541_vm13  ;;  %v5910_v37 = vshll.u32 %v17381_v12, 16  ;;  %v12298_v56 = vcombine.low %v14065_v62, %v14064_v42  ;;  %v5895_v12 = vsel %vm14373_vm9, %v5890_v23, %v5894_v36 }
 0x491   : > { %7765 = vmatmul.mubr.bf16.gmra.mrb[92].mxu0 %v7347_v54  ;;  %v5898_v54 = vrot.slane %v5896_v47, 4  ;;  %v7393_v33 = vsel %vm20540_vm15, %v12353_v63, %v17744_v49  ;;  %v7350_v21 = vsel %vm20544_vm5, %v7313_v32, %v17754_v27  ;;  %v5920_v49 = vshrl.u32 %v17383_v35, 16  ;;  %vm20545_vm13 = vmmov %vm20540_vm15 }
 0x492   : > { %v17773_v48 = vpop.permute.xlu0 %7048  ;;  %v7425_v20 = vsel %vm20542_vm3, %v7393_v33, %v17752_v10  ;;  %v14063_v10 = vld [vmem:[#allocation2 + $0x8c] sm:$0x1]  ;;  %v5912_v7 = vrot.slane %v5910_v37, 5  ;;  %v7284_v1 = vsel %vm20540_vm15, %v12298_v56, %v6783_v39  ;;  %v5940_v39 = vshll.u32 %v17481_v57, 16  ;;  %vm20547_vm15 = vmmov %vm20544_vm5 }
 0x493   : > { %v5899_v6 = vor.u32 %v5898_v54, %v5894_v36  ;;  %v5902_v5 = vshll.u32 %v14063_v10, 16  ;;  %v5922_v30 = vrot.slane %v5920_v49, 4  ;;  %v7315_v53 = vsel %vm20542_vm3, %v7284_v1, %v17769_v25  ;;  %vm20550_vm2 = vmmov %vm20547_vm15 }
 0x494   : > { %v5913_v60 = vor.u32 %v5912_v7, %v5909_v3  ;;  %v5928_v36 = vrot.slane %v5926_v2, 5  ;;  %v7353_v25 = vsel %vm20547_vm15, %v7315_v53, %v17776_v34  ;;  %v12299_v49 = vcombine.low %v14066_v15, %v14067_v28 }
 0x495   : > { %v5900_v19 = vrot.slane %v5899_v6, 4  ;;  %v5904_v27 = vrot.slane %v5902_v5, 5  ;;  %v5923_v13 = vor.u32 %v5922_v30, %v5918_v11  ;;  %v5942_v37 = vrot.slane %v5940_v39, 5  ;;  %v14069_v39 = vld [vmem:[#allocation2 + $0x94] sm:$0xf] }
 0x496   : > { %v7133_v18 = vpop.permute.xlu0 %7132  ;;  %v5914_v54 = vrot.slane %v5913_v60, 4  ;;  %v5946_v10 = vrot.slane %v5944_v55, 4  ;;  %v5950_v56 = vshll.u32 %v17538_v43, 16  ;;  %v5955_v60 = vshrl.u32 %v17579_v46, 16 }
 0x497   : > { %v5905_v35 = vsel %vm14373_vm9, %v5900_v19, %v5904_v27  ;;  %v5924_v63 = vrot.slane %v5923_v13, 4  ;;  %v5958_v1 = vshll.u32 %v17579_v46, 16  ;;  %v5974_v28 = vshll.u32 %v17595_v9, 16 }
 0x498   : > { %v12354_v0 = vcombine.low %v5895_v12, %v5905_v35  ;;  %v5947_v27 = vor.u32 %v5946_v10, %v5942_v37  ;;  %v5964_v12 = vshll.u32 %v17584_v8, 16 }
 0x499   : > { %v17778_v16 = vpop.f32.mrb[60].mxu1  ;;  %v6785_v61 = vpop.permute.xlu1 %6784  ;;  %v5929_v6 = vsel %vm14373_vm9, %v5924_v63, %v5928_v36  ;;  %v5952_v63 = vrot.slane %v5950_v56, 5  ;;  %v5957_v36 = vrot.slane %v5955_v60, 4  ;;  %v8519_v60 = vld [vmem:[#allocation2 + $0x4] sm:$0xf] }
 0x49a   : > { %v17780_v45 = vpop.f32.mrb[61].mxu1  ;;  %v7396_v33 = vsel %vm20545_vm13, %v12354_v0, %v17773_v48  ;;  %v5919_v48 = vsel %vm14373_vm9, %v5914_v54, %v5918_v11 }
 0x49b   : > { %v17786_v51 = vpop.f32.mrb[62].mxu1  ;;  %v12355_v57 = vcombine.low %v5919_v48, %v5929_v6 }
 0x49c   : > { %v17788_v31 = vpop.f32.mrb[63].mxu1 }
 0x49d   : > { %v6855_v24 = vpop.permute.xlu1 %6854 }
 0x4a1   : > { %v6939_v44 = vpop.permute.xlu1 %6938 }
 0x4a3   : > { %v7201_v17 = vpop.permute.xlu0 %7200 }
 0x4a4   : > { %v7462_v41 = vsel %vm20543_vm10, %v7425_v20, %v7201_v17  ;;  %vm20546_vm10 = vmmov %vm20542_vm3 }
 0x4a5   : > { %7772 = vmatprep.mubr.bf16.mxu0 %v7462_v41  ;;  %v7427_v32 = vsel %vm20546_vm10, %v7396_v33, %v7133_v18  ;;  %v5931_v41 = vshrl.u32 %v17479_v50, 16  ;;  %v5934_v18 = vshll.u32 %v17479_v50, 16  ;;  %vm20548_vm3 = vmmov %vm20545_vm13  ;;  %v5966_v33 = vrot.slane %v5964_v12, 5 }
 0x4a6   : > { %7773 = vmatmul.mubr.bf16.gmra.mrb[96].mxu0 %v7350_v21  ;;  %v7287_v11 = vsel %vm20548_vm3, %v12299_v49, %v6785_v61  ;;  %v5968_v61 = vshrl.u32 %v17584_v8, 16 }
 0x4a7   : > { %v7051_v47 = vpop.permute.xlu0 %7050  ;;  %v5933_v5 = vrot.slane %v5931_v41, 4  ;;  %v5936_v19 = vrot.slane %v5934_v18, 5 }
 0x4a8   : > { %v7399_v23 = vsel %vm20545_vm13, %v12355_v57, %v7051_v47  ;;  %v5948_v47 = vrot.slane %v5947_v27, 4 }
 0x4a9   : > { %v5937_v42 = vor.u32 %v5936_v19, %v5933_v5  ;;  %v5976_v19 = vrot.slane %v5974_v28, 5 }
 0x4aa   : > { %v5953_v8 = vsel %vm14373_vm9, %v5948_v47, %v5952_v63 }
 0x4ac   : > { %v6787_v4 = vpop.permute.xlu1 %6786 }
 0x4b4   : > { %v6857_v62 = vpop.permute.xlu1 %6856 }
 0x4b5   : > { %v7203_v20 = vpop.permute.xlu0 %7202 }
 0x4b6   : > { %v7465_v17 = vsel %vm20544_vm5, %v7427_v32, %v7203_v20  ;;  %vm20549_vm5 = vmmov %vm20546_vm10  ;;  %v5960_v20 = vrot.slane %v5958_v1, 5  ;;  %v8546_v1 = vld [vmem:[#allocation2 + $0x8] sm:$0x1] }
 0x4b7   : > { %7780 = vmatprep.mubr.bf16.mxu0 %v7465_v17  ;;  %v7317_v50 = vsel %vm20549_vm5, %v7287_v11, %v6855_v24  ;;  %v5938_v24 = vrot.slane %v5937_v42, 4  ;;  %v14068_v17 = vld [vmem:[#allocation2 + $0x90] sm:$0xf] }
 0x4b8   : > { %7781 = vmatmul.mubr.bf16.gmra.mrb[100].mxu0 %v7353_v25  ;;  %v7356_v7 = vsel %vm20550_vm2, %v7317_v50, %v6939_v44  ;;  %v6941_v43 = vpop.permute.xlu1 %6940  ;;  %v5970_v44 = vrot.slane %v5968_v61, 4  ;;  %v12300_v55 = vcombine.low %v14068_v17, %v14069_v39  ;;  %v5961_v6 = vor.u32 %v5960_v20, %v5957_v36  ;;  %vm20551_vm2 = vmmov %vm20548_vm3 }
 0x4b9   : > { %v7135_v21 = vpop.permute.xlu0 %7134  ;;  %v5943_v53 = vsel %vm14373_vm9, %v5938_v24, %v5942_v37  ;;  %vm20552_vm13 = vmmov %vm20551_vm2  ;;  %v12301_v50 = vcombine.low %v17498_v59, %v17504_v52  ;;  %v8518_v24 = vld [vmem:[#allocation2] sm:$0xf] }
 0x4ba   : > { %v7429_v30 = vsel %vm20546_vm10, %v7399_v23, %v7135_v21  ;;  %v12356_v46 = vcombine.low %v5943_v53, %v5953_v8  ;;  %v5971_v41 = vor.u32 %v5970_v44, %v5966_v33  ;;  %v7290_v18 = vsel %vm20552_vm13, %v12300_v55, %v6787_v4  ;;  %vm20553_vm3 = vmmov %vm20549_vm5 }
 0x4bb   : > { %vm20554_vm10 = vmmov %vm20553_vm3  ;;  %v5962_v5 = vrot.slane %v5961_v6, 4  ;;  %v8561_v63 = vshrl.u32 %v8518_v24, 16  ;;  %v8574_v44 = vshrl.u32 %v8519_v60, 16  ;;  %v8580_v8 = vshll.u32 %v8546_v1, 16 }
 0x4bc   : > { %v7319_v49 = vsel %vm20554_vm10, %v7290_v18, %v6857_v62  ;;  %vm20555_vm5 = vmmov %vm20547_vm15  ;;  %v5972_v10 = vrot.slane %v5971_v41, 4  ;;  %v8954_v18 = vrot.slane %v8519_v60, 5 }
 0x4bd   : > { %v7205_v34 = vpop.permute.xlu0 %7204  ;;  %vm20557_vm13 = vmmov %vm20551_vm2  ;;  %v8563_v53 = vrot.slane %v8561_v63, 4  ;;  %v8576_v20 = vrot.slane %v8574_v44, 4  ;;  %v8582_v39 = vrot.slane %v8580_v8, 5 }
 0x4be   : > { %v7468_v3 = vsel %vm20547_vm15, %v7429_v30, %v7205_v34  ;;  %vm20556_vm15 = vmmov %vm20555_vm5  ;;  %v5977_v4 = vsel %vm14373_vm9, %v5972_v10, %v5976_v19  ;;  %v5967_v30 = vsel %vm14373_vm9, %v5962_v5, %v5966_v33  ;;  %v8570_v33 = vshll.u32 %v8519_v60, 16 }
 0x4bf   : > { %7788 = vmatprep.mubr.bf16.mxu0 %v7468_v3  ;;  %v6789_v48 = vpop.permute.xlu1 %6788  ;;  %v7359_v37 = vsel %vm20556_vm15, %v7319_v49, %v6941_v43  ;;  %v12357_v34 = vcombine.low %v5967_v30, %v5977_v4  ;;  %vm20558_vm10 = vmmov %vm20553_vm3  ;;  %v8564_v43 = vshll.u32 %v8518_v24, 16  ;;  %v8956_v5 = vrot.slane %v8954_v18, 4  ;;  %v17897_v30 = vld [vmem:[%s20199_s4 + $0x1] ss:$0 sm:$0xff] }
 0x4c0   : > { %7789 = vmatmul.mubr.bf16.gmra.mrb[104].mxu0 %v7356_v7  ;;  %v7293_v27 = vsel %vm20557_vm13, %v12301_v50, %v6789_v48  ;;  %vm20559_vm15 = vmmov %vm20555_vm5  ;;  %v8572_v36 = vrot.slane %v8570_v33, 5 }
 0x4c1   : > { %v7053_v35 = vpop.permute.xlu0 %7052  ;;  %v17835_v13 = vpop.f32.mrb[64].mxu1 }
 0x4c2   : > { %v17839_v2 = vpop.f32.mrb[65].mxu1  ;;  %v7402_v25 = vsel %vm20551_vm2, %v12356_v46, %v7053_v35  ;;  %v8577_v17 = vor.u32 %v8576_v20, %v8572_v36 }
 0x4c3   : > { %v17841_v0 = vpop.f32.mrb[66].mxu1  ;;  %v6859_v11 = vpop.permute.xlu1 %6858 }
 0x4c4   : > { %v17843_v54 = vpop.f32.mrb[67].mxu1  ;;  %v7321_v56 = vsel %vm20558_vm10, %v7293_v27, %v6859_v11  ;;  %v8578_v6 = vrot.slane %v8577_v17, 4 }
 0x4c5   : > { %v7137_v32 = vpop.permute.xlu0 %7136 }
 0x4c6   : > { %v7431_v21 = vsel %vm20553_vm3, %v7402_v25, %v7137_v32  ;;  %v8566_v32 = vrot.slane %v8564_v43, 5  ;;  %v8896_v25 = vld [vmem:[#allocation2] sm:$0xe]  ;;  %v8583_v49 = vsel %vm14373_vm9, %v8578_v6, %v8582_v39  ;;  %v20561_v39 = vld [vmem:[#allocation41_spill] sm:$0xff] }
 0x4c7   : > { %v6943_v3 = vpop.permute.xlu1 %6942 }
 0x4c8   : > { %v7362_v61 = vsel %vm20559_vm15, %v7321_v56, %v6943_v3  ;;  %v8567_v46 = vor.u32 %v8566_v32, %v8563_v53 }
 0x4ca   : > { %v8568_v41 = vrot.slane %v8567_v46, 4 }
 0x4cc   : > { %v8573_v28 = vsel %vm14373_vm9, %v8568_v41, %v8572_v36 }
 0x4cd   : > { %v12581_v10 = vcombine.low %v8573_v28, %v8583_v49 }
 0x4ce   : > { %v7207_v15 = vpop.permute.xlu0 %7206 }
 0x4cf   : > { %v7471_v57 = vsel %vm20555_vm5, %v7431_v21, %v7207_v15  ;;  %v8957_v21 = vrot.slane %v8546_v1, 5  ;;  %10212 = vrot.lane.b32.xlu1 %v12581_v10, %s14228_s12 }
 0x4d0   : > { %7796 = vmatprep.mubr.bf16.mxu0 %v7471_v57  ;;  %v12525_v57 = vrot.slane %v8896_v25, 9  ;;  %v13480_v25 = vld [vmem:[%s20198_s3 + $0x1a8] sm:$0xff]  }
 0x4d1   : > { %7797 = vmatmul.mubr.bf16.gmra.mrb[108].mxu0 %v7359_v37 }
 0x4d2   : > { %v7055_v23 = vpop.permute.xlu0 %7054  ;;  %v8955_v19 = vsel %vm14364_vm6, %v12525_v57, %v8954_v18 }
 0x4d3   : > { %v7405_v7 = vsel %vm20551_vm2, %v12357_v34, %v7055_v23  ;;  %v8958_v23 = vsel %vm14364_vm6, %v8956_v5, %v8957_v21  ;;  %v13477_v34 = vld [vmem:[%s20198_s3 + $0x1a0] sm:$0xff]   ;;  %v20562_v21 = vld [vmem:[#allocation47_spill] sm:$0xff]  ;;  %vm20566_vm2 = vcmask 257024  }
 0x4d4   : > { %v12595_v11 = vcombine.low %v8955_v19, %v8958_v23  ;;  %13225 = vmatprep.subr.bf16.mxu0 %v13477_v34  ;;  %vm20567_vm13 = vmmov %vm20566_vm2 }
 0x4d5   : > { %13226 = vmatpush3.bf16.msra.mxu0 %v13477_v34  ;;  %vm20571_vm10 = vmmov %vm20566_vm2 }
 0x4d6   : > { %v7139_v9 = vpop.permute.xlu0 %7138  ;;  %10282 = vrot.lane.b32.xlu1 %v12595_v11, %s14227_s10  ;;  %13227 = vmatprep.subr.bf16.mxu0 %v13480_v25 }
 0x4d7   : > { %v7433_v42 = vsel %vm20553_vm3, %v7405_v7, %v7139_v9  ;;  %vm20570_vm3 = vmmov %vm20566_vm2 }
 0x4d9   : > { %13228 = vmatpush3.bf16.msra.mxu0 %v13480_v25 }
 0x4da   : > { %v7209_v62 = vpop.permute.xlu0 %7208  ;;  %v17867_v12 = vpop.f32.mrb[68].mxu1 }
 0x4db   : > { %v7474_v35 = vsel %vm20555_vm5, %v7433_v42, %v7209_v62  ;;  %v17870_v47 = vpop.f32.mrb[69].mxu1  ;;  %vm20576_vm5 = vmmov %vm20566_vm2 }
 0x4dc   : > { %7804 = vmatprep.mubr.bf16.mxu0 %v7474_v35  ;;  %v17872_v59 = vpop.f32.mrb[70].mxu1 }
 0x4dd   : > { %7805 = vmatmul.mubr.bf16.gmra.mrb[112].mxu0 %v7362_v61  ;;  %v17874_v52 = vpop.f32.mrb[71].mxu1  ;;  %v20560_v61 = vld [vmem:[#allocation39_spill] sm:$0xff] }
 0x4ef   : > { %v17876_v55 = vpop.f32.mrb[72].mxu1 }
 0x4f0   : > { %v17878_v48 = vpop.f32.mrb[73].mxu1 }
 0x4f1   : > { %v17880_v15 = vpop.f32.mrb[74].mxu1 }
 0x4f2   : > { %v17886_v37 = vpop.f32.mrb[75].mxu1 }
 0x506   : > { %v12915_v4 = vpop.f32.mrb[60].mxu0 }
 0x507   : > { %v12916_v9 = vpop.f32.mrb[61].mxu0 }
 0x508   : > { %v12917_v50 = vadd.f32 %v12916_v9, %v12915_v4  ;;  %v12918_v3 = vpop.f32.mrb[62].mxu0 }
 0x509   : > { %v12919_v7 = vpop.f32.mrb[63].mxu0 }
 0x50a   : > { %v7703_v27 = vadd.f32 %v12917_v50, %v17897_v30  ;;  %v12920_v42 = vadd.f32 %v12919_v7, %v12918_v3 }
 0x50c   : > { %v7848_v62 = vadd.f32 %v17514_v29, %v7703_v27  ;;  %v7706_v56 = vadd.f32 %v12920_v42, %v17897_v30 }
 0x50e   : > { %v7958_v35 = vsub.f32 0.0, %v7848_v62  ;;  %v7851_v24 = vadd.f32 %v20560_v61, %v7706_v56 }
 0x510   : > { %v7986_v60 = vmul.f32 1.442695, %v7958_v35  ;;  %v7959_v1 = vsub.f32 0.0, %v7851_v24 }
 0x512   : > { %13750 = vpow2.f32 %v7986_v60  ;;  %v7988_v63 = vmul.f32 1.442695, %v7959_v1 }
 0x514   : > { %13752 = vpow2.f32 %v7988_v63 }
 0x51c   : > { %v13751_v43 = vpop.eup %13750 }
 0x51d   : > { %v8042_v33 = vadd.f32 1.0, %v13751_v43 }
 0x51e   : > { %v13753_v44 = vpop.eup %13752 }
 0x51f   : > { %v12921_v8 = vpop.f32.mrb[64].mxu0  ;;  %13754 = vrcp.f32 %v8042_v33  ;;  %v8043_v53 = vadd.f32 1.0, %v13753_v44 }
 0x520   : > { %v12922_v32 = vpop.f32.mrb[65].mxu0 }
 0x521   : > { %v12923_v36 = vadd.f32 %v12922_v32, %v12921_v8  ;;  %v12924_v20 = vpop.f32.mrb[66].mxu0  ;;  %13756 = vrcp.f32 %v8043_v53 }
 0x522   : > { %v12925_v29 = vpop.f32.mrb[67].mxu0 }
 0x523   : > { %v7711_v46 = vadd.f32 %v12923_v36, %v17897_v30  ;;  %v12926_v17 = vadd.f32 %v12925_v29, %v12924_v20 }
 0x525   : > { %v17908_v41 = vadd.f32 %v20561_v39, %v7711_v46  ;;  %v7714_v6 = vadd.f32 %v12926_v17, %v17897_v30 }
 0x527   : > { %v7960_v18 = vsub.f32 0.0, %v17908_v41  ;;  %v17916_v28 = vadd.f32 %v20562_v21, %v7714_v6 }
 0x529   : > { %v7990_v49 = vmul.f32 1.442695, %v7960_v18  ;;  %v7961_v57 = vsub.f32 0.0, %v17916_v28  ;;  %v13755_v10 = vpop.eup %13754 }
 0x52a   : > { %v8098_v5 = vmul.f32 %v13755_v10, %v7848_v62 }
 0x52b   : > { %13758 = vpow2.f32 %v7990_v49  ;;  %v7992_v19 = vmul.f32 1.442695, %v7961_v57  ;;  %v13757_v23 = vpop.eup %13756  ;;  %v12927_v11 = vpop.f32.mrb[68].mxu0 }
 0x52c   : > { %v8099_v4 = vmul.f32 %v13757_v23, %v7851_v24  ;;  %v12928_v9 = vpop.f32.mrb[69].mxu0  ;;  %v8126_v7 = vsel %vm14502_vm8, %v8098_v5, 0.0 }
 0x52d   : > { %13760 = vpow2.f32 %v7992_v19  ;;  %v12929_v34 = vadd.f32 %v12928_v9, %v12927_v11  ;;  %v12930_v50 = vpop.f32.mrb[70].mxu0 }
 0x52e   : > { %v8127_v27 = vsel %vm14502_vm8, %v8099_v4, 0.0  ;;  %v12931_v42 = vpop.f32.mrb[71].mxu0  ;;  %vm20565_vm8 = vcmask 253952  }
 0x52f   : > { %v8154_v56 = vpack.c.bf16 %v8127_v27, %v8126_v7  ;;  %v7719_v35 = vadd.f32 %v12929_v34, %v17897_v30  ;;  %v12932_v62 = vadd.f32 %v12931_v42, %v12930_v50 }
 0x531   : > { %v8169_v61 = vshrl.u32 %v8154_v56, 16  ;;  %v17925_v60 = vadd.f32 %v17692_v14, %v7719_v35  ;;  %v7722_v24 = vadd.f32 %v12932_v62, %v17897_v30  ;;  %v8172_v63 = vshll.u32 %v8154_v56, 16 }
 0x533   : > { %v8171_v1 = vrot.slane %v8169_v61, 7  ;;  %v7962_v43 = vsub.f32 0.0, %v17925_v60  ;;  %v17930_v33 = vadd.f32 %v17698_v58, %v7722_v24 }
 0x535   : > { %v13759_v44 = vpop.eup %13758  ;;  %v8174_v8 = vor.u32 %v8172_v63, %v8171_v1  ;;  %v8308_v32 = vsel %vm14549_vm11, %v8171_v1, 0  ;;  %v7994_v20 = vmul.f32 1.442695, %v7962_v43  ;;  %v7963_v17 = vsub.f32 0.0, %v17930_v33 }
 0x536   : > { %v8044_v36 = vadd.f32 1.0, %v13759_v44  ;;  %v12933_v29 = vpop.f32.mrb[72].mxu0  ;;  %v12485_v14 = vcombine.low %v8308_v32, %v8308_v32 }
 0x537   : > { %v13761_v46 = vpop.eup %13760  ;;  %v12934_v39 = vpop.f32.mrb[73].mxu0  ;;  %v8294_v6 = vsel %vm14549_vm11, 0, %v8174_v8  ;;  %v7996_v57 = vmul.f32 1.442695, %v7963_v17 }
 0x538   : > { %13762 = vrcp.f32 %v8044_v36  ;;  %v8045_v25 = vadd.f32 1.0, %v13761_v46  ;;  %v12935_v58 = vadd.f32 %v12934_v39, %v12933_v29  ;;  %v12936_v18 = vpop.f32.mrb[74].mxu0  ;;  %v12483_v21 = vcombine.low %v8294_v6, %v8294_v6  ;;  %8478 = vst.msk [vmem:[#allocation2 + $0x14] sm:$0x1] %vm20565_vm8, %v12485_v14 }
 0x539   : > { %v12484_v49 = vcombine.high %v8294_v6, %v8294_v6  ;;  %13764 = vpow2.f32 %v7994_v20  ;;  %v12937_v10 = vpop.f32.mrb[75].mxu0 }
 0x53a   : > { %13766 = vrcp.f32 %v8045_v25  ;;  %v7727_v5 = vadd.f32 %v12935_v58, %v17897_v30  ;;  %v12938_v19 = vadd.f32 %v12937_v10, %v12936_v18  ;;  %8476 = vst.msk [vmem:[#allocation2 + $0xc] sm:$0xf] %vm20567_vm13, %v12483_v21  ;;  %vm20583_vm13 = vcmask 261120  }
 0x53b   : > { %8477 = vst.msk [vmem:[#allocation2 + $0x10] sm:$0xf] %vm20566_vm2, %v12484_v49  ;;  %13768 = vpow2.f32 %v7996_v57 }
 0x53c   : > { %v17942_v23 = vadd.f32 %v17686_v22, %v7727_v5  ;;  %v7730_v11 = vadd.f32 %v12938_v19, %v17897_v30 }
 0x53e   : > { %v7964_v4 = vsub.f32 0.0, %v17942_v23  ;;  %v17947_v9 = vadd.f32 %v17696_v38, %v7730_v11  ;;  %v12939_v34 = vpop.f32.mrb[76].mxu0 }
 0x53f   : > { %v12940_v50 = vpop.f32.mrb[77].mxu0  ;;  %v9078_v35 = vld [vmem:[#allocation2 + $0x14] sm:$0x1] }
 0x540   : > { %v7998_v3 = vmul.f32 1.442695, %v7964_v4  ;;  %v7965_v7 = vsub.f32 0.0, %v17947_v9  ;;  %v12941_v27 = vadd.f32 %v12940_v50, %v12939_v34  ;;  %v12942_v42 = vpop.f32.mrb[78].mxu0  ;;  %v9489_v17 = vrot.slane %v9078_v35, 5 }
 0x541   : > { %v12943_v56 = vpop.f32.mrb[79].mxu0  ;;  %v9050_v1 = vld [vmem:[#allocation2 + $0xc] sm:$0xf] }
 0x542   : > { %v13763_v62 = vpop.eup %13762  ;;  %13770 = vpow2.f32 %v7998_v3  ;;  %v8000_v22 = vmul.f32 1.442695, %v7965_v7  ;;  %v7735_v61 = vadd.f32 %v12941_v27, %v17897_v30  ;;  %v12944_v24 = vadd.f32 %v12943_v56, %v12942_v42  ;;  %v9051_v63 = vld [vmem:[#allocation2 + $0x10] sm:$0xf]  ;;  %v9428_v29 = vld [vmem:[#allocation2 + $0xc] sm:$0xe] }
 0x543   : > { %v13765_v43 = vpop.eup %13764  ;;  %v8100_v38 = vmul.f32 %v13763_v62, %v17908_v41  ;;  %v12609_v44 = vcombine.low %v9050_v1, %v9051_v63  ;;  %v17962_v25 = vld [vmem:[#allocation2 + $0x10] sm:$0xf]  ;;  %v12539_v49 = vrot.slane %v9428_v29, 9  ;;  %v9486_v57 = vrot.slane %v9051_v63, 5  ;;  %v8520_v1 = vld [vmem:[#allocation2 + $0xc] sm:$0xf] }
 0x544   : > { %v13767_v8 = vpop.eup %13766  ;;  %v8046_v32 = vadd.f32 1.0, %v13765_v43  ;;  %13772 = vpow2.f32 %v8000_v22  ;;  %v17953_v36 = vadd.f32 %v17780_v45, %v7735_v61  ;;  %v7738_v20 = vadd.f32 %v12944_v24, %v17897_v30  ;;  %v8897_v45 = vld [vmem:[#allocation2 + $0xc] sm:$0xe]  ;;  %v17975_v24 = vld [vmem:[#allocation2 + $0x14] sm:$0x1] }
 0x545   : > { %v13769_v46 = vpop.eup %13768  ;;  %v8101_v14 = vmul.f32 %v13767_v8, %v17916_v28  ;;  %10366 = vrot.lane.b32.xlu1 %v12609_v44, %s14229_s17  ;;  %v8128_v18 = vsel %vm14489_vm7, %v8100_v38, 0.0  ;;  %v9488_v34 = vrot.slane %v9486_v57, 4  ;;  %v12526_v50 = vrot.slane %v8897_v45, 9 }
 0x546   : > { %13774 = vrcp.f32 %v8046_v32  ;;  %v8047_v39 = vadd.f32 1.0, %v13769_v46  ;;  %v7966_v41 = vsub.f32 0.0, %v17953_v36  ;;  %v17960_v6 = vadd.f32 %v17788_v31, %v7738_v20 }
 0x547   : > { %v8129_v21 = vsel %vm14489_vm7, %v8101_v14, 0.0  ;;  %v12945_v28 = vpop.f32.mrb[80].mxu0  ;;  %v8961_v3 = vrot.slane %v17962_v25, 5  ;;  %v9487_v56 = vsel %vm14364_vm6, %v12539_v49, %v9486_v57  ;;  %v9490_v61 = vsel %vm14364_vm6, %v9488_v34, %v9489_v17  ;;  %vm20569_vm7 = vmmov %vm20565_vm8 }
 0x548   : > { %v8155_v10 = vpack.c.bf16 %v8129_v21, %v8128_v18  ;;  %13776 = vrcp.f32 %v8047_v39  ;;  %v8002_v5 = vmul.f32 1.442695, %v7966_v41  ;;  %v7967_v19 = vsub.f32 0.0, %v17960_v6  ;;  %v12946_v11 = vpop.f32.mrb[81].mxu0  ;;  %vm20578_vm15 = vmmov %vm20569_vm7 }
 0x549   : > { %v12947_v31 = vadd.f32 %v12946_v11, %v12945_v28  ;;  %v12948_v4 = vpop.f32.mrb[82].mxu0  ;;  %v12637_v38 = vcombine.low %v9487_v56, %v9490_v61  ;;  %v8963_v44 = vrot.slane %v8961_v3, 4  ;;  %v8962_v29 = vsel %vm14364_vm6, %v12526_v50, %v8961_v3  ;;  %vm20580_vm8 = vmmov %vm20566_vm2 }
 0x54a   : > { %v8176_v7 = vshrl.u32 %v8155_v10, 16  ;;  %13778 = vpow2.f32 %v8002_v5  ;;  %v8004_v27 = vmul.f32 1.442695, %v7967_v19  ;;  %v12949_v42 = vpop.f32.mrb[83].mxu0  ;;  %v8179_v35 = vshll.u32 %v8155_v10, 16 }
 0x54b   : > { %v7743_v62 = vadd.f32 %v12947_v31, %v17897_v30  ;;  %v12950_v22 = vadd.f32 %v12949_v42, %v12948_v4  ;;  %10478 = vrot.lane.b32.xlu0 %v12637_v38, %s14228_s12  ;;  %v8964_v39 = vrot.slane %v17975_v24, 5  ;;  %v8585_v41 = vshrl.u32 %v8520_v1, 16 }
 0x54c   : > { %v13771_v63 = vpop.eup %13770  ;;  %v8178_v43 = vrot.slane %v8176_v7, 7  ;;  %13780 = vpow2.f32 %v8004_v27  ;;  %v8588_v5 = vshll.u32 %v8520_v1, 16 }
 0x54d   : > { %v8048_v8 = vadd.f32 1.0, %v13771_v63  ;;  %v17978_v32 = vadd.f32 %v17778_v16, %v7743_v62  ;;  %v7746_v20 = vadd.f32 %v12950_v22, %v17897_v30  ;;  %v8965_v57 = vsel %vm14364_vm6, %v8963_v44, %v8964_v39 }
 0x54e   : > { %v13773_v46 = vpop.eup %13772  ;;  %v8181_v14 = vor.u32 %v8179_v35, %v8178_v43  ;;  %v8309_v17 = vsel %vm14549_vm11, %v8178_v43, 0  ;;  %v12596_v7 = vcombine.low %v8962_v29, %v8965_v57  ;;  %v8587_v35 = vrot.slane %v8585_v41, 4 }
 0x54f   : > { %v12488_v45 = vcombine.low %v8309_v17, %v8309_v17  ;;  %13782 = vrcp.f32 %v8048_v8  ;;  %v8049_v58 = vadd.f32 1.0, %v13773_v46  ;;  %v7968_v16 = vsub.f32 0.0, %v17978_v32  ;;  %v12951_v18 = vpop.f32.mrb[84].mxu0 }
 0x550   : > { %v13775_v21 = vpop.eup %13774  ;;  %v8295_v28 = vsel %vm14549_vm11, 0, %v8181_v14  ;;  %v17991_v49 = vadd.f32 %v17786_v51, %v7746_v20  ;;  %v12952_v10 = vpop.f32.mrb[85].mxu0  ;;  %10284 = vrot.lane.b32.xlu1 %v12596_v7, %s14227_s10  ;;  %v8590_v44 = vrot.slane %v8588_v5, 5  ;;  %v8594_v14 = vshll.u32 %v17962_v25, 16 }
 0x551   : > { %v12486_v19 = vcombine.low %v8295_v28, %v8295_v28  ;;  %v12487_v11 = vcombine.high %v8295_v28, %v8295_v28  ;;  %8481 = vst.msk [vmem:[#allocation2 + $0x20] sm:$0x1] %vm20569_vm7, %v12488_v45  ;;  %v8102_v31 = vmul.f32 %v13775_v21, %v17925_v60  ;;  %13784 = vrcp.f32 %v8049_v58  ;;  %v12954_v4 = vpop.f32.mrb[86].mxu0 }
 0x552   : > { %v13777_v34 = vpop.eup %13776  ;;  %v8006_v50 = vmul.f32 1.442695, %v7968_v16  ;;  %v7969_v3 = vsub.f32 0.0, %v17991_v49  ;;  %v12953_v51 = vadd.f32 %v12952_v10, %v12951_v18  ;;  %v12955_v27 = vpop.f32.mrb[87].mxu0  ;;  %v8591_v16 = vor.u32 %v8590_v44, %v8587_v35 }
 0x553   : > { %8479 = vst.msk [vmem:[#allocation2 + $0x18] sm:$0xf] %vm20570_vm3, %v12486_v19  ;;  %v8103_v42 = vmul.f32 %v13777_v34, %v17930_v33  ;;  %v12956_v56 = vadd.f32 %v12955_v27, %v12954_v4  ;;  %v8130_v60 = vsel %vm14560_vm14, %v8102_v31, 0.0  ;;  %v18024_v5 = vrot.slane %v8594_v14, 5 }
 0x554   : > { %8480 = vst.msk [vmem:[#allocation2 + $0x1c] sm:$0xf] %vm20571_vm10, %v12487_v11  ;;  %v13779_v62 = vpop.eup %13778  ;;  %13786 = vpow2.f32 %v8006_v50  ;;  %v8008_v61 = vmul.f32 1.442695, %v7969_v3  ;;  %v7751_v1 = vadd.f32 %v12953_v51, %v17897_v30  ;;  %v8592_v3 = vrot.slane %v8591_v16, 4 }
 0x555   : > { %v8131_v63 = vsel %vm14560_vm14, %v8103_v42, 0.0  ;;  %v8050_v43 = vadd.f32 1.0, %v13779_v62  ;;  %v7754_v38 = vadd.f32 %v12956_v56, %v17897_v30  ;;  %vm20574_vm14 = vmmov %vm20569_vm7  ;;  %v8604_v44 = vshll.u32 %v17975_v24, 16 }
 0x556   : > { %v13781_v33 = vpop.eup %13780  ;;  %v8156_v8 = vpack.c.bf16 %v8131_v63, %v8130_v60  ;;  %13788 = vpow2.f32 %v8008_v61  ;;  %v18009_v20 = vadd.f32 %v17839_v2, %v7751_v1  ;;  %v8597_v24 = vsel %vm14373_vm9, %v8592_v3, %v18024_v5 }
 0x557   : > { %13790 = vrcp.f32 %v8050_v43  ;;  %v8051_v29 = vadd.f32 1.0, %v13781_v33  ;;  %v18012_v46 = vadd.f32 %v17843_v54, %v7754_v38  ;;  %v18015_v17 = vpop.f32.mrb[88].mxu0  ;;  %v8598_v54 = vshrl.u32 %v17962_v25, 16 }
 0x558   : > { %v8183_v39 = vshrl.u32 %v8156_v8, 16  ;;  %v7970_v41 = vsub.f32 0.0, %v18009_v20  ;;  %v8186_v58 = vshll.u32 %v8156_v8, 16  ;;  %v18034_v7 = vpop.f32.mrb[89].mxu0 }
 0x559   : > { %v13783_v45 = vpop.eup %13782  ;;  %13792 = vrcp.f32 %v8051_v29  ;;  %v7971_v4 = vsub.f32 0.0, %v18012_v46  ;;  %v8600_v35 = vrot.slane %v8598_v54, 4  ;;  %v18044_v1 = vpop.f32.mrb[90].mxu0 }
 0x55a   : > { %v8185_v18 = vrot.slane %v8183_v39, 7  ;;  %v8104_v2 = vmul.f32 %v13783_v45, %v17942_v23  ;;  %v8010_v21 = vmul.f32 1.442695, %v7970_v41  ;;  %v18019_v28 = vld [vmem:[#allocation2 + $0x18] sm:$0xf]  ;;  %v18048_v33 = vpop.f32.mrb[91].mxu0 }
 0x55b   : > { %v13785_v57 = vpop.eup %13784  ;;  %v18022_v10 = vld [vmem:[#allocation2 + $0x1c] sm:$0xf]  ;;  %v9052_v50 = vld [vmem:[#allocation2 + $0x18] sm:$0xf]  ;;  %v8012_v38 = vmul.f32 1.442695, %v7971_v4 }
 0x55c   : > { %v8188_v19 = vor.u32 %v8186_v58, %v8185_v18  ;;  %v8310_v11 = vsel %vm14549_vm11, %v8185_v18, 0  ;;  %v8105_v31 = vmul.f32 %v13785_v57, %v17947_v9  ;;  %13794 = vpow2.f32 %v8010_v21  ;;  %v18032_v25 = vld [vmem:[#allocation2 + $0x1c] sm:$0xf]  ;;  %v9429_v45 = vld [vmem:[#allocation2 + $0x18] sm:$0xe] }
 0x55d   : > { %v12491_v34 = vcombine.low %v8310_v11, %v8310_v11  ;;  %v12651_v23 = vcombine.low %v18019_v28, %v18022_v10  ;;  %v8132_v9 = vsel %vm14541_vm12, %v8104_v2, 0.0  ;;  %v12610_v43 = vcombine.low %v9052_v50, %v18032_v25  ;;  %v9079_v21 = vld [vmem:[#allocation2 + $0x20] sm:$0x1] }
 0x55e   : > { %v13787_v51 = vpop.eup %13786  ;;  %v8296_v27 = vsel %vm14549_vm11, 0, %v8188_v19  ;;  %v8133_v56 = vsel %vm14541_vm12, %v8105_v31, 0.0  ;;  %vm20575_vm12 = vmmov %vm20566_vm2  ;;  %v9625_v41 = vshrl.u32 %v18019_v28, 16  ;;  %v8601_v2 = vor.u32 %v8600_v35, %v18024_v5  ;;  %v9960_v31 = vld [vmem:[#allocation2 + $0x18] sm:$0xe] }
 0x55f   : > { %v12489_v62 = vcombine.low %v8296_v27, %v8296_v27  ;;  %v12490_v22 = vcombine.high %v8296_v27, %v8296_v27  ;;  %8484 = vst.msk [vmem:[#allocation2 + $0x2c] sm:$0x1] %vm20574_vm14, %v12491_v34  ;;  %v8157_v60 = vpack.c.bf16 %v8133_v56, %v8132_v9  ;;  %v8052_v61 = vadd.f32 1.0, %v13787_v51  ;;  %10562 = vrot.lane.b32.xlu0 %v12651_v23, %s14227_s10 }
 0x560   : > { %v13789_v63 = vpop.eup %13788  ;;  %10368 = vrot.lane.b32.xlu1 %v12610_v43, %s14229_s17  ;;  %v8606_v19 = vrot.slane %v8604_v44, 5  ;;  %v9493_v11 = vrot.slane %v18032_v25, 5  ;;  %v8602_v23 = vrot.slane %v8601_v2, 4  ;;  %v12540_v50 = vrot.slane %v9429_v45, 9  ;;  %v18076_v43 = vld [vmem:[#allocation2 + $0x1c] sm:$0xf] }
 0x561   : > { %v13791_v8 = vpop.eup %13790  ;;  %8482 = vst.msk [vmem:[#allocation2 + $0x24] sm:$0xf] %vm20575_vm12, %v12489_v62  ;;  %v8190_v29 = vshrl.u32 %v8157_v60, 16  ;;  %13796 = vrcp.f32 %v8052_v61  ;;  %v8053_v14 = vadd.f32 1.0, %v13789_v63  ;;  %v8193_v18 = vshll.u32 %v8157_v60, 16  ;;  %vm20591_vm12 = vmmov %vm20583_vm13 }
 0x562   : > { %8483 = vst.msk [vmem:[#allocation2 + $0x28] sm:$0xf] %vm20576_vm5, %v12490_v22  ;;  %v8106_v39 = vmul.f32 %v13791_v8, %v17953_v36  ;;  %13798 = vpow2.f32 %v8012_v38  ;;  %v9495_v51 = vrot.slane %v9493_v11, 4  ;;  %v9496_v27 = vrot.slane %v9079_v21, 5  ;;  %v18074_v63 = vld [vmem:[#allocation2 + $0x20] sm:$0x1] }
 0x563   : > { %v13793_v58 = vpop.eup %13792  ;;  %v8192_v16 = vrot.slane %v8190_v29, 7  ;;  %13800 = vrcp.f32 %v8053_v14  ;;  %v8607_v25 = vsel %vm14373_vm9, %v8602_v23, %v8606_v19  ;;  %v12553_v56 = vrot.slane %v9960_v31, 9 }
 0x564   : > { %v8134_v36 = vsel %vm14618_vm4, %v8106_v39, 0.0  ;;  %v8107_v57 = vmul.f32 %v13793_v58, %v17960_v6  ;;  %v18071_v35 = vpop.f32.mrb[92].mxu0  ;;  %v12582_v61 = vcombine.low %v8597_v24, %v8607_v25  ;;  %v9494_v8 = vsel %vm14364_vm6, %v12540_v50, %v9493_v11  ;;  %v8898_v39 = vld [vmem:[#allocation2 + $0x18] sm:$0xe] }
 0x565   : > { %v8195_v4 = vor.u32 %v8193_v18, %v8192_v16  ;;  %v8311_v34 = vsel %vm14549_vm11, %v8192_v16, 0  ;;  %v18078_v38 = vpop.f32.mrb[93].mxu0  ;;  %v9497_v29 = vsel %vm14364_vm6, %v9495_v51, %v9496_v27  ;;  %v10018_v14 = vrot.slane %v18022_v10, 5  ;;  %v18091_v18 = vld [vmem:[#allocation2 + $0x20] sm:$0x1] }
 0x566   : > { %v12494_v3 = vcombine.low %v8311_v34, %v8311_v34  ;;  %v8135_v5 = vsel %vm14618_vm4, %v8107_v57, 0.0  ;;  %v13795_v42 = vpop.eup %13794  ;;  %v18085_v45 = vpop.f32.mrb[94].mxu0  ;;  %vm20579_vm4 = vmmov %vm20566_vm2  ;;  %v9628_v58 = vshll.u32 %v18019_v28, 16  ;;  %10214 = vrot.lane.b32.xlu1 %v12582_v61, %s14228_s12  ;;  %v12638_v16 = vcombine.low %v9494_v8, %v9497_v29 }
 0x567   : > { %v8297_v6 = vsel %vm14549_vm11, 0, %v8195_v4  ;;  %v8158_v9 = vpack.c.bf16 %v8135_v5, %v8134_v36  ;;  %v8054_v60 = vadd.f32 1.0, %v13795_v42  ;;  %v10020_v54 = vrot.slane %v10018_v14, 4  ;;  %v18095_v19 = vpop.f32.mrb[95].mxu0  ;;  %vm20582_vm2 = vmmov %vm20569_vm7 }
 0x568   : > { %v12492_v62 = vcombine.low %v8297_v6, %v8297_v6  ;;  %v12493_v22 = vcombine.high %v8297_v6, %v8297_v6  ;;  %8487 = vst.msk [vmem:[#allocation2 + $0x38] sm:$0x1] %vm20578_vm15, %v12494_v3  ;;  %v10021_v36 = vrot.slane %v18074_v63, 5  ;;  %v8968_v57 = vrot.slane %v18076_v43, 5  ;;  %10480 = vrot.lane.b32.xlu0 %v12638_v16, %s14228_s12  ;;  %v18109_v25 = vld [vmem:[#allocation2 + $0x24] sm:$0xf]  ;;  %vm20584_vm7 = vmmov %vm20570_vm3 }
 0x569   : > { %v8197_v44 = vshrl.u32 %v8158_v9, 16  ;;  %v8200_v24 = vshll.u32 %v8158_v9, 16  ;;  %13802 = vrcp.f32 %v8054_v60  ;;  %v10019_v4 = vsel %vm14364_vm6, %v12553_v56, %v10018_v14  ;;  %v18111_v56 = vld [vmem:[#allocation2 + $0x28] sm:$0xf] }
 0x56a   : > { %8485 = vst.msk [vmem:[#allocation2 + $0x30] sm:$0xf] %vm20579_vm4, %v12492_v62  ;;  %v12527_v34 = vrot.slane %v8898_v39, 9  ;;  %v12959_v23 = vadd.f32 %v18034_v7, %v18015_v17  ;;  %v10022_v27 = vsel %vm14364_vm6, %v10020_v54, %v10021_v36  ;;  %v8971_v9 = vrot.slane %v18091_v18, 5  ;;  %v18128_v16 = vld [vmem:[#allocation2 + $0x28] sm:$0xf] }
 0x56b   : > { %8486 = vst.msk [vmem:[#allocation2 + $0x34] sm:$0xf] %vm20580_vm8, %v12493_v22  ;;  %v13797_v2 = vpop.eup %13796  ;;  %v8199_v21 = vrot.slane %v8197_v44, 7  ;;  %v12679_v6 = vcombine.low %v10019_v4, %v10022_v27  ;;  %v8970_v22 = vrot.slane %v8968_v57, 4  ;;  %v12652_v39 = vcombine.low %v18109_v25, %v18111_v56  ;;  %v8522_v7 = vld [vmem:[#allocation2 + $0x18] sm:$0xf]  ;;  %vm20596_vm8 = vmmov %vm20591_vm12 }
 0x56c   : > { %v13799_v11 = vpop.eup %13798  ;;  %v8108_v31 = vmul.f32 %v13797_v2, %v17978_v32  ;;  %v7759_v44 = vadd.f32 %v12959_v23, %v17897_v30  ;;  %v8969_v29 = vsel %vm14364_vm6, %v12527_v34, %v8968_v57  ;;  %v9627_v2 = vrot.slane %v9625_v41, 4 }
 0x56d   : > { %v13801_v50 = vpop.eup %13800  ;;  %v8202_v3 = vor.u32 %v8200_v24, %v8199_v21  ;;  %v8312_v5 = vsel %vm14549_vm11, %v8199_v21, 0  ;;  %v8055_v51 = vadd.f32 1.0, %v13799_v11  ;;  %13229 = vmatprep.mubr.msk.bf16.mxu0 %vm20583_vm13, %v12679_v6  ;;  %v8972_v14 = vsel %vm14364_vm6, %v8970_v22, %v8971_v9  ;;  %v9054_v24 = vld [vmem:[#allocation2 + $0x24] sm:$0xf]  ;;  %10564 = vrot.lane.b32.xlu0 %v12652_v39, %s14227_s10 }
 0x56e   : > { %v12497_v42 = vcombine.low %v8312_v5, %v8312_v5  ;;  %v8109_v32 = vmul.f32 %v13801_v50, %v17991_v49  ;;  %v8136_v62 = vsel %vm14605_vm1, %v8108_v31, 0.0  ;;  %v9630_v21 = vrot.slane %v9628_v58, 5 }
 0x56f   : > { %v8298_v17 = vsel %vm14549_vm11, 0, %v8202_v3  ;;  %13804 = vrcp.f32 %v8055_v51  ;;  %v12597_v54 = vcombine.low %v8969_v29, %v8972_v14  ;;  %v18135_v36 = vadd.f32 %v17835_v13, %v7759_v44 }
 0x570   : > { %v12495_v60 = vcombine.low %v8298_v17, %v8298_v17  ;;  %v12496_v61 = vcombine.high %v8298_v17, %v8298_v17  ;;  %8490 = vst.msk [vmem:[#allocation2 + $0x44] sm:$0x1] %vm20582_vm2, %v12497_v42  ;;  %v8137_v49 = vsel %vm14605_vm1, %v8109_v32, 0.0  ;;  %vm20585_vm1 = vmmov %vm20570_vm3  ;;  %v9638_v31 = vshrl.u32 %v18022_v10, 16  ;;  %v18153_v17 = vpop.f32.mrb[76].mxu1 }
 0x571   : > { %v8159_v8 = vpack.c.bf16 %v8137_v49, %v8136_v62  ;;  %10286 = vrot.lane.b32.xlu1 %v12597_v54, %s14227_s10  ;;  %v7972_v4 = vsub.f32 0.0, %v18135_v36  ;;  %v10025_v34 = vrot.slane %v18111_v56, 5  ;;  %v12611_v28 = vcombine.low %v9054_v24, %v18128_v16  ;;  %vm20587_vm3 = vmmov %vm20582_vm2 }
 0x572   : > { %8488 = vst.msk [vmem:[#allocation2 + $0x3c] sm:$0xf] %vm20584_vm7, %v12495_v60  ;;  %v12962_v13 = vadd.f32 %v18048_v33, %v18044_v1  ;;  %v9649_v3 = vshrl.u32 %v18109_v25, 16  ;;  %v9631_v5 = vor.u32 %v9630_v21, %v9627_v2  ;;  %v9634_v51 = vshll.u32 %v18022_v10, 16  ;;  %v18157_v10 = vpop.f32.mrb[77].mxu1  ;;  %vm20588_vm10 = vmmov %vm20585_vm1 }
 0x573   : > { %8489 = vst.msk [vmem:[#allocation2 + $0x40] sm:$0xf] %vm20585_vm1, %v12496_v61  ;;  %v8204_v57 = vshrl.u32 %v8159_v8, 16  ;;  %v13803_v11 = vpop.eup %13802  ;;  %v8207_v58 = vshll.u32 %v8159_v8, 16  ;;  %v8014_v50 = vmul.f32 1.442695, %v7972_v4  ;;  %vm20589_vm14 = vmmov %vm20585_vm1 }
 0x574   : > { %v8110_v23 = vmul.f32 %v13803_v11, %v18009_v20  ;;  %v9652_v9 = vshll.u32 %v18109_v25, 16  ;;  %v7762_v1 = vadd.f32 %v12962_v13, %v17897_v30  ;;  %v9632_v33 = vrot.slane %v9631_v5, 4  ;;  %vm20592_vm5 = vmmov %vm20585_vm1 }
 0x575   : > { %v8206_v41 = vrot.slane %v8204_v57, 7  ;;  %13806 = vpow2.f32 %v8014_v50  ;;  %10370 = vrot.lane.b32.xlu1 %v12611_v28, %s14229_s17  ;;  %v9636_v60 = vrot.slane %v9634_v51, 5  ;;  %v9640_v61 = vrot.slane %v9638_v31, 4  ;;  %vm20593_vm15 = vmmov %vm20585_vm1 }
 0x576   : > { %v8138_v6 = vsel %vm20446_vm0, %v8110_v23, 0.0  ;;  %v9644_v49 = vshll.u32 %v18074_v63, 16  ;;  %v18165_v14 = vadd.f32 %v17841_v0, %v7762_v1  ;;  %v8609_v21 = vshrl.u32 %v8522_v7, 16  ;;  %v9961_v23 = vld [vmem:[#allocation2 + $0x24] sm:$0xe]  ;;  %vm20598_vm13 = vmmov %vm20585_vm1 }
 0x577   : > { %v8209_v27 = vor.u32 %v8207_v58, %v8206_v41  ;;  %v8313_v42 = vsel %vm14549_vm11, %v8206_v41, 0  ;;  %v9637_v39 = vsel %vm14373_vm9, %v9632_v33, %v9636_v60  ;;  %v9641_v24 = vor.u32 %v9640_v61, %v9636_v60  ;;  %v18180_v58 = vld [vmem:[#allocation2 + $0x2c] sm:$0x1]  ;;  %v9430_v1 = vld [vmem:[#allocation2 + $0x24] sm:$0xe]  ;;  %vm20599_vm7 = vmmov %vm20585_vm1 }
 0x578   : > { %v12500_v20 = vcombine.low %v8313_v42, %v8313_v42  ;;  %v9646_v2 = vrot.slane %v9644_v49, 5  ;;  %v8612_v57 = vshll.u32 %v8522_v7, 16  ;;  %v8618_v0 = vshll.u32 %v18076_v43, 16 }
 0x579   : > { %v13805_v62 = vpop.eup %13804  ;;  %v8299_v22 = vsel %vm14549_vm11, 0, %v8209_v27  ;;  %v18169_v54 = vpop.f32.mrb[96].mxu0  ;;  %v9642_v4 = vrot.slane %v9641_v24, 4  ;;  %v8611_v28 = vrot.slane %v8609_v21, 4  ;;  %v8622_v41 = vshrl.u32 %v18076_v43, 16 }
 0x57a   : > { %v12498_v44 = vcombine.low %v8299_v22, %v8299_v22  ;;  %v12499_v8 = vcombine.high %v8299_v22, %v8299_v22  ;;  %8493 = vst.msk [vmem:[#allocation2 + $0x50] sm:$0x1] %vm20587_vm3, %v12500_v20  ;;  %v8111_v29 = vmul.f32 %v13805_v62, %v18012_v46  ;;  %v7973_v46 = vsub.f32 0.0, %v18165_v14  ;;  %v18177_v11 = vpop.f32.mrb[97].mxu0  ;;  %vm20602_vm3 = vmmov %vm20596_vm8 }
 0x57b   : > { %v18182_v13 = vpop.f32.mrb[98].mxu0  ;;  %v8614_v5 = vrot.slane %v8612_v57, 5  ;;  %v8620_v51 = vrot.slane %v8618_v0, 5  ;;  %v8628_v27 = vshll.u32 %v18091_v18, 16  ;;  %v9647_v20 = vsel %vm14373_vm9, %v9642_v4, %v9646_v2  ;;  %v18191_v18 = vpop.f32.mrb[78].mxu1 }
 0x57c   : > { %8491 = vst.msk [vmem:[#allocation2 + $0x48] sm:$0xf] %vm20588_vm10, %v12498_v44  ;;  %v8139_v63 = vsel %vm20446_vm0, %v8111_v29, 0.0  ;;  %v8016_v50 = vmul.f32 1.442695, %v7973_v46  ;;  %v18185_v42 = vpop.f32.mrb[99].mxu0  ;;  %v12665_v7 = vcombine.low %v9637_v39, %v9647_v20  ;;  %vm20590_vm0 = vmmov %vm20582_vm2 }
 0x57d   : > { %8492 = vst.msk [vmem:[#allocation2 + $0x4c] sm:$0xf] %vm20589_vm14, %v12499_v8  ;;  %v8160_v31 = vpack.c.bf16 %v8139_v63, %v8138_v6  ;;  %v10027_v6 = vrot.slane %v10025_v34, 4  ;;  %v8624_v43 = vrot.slane %v8622_v41, 4  ;;  %v8615_v62 = vor.u32 %v8614_v5, %v8611_v28  ;;  %v18198_v57 = vpop.f32.mrb[79].mxu1  ;;  %vm20597_vm2 = vmmov %vm20590_vm0 }
 0x57e   : > { %13808 = vpow2.f32 %v8016_v50  ;;  %v8630_v61 = vrot.slane %v8628_v27, 5  ;;  %v12554_v49 = vrot.slane %v9961_v23, 9  ;;  %10632 = vrot.lane.b32.xlu0 %v12665_v7, %s14229_s17  ;;  %v10028_v29 = vrot.slane %v18180_v58, 5  ;;  %v9080_v28 = vld [vmem:[#allocation2 + $0x2c] sm:$0x1]  ;;  %vm20603_vm10 = vmmov %vm20590_vm0 }
 0x57f   : > { %v8211_v32 = vshrl.u32 %v8160_v31, 16  ;;  %v8214_v33 = vshll.u32 %v8160_v31, 16  ;;  %v8625_v60 = vor.u32 %v8624_v43, %v8620_v51  ;;  %v13807_v44 = vpop.eup %13806  ;;  %v8616_v8 = vrot.slane %v8615_v62, 4  ;;  %v18208_v41 = vld [vmem:[#allocation2 + $0x28] sm:$0xf]  ;;  %vm20604_vm14 = vmmov %vm20592_vm5 }
 0x580   : > { %v12541_v24 = vrot.slane %v9430_v1, 9  ;;  %v9500_v2 = vrot.slane %v18128_v16, 5  ;;  %v8056_v63 = vadd.f32 1.0, %v13807_v44  ;;  %v10026_v4 = vsel %vm14364_vm6, %v12554_v49, %v10025_v34  ;;  %v8899_v23 = vld [vmem:[#allocation2 + $0x24] sm:$0xe] }
 0x581   : > { %v8213_v22 = vrot.slane %v8211_v32, 7  ;;  %v8626_v46 = vrot.slane %v8625_v60, 4  ;;  %v8621_v31 = vsel %vm14373_vm9, %v8616_v8, %v8620_v51  ;;  %v10029_v16 = vsel %vm14364_vm6, %v10027_v6, %v10028_v29  ;;  %v18215_v20 = vld [vmem:[#allocation2 + $0x2c] sm:$0x1]  ;;  %v18233_v8 = vld [vmem:[#allocation2 + $0x30] sm:$0xf] }
 0x582   : > { %13810 = vrcp.f32 %v8056_v63  ;;  %v12680_v51 = vcombine.low %v10026_v4, %v10029_v16  ;;  %v9502_v6 = vrot.slane %v9500_v2, 4  ;;  %v9503_v43 = vrot.slane %v9080_v28, 5  ;;  %v8524_v4 = vld [vmem:[#allocation2 + $0x24] sm:$0xf] }
 0x583   : > { %v8216_v21 = vor.u32 %v8214_v33, %v8213_v22  ;;  %v8314_v39 = vsel %vm14549_vm11, %v8213_v22, 0  ;;  %v8631_v5 = vsel %vm14373_vm9, %v8626_v46, %v8630_v61  ;;  %v12528_v1 = vrot.slane %v8899_v23, 9 }
 0x584   : > { %v12503_v0 = vcombine.low %v8314_v39, %v8314_v39  ;;  %v12583_v34 = vcombine.low %v8621_v31, %v8631_v5  ;;  %13230 = vmatmul.mubr.msk.bf16.vlgmr.msra.gmra.mrb[116].mxu0 %vm20591_vm12, %v12680_v51  ;;  %v8975_v33 = vrot.slane %v18208_v41, 5  ;;  %v9651_v7 = vrot.slane %v9649_v3, 4  ;;  %v18235_v3 = vld [vmem:[#allocation2 + $0x34] sm:$0xf] }
 0x585   : > { %v8300_v50 = vsel %vm14549_vm11, 0, %v8216_v21  ;;  %v9654_v62 = vrot.slane %v9652_v9, 5  ;;  %v12965_v22 = vadd.f32 %v18078_v38, %v18071_v35  ;;  %v9501_v60 = vsel %vm14364_vm6, %v12541_v24, %v9500_v2  ;;  %v9056_v2 = vld [vmem:[#allocation2 + $0x30] sm:$0xf]  ;;  %v18243_v39 = vld [vmem:[#allocation2 + $0x34] sm:$0xf] }
 0x586   : > { %v12501_v27 = vcombine.low %v8300_v50, %v8300_v50  ;;  %v12502_v32 = vcombine.high %v8300_v50, %v8300_v50  ;;  %8496 = vst.msk [vmem:[#allocation2 + $0x5c] sm:$0x1] %vm20590_vm0, %v12503_v0  ;;  %10216 = vrot.lane.b32.xlu1 %v12583_v34, %s14228_s12  ;;  %v9504_v61 = vsel %vm14364_vm6, %v9502_v6, %v9503_v43  ;;  %v8977_v49 = vrot.slane %v8975_v33, 4  ;;  %vm20605_vm0 = vmmov %vm20592_vm5 }
 0x587   : > { %v8978_v44 = vrot.slane %v18215_v20, 5  ;;  %v9662_v9 = vshrl.u32 %v18111_v56, 16  ;;  %v12639_v29 = vcombine.low %v9501_v60, %v9504_v61  ;;  %v7767_v21 = vadd.f32 %v12965_v22, %v17897_v30 }
 0x588   : > { %8494 = vst.msk [vmem:[#allocation2 + $0x54] sm:$0xf] %vm20592_vm5, %v12501_v27  ;;  %v13809_v25 = vpop.eup %13808  ;;  %v8976_v38 = vsel %vm14364_vm6, %v12528_v1, %v8975_v33  ;;  %v12653_v0 = vcombine.low %v18233_v8, %v18235_v3  ;;  %v12968_v31 = vadd.f32 %v18095_v19, %v18085_v45  ;;  %v9673_v28 = vshrl.u32 %v18233_v8, 16  ;;  %vm20608_vm5 = vmmov %vm20602_vm3 }
 0x589   : > { %8495 = vst.msk [vmem:[#allocation2 + $0x58] sm:$0xf] %vm20593_vm15, %v12502_v32  ;;  %v8057_v35 = vadd.f32 1.0, %v13809_v25  ;;  %v8979_v24 = vsel %vm14364_vm6, %v8977_v49, %v8978_v44  ;;  %10482 = vrot.lane.b32.xlu0 %v12639_v29, %s14228_s12  ;;  %v18247_v46 = vadd.f32 %v17870_v47, %v7767_v21  ;;  %v9655_v23 = vor.u32 %v9654_v62, %v9651_v7  ;;  %v18278_v29 = vld [vmem:[#allocation2 + $0x38] sm:$0x1]  ;;  %vm20609_vm15 = vmmov %vm20597_vm2 }
 0x58a   : > { %v12598_v63 = vcombine.low %v8976_v38, %v8979_v24  ;;  %v9658_v50 = vshll.u32 %v18111_v56, 16  ;;  %v12612_v51 = vcombine.low %v9056_v2, %v18243_v39  ;;  %v7770_v27 = vadd.f32 %v12968_v31, %v17897_v30  ;;  %v9431_v38 = vld [vmem:[#allocation2 + $0x30] sm:$0xe] }
 0x58b   : > { %v18253_v16 = vpop.f32.mrb[100].mxu0  ;;  %13812 = vrcp.f32 %v8057_v35  ;;  %v7974_v47 = vsub.f32 0.0, %v18247_v46  ;;  %v9664_v45 = vrot.slane %v9662_v9, 4  ;;  %v9656_v34 = vrot.slane %v9655_v23, 4 }
 0x58c   : > { %v18257_v5 = vpop.f32.mrb[101].mxu0  ;;  %10288 = vrot.lane.b32.xlu1 %v12598_v63, %s14227_s10  ;;  %v13811_v32 = vpop.eup %13810  ;;  %v9660_v6 = vrot.slane %v9658_v50, 5  ;;  %v9668_v43 = vshll.u32 %v18180_v58, 16  ;;  %v8633_v1 = vshrl.u32 %v8524_v4, 16  ;;  %v9676_v7 = vshll.u32 %v18233_v8, 16 }
 0x58d   : > { %v18263_v19 = vpop.f32.mrb[102].mxu0  ;;  %v8018_v33 = vmul.f32 1.442695, %v7974_v47  ;;  %10566 = vrot.lane.b32.xlu0 %v12653_v0, %s14227_s10  ;;  %v18271_v62 = vadd.f32 %v17874_v52, %v7770_v27  ;;  %v8636_v30 = vshll.u32 %v8524_v4, 16  ;;  %v8112_v22 = vmul.f32 %v13811_v32, %v18135_v36  ;;  %v9962_v58 = vld [vmem:[#allocation2 + $0x30] sm:$0xe] }
 0x58e   : > { %v18266_v56 = vpop.f32.mrb[103].mxu0  ;;  %v9661_v60 = vsel %vm14373_vm9, %v9656_v34, %v9660_v6  ;;  %v9665_v61 = vor.u32 %v9664_v45, %v9660_v6  ;;  %v8635_v49 = vrot.slane %v8633_v1, 4  ;;  %v9670_v25 = vrot.slane %v9668_v43, 5  ;;  %v20594_v4 = vld [vmem:[#allocation19_spill] sm:$0xff]  ;;  %v9081_v27 = vld [vmem:[#allocation2 + $0x38] sm:$0x1] }
 0x58f   : > { %13814 = vpow2.f32 %v8018_v33  ;;  %v7975_v44 = vsub.f32 0.0, %v18271_v62  ;;  %v8638_v9 = vrot.slane %v8636_v30, 5  ;;  %v8642_v21 = vshll.u32 %v18208_v41, 16  ;;  %v18292_v34 = vld [vmem:[#allocation2 + $0x34] sm:$0xf] }
 0x590   : > { %10372 = vrot.lane.b32.xlu1 %v12612_v51, %s14229_s17  ;;  %v9666_v52 = vrot.slane %v9665_v61, 4  ;;  %v8646_v36 = vshrl.u32 %v18208_v41, 16  ;;  %v8652_v35 = vshll.u32 %v18215_v20, 16  ;;  %v12555_v63 = vrot.slane %v9962_v58, 9  ;;  %v8900_v61 = vld [vmem:[#allocation2 + $0x30] sm:$0xe] }
 0x591   : > { %v8020_v24 = vmul.f32 1.442695, %v7975_v44  ;;  %v8639_v2 = vor.u32 %v8638_v9, %v8635_v49  ;;  %v10032_v0 = vrot.slane %v18235_v3, 5  ;;  %vm20595_vm4 = vnez %v20594_v4 }
 0x592   : > { %v8140_v23 = vsel %vm20595_vm4, %v8112_v22, 0.0  ;;  %v9671_v50 = vsel %vm14373_vm9, %v9666_v52, %v9670_v25  ;;  %v8644_v47 = vrot.slane %v8642_v21, 5  ;;  %v8648_v51 = vrot.slane %v8646_v36, 4  ;;  %v18308_v36 = vld [vmem:[#allocation2 + $0x38] sm:$0x1] }
 0x593   : > { %v18284_v31 = vpop.f32.mrb[104].mxu0  ;;  %13816 = vpow2.f32 %v8020_v24  ;;  %v12666_v20 = vcombine.low %v9661_v60, %v9671_v50  ;;  %v8640_v45 = vrot.slane %v8639_v2, 4  ;;  %v8654_v32 = vrot.slane %v8652_v35, 5 }
 0x594   : > { %v18290_v41 = vpop.f32.mrb[105].mxu0  ;;  %v8649_v1 = vor.u32 %v8648_v51, %v8644_v47  ;;  %v10034_v33 = vrot.slane %v10032_v0, 4  ;;  %v10035_v30 = vrot.slane %v18278_v29, 5  ;;  %v12542_v22 = vrot.slane %v9431_v38, 9 }
 0x595   : > { %v18294_v6 = vpop.f32.mrb[106].mxu0  ;;  %v13813_v43 = vpop.eup %13812  ;;  %10634 = vrot.lane.b32.xlu0 %v12666_v20, %s14229_s17  ;;  %v8645_v60 = vsel %vm14373_vm9, %v8640_v45, %v8644_v47  ;;  %v10033_v44 = vsel %vm14364_vm6, %v12555_v63, %v10032_v0  ;;  %v9507_v25 = vrot.slane %v18243_v39, 5  ;;  %v9510_v21 = vrot.slane %v9081_v27, 5  ;;  %v18325_v45 = vld [vmem:[#allocation2 + $0x40] sm:$0xf] }
 0x596   : > { %v18297_v49 = vpop.f32.mrb[107].mxu0  ;;  %v8113_v58 = vmul.f32 %v13813_v43, %v18165_v14  ;;  %v8650_v9 = vrot.slane %v8649_v1, 4  ;;  %v10036_v52 = vsel %vm14364_vm6, %v10034_v33, %v10035_v30  ;;  %v8982_v35 = vrot.slane %v18292_v34, 5 }
 0x597   : > { %v12681_v38 = vcombine.low %v10033_v44, %v10036_v52  ;;  %v9509_v24 = vrot.slane %v9507_v25, 4  ;;  %v12529_v2 = vrot.slane %v8900_v61, 9  ;;  %v9508_v39 = vsel %vm14364_vm6, %v12542_v22, %v9507_v25  ;;  %v18335_v22 = vld [vmem:[%s20199_s4 + $0x1] ss:$0 sm:$0xff] }
 0x598   : > { %v8141_v14 = vsel %vm20595_vm4, %v8113_v58, 0.0  ;;  %v8655_v63 = vsel %vm14373_vm9, %v8650_v9, %v8654_v32  ;;  %v8984_v0 = vrot.slane %v8982_v35, 4  ;;  %v8985_v4 = vrot.slane %v18308_v36, 5  ;;  %v18341_v44 = vld [vmem:[#allocation2 + $0x40] sm:$0xf]  ;;  %vm20610_vm4 = vmmov %vm20605_vm0 }
 0x599   : > { %v8161_v50 = vpack.c.bf16 %v8141_v14, %v8140_v23  ;;  %v13815_v47 = vpop.eup %13814  ;;  %v12584_v51 = vcombine.low %v8645_v60, %v8655_v63  ;;  %13233 = vmatprep.mubr.msk.bf16.mxu0 %vm20596_vm8, %v12681_v38  ;;  %v9511_v27 = vsel %vm14364_vm6, %v9509_v24, %v9510_v21  ;;  %v12971_v20 = vadd.f32 %v18177_v11, %v18169_v54  ;;  %v18323_v23 = vld [vmem:[#allocation2 + $0x3c] sm:$0xf]  ;;  %vm20611_vm8 = vmmov %vm20605_vm0 }
 0x59a   : > { %v8058_v43 = vadd.f32 1.0, %v13815_v47  ;;  %v12640_v1 = vcombine.low %v9508_v39, %v9511_v27  ;;  %v8983_v33 = vsel %vm14364_vm6, %v12529_v2, %v8982_v35  ;;  %v8986_v30 = vsel %vm14364_vm6, %v8984_v0, %v8985_v4  ;;  %v9058_v60 = vld [vmem:[#allocation2 + $0x3c] sm:$0xf]  ;;  %v8526_v39 = vld [vmem:[#allocation2 + $0x30] sm:$0xf] }
 0x59b   : > { %v8218_v32 = vshrl.u32 %v8161_v50, 16  ;;  %10218 = vrot.lane.b32.xlu1 %v12584_v51, %s14228_s12  ;;  %v7775_v54 = vadd.f32 %v18335_v22, %v12971_v20  ;;  %v8221_v61 = vshll.u32 %v8161_v50, 16  ;;  %v12654_v58 = vcombine.low %v18323_v23, %v18325_v45 }
 0x59c   : > { %13818 = vrcp.f32 %v8058_v43  ;;  %10484 = vrot.lane.b32.xlu0 %v12640_v1, %s14228_s12  ;;  %v9675_v9 = vrot.slane %v9673_v28, 4  ;;  %v9678_v52 = vrot.slane %v9676_v7, 5  ;;  %v12599_v21 = vcombine.low %v8983_v33, %v8986_v30 }
 0x59d   : > { %v8220_v11 = vrot.slane %v8218_v32, 7  ;;  %v13817_v25 = vpop.eup %13816  ;;  %v18348_v35 = vadd.f32 %v17867_v12, %v7775_v54  ;;  %v9686_v24 = vshrl.u32 %v18235_v3, 16  ;;  %v12613_v28 = vcombine.low %v9058_v60, %v18341_v44 }
 0x59e   : > { %v8059_v2 = vadd.f32 1.0, %v13817_v25  ;;  %v9697_v12 = vshrl.u32 %v18323_v23, 16  ;;  %v12974_v7 = vadd.f32 %v18185_v42, %v18182_v13  ;;  %v9679_v27 = vor.u32 %v9678_v52, %v9675_v9  ;;  %v13495_v13 = vld [vmem:[%s20198_s3 + $0x160] sm:$0xff]  }
 0x59f   : > { %v8223_v14 = vor.u32 %v8221_v61, %v8220_v11  ;;  %v8315_v38 = vsel %vm14549_vm11, %v8220_v11, 0  ;;  %10290 = vrot.lane.b32.xlu1 %v12599_v21, %s14227_s10  ;;  %v7976_v63 = vsub.f32 0.0, %v18348_v35  ;;  %v9700_v20 = vshll.u32 %v18323_v23, 16  ;;  %v13496_v42 = vld [vmem:[%s20198_s3 + $0x120] sm:$0xff]   ;;  %13015 = vmatprep.subr.bf16.mxu1 %v13495_v13 }
 0x5a0   : > { %v12506_v50 = vcombine.low %v8315_v38, %v8315_v38  ;;  %13820 = vrcp.f32 %v8059_v2  ;;  %10568 = vrot.lane.b32.xlu0 %v12654_v58, %s14227_s10  ;;  %v7778_v32 = vadd.f32 %v18335_v22, %v12974_v7  ;;  %v9682_v43 = vshll.u32 %v18235_v3, 16  ;;  %v9963_v38 = vld [vmem:[#allocation2 + $0x3c] sm:$0xe]  ;;  %13016 = vmatpush3.bf16.msra.mxu1 %v13496_v42 }
 0x5a1   : > { %v8301_v8 = vsel %vm14549_vm11, 0, %v8223_v14  ;;  %v8022_v51 = vmul.f32 1.442695, %v7976_v63  ;;  %v9688_v1 = vrot.slane %v9686_v24, 4  ;;  %v9680_v30 = vrot.slane %v9679_v27, 4 }
 0x5a2   : > { %v12504_v0 = vcombine.low %v8301_v8, %v8301_v8  ;;  %v12505_v47 = vcombine.high %v8301_v8, %v8301_v8  ;;  %8499 = vst.msk [vmem:[#allocation2 + $0x68] sm:$0x1] %vm20597_vm2, %v12506_v50  ;;  %v9692_v3 = vshll.u32 %v18278_v29, 16  ;;  %v8657_v54 = vshrl.u32 %v8526_v39, 16 }
 0x5a3   : > { %13822 = vpow2.f32 %v8022_v51  ;;  %10374 = vrot.lane.b32.xlu1 %v12613_v28, %s14229_s17  ;;  %v18383_v61 = vadd.f32 %v17872_v59, %v7778_v32  ;;  %v9684_v58 = vrot.slane %v9682_v43, 5  ;;  %v8660_v60 = vshll.u32 %v8526_v39, 16  ;;  %v20600_v51 = vld [vmem:[#allocation27_spill] sm:$0xff] }
 0x5a4   : > { %v18363_v4 = vpop.f32.mrb[108].mxu0  ;;  %8497 = vst.msk [vmem:[#allocation2 + $0x60] sm:$0xf] %vm20598_vm13, %v12504_v0  ;;  %v8666_v25 = vshll.u32 %v18292_v34, 16  ;;  %v18388_v52 = vrot.slane %v9697_v12, 4  ;;  %v8659_v21 = vrot.slane %v8657_v54, 4  ;;  %vm20601_vm1 = vnez %v20600_v51  ;;  %vm20614_vm13 = vmmov %vm20603_vm10 }
 0x5a5   : > { %v18368_v33 = vpop.f32.mrb[109].mxu0  ;;  %8498 = vst.msk [vmem:[#allocation2 + $0x64] sm:$0xf] %vm20599_vm7, %v12505_v47  ;;  %v8670_v14 = vshrl.u32 %v18292_v34, 16  ;;  %v8676_v29 = vshll.u32 %v18308_v36, 16  ;;  %v7977_v59 = vsub.f32 0.0, %v18383_v61  ;;  %v9689_v2 = vor.u32 %v9688_v1, %v9684_v58  ;;  %vm20615_vm7 = vmmov %vm20602_vm3 }
 0x5a6   : > { %v18380_v11 = vpop.f32.mrb[110].mxu0  ;;  %v13819_v24 = vpop.eup %13818  ;;  %v9694_v50 = vrot.slane %v9692_v3, 5  ;;  %v8662_v63 = vrot.slane %v8660_v60, 5  ;;  %v9685_v8 = vsel %vm14373_vm9, %v9680_v30, %v9684_v58  ;;  %v8668_v12 = vrot.slane %v8666_v25, 5  ;;  %v18396_v47 = vld [vmem:[#allocation2 + $0x44] sm:$0x1] }
 0x5a7   : > { %v18386_v9 = vpop.f32.mrb[111].mxu0  ;;  %v8114_v28 = vmul.f32 %v13819_v24, %v18247_v46  ;;  %v8672_v7 = vrot.slane %v8670_v14, 4  ;;  %v8024_v39 = vmul.f32 1.442695, %v7977_v59  ;;  %v9690_v0 = vrot.slane %v9689_v2, 4  ;;  %v13497_v54 = vld [vmem:[%s20198_s3 + $0x168] sm:$0xff]  }
 0x5a8   : > { %v8663_v34 = vor.u32 %v8662_v63, %v8659_v21  ;;  %v12556_v36 = vrot.slane %v9963_v38, 9  ;;  %v8678_v43 = vrot.slane %v8676_v29, 5  ;;  %v10039_v1 = vrot.slane %v18325_v45, 5  ;;  %v9432_v3 = vld [vmem:[#allocation2 + $0x3c] sm:$0xe]  ;;  %13017 = vmatprep.subr.bf16.mxu1 %v13497_v54 }
 0x5a9   : > { %v8142_v27 = vsel %vm20601_vm1, %v8114_v28, 0.0  ;;  %v8673_v32 = vor.u32 %v8672_v7, %v8668_v12  ;;  %13824 = vpow2.f32 %v8024_v39  ;;  %v9695_v46 = vsel %vm14373_vm9, %v9690_v0, %v9694_v50  ;;  %v8901_v63 = vld [vmem:[#allocation2 + $0x3c] sm:$0xe]  ;;  %v18425_v0 = vld [vmem:[#allocation2 + $0x40] sm:$0xf] }
 0x5aa   : > { %v13821_v13 = vpop.eup %13820  ;;  %v8664_v42 = vrot.slane %v8663_v34, 4  ;;  %v12977_v30 = vadd.f32 %v18257_v5, %v18253_v16  ;;  %v12667_v60 = vcombine.low %v9685_v8, %v9695_v46  ;;  %v10042_v21 = vrot.slane %v18396_v47, 5  ;;  %v9082_v5 = vld [vmem:[#allocation2 + $0x44] sm:$0x1] }
 0x5ab   : > { %v8115_v58 = vmul.f32 %v13821_v13, %v18271_v62  ;;  %v8674_v25 = vrot.slane %v8673_v32, 4  ;;  %v10040_v29 = vsel %vm14364_vm6, %v12556_v36, %v10039_v1  ;;  %v10041_v38 = vrot.slane %v10039_v1, 4  ;;  %v13500_v1 = vld [vmem:[%s20198_s3 + $0x170] sm:$0xff]  }
 0x5ac   : > { %v8669_v14 = vsel %vm14373_vm9, %v8664_v42, %v8668_v12  ;;  %v7783_v16 = vadd.f32 %v18335_v22, %v12977_v30  ;;  %10636 = vrot.lane.b32.xlu0 %v12667_v60, %s14229_s17  ;;  %v12543_v2 = vrot.slane %v9432_v3, 9  ;;  %v9514_v50 = vrot.slane %v18341_v44, 5  ;;  %v18458_v60 = vld [vmem:[#allocation2 + $0x4c] sm:$0xf] }
 0x5ad   : > { %v13823_v24 = vpop.eup %13822  ;;  %v8143_v59 = vsel %vm20601_vm1, %v8115_v58, 0.0  ;;  %v8679_v62 = vsel %vm14373_vm9, %v8674_v25, %v8678_v43  ;;  %v10043_v39 = vsel %vm14364_vm6, %v10041_v38, %v10042_v21  ;;  %v9517_v43 = vrot.slane %v9082_v5, 5  ;;  %vm20616_vm1 = vmmov %vm20605_vm0 }
 0x5ae   : > { %v8162_v8 = vpack.c.bf16 %v8143_v59, %v8142_v27  ;;  %v8060_v12 = vadd.f32 1.0, %v13823_v24  ;;  %v12585_v7 = vcombine.low %v8669_v14, %v8679_v62  ;;  %v12682_v36 = vcombine.low %v10040_v29, %v10043_v39  ;;  %v13498_v27 = vld [vmem:[%s20198_s3 + $0x128] sm:$0xff]   ;;  %v13501_v59 = vld [vmem:[%s20198_s3 + $0x130] sm:$0xff]  }
 0x5af   : > { %v18430_v51 = vadd.f32 %v17878_v48, %v7783_v16  ;;  %v9516_v32 = vrot.slane %v9514_v50, 4  ;;  %v18442_v46 = vrot.slane %v9700_v20, 5  ;;  %v18445_v48 = vld [vmem:[#allocation2 + $0x44] sm:$0x1]  ;;  %v12530_v42 = vrot.slane %v8901_v63, 9  ;;  %13018 = vmatpush3.bf16.msra.mxu1 %v13498_v27 }
 0x5b0   : > { %v18421_v28 = vpop.f32.mrb[112].mxu0  ;;  %v8225_v13 = vshrl.u32 %v8162_v8, 16  ;;  %13826 = vrcp.f32 %v8060_v12  ;;  %10220 = vrot.lane.b32.xlu1 %v12585_v7, %s14228_s12  ;;  %13234 = vmatmul.mubr.msk.bf16.gmra.mrb[120].mxu0 %vm20602_vm3, %v12682_v36  ;;  %v9515_v54 = vsel %vm14364_vm6, %v12543_v2, %v9514_v50  ;;  %v8989_v23 = vrot.slane %v18425_v0, 5  ;;  %v18456_v20 = vld [vmem:[#allocation2 + $0x48] sm:$0xf]  ;;  %vm20617_vm3 = vmmov %vm20605_vm0 }
 0x5b1   : > { %v18427_v34 = vpop.f32.mrb[113].mxu0  ;;  %v7978_v3 = vsub.f32 0.0, %v18430_v51  ;;  %v9518_v58 = vsel %vm14364_vm6, %v9516_v32, %v9517_v43  ;;  %v8228_v21 = vshll.u32 %v8162_v8, 16  ;;  %v12980_v29 = vadd.f32 %v18266_v56, %v18263_v19  ;;  %13019 = vmatprep.subr.bf16.mxu1 %v13500_v1  ;;  %v18476_v7 = vld [vmem:[#allocation2 + $0x48] sm:$0xf] }
 0x5b2   : > { %v18432_v44 = vpop.f32.mrb[114].mxu0  ;;  %v8227_v25 = vrot.slane %v8225_v13, 7  ;;  %v12641_v14 = vcombine.low %v9515_v54, %v9518_v58  ;;  %v8990_v16 = vsel %vm14364_vm6, %v12530_v42, %v8989_v23  ;;  %v8991_v5 = vrot.slane %v8989_v23, 4  ;;  %v18478_v39 = vld [vmem:[#allocation2 + $0x4c] sm:$0xf]  ;;  %v13502_v42 = vld [vmem:[%s20198_s3 + $0x178] sm:$0xff]  }
 0x5b3   : > { %v18447_v30 = vpop.f32.mrb[115].mxu0  ;;  %v8026_v38 = vmul.f32 1.442695, %v7978_v3  ;;  %v8992_v24 = vrot.slane %v18445_v48, 5  ;;  %v13825_v62 = vpop.eup %13824  ;;  %v7786_v19 = vadd.f32 %v18335_v22, %v12980_v29  ;;  %v12655_v56 = vcombine.low %v18456_v20, %v18458_v60  ;;  %13020 = vmatpush3.bf16.msra.mxu1 %v13501_v59  ;;  %v13504_v3 = vld [vmem:[%s20198_s3 + $0x138] sm:$0xff]  }
 0x5b4   : > { %v8230_v2 = vor.u32 %v8228_v21, %v8227_v25  ;;  %v8316_v50 = vsel %vm14549_vm11, %v8227_v25, 0  ;;  %10486 = vrot.lane.b32.xlu0 %v12641_v14, %s14228_s12  ;;  %v8061_v8 = vadd.f32 1.0, %v13825_v62  ;;  %v9710_v32 = vshrl.u32 %v18325_v45, 16  ;;  %v18493_v54 = vld [vmem:[#allocation2 + $0xc] sm:$0xf]  ;;  %13021 = vmatprep.subr.bf16.mxu1 %v13502_v42 }
 0x5b5   : > { %v12509_v63 = vcombine.low %v8316_v50, %v8316_v50  ;;  %13828 = vpow2.f32 %v8026_v38  ;;  %v8993_v12 = vsel %vm14364_vm6, %v8991_v5, %v8992_v24  ;;  %v18484_v27 = vadd.f32 %v17886_v37, %v7786_v19  ;;  %v8528_v38 = vld [vmem:[#allocation2 + $0x3c] sm:$0xf]  ;;  %v18509_v5 = vld [vmem:[#allocation2 + $0x18] sm:$0xf] }
 0x5b6   : > { %v8302_v36 = vsel %vm14549_vm11, 0, %v8230_v2  ;;  %v12600_v43 = vcombine.low %v8990_v16, %v8993_v12  ;;  %13830 = vrcp.f32 %v8061_v8  ;;  %v9093_v58 = vshrl.u32 %v18493_v54, 16 }
 0x5b7   : > { %v12507_v1 = vcombine.low %v8302_v36, %v8302_v36  ;;  %v12508_v13 = vcombine.high %v8302_v36, %v8302_v36  ;;  %8502 = vst.msk [vmem:[#allocation2 + $0x74] sm:$0x1] %vm20603_vm10, %v12509_v63  ;;  %v7979_v37 = vsub.f32 0.0, %v18484_v27  ;;  %v12614_v23 = vcombine.low %v18476_v7, %v18478_v39  ;;  %13022 = vmatpush3.bf16.msra.mxu1 %v13504_v3 }
 0x5b8   : > { %10292 = vrot.lane.b32.xlu1 %v12600_v43, %s14227_s10  ;;  %10570 = vrot.lane.b32.xlu0 %v12655_v56, %s14227_s10  ;;  %v9096_v25 = vshll.u32 %v18493_v54, 16  ;;  %v12983_v21 = vadd.f32 %v18290_v41, %v18284_v31  ;;  %v9703_v14 = vor.u32 %v18442_v46, %v18388_v52  ;;  %v9706_v29 = vshll.u32 %v18325_v45, 16  ;;  %v13505_v45 = vld [vmem:[%s20198_s3 + $0x180] sm:$0xff]  }
 0x5b9   : > { %8500 = vst.msk [vmem:[#allocation2 + $0x6c] sm:$0xf] %vm20604_vm14, %v12507_v1  ;;  %v9117_v24 = vshrl.u32 %v18509_v5, 16  ;;  %v8028_v59 = vmul.f32 1.442695, %v7979_v37  ;;  %v9721_v62 = vshrl.u32 %v18456_v20, 16  ;;  %13023 = vmatprep.subr.bf16.mxu1 %v13505_v45  ;;  %vm20620_vm14 = vmmov %vm20614_vm13 }
 0x5ba   : > { %8501 = vst.msk [vmem:[#allocation2 + $0x70] sm:$0xf] %vm20605_vm0, %v12508_v13  ;;  %v13827_v16 = vpop.eup %13826  ;;  %v9712_v2 = vrot.slane %v9710_v32, 4  ;;  %v9724_v50 = vshll.u32 %v18456_v20, 16  ;;  %v7791_v31 = vadd.f32 %v18335_v22, %v12983_v21  ;;  %v9704_v41 = vrot.slane %v9703_v14, 4 }
 0x5bb   : > { %v9708_v52 = vrot.slane %v9706_v29, 5  ;;  %13832 = vpow2.f32 %v8028_v59  ;;  %v9716_v46 = vshll.u32 %v18396_v47, 16  ;;  %v8681_v19 = vshrl.u32 %v8528_v38, 16  ;;  %v9964_v29 = vld [vmem:[#allocation2 + $0x48] sm:$0xe] }
 0x5bc   : > { %10376 = vrot.lane.b32.xlu1 %v12614_v23, %s14229_s17  ;;  %v8684_v56 = vshll.u32 %v8528_v38, 16  ;;  %v8116_v63 = vmul.f32 %v13827_v16, %v18348_v35  ;;  %v18522_v8 = vadd.f32 %v17876_v55, %v7791_v31  ;;  %v8690_v13 = vshll.u32 %v18425_v0, 16  ;;  %v20606_v16 = vld [vmem:[#allocation25_spill] sm:$0xff]  ;;  %v18537_v45 = vld [vmem:[#allocation2 + $0x50] sm:$0x1] }
 0x5bd   : > { %v9709_v12 = vsel %vm14373_vm9, %v9704_v41, %v9708_v52  ;;  %v9713_v36 = vor.u32 %v9712_v2, %v9708_v52  ;;  %v9718_v32 = vrot.slane %v9716_v46, 5  ;;  %v8683_v43 = vrot.slane %v8681_v19, 4 }
 0x5be   : > { %v8686_v1 = vrot.slane %v8684_v56, 5  ;;  %v7980_v47 = vsub.f32 0.0, %v18522_v8  ;;  %v8694_v37 = vshrl.u32 %v18425_v0, 16  ;;  %v8700_v35 = vshll.u32 %v18445_v48, 16  ;;  %v9433_v56 = vld [vmem:[#allocation2 + $0x48] sm:$0xe] }
 0x5bf   : > { %v13829_v42 = vpop.eup %13828  ;;  %v9714_v3 = vrot.slane %v9713_v36, 4  ;;  %v8692_v21 = vrot.slane %v8690_v13, 5  ;;  %v12986_v14 = vadd.f32 %v18297_v49, %v18294_v6  ;;  %vm20607_vm12 = vnez %v20606_v16  ;;  %v13506_v6 = vld [vmem:[%s20198_s3 + $0x140] sm:$0xff]  }
 0x5c0   : > { %v8062_v55 = vadd.f32 1.0, %v13829_v42  ;;  %v8687_v23 = vor.u32 %v8686_v1, %v8683_v43  ;;  %v13831_v38 = vpop.eup %13830  ;;  %v8144_v59 = vsel %vm20607_vm12, %v8116_v63, 0.0  ;;  %v8030_v2 = vmul.f32 1.442695, %v7980_v47  ;;  %13024 = vmatpush3.bf16.msra.mxu1 %v13506_v6 }
 0x5c1   : > { %v9719_v31 = vsel %vm14373_vm9, %v9714_v3, %v9718_v32  ;;  %v8696_v41 = vrot.slane %v8694_v37, 4  ;;  %v8117_v0 = vmul.f32 %v13831_v38, %v18383_v61  ;;  %v7794_v46 = vadd.f32 %v18335_v22, %v12986_v14  ;;  %v9083_v32 = vld [vmem:[#allocation2 + $0x50] sm:$0x1]  ;;  %v18558_v38 = vld [vmem:[#allocation2 + $0x4c] sm:$0xf] }
 0x5c2   : > { %13834 = vrcp.f32 %v8062_v55  ;;  %v12668_v48 = vcombine.low %v9709_v12, %v9719_v31  ;;  %v8688_v52 = vrot.slane %v8687_v23, 4  ;;  %v12557_v19 = vrot.slane %v9964_v29, 9  ;;  %v8902_v31 = vld [vmem:[#allocation2 + $0x48] sm:$0xe] }
 0x5c3   : > { %13836 = vpow2.f32 %v8030_v2  ;;  %v8697_v49 = vor.u32 %v8696_v41, %v8692_v21  ;;  %v8145_v63 = vsel %vm20607_vm12, %v8117_v0, 0.0  ;;  %v8702_v12 = vrot.slane %v8700_v35, 5  ;;  %v13508_v41 = vld [vmem:[%s20198_s3 + $0x148] sm:$0xff]   ;;  %vm20621_vm12 = vmmov %vm20605_vm0 }
 0x5c4   : > { %10638 = vrot.lane.b32.xlu0 %v12668_v48, %s14229_s17  ;;  %v8693_v61 = vsel %vm14373_vm9, %v8688_v52, %v8692_v21  ;;  %v10046_v36 = vrot.slane %v18458_v60, 5  ;;  %v8163_v43 = vpack.c.bf16 %v8145_v63, %v8144_v59  ;;  %v18550_v13 = vadd.f32 %v17880_v15, %v7794_v46 }
 0x5c5   : > { %v8698_v1 = vrot.slane %v8697_v49, 4  ;;  %v10049_v42 = vrot.slane %v18537_v45, 5  ;;  %v13833_v47 = vpop.eup %13832  ;;  %v12544_v55 = vrot.slane %v9433_v56, 9  ;;  %v9521_v23 = vrot.slane %v18478_v39, 5  ;;  %v13507_v39 = vld [vmem:[%s20198_s3 + $0x188] sm:$0xff]  }
 0x5c6   : > { %v10047_v3 = vsel %vm14364_vm6, %v12557_v19, %v10046_v36  ;;  %v10048_v37 = vrot.slane %v10046_v36, 4  ;;  %v8232_v35 = vshrl.u32 %v8163_v43, 16  ;;  %v8063_v21 = vadd.f32 1.0, %v13833_v47  ;;  %v18576_v19 = vld [vmem:[#allocation2 + $0x50] sm:$0x1]  ;;  %13025 = vmatprep.subr.bf16.mxu1 %v13507_v39 }
 0x5c7   : > { %v8703_v14 = vsel %vm14373_vm9, %v8698_v1, %v8702_v12  ;;  %v9524_v29 = vrot.slane %v9083_v32, 5  ;;  %v8235_v15 = vshll.u32 %v8163_v43, 16  ;;  %v7981_v59 = vsub.f32 0.0, %v18550_v13  ;;  %v18584_v36 = vld [vmem:[#allocation2 + $0x54] sm:$0xf]  ;;  %13026 = vmatpush3.bf16.msra.mxu1 %v13508_v41 }
 0x5c8   : > { %v12586_v16 = vcombine.low %v8693_v61, %v8703_v14  ;;  %v10050_v2 = vsel %vm14364_vm6, %v10048_v37, %v10049_v42  ;;  %v8234_v0 = vrot.slane %v8232_v35, 7  ;;  %13838 = vrcp.f32 %v8063_v21  ;;  %v18586_v32 = vld [vmem:[#allocation2 + $0x58] sm:$0xf]  ;;  %v13512_v37 = vld [vmem:[%s20198_s3 + $0x150] sm:$0xff]  }
 0x5c9   : > { %v12683_v48 = vcombine.low %v10047_v3, %v10050_v2  ;;  %v9523_v52 = vrot.slane %v9521_v23, 4  ;;  %v18571_v6 = vrot.slane %v9721_v62, 4  ;;  %v8032_v49 = vmul.f32 1.442695, %v7981_v59  ;;  %v13510_v3 = vld [vmem:[%s20198_s3 + $0x190] sm:$0xff]  }
 0x5ca   : > { %10222 = vrot.lane.b32.xlu1 %v12586_v16, %s14228_s12  ;;  %v9522_v46 = vsel %vm14364_vm6, %v12544_v55, %v9521_v23  ;;  %v8996_v56 = vrot.slane %v18558_v38, 5  ;;  %v8237_v63 = vor.u32 %v8235_v15, %v8234_v0  ;;  %v8317_v61 = vsel %vm14549_vm11, %v8234_v0, 0  ;;  %13027 = vmatprep.subr.bf16.mxu1 %v13510_v3  ;;  %v18609_v2 = vld [vmem:[#allocation2 + $0x54] sm:$0xf] }
 0x5cb   : > { %13237 = vmatprep.mubr.msk.bf16.mxu0 %vm20608_vm5, %v12683_v48  ;;  %v9525_v62 = vsel %vm14364_vm6, %v9523_v52, %v9524_v29  ;;  %v12531_v12 = vrot.slane %v8902_v31, 9  ;;  %v12512_v1 = vcombine.low %v8317_v61, %v8317_v61  ;;  %v9726_v42 = vrot.slane %v9724_v50, 5  ;;  %v18611_v31 = vld [vmem:[#allocation2 + $0x58] sm:$0xf]  ;;  %13028 = vmatpush3.bf16.msra.mxu1 %v13512_v37  ;;  %v8530_v52 = vld [vmem:[#allocation2 + $0x48] sm:$0xf] }
 0x5cc   : > { %v13835_v43 = vpop.eup %13834  ;;  %13840 = vpow2.f32 %v8032_v49  ;;  %v12642_v47 = vcombine.low %v9522_v46, %v9525_v62  ;;  %v8303_v23 = vsel %vm14549_vm11, 0, %v8237_v63  ;;  %v8998_v21 = vrot.slane %v8996_v56, 4  ;;  %v20612_v63 = vld [vmem:[#allocation32_spill] sm:$0xff] }
 0x5cd   : > { %v13837_v55 = vpop.eup %13836  ;;  %v8118_v35 = vmul.f32 %v13835_v43, %v18430_v51  ;;  %v8999_v20 = vrot.slane %v18576_v19, 5  ;;  %v12510_v50 = vcombine.low %v8303_v23, %v8303_v23  ;;  %v12511_v14 = vcombine.high %v8303_v23, %v8303_v23  ;;  %8505 = vst.msk [vmem:[#allocation2 + $0x80] sm:$0x1] %vm20609_vm15, %v12512_v1 }
 0x5ce   : > { %v9734_v29 = vshrl.u32 %v18458_v60, 16  ;;  %10488 = vrot.lane.b32.xlu0 %v12642_v47, %s14228_s12  ;;  %v12656_v15 = vcombine.low %v18584_v36, %v18586_v32  ;;  %v8064_v16 = vadd.f32 1.0, %v13837_v55  ;;  %v8997_v59 = vsel %vm14364_vm6, %v12531_v12, %v8996_v56  ;;  %v13514_v56 = vld [vmem:[%s20198_s3 + $0x158] sm:$0xff]  }
 0x5cf   : > { %v9000_v51 = vsel %vm14364_vm6, %v8998_v21, %v8999_v20  ;;  %v18615_v39 = vrot.slane %v9093_v58, 4  ;;  %v18619_v41 = vrot.slane %v9096_v25, 5  ;;  %v9120_v0 = vshll.u32 %v18509_v5, 16  ;;  %8503 = vst.msk [vmem:[#allocation2 + $0x78] sm:$0xf] %vm20610_vm4, %v12510_v50  ;;  %v13513_v25 = vld [vmem:[%s20198_s3 + $0x198] sm:$0xff]   ;;  %vm20624_vm4 = vmmov %vm20614_vm13 }
 0x5d0   : > { %8504 = vst.msk [vmem:[#allocation2 + $0x7c] sm:$0xf] %vm20611_vm8, %v12511_v14  ;;  %v12601_v48 = vcombine.low %v8997_v59, %v9000_v51  ;;  %v18626_v49 = vrot.slane %v9117_v24, 4  ;;  %v9745_v46 = vshrl.u32 %v18584_v36, 16  ;;  %v12989_v58 = vadd.f32 %v18368_v33, %v18363_v4  ;;  %13029 = vmatprep.subr.bf16.mxu1 %v13513_v25  ;;  %v9965_v50 = vld [vmem:[#allocation2 + $0x54] sm:$0xe]  ;;  %vm20625_vm8 = vmmov %vm20608_vm5 }
 0x5d1   : > { %v9727_v54 = vor.u32 %v9726_v42, %v18571_v6  ;;  %vm20613_vm2 = vnez %v20612_v63  ;;  %v12615_v4 = vcombine.low %v18609_v2, %v18611_v31  ;;  %v9730_v33 = vshll.u32 %v18458_v60, 16  ;;  %13030 = vmatpush3.bf16.msra.mxu1 %v13514_v56  ;;  %v8532_v5 = vld [vmem:[#allocation2 + $0x54] sm:$0xf] }
 0x5d2   : > { %v8146_v61 = vsel %vm20613_vm2, %v8118_v35, 0.0  ;;  %10294 = vrot.lane.b32.xlu1 %v12601_v48, %s14227_s10  ;;  %10572 = vrot.lane.b32.xlu0 %v12656_v15, %s14227_s10  ;;  %v9736_v24 = vrot.slane %v9734_v29, 4  ;;  %v13839_v6 = vpop.eup %13838  ;;  %13842 = vrcp.f32 %v8064_v16  ;;  %v9740_v62 = vshll.u32 %v18537_v45, 16 }
 0x5d3   : > { %v8705_v12 = vshrl.u32 %v8530_v52, 16  ;;  %v8708_v43 = vshll.u32 %v8530_v52, 16  ;;  %v8119_v1 = vmul.f32 %v13839_v6, %v18484_v27  ;;  %v9728_v42 = vrot.slane %v9727_v54, 4  ;;  %v18658_v52 = vld [vmem:[#allocation2 + $0x5c] sm:$0x1] }
 0x5d4   : > { %v9732_v47 = vrot.slane %v9730_v33, 5  ;;  %v8714_v3 = vshll.u32 %v18558_v38, 16  ;;  %v9748_v37 = vshll.u32 %v18584_v36, 16  ;;  %v8718_v60 = vshrl.u32 %v18558_v38, 16  ;;  %v9434_v33 = vld [vmem:[#allocation2 + $0x54] sm:$0xe] }
 0x5d5   : > { %v8707_v55 = vrot.slane %v8705_v12, 4  ;;  %v8710_v23 = vrot.slane %v8708_v43, 5  ;;  %v8147_v45 = vsel %vm20613_vm2, %v8119_v1, 0.0  ;;  %v8724_v27 = vshll.u32 %v18576_v19, 16  ;;  %vm20626_vm2 = vmmov %vm20605_vm0 }
 0x5d6   : > { %v13841_v35 = vpop.eup %13840  ;;  %10378 = vrot.lane.b32.xlu1 %v12615_v4, %s14229_s17  ;;  %v9737_v21 = vor.u32 %v9736_v24, %v9732_v47  ;;  %v8716_v20 = vrot.slane %v8714_v3, 5  ;;  %v8164_v14 = vpack.c.bf16 %v8147_v45, %v8146_v61  ;;  %v8720_v16 = vrot.slane %v8718_v60, 4 }
 0x5d7   : > { %v8065_v29 = vadd.f32 1.0, %v13841_v35  ;;  %v8711_v15 = vor.u32 %v8710_v23, %v8707_v55  ;;  %v9733_v59 = vsel %vm14373_vm9, %v9728_v42, %v9732_v47  ;;  %v9742_v38 = vrot.slane %v9740_v62, 5  ;;  %v18995_v53 = vld [vmem:[#allocation2 + $0x7c] sm:$0xf] }
 0x5d8   : > { %v9738_v51 = vrot.slane %v9737_v21, 4  ;;  %v12992_v48 = vadd.f32 %v18386_v9, %v18380_v11  ;;  %v8239_v54 = vshrl.u32 %v8164_v14, 16  ;;  %v12558_v56 = vrot.slane %v9965_v50, 9  ;;  %v9084_v21 = vld [vmem:[#allocation2 + $0x5c] sm:$0x1] }
 0x5d9   : > { %13844 = vrcp.f32 %v8065_v29  ;;  %v8712_v25 = vrot.slane %v8711_v15, 4  ;;  %v8721_v63 = vor.u32 %v8720_v16, %v8716_v20  ;;  %v8726_v61 = vrot.slane %v8724_v27, 5  ;;  %v8903_v27 = vld [vmem:[#allocation2 + $0x54] sm:$0xe] }
 0x5da   : > { %v9743_v19 = vsel %vm14373_vm9, %v9738_v51, %v9742_v38  ;;  %v10053_v4 = vrot.slane %v18586_v32, 5  ;;  %v8241_v24 = vrot.slane %v8239_v54, 7  ;;  %v8242_v6 = vshll.u32 %v8164_v14, 16  ;;  %v18687_v38 = vld [vmem:[#allocation2 + $0x5c] sm:$0x1] }
 0x5db   : > { %v12669_v62 = vcombine.low %v9733_v59, %v9743_v19  ;;  %v10056_v12 = vrot.slane %v18658_v52, 5  ;;  %v8717_v11 = vsel %vm14373_vm9, %v8712_v25, %v8716_v20  ;;  %v8722_v9 = vrot.slane %v8721_v63, 4  ;;  %v18679_v20 = vld [vmem:[#allocation2 + $0x58] sm:$0xf] }
 0x5dc   : > { %v10055_v43 = vrot.slane %v10053_v4, 4  ;;  %v7799_v1 = vadd.f32 %v18335_v22, %v12989_v58  ;;  %v13843_v42 = vpop.eup %13842  ;;  %v8244_v47 = vor.u32 %v8242_v6, %v8241_v24  ;;  %v8318_v3 = vsel %vm14549_vm11, %v8241_v24, 0 }
 0x5dd   : > { %10640 = vrot.lane.b32.xlu0 %v12669_v62, %s14229_s17  ;;  %v10054_v55 = vsel %vm14364_vm6, %v12558_v56, %v10053_v4  ;;  %v12545_v23 = vrot.slane %v9434_v33, 9  ;;  %v12515_v60 = vcombine.low %v8318_v3, %v8318_v3  ;;  %v8727_v35 = vsel %vm14373_vm9, %v8722_v9, %v8726_v61  ;;  %v18721_v3 = vld [vmem:[#allocation2 + $0x64] sm:$0xf] }
 0x5de   : > { %v10057_v45 = vsel %vm14364_vm6, %v10055_v43, %v10056_v12  ;;  %v18677_v58 = vadd.f32 %v18157_v10, %v7799_v1  ;;  %v8304_v50 = vsel %vm14549_vm11, 0, %v8244_v47  ;;  %v12587_v14 = vcombine.low %v8717_v11, %v8727_v35  ;;  %v18704_v12 = vld [vmem:[#allocation2 + $0x60] sm:$0xf]  ;;  %v18706_v11 = vld [vmem:[#allocation2 + $0x64] sm:$0xf] }
 0x5df   : > { %v12684_v29 = vcombine.low %v10054_v55, %v10057_v45  ;;  %v9528_v15 = vrot.slane %v18611_v31, 5  ;;  %v12513_v16 = vcombine.low %v8304_v50, %v8304_v50  ;;  %v12514_v59 = vcombine.high %v8304_v50, %v8304_v50  ;;  %8508 = vst.msk [vmem:[#allocation2 + $0x8c] sm:$0x1] %vm20614_vm13, %v12515_v60  ;;  %v18719_v47 = vld [vmem:[#allocation2 + $0x60] sm:$0xf]  ;;  %vm20627_vm13 = vmmov %vm20605_vm0 }
 0x5e0   : > { %v8120_v51 = vmul.f32 %v13843_v42, %v18522_v8  ;;  %v7982_v10 = vsub.f32 0.0, %v18677_v58  ;;  %10224 = vrot.lane.b32.xlu1 %v12587_v14, %s14228_s12  ;;  %v9531_v25 = vrot.slane %v9084_v21, 5  ;;  %v12532_v56 = vrot.slane %v8903_v27, 9  ;;  %v18733_v35 = vld [vmem:[#allocation2 + $0x24] sm:$0xf] }
 0x5e1   : > { %13238 = vmatmul.mubr.msk.bf16.gmra.mrb[124].mxu0 %vm20615_vm7, %v12684_v29  ;;  %v9530_v54 = vrot.slane %v9528_v15, 4  ;;  %v9003_v19 = vrot.slane %v18679_v20, 5  ;;  %8506 = vst.msk [vmem:[#allocation2 + $0x84] sm:$0xf] %vm20616_vm1, %v12513_v16  ;;  %v9747_v8 = vrot.slane %v9745_v46, 4  ;;  %v9750_v31 = vrot.slane %v9748_v37, 5  ;;  %vm20636_vm1 = vmmov %vm20624_vm4 }
 0x5e2   : > { %8507 = vst.msk [vmem:[#allocation2 + $0x88] sm:$0xf] %vm20617_vm3, %v12514_v59  ;;  %v8034_v63 = vmul.f32 1.442695, %v7982_v10  ;;  %v7802_v61 = vadd.f32 %v18335_v22, %v12992_v48  ;;  %v9529_v33 = vsel %vm14364_vm6, %v12545_v23, %v9528_v15  ;;  %v9006_v62 = vrot.slane %v18687_v38, 5  ;;  %v20618_v48 = vld [vmem:[#allocation31_spill] sm:$0xff]  ;;  %vm20639_vm3 = vmmov %vm20605_vm0 }
 0x5e3   : > { %v13845_v4 = vpop.eup %13844  ;;  %v9532_v24 = vsel %vm14364_vm6, %v9530_v54, %v9531_v25  ;;  %v9005_v6 = vrot.slane %v9003_v19, 4  ;;  %vm20619_vm10 = vnez %v20618_v48  ;;  %v9758_v43 = vshrl.u32 %v18586_v32, 16 }
 0x5e4   : > { %v8121_v36 = vmul.f32 %v13845_v4, %v18550_v13  ;;  %13846 = vpow2.f32 %v8034_v63  ;;  %v12643_v46 = vcombine.low %v9529_v33, %v9532_v24  ;;  %v18710_v37 = vadd.f32 %v18198_v57, %v7802_v61 }
 0x5e5   : > { %v8148_v9 = vsel %vm20619_vm10, %v8120_v51, 0.0  ;;  %v9004_v1 = vsel %vm14364_vm6, %v12532_v56, %v9003_v19  ;;  %v9007_v42 = vsel %vm14364_vm6, %v9005_v6, %v9006_v62  ;;  %v12657_v23 = vcombine.low %v18704_v12, %v18706_v11 }
 0x5e6   : > { %v8149_v13 = vsel %vm20619_vm10, %v8121_v36, 0.0  ;;  %10490 = vrot.lane.b32.xlu0 %v12643_v46, %s14228_s12  ;;  %v12602_v57 = vcombine.low %v9004_v1, %v9007_v42  ;;  %v7983_v55 = vsub.f32 0.0, %v18710_v37  ;;  %v18731_v60 = vrot.slane %v9120_v0, 5  ;;  %v18742_v0 = vld [vmem:[#allocation2 + $0x30] sm:$0xf]  ;;  %vm20640_vm10 = vmmov %vm20605_vm0 }
 0x5e7   : > { %v9141_v45 = vshrl.u32 %v18733_v35, 16  ;;  %v9144_v21 = vshll.u32 %v18733_v35, 16  ;;  %v8165_v27 = vpack.c.bf16 %v8149_v13, %v8148_v9  ;;  %v12616_v14 = vcombine.low %v18719_v47, %v18721_v3 }
 0x5e8   : > { %10296 = vrot.lane.b32.xlu1 %v12602_v57, %s14227_s10  ;;  %v8036_v50 = vmul.f32 1.442695, %v7983_v55  ;;  %v12995_v29 = vadd.f32 %v18427_v34, %v18421_v28  ;;  %v9751_v15 = vor.u32 %v9750_v31, %v9747_v8  ;;  %v9165_v16 = vshrl.u32 %v18742_v0, 16  ;;  %v9966_v55 = vld [vmem:[#allocation2 + $0x60] sm:$0xe] }
 0x5e9   : > { %v8246_v59 = vshrl.u32 %v8165_v27, 16  ;;  %v8249_v51 = vshll.u32 %v8165_v27, 16  ;;  %v9754_v10 = vshll.u32 %v18586_v32, 16  ;;  %v9760_v56 = vrot.slane %v9758_v43, 4 }
 0x5ea   : > { %13848 = vpow2.f32 %v8036_v50  ;;  %10574 = vrot.lane.b32.xlu0 %v12657_v23, %s14227_s10  ;;  %v7807_v54 = vadd.f32 %v18335_v22, %v12995_v29  ;;  %v9752_v25 = vrot.slane %v9751_v15, 4  ;;  %v9764_v28 = vshll.u32 %v18658_v52, 16  ;;  %v18763_v23 = vpop.permute.xlu1 %10212 }
 0x5eb   : > { %v8248_v19 = vrot.slane %v8246_v59, 7  ;;  %v9756_v63 = vrot.slane %v9754_v10, 5  ;;  %v8729_v34 = vshrl.u32 %v8532_v5, 16  ;;  %v8732_v31 = vshll.u32 %v8532_v5, 16  ;;  %v18772_v59 = vld [vmem:[#allocation2 + $0x68] sm:$0x1] }
 0x5ec   : > { %10380 = vrot.lane.b32.xlu1 %v12616_v14, %s14229_s17  ;;  %v18751_v8 = vadd.f32 %v18153_v17, %v7807_v54  ;;  %v8738_v32 = vshll.u32 %v18679_v20, 16  ;;  %v8742_v61 = vshrl.u32 %v18679_v20, 16  ;;  %v9766_v46 = vrot.slane %v9764_v28, 5 }
 0x5ed   : > { %v8251_v4 = vor.u32 %v8249_v51, %v8248_v19  ;;  %v8319_v33 = vsel %vm14549_vm11, %v8248_v19, 0  ;;  %v9757_v24 = vsel %vm14373_vm9, %v9752_v25, %v9756_v63  ;;  %v9761_v6 = vor.u32 %v9760_v56, %v9756_v63  ;;  %v9435_v56 = vld [vmem:[#allocation2 + $0x60] sm:$0xe] }
 0x5ee   : > { %v13847_v52 = vpop.eup %13846  ;;  %v12518_v62 = vcombine.low %v8319_v33, %v8319_v33  ;;  %v7984_v36 = vsub.f32 0.0, %v18751_v8  ;;  %v8731_v17 = vrot.slane %v8729_v34, 4  ;;  %v8734_v20 = vrot.slane %v8732_v31, 5  ;;  %v18779_v31 = vld [vmem:[#allocation2 + $0x64] sm:$0xf] }
 0x5ef   : > { %v8305_v48 = vsel %vm14549_vm11, 0, %v8251_v4  ;;  %v8066_v9 = vadd.f32 1.0, %v13847_v52  ;;  %v9762_v43 = vrot.slane %v9761_v6, 4  ;;  %v8740_v57 = vrot.slane %v8738_v32, 5  ;;  %v8904_v4 = vld [vmem:[#allocation2 + $0x60] sm:$0xe] }
 0x5f0   : > { %v12516_v1 = vcombine.low %v8305_v48, %v8305_v48  ;;  %v12517_v42 = vcombine.high %v8305_v48, %v8305_v48  ;;  %8511 = vst.msk [vmem:[#allocation2 + $0x98] sm:$0x1] %vm20620_vm14, %v12518_v62  ;;  %v8038_v13 = vmul.f32 1.442695, %v7984_v36  ;;  %v8735_v50 = vor.u32 %v8734_v20, %v8731_v17  ;;  %v18788_v62 = vpop.permute.xlu1 %10282  ;;  %vm20642_vm14 = vmmov %vm20608_vm5 }
 0x5f1   : > { %13850 = vrcp.f32 %v8066_v9  ;;  %v9767_v27 = vsel %vm14373_vm9, %v9762_v43, %v9766_v46  ;;  %v8744_v14 = vrot.slane %v8742_v61, 4  ;;  %v8748_v15 = vshll.u32 %v18687_v38, 16  ;;  %v18794_v46 = vld [vmem:[#allocation2 + $0x68] sm:$0x1] }
 0x5f2   : > { %8509 = vst.msk [vmem:[#allocation2 + $0x90] sm:$0xf] %vm20605_vm0, %v12516_v1  ;;  %13852 = vpow2.f32 %v8038_v13  ;;  %v12670_v29 = vcombine.low %v9757_v24, %v9767_v27  ;;  %v12998_v5 = vadd.f32 %v18447_v30, %v18432_v44  ;;  %v8736_v51 = vrot.slane %v8735_v50, 4  ;;  %vm20645_vm0 = vmmov %vm20608_vm5 }
 0x5f3   : > { %8510 = vst.msk [vmem:[#allocation2 + $0x94] sm:$0xf] %vm20621_vm12, %v12517_v42  ;;  %v8745_v10 = vor.u32 %v8744_v14, %v8740_v57  ;;  %v12559_v54 = vrot.slane %v9966_v55, 9  ;;  %v10060_v25 = vrot.slane %v18706_v11, 5  ;;  %v9769_v63 = vshrl.u32 %v18704_v12, 16 }
 0x5f4   : > { %v13849_v19 = vpop.eup %13848  ;;  %v9772_v28 = vshll.u32 %v18704_v12, 16  ;;  %10642 = vrot.lane.b32.xlu0 %v12670_v29, %s14229_s17  ;;  %v8750_v34 = vrot.slane %v8748_v15, 5  ;;  %v7810_v38 = vadd.f32 %v18335_v22, %v12998_v5  ;;  %v8741_v30 = vsel %vm14373_vm9, %v8736_v51, %v8740_v57  ;;  %v9085_v12 = vld [vmem:[#allocation2 + $0x68] sm:$0x1]  ;;  %v18812_v51 = vld [vmem:[#allocation2 + $0x6c] sm:$0xf] }
 0x5f5   : > { %v8067_v44 = vadd.f32 1.0, %v13849_v19  ;;  %v8746_v32 = vrot.slane %v8745_v10, 4  ;;  %v10063_v61 = vrot.slane %v18772_v59, 5  ;;  %v10062_v24 = vrot.slane %v10060_v25, 4  ;;  %v18814_v10 = vld [vmem:[#allocation2 + $0x70] sm:$0xf] }
 0x5f6   : > { %v18785_v33 = vadd.f32 %v18191_v18, %v7810_v38  ;;  %v12546_v6 = vrot.slane %v9435_v56, 9  ;;  %v9535_v52 = vrot.slane %v18721_v3, 5  ;;  %v10061_v36 = vsel %vm14364_vm6, %v12559_v54, %v10060_v25  ;;  %v9066_v19 = vld [vmem:[#allocation2 + $0x6c] sm:$0xf] }
 0x5f7   : > { %13854 = vrcp.f32 %v8067_v44  ;;  %v8751_v22 = vsel %vm14373_vm9, %v8746_v32, %v8750_v34  ;;  %v9010_v17 = vrot.slane %v18779_v31, 5  ;;  %v10064_v9 = vsel %vm14364_vm6, %v10062_v24, %v10063_v61  ;;  %v8534_v32 = vld [vmem:[#allocation2 + $0x60] sm:$0xf] }
 0x5f8   : > { %v12588_v18 = vcombine.low %v8741_v30, %v8751_v22  ;;  %v7985_v48 = vsub.f32 0.0, %v18785_v33  ;;  %v12533_v3 = vrot.slane %v8904_v4, 9  ;;  %v12685_v43 = vcombine.low %v10061_v36, %v10064_v9  ;;  %v18834_v4 = vld [vmem:[#allocation2 + $0x3c] sm:$0xf]  ;;  %v20622_v9 = vld [vmem:[#allocation36_spill] sm:$0xff] }
 0x5f9   : > { %v9537_v20 = vrot.slane %v9535_v52, 4  ;;  %v9538_v1 = vrot.slane %v9085_v12, 5  ;;  %v9012_v42 = vrot.slane %v9010_v17, 4  ;;  %v9771_v13 = vrot.slane %v9769_v63, 4  ;;  %v18820_v63 = vld [vmem:[#allocation2 + $0x70] sm:$0xf] }
 0x5fa   : > { %v9774_v57 = vrot.slane %v9772_v28, 5  ;;  %10226 = vrot.lane.b32.xlu1 %v12588_v18, %s14228_s12  ;;  %v8040_v55 = vmul.f32 1.442695, %v7985_v48  ;;  %v9013_v27 = vrot.slane %v18794_v46, 5  ;;  %v18804_v14 = vrot.slane %v9141_v45, 4  ;;  %13241 = vmatprep.mubr.msk.bf16.mxu0 %vm20608_vm5, %v12685_v43  ;;  %v18822_v28 = vpop.permute.xlu1 %10366 }
 0x5fb   : > { %v13851_v50 = vpop.eup %13850  ;;  %v9782_v29 = vshrl.u32 %v18706_v11, 16  ;;  %v9536_v15 = vsel %vm14364_vm6, %v12546_v6, %v9535_v52  ;;  %v9539_v5 = vsel %vm14364_vm6, %v9537_v20, %v9538_v1  ;;  %v9011_v45 = vsel %vm14364_vm6, %v12533_v3, %v9010_v17 }
 0x5fc   : > { %v13853_v54 = vpop.eup %13852  ;;  %13856 = vpow2.f32 %v8040_v55  ;;  %v12644_v25 = vcombine.low %v9536_v15, %v9539_v5  ;;  %v9014_v56 = vsel %vm14364_vm6, %v9012_v42, %v9013_v27  ;;  %v18826_v34 = vrot.slane %v9144_v21, 5 }
 0x5fd   : > { %v9168_v38 = vshll.u32 %v18742_v0, 16  ;;  %v8122_v44 = vmul.f32 %v13851_v50, %v18677_v58  ;;  %v12603_v30 = vcombine.low %v9011_v45, %v9014_v56  ;;  %v18832_v61 = vrot.slane %v9165_v16, 4  ;;  %v18843_v16 = vpop.permute.xlu0 %10478 }
 0x5fe   : > { %v9189_v24 = vshrl.u32 %v18834_v4, 16  ;;  %10492 = vrot.lane.b32.xlu0 %v12644_v25, %s14228_s12  ;;  %v12658_v35 = vcombine.low %v18812_v51, %v18814_v10  ;;  %v9775_v21 = vor.u32 %v9774_v57, %v9771_v13  ;;  %v8068_v12 = vadd.f32 1.0, %v13853_v54  ;;  %v18854_v55 = vpop.permute.xlu1 %10284 }
 0x5ff   : > { %10298 = vrot.lane.b32.xlu1 %v12603_v30, %s14227_s10  ;;  %v12617_v58 = vcombine.low %v9066_v19, %v18820_v63  ;;  %v9778_v6 = vshll.u32 %v18706_v11, 16  ;;  %v9784_v52 = vrot.slane %v9782_v29, 4  ;;  %v9793_v22 = vshrl.u32 %v18812_v51, 16  ;;  %v9967_v29 = vld [vmem:[#allocation2 + $0x6c] sm:$0xe] }
 0x600   : > { %v9776_v36 = vrot.slane %v9775_v21, 4  ;;  %v9788_v17 = vshll.u32 %v18772_v59, 16  ;;  %v8753_v18 = vshrl.u32 %v8534_v32, 16  ;;  %vm20623_vm15 = vnez %v20622_v9 }
 0x601   : > { %v13855_v48 = vpop.eup %13854  ;;  %v8150_v3 = vsel %vm20623_vm15, %v8122_v44, 0.0  ;;  %v9780_v43 = vrot.slane %v9778_v6, 5  ;;  %v8756_v20 = vshll.u32 %v8534_v32, 16  ;;  %v8762_v1 = vshll.u32 %v18779_v31, 16  ;;  %v18857_v15 = vpop.permute.xlu0 %10562  ;;  %v9436_v44 = vld [vmem:[#allocation2 + $0x6c] sm:$0xe] }
 0x602   : > { %v8123_v42 = vmul.f32 %v13855_v48, %v18710_v37  ;;  %10576 = vrot.lane.b32.xlu0 %v12658_v35, %s14227_s10  ;;  %v8755_v11 = vrot.slane %v8753_v18, 4  ;;  %v8766_v13 = vshrl.u32 %v18779_v31, 16  ;;  %v8772_v57 = vshll.u32 %v18794_v46, 16  ;;  %v18863_v46 = vld [vmem:[#allocation2 + $0x74] sm:$0x1] }
 0x603   : > { %13858 = vrcp.f32 %v8068_v12  ;;  %10382 = vrot.lane.b32.xlu1 %v12617_v58, %s14229_s17  ;;  %v9785_v59 = vor.u32 %v9784_v52, %v9780_v43  ;;  %v8758_v27 = vrot.slane %v8756_v20, 5  ;;  %v8764_v50 = vrot.slane %v8762_v1, 5  ;;  %v18867_v58 = vpop.permute.xlu1 %10368 }
 0x604   : > { %v8151_v37 = vsel %vm20623_vm15, %v8123_v42, 0.0  ;;  %v9781_v5 = vsel %vm14373_vm9, %v9776_v36, %v9780_v43  ;;  %v9790_v31 = vrot.slane %v9788_v17, 5  ;;  %v8768_v54 = vrot.slane %v8766_v13, 4 }
 0x605   : > { %v8166_v25 = vpack.c.bf16 %v8151_v37, %v8150_v3  ;;  %v9786_v45 = vrot.slane %v9785_v59, 4  ;;  %v8759_v56 = vor.u32 %v8758_v27, %v8755_v11  ;;  %v10067_v19 = vrot.slane %v18814_v10, 5  ;;  %v18872_v42 = vpop.permute.xlu0 %10480  ;;  %v9086_v59 = vld [vmem:[#allocation2 + $0x74] sm:$0x1] }
 0x606   : > { %v13857_v30 = vpop.eup %13856  ;;  %v9796_v32 = vshll.u32 %v18812_v51, 16  ;;  %v8769_v35 = vor.u32 %v8768_v54, %v8764_v50  ;;  %v8774_v21 = vrot.slane %v8772_v57, 5  ;;  %v12560_v12 = vrot.slane %v9967_v29, 9  ;;  %v18886_v54 = vld [vmem:[#allocation2 + $0x70] sm:$0xf] }
 0x607   : > { %v8253_v6 = vshrl.u32 %v8166_v25, 16  ;;  %v8069_v52 = vadd.f32 1.0, %v13857_v30  ;;  %v9791_v36 = vsel %vm14373_vm9, %v9786_v45, %v9790_v31  ;;  %v10070_v17 = vrot.slane %v18863_v46, 5 }
 0x608   : > { %v12671_v18 = vcombine.low %v9781_v5, %v9791_v36  ;;  %v8760_v48 = vrot.slane %v8759_v56, 4  ;;  %v8770_v9 = vrot.slane %v8769_v35, 4  ;;  %v12547_v3 = vrot.slane %v9436_v44, 9  ;;  %v18891_v44 = vpop.permute.xlu1 %10214 }
 0x609   : > { %v8255_v43 = vrot.slane %v8253_v6, 7  ;;  %v8256_v20 = vshll.u32 %v8166_v25, 16  ;;  %13860 = vrcp.f32 %v8069_v52  ;;  %v10069_v1 = vrot.slane %v10067_v19, 4  ;;  %v18896_v6 = vld [vmem:[#allocation2 + $0x74] sm:$0x1]  ;;  %v18898_v52 = vpop.permute.xlu0 %10564 }
 0x60a   : > { %10644 = vrot.lane.b32.xlu0 %v12671_v18, %s14229_s17  ;;  %v8765_v11 = vsel %vm14373_vm9, %v8760_v48, %v8764_v50  ;;  %v8775_v13 = vsel %vm14373_vm9, %v8770_v9, %v8774_v21  ;;  %v10068_v57 = vsel %vm14364_vm6, %v12560_v12, %v10067_v19  ;;  %v9542_v27 = vrot.slane %v18820_v63, 5  ;;  %v8905_v50 = vld [vmem:[#allocation2 + $0x6c] sm:$0xe]  ;;  %v18907_v48 = vld [vmem:[#allocation2 + $0x78] sm:$0xf] }
 0x60b   : > { %v8258_v29 = vor.u32 %v8256_v20, %v8255_v43  ;;  %v8320_v37 = vsel %vm14549_vm11, %v8255_v43, 0  ;;  %v12589_v5 = vcombine.low %v8765_v11, %v8775_v13  ;;  %v10071_v31 = vsel %vm14364_vm6, %v10069_v1, %v10070_v17  ;;  %v18909_v9 = vld [vmem:[#allocation2 + $0x7c] sm:$0xf]  ;;  %v9068_v43 = vld [vmem:[#allocation2 + $0x78] sm:$0xf] }
 0x60c   : > { %v9192_v25 = vshll.u32 %v18834_v4, 16  ;;  %v12521_v45 = vcombine.low %v8320_v37, %v8320_v37  ;;  %v9795_v56 = vrot.slane %v9793_v22, 4  ;;  %v12686_v19 = vcombine.low %v10068_v57, %v10071_v31  ;;  %v18915_v57 = vld [vmem:[#allocation2 + $0x7c] sm:$0xf]  ;;  %v8536_v31 = vld [vmem:[#allocation2 + $0x6c] sm:$0xf]  ;;  %v18935_v4 = vpop.permute.xlu1 %10286 }
 0x60d   : > { %v13859_v63 = vpop.eup %13858  ;;  %v8306_v30 = vsel %vm14549_vm11, 0, %v8258_v29  ;;  %v9798_v35 = vrot.slane %v9796_v32, 5  ;;  %10228 = vrot.lane.b32.xlu1 %v12589_v5, %s14228_s12  ;;  %v9544_v21 = vrot.slane %v9542_v27, 4  ;;  %v9545_v12 = vrot.slane %v9086_v59, 5  ;;  %20630 = vst [vmem:[#allocation45_spill] sm:$0xff] %v18935_v4 }
 0x60e   : > { %v12519_v36 = vcombine.low %v8306_v30, %v8306_v30  ;;  %v12520_v17 = vcombine.high %v8306_v30, %v8306_v30  ;;  %8514 = vst.msk [vmem:[#allocation2 + $0xa4] sm:$0x1] %vm20624_vm4, %v12521_v45  ;;  %13242 = vmatmul.mubr.msk.bf16.gmra.mrb[128].mxu0 %vm20625_vm8, %v12686_v19  ;;  %v12534_v51 = vrot.slane %v8905_v50, 9  ;;  %v9017_v22 = vrot.slane %v18886_v54, 5  ;;  %vm20652_vm4 = vmmov %vm20645_vm0 }
 0x60f   : > { %v9543_v32 = vsel %vm14364_vm6, %v12547_v3, %v9542_v27  ;;  %v9546_v18 = vsel %vm14364_vm6, %v9544_v21, %v9545_v12  ;;  %v9806_v20 = vshrl.u32 %v18814_v10, 16  ;;  %v9020_v13 = vrot.slane %v18896_v6, 5 }
 0x610   : > { %8512 = vst.msk [vmem:[#allocation2 + $0x9c] sm:$0xf] %vm20626_vm2, %v12519_v36  ;;  %v12645_v1 = vcombine.low %v9543_v32, %v9546_v18  ;;  %v9019_v11 = vrot.slane %v9017_v22, 4  ;;  %v18919_v3 = vrot.slane %v9168_v38, 5  ;;  %v18923_v59 = vrot.slane %v9189_v24, 4 }
 0x611   : > { %8513 = vst.msk [vmem:[#allocation2 + $0xa0] sm:$0xf] %vm20627_vm13, %v12520_v17  ;;  %v18925_v27 = vrot.slane %v9192_v25, 5  ;;  %v8124_v29 = vmul.f32 %v13859_v63, %v18751_v8  ;;  %v9018_v37 = vsel %vm14364_vm6, %v12534_v51, %v9017_v22  ;;  %v12659_v0 = vcombine.low %v18907_v48, %v18909_v9  ;;  %v18938_v25 = vld [vmem:[#allocation2 + $0x48] sm:$0xf]  ;;  %v18942_v63 = vpop.permute.xlu0 %10632  ;;  %vm20656_vm13 = vmmov %vm20645_vm0 }
 0x612   : > { %20628 = vst [vmem:[#allocation49_spill] sm:$0xff] %v18923_v59  ;;  %10494 = vrot.lane.b32.xlu0 %v12645_v1, %s14228_s12  ;;  %v9021_v5 = vsel %vm14364_vm6, %v9019_v11, %v9020_v13  ;;  %v9799_v38 = vor.u32 %v9798_v35, %v9795_v56  ;;  %v9213_v50 = vshrl.u32 %v18476_v7, 16  ;;  %v9216_v8 = vshll.u32 %v18938_v25, 16  ;;  %v20631_v51 = vld [vmem:[#allocation35_spill] sm:$0xff]  ;;  %v9968_v1 = vld [vmem:[#allocation2 + $0x78] sm:$0xe] }
 0x613   : > { %20629 = vst [vmem:[#allocation40_spill] sm:$0xff] %v18925_v27  ;;  %v13861_v24 = vpop.eup %13860  ;;  %v12604_v45 = vcombine.low %v9018_v37, %v9021_v5  ;;  %v12618_v19 = vcombine.low %v9068_v43, %v18915_v57  ;;  %v9802_v56 = vshll.u32 %v18814_v10, 16  ;;  %v9808_v35 = vrot.slane %v9806_v20, 4 }
 0x614   : > { %v8125_v30 = vmul.f32 %v13861_v24, %v18785_v33  ;;  %v9800_v21 = vrot.slane %v9799_v38, 4  ;;  %v9812_v12 = vshll.u32 %v18863_v46, 16  ;;  %v8777_v7 = vshrl.u32 %v8536_v31, 16  ;;  %v18962_v24 = vld [vmem:[#allocation2 + $0x80] sm:$0x1] }
 0x615   : > { %10300 = vrot.lane.b32.xlu1 %v12604_v45, %s14227_s10  ;;  %v8780_v36 = vshll.u32 %v8536_v31, 16  ;;  %v8786_v17 = vshll.u32 %v18886_v54, 16  ;;  %vm20632_vm7 = vnez %v20631_v51  ;;  %v9804_v33 = vrot.slane %v9802_v56, 5  ;;  %v18964_v45 = vpop.permute.xlu0 %10482 }
 0x616   : > { %v8152_v22 = vsel %vm20632_vm7, %v8124_v29, 0.0  ;;  %v8153_v32 = vsel %vm20632_vm7, %v8125_v30, 0.0  ;;  %10578 = vrot.lane.b32.xlu0 %v12659_v0, %s14227_s10  ;;  %v8790_v10 = vshrl.u32 %v18886_v54, 16  ;;  %v8779_v43 = vrot.slane %v8777_v7, 4  ;;  %v18957_v29 = vpop.permute.xlu1 %10370  ;;  %vm20658_vm7 = vmmov %vm20645_vm0 }
 0x617   : > { %v8167_v18 = vpack.c.bf16 %v8153_v32, %v8152_v22  ;;  %v8782_v20 = vrot.slane %v8780_v36, 5  ;;  %v8796_v46 = vshll.u32 %v18896_v6, 16  ;;  %v9237_v11 = vshrl.u32 %v18609_v2, 16  ;;  %20633 = vst [vmem:[#allocation43_spill] sm:$0xff] %v18957_v29  ;;  %v19092_v29 = vld [vmem:[#allocation2 + $0x98] sm:$0x1] }
 0x618   : > { %v9809_v13 = vor.u32 %v9808_v35, %v9804_v33  ;;  %v8788_v37 = vrot.slane %v8786_v17, 5  ;;  %v8792_v5 = vrot.slane %v8790_v10, 4  ;;  %v9805_v0 = vsel %vm14373_vm9, %v9800_v21, %v9804_v33 }
 0x619   : > { %v8260_v38 = vshrl.u32 %v8167_v18, 16  ;;  %10384 = vrot.lane.b32.xlu1 %v12618_v19, %s14229_s17  ;;  %v9814_v54 = vrot.slane %v9812_v12, 5  ;;  %v8783_v31 = vor.u32 %v8782_v20, %v8779_v43  ;;  %v12561_v56 = vrot.slane %v9968_v1, 9 }
 0x61a   : > { %v9810_v6 = vrot.slane %v9809_v13, 4  ;;  %v8793_v30 = vor.u32 %v8792_v5, %v8788_v37  ;;  %v10074_v35 = vrot.slane %v18909_v9, 5  ;;  %v8263_v36 = vshll.u32 %v8167_v18, 16  ;;  %v9437_v13 = vld [vmem:[#allocation2 + $0x78] sm:$0xe]  ;;  %v18980_v5 = vpop.permute.xlu1 %10216 }
 0x61b   : > { %v8262_v7 = vrot.slane %v8260_v38, 7  ;;  %v8784_v17 = vrot.slane %v8783_v31, 4  ;;  %v8798_v51 = vrot.slane %v8796_v46, 5  ;;  %v10077_v12 = vrot.slane %v18962_v24, 5  ;;  %v8538_v31 = vld [vmem:[#allocation2 + $0x78] sm:$0xf] }
 0x61c   : > { %v9815_v19 = vsel %vm14373_vm9, %v9810_v6, %v9814_v54  ;;  %v8794_v22 = vrot.slane %v8793_v30, 4  ;;  %v10076_v21 = vrot.slane %v10074_v35, 4  ;;  %v10075_v46 = vsel %vm14364_vm6, %v12561_v56, %v10074_v35  ;;  %v18987_v6 = vpop.permute.xlu0 %10566 }
 0x61d   : > { %v8265_v32 = vor.u32 %v8263_v36, %v8262_v7  ;;  %v8321_v33 = vsel %vm14549_vm11, %v8262_v7, 0  ;;  %v12672_v10 = vcombine.low %v9805_v0, %v9815_v19  ;;  %v8789_v43 = vsel %vm14373_vm9, %v8784_v17, %v8788_v37  ;;  %v14077_v17 = vld [vmem:[#allocation2] sm:$0xf] }
 0x61e   : > { %v12524_v20 = vcombine.low %v8321_v33, %v8321_v33  ;;  %v8799_v18 = vsel %vm14373_vm9, %v8794_v22, %v8798_v51  ;;  %v10078_v1 = vsel %vm14364_vm6, %v10076_v21, %v10077_v12  ;;  %v18982_v38 = vrot.slane %v9213_v50, 4  ;;  %v9087_v50 = vld [vmem:[#allocation2 + $0x80] sm:$0x1]  ;;  %v14078_v51 = vld [vmem:[#allocation2 + $0x4] sm:$0xf] }
 0x61f   : > { %v8307_v0 = vsel %vm14549_vm11, 0, %v8265_v32  ;;  %10646 = vrot.lane.b32.xlu0 %v12672_v10, %s14229_s17  ;;  %v12590_v37 = vcombine.low %v8789_v43, %v8799_v18  ;;  %v12687_v54 = vcombine.low %v10075_v46, %v10078_v1  ;;  %v18991_v30 = vrot.slane %v9216_v8, 5  ;;  %vm20638_vm11 = vmmov %vm20608_vm5  ;;  %v14079_v32 = vld [vmem:[#allocation2 + $0x10] sm:$0xf] }
 0x620   : > { %20634 = vst [vmem:[#allocation50_spill] sm:$0xff] %v18982_v38  ;;  %v12522_v35 = vcombine.low %v8307_v0, %v8307_v0  ;;  %v12523_v7 = vcombine.high %v8307_v0, %v8307_v0  ;;  %8517 = vst.msk [vmem:[#allocation2 + $0xb0] sm:$0x1] %vm20636_vm1, %v12524_v20  ;;  %v18997_v36 = vrot.slane %v9237_v11, 4  ;;  %v12567_v19 = vcombine.low %v14077_v17, %v14078_v51  ;;  %v8556_v20 = vld [vmem:[#allocation2 + $0x80] sm:$0x1]  ;;  %v19008_v0 = vpop.permute.xlu1 %10288 }
 0x621   : > { %20635 = vst [vmem:[#allocation44_spill] sm:$0xff] %v18991_v30  ;;  %10230 = vrot.lane.b32.xlu1 %v12590_v37, %s14228_s12  ;;  %13245 = vmatprep.mubr.msk.bf16.mxu0 %vm20638_vm11, %v12687_v54  ;;  %v12548_v25 = vrot.slane %v9437_v13, 9  ;;  %v9549_v8 = vrot.slane %v18915_v57, 5  ;;  %v9817_v22 = vshrl.u32 %v18907_v48, 16  ;;  %v9820_v21 = vshll.u32 %v18907_v48, 16  ;;  %20641 = vst [vmem:[#allocation46_spill] sm:$0xff] %v19008_v0 }
 0x622   : > { %20637 = vst [vmem:[#allocation51_spill] sm:$0xff] %v18997_v36  ;;  %8516 = vst.msk [vmem:[#allocation2 + $0xac] sm:$0xf] %vm20639_vm3, %v12523_v7  ;;  %v8801_v11 = vshrl.u32 %v8538_v31, 16  ;;  %v8804_v12 = vshll.u32 %v8538_v31, 16  ;;  %v9102_v33 = vshll.u32 %v14079_v32, 16  ;;  %v9099_v37 = vor.u32 %v18619_v41, %v18615_v39 }
 0x623   : > { %8515 = vst.msk [vmem:[#allocation2 + $0xa8] sm:$0xf] %vm20640_vm10, %v12522_v35  ;;  %v9551_v10 = vrot.slane %v9549_v8, 4  ;;  %v9552_v43 = vrot.slane %v9087_v50, 5  ;;  %v8810_v18 = vshll.u32 %v18995_v53, 16  ;;  %v9106_v46 = vshrl.u32 %v14079_v32, 16  ;;  %v19016_v35 = vpop.permute.xlu0 %10634  ;;  %vm20650_vm5 = vmmov %vm20645_vm0 }
 0x624   : > { %v8803_v1 = vrot.slane %v8801_v11, 4  ;;  %v8806_v57 = vrot.slane %v8804_v12, 5  ;;  %v8814_v13 = vshrl.u32 %v18995_v53, 16  ;;  %v9550_v48 = vsel %vm14364_vm6, %v12548_v25, %v9549_v8  ;;  %v8906_v11 = vld [vmem:[#allocation2 + $0x78] sm:$0xe]  ;;  %vm20659_vm1 = vmmov %vm20645_vm0 }
 0x625   : > { %v9553_v54 = vsel %vm14364_vm6, %v9551_v10, %v9552_v43  ;;  %v8812_v31 = vrot.slane %v8810_v18, 5  ;;  %v8820_v51 = vshll.u32 %v8556_v20, 16  ;;  %v19020_v12 = vsel %vm20642_vm14, %v12567_v19, %v18763_v23  ;;  %v19023_v32 = vld [vmem:[#allocation2 + $0x84] sm:$0xf]  ;;  %v19025_v25 = vld [vmem:[#allocation2 + $0x88] sm:$0xf]  ;;  %vm20663_vm3 = vmmov %vm20645_vm0 }
 0x626   : > { %v12646_v7 = vcombine.low %v9550_v48, %v9553_v54  ;;  %v8807_v50 = vor.u32 %v8806_v57, %v8803_v1  ;;  %v8816_v17 = vrot.slane %v8814_v13, 4  ;;  %v9830_v39 = vshrl.u32 %v18909_v9, 16  ;;  %v9969_v1 = vld [vmem:[#allocation2 + $0x84] sm:$0xe]  ;;  %v14080_v13 = vld [vmem:[#allocation2 + $0x14] sm:$0x1] }
 0x627   : > { %v9819_v41 = vrot.slane %v9817_v22, 4  ;;  %v9822_v8 = vrot.slane %v9820_v21, 5  ;;  %v19027_v10 = vrot.slane %v9102_v33, 5  ;;  %v19030_v57 = vrot.slane %v9106_v46, 4 }
 0x628   : > { %10496 = vrot.lane.b32.xlu0 %v12646_v7, %s14228_s12  ;;  %v8808_v43 = vrot.slane %v8807_v50, 4  ;;  %v8817_v18 = vor.u32 %v8816_v17, %v8812_v31  ;;  %v9112_v23 = vshll.u32 %v14080_v13, 16  ;;  %v19032_v19 = vrot.slane %v9099_v37, 4  ;;  %v19039_v7 = vld [vmem:[#allocation2 + $0x8c] sm:$0x1]  ;;  %v19041_v50 = vpop.permute.xlu1 %10372  ;;  %v19044_v13 = vpop.permute.xlu0 %10484 }
 0x629   : > { %v9024_v22 = vrot.slane %v18995_v53, 5  ;;  %v8822_v21 = vrot.slane %v8820_v51, 5  ;;  %v12660_v33 = vcombine.low %v19023_v32, %v19025_v25  ;;  %20643 = vst [vmem:[#allocation48_spill] sm:$0xff] %v19041_v50  ;;  %v12535_v46 = vrot.slane %v8906_v11, 9 }
 0x62a   : > { %v8813_v48 = vsel %vm14373_vm9, %v8808_v43, %v8812_v31  ;;  %v8818_v54 = vrot.slane %v8817_v18, 4  ;;  %v12562_v56 = vrot.slane %v9969_v1, 9  ;;  %v10081_v37 = vrot.slane %v19025_v25, 5  ;;  %v9070_v1 = vld [vmem:[#allocation2 + $0x84] sm:$0xf] }
 0x62b   : > { %v9026_v17 = vrot.slane %v9024_v22, 4  ;;  %v9027_v31 = vrot.slane %v8556_v20, 5  ;;  %v9823_v51 = vor.u32 %v9822_v8, %v9819_v41  ;;  %v9826_v43 = vshll.u32 %v18909_v9, 16 }
 0x62c   : > { %v8823_v53 = vsel %vm14373_vm9, %v8818_v54, %v8822_v21  ;;  %10580 = vrot.lane.b32.xlu0 %v12660_v33, %s14227_s10  ;;  %v19050_v18 = vrot.slane %v9112_v23, 5  ;;  %v10083_v30 = vrot.slane %v10081_v37, 4  ;;  %v10084_v11 = vrot.slane %v19039_v7, 5  ;;  %v9071_v54 = vld [vmem:[#allocation2 + $0x88] sm:$0xf]  ;;  %v19071_v33 = vpop.permute.xlu1 %10218 }
 0x62d   : > { %v12591_v36 = vcombine.low %v8813_v48, %v8823_v53  ;;  %v9028_v38 = vsel %vm14364_vm6, %v9026_v17, %v9027_v31  ;;  %v9824_v50 = vrot.slane %v9823_v51, 4  ;;  %v9828_v0 = vrot.slane %v9826_v43, 5  ;;  %v8540_v21 = vld [vmem:[#allocation2 + $0x84] sm:$0xf]  ;;  %v19075_v31 = vpop.permute.xlu0 %10568  ;;  %v19080_v43 = vld [vmem:[#allocation2 + $0x8c] sm:$0x1] }
 0x62e   : > { %v9832_v27 = vrot.slane %v9830_v39, 4  ;;  %v9109_v20 = vor.u32 %v19030_v57, %v19027_v10  ;;  %v10082_v9 = vsel %vm14364_vm6, %v12562_v56, %v10081_v37  ;;  %v10085_v41 = vsel %vm14364_vm6, %v10083_v30, %v10084_v11  ;;  %v9088_v37 = vld [vmem:[#allocation2 + $0x8c] sm:$0x1]  ;;  %v9438_v53 = vld [vmem:[#allocation2 + $0x84] sm:$0xe]  ;;  %20644 = vst [vmem:[#allocation37_spill] sm:$0xff] %v19075_v31 }
 0x62f   : > { %10232 = vrot.lane.b32.xlu1 %v12591_v36, %s14228_s12  ;;  %v9836_v8 = vshll.u32 %v18962_v24, 16  ;;  %v9025_v39 = vsel %vm14364_vm6, %v12535_v46, %v9024_v22  ;;  %v12688_v48 = vcombine.low %v10082_v9, %v10085_v41  ;;  %v19069_v36 = vld [vmem:[#allocation2 + $0x88] sm:$0xf]  ;;  %v9841_v56 = vshrl.u32 %v19023_v32, 16  ;;  %v19085_v9 = vld [vmem:[#allocation2 + $0x94] sm:$0xf] }
 0x630   : > { %v9833_v57 = vor.u32 %v9832_v27, %v9828_v0  ;;  %v9844_v30 = vshll.u32 %v19023_v32, 16  ;;  %v12605_v24 = vcombine.low %v9025_v39, %v9028_v38  ;;  %v12619_v17 = vcombine.low %v9070_v1, %v9071_v54  ;;  %v19094_v4 = vpop.permute.xlu1 %10290 }
 0x631   : > { %13246 = vmatmul.mubr.msk.bf16.gmra.mrb[132].mxu0 %vm20645_vm0, %v12688_v48  ;;  %v9829_v27 = vsel %vm14373_vm9, %v9824_v50, %v9828_v0  ;;  %v9838_v46 = vrot.slane %v9836_v8, 5  ;;  %v9556_v51 = vrot.slane %v9071_v54, 5  ;;  %v8825_v11 = vshrl.u32 %v8540_v21, 16  ;;  %v9970_v8 = vld [vmem:[#allocation2 + $0x90] sm:$0xe]  ;;  %20646 = vst [vmem:[#allocation42_spill] sm:$0xff] %v19094_v4 }
 0x632   : > { %v9834_v22 = vrot.slane %v9833_v57, 4  ;;  %v8828_v32 = vshll.u32 %v8540_v21, 16  ;;  %v8834_v38 = vshll.u32 %v19069_v36, 16  ;;  %v8838_v1 = vshrl.u32 %v19069_v36, 16 }
 0x633   : > { %10302 = vrot.lane.b32.xlu1 %v12605_v24, %s14227_s10  ;;  %v12549_v39 = vrot.slane %v9438_v53, 9  ;;  %v9558_v0 = vrot.slane %v9556_v51, 4  ;;  %v9559_v50 = vrot.slane %v9088_v37, 5  ;;  %v8827_v48 = vrot.slane %v8825_v11, 4 }
 0x634   : > { %v9839_v41 = vsel %vm14373_vm9, %v9834_v22, %v9838_v46  ;;  %v8830_v57 = vrot.slane %v8828_v32, 5  ;;  %v8836_v23 = vrot.slane %v8834_v38, 5  ;;  %v9110_v24 = vrot.slane %v9109_v20, 4  ;;  %v19100_v22 = vpop.permute.xlu0 %10636 }
 0x635   : > { %v12673_v54 = vcombine.low %v9829_v27, %v9839_v41  ;;  %v9560_v21 = vsel %vm14364_vm6, %v9558_v0, %v9559_v50  ;;  %v8840_v31 = vrot.slane %v8838_v1, 4  ;;  %v8844_v59 = vshll.u32 %v19080_v43, 16 }
 0x636   : > { %v9854_v53 = vshrl.u32 %v19025_v25, 16  ;;  %v8831_v37 = vor.u32 %v8830_v57, %v8827_v48  ;;  %v12563_v27 = vrot.slane %v9970_v8, 9  ;;  %v10088_v20 = vrot.slane %v19085_v9, 5 }
 0x637   : > { %10648 = vrot.lane.b32.xlu0 %v12673_v54, %s14229_s17  ;;  %10386 = vrot.lane.b32.xlu1 %v12619_v17, %s14229_s17  ;;  %v9843_v46 = vrot.slane %v9841_v56, 4  ;;  %v9846_v11 = vrot.slane %v9844_v30, 5  ;;  %v9557_v32 = vsel %vm14364_vm6, %v12549_v39, %v9556_v51  ;;  %v8841_v38 = vor.u32 %v8840_v31, %v8836_v23  ;;  %v14081_v17 = vld [vmem:[#allocation2 + $0x1c] sm:$0xf] }
 0x638   : > { %v12647_v1 = vcombine.low %v9557_v32, %v9560_v21  ;;  %v8832_v41 = vrot.slane %v8831_v37, 4  ;;  %v10090_v0 = vrot.slane %v10088_v20, 4  ;;  %v10091_v50 = vrot.slane %v19092_v29, 5  ;;  %v8907_v32 = vld [vmem:[#allocation2 + $0x84] sm:$0xe] }
 0x639   : > { %v8842_v54 = vrot.slane %v8841_v38, 4  ;;  %v8846_v4 = vrot.slane %v8844_v59, 5  ;;  %v9126_v48 = vshll.u32 %v14081_v17, 16  ;;  %v9130_v8 = vshrl.u32 %v14081_v17, 16  ;;  %v19127_v38 = vld [vmem:[#allocation2 + $0x90] sm:$0xf] }
 0x63a   : > { %v9115_v57 = vsel %vm14373_vm9, %v9110_v24, %v19050_v18  ;;  %v8837_v56 = vsel %vm14373_vm9, %v8832_v41, %v8836_v23  ;;  %v10089_v30 = vsel %vm14364_vm6, %v12563_v27, %v10088_v20  ;;  %v10092_v31 = vsel %vm14364_vm6, %v10090_v0, %v10091_v50  ;;  %v19121_v24 = vpop.permute.xlu1 %10374  ;;  %v14082_v17 = vld [vmem:[#allocation2 + $0x20] sm:$0x1] }
 0x63b   : > { %10498 = vrot.lane.b32.xlu0 %v12647_v1, %s14228_s12  ;;  %v20647_v59 = vshll.u32 %v18609_v2, 16  ;;  %v8847_v39 = vsel %vm14373_vm9, %v8842_v54, %v8846_v4  ;;  %v12689_v21 = vcombine.low %v10089_v30, %v10092_v31  ;;  %v9847_v18 = vor.u32 %v9846_v11, %v9843_v46  ;;  %v19129_v2 = vpop.permute.xlu0 %10486 }
 0x63c   : > { %vm20648_vm12 = vcmask 523264   ;;  %v12592_v37 = vcombine.low %v8837_v56, %v8847_v39  ;;  %v9850_v27 = vshll.u32 %v19025_v25, 16  ;;  %v9856_v20 = vrot.slane %v9854_v53, 4 }
 0x63d   : > { %v19117_v51 = vrot.slane %v20647_v59, 5  ;;  %v10745_v23 = vsel %vm20648_vm12, %v19020_v12, %v18788_v62  ;;  %v9261_v1 = vshrl.u32 %v18719_v47, 16  ;;  %v20649_v4 = vsel %vm14373_vm9, %v19032_v19, %v19027_v10  ;;  %13249 = vmatprep.mubr.msk.bf16.mxu0 %vm20650_vm5, %v12689_v21  ;;  %vm20653_vm8 = vmmov %vm20648_vm12 }
 0x63e   : > { %v12623_v46 = vcombine.low %v20649_v4, %v9115_v57  ;;  %v19138_v62 = vrot.slane %v9126_v48, 5  ;;  %v9132_v12 = vrot.slane %v9130_v8, 4  ;;  %10234 = vrot.lane.b32.xlu1 %v12592_v37, %s14228_s12  ;;  %v9848_v25 = vrot.slane %v9847_v18, 4  ;;  %v19156_v30 = vpop.permute.xlu1 %10220  ;;  %v19168_v18 = vld [vmem:[#allocation2 + $0x94] sm:$0xf]  ;;  %vm20662_vm11 = vmmov %vm20653_vm8 }
 0x63f   : > { %v9852_v53 = vrot.slane %v9850_v27, 5  ;;  %v9860_v11 = vshll.u32 %v19039_v7, 16  ;;  %v9031_v41 = vrot.slane %v19069_v36, 5  ;;  %vm20651_vm15 = vcmask 785408   ;;  %v19161_v39 = vpop.permute.xlu0 %10570  ;;  %v8908_v37 = vld [vmem:[#allocation2 + $0x90] sm:$0xe]  ;;  %vm20665_vm14 = vmmov %vm20653_vm8 }
 0x640   : > { %v19145_v0 = vsel %vm20651_vm15, %v10745_v23, %v18822_v28  ;;  %v10816_v10 = vsel %vm20652_vm4, %v12623_v46, %v18843_v16  ;;  %v12536_v19 = vrot.slane %v8907_v32, 9  ;;  %v9865_v50 = vshrl.u32 %v19127_v38, 16  ;;  %v19170_v23 = vld [vmem:[#allocation2 + $0x98] sm:$0x1]  ;;  %v19178_v46 = vld [vmem:[#allocation2 + $0xa0] sm:$0xf]  ;;  %vm20654_vm2 = vmmov %vm20651_vm15 }
 0x641   : > { %v10857_v54 = vsel %vm20653_vm8, %v10816_v10, %v18857_v15  ;;  %v9136_v48 = vshll.u32 %v14082_v17, 16  ;;  %v9123_v7 = vor.u32 %v18731_v60, %v18626_v49  ;;  %v9857_v8 = vor.u32 %v9856_v20, %v9852_v53  ;;  %vm20664_vm10 = vmmov %vm20654_vm2 }
 0x642   : > { %v9033_v36 = vrot.slane %v9031_v41, 4  ;;  %v9034_v57 = vrot.slane %v19080_v43, 5  ;;  %v9867_v28 = vrot.slane %v9865_v50, 4  ;;  %v9868_v56 = vshll.u32 %v19127_v38, 16  ;;  %vm20666_vm0 = vmmov %vm20654_vm2 }
 0x643   : > { %v9133_v16 = vor.u32 %v9132_v12, %v19138_v62  ;;  %v9853_v31 = vsel %vm14373_vm9, %v9848_v25, %v9852_v53  ;;  %v9858_v15 = vrot.slane %v9857_v8, 4  ;;  %v9862_v59 = vrot.slane %v9860_v11, 5  ;;  %v9971_v12 = vld [vmem:[#allocation2 + $0x9c] sm:$0xe]  ;;  %v9072_v53 = vld [vmem:[#allocation2 + $0x90] sm:$0xf]  ;;  %vm20667_vm12 = vmmov %vm20659_vm1 }
 0x644   : > { %v9032_v49 = vsel %vm14364_vm6, %v12536_v19, %v9031_v41  ;;  %v9035_v60 = vsel %vm14364_vm6, %v9033_v36, %v9034_v57  ;;  %v9870_v43 = vrot.slane %v9868_v56, 5  ;;  %v9874_v21 = vshll.u32 %v19085_v9, 16  ;;  %v19180_v11 = vld [vmem:[#allocation2 + $0x94] sm:$0xf]  ;;  %v19186_v8 = vld [vmem:[#allocation2 + $0xa4] sm:$0x1]  ;;  %vm20669_vm5 = vmmov %vm20659_vm1 }
 0x645   : > { %v19172_v27 = vrot.slane %v9136_v48, 5  ;;  %v19174_v20 = vrot.slane %v9123_v7, 4  ;;  %v9863_v32 = vsel %vm14373_vm9, %v9858_v15, %v9862_v59  ;;  %v12606_v4 = vcombine.low %v9032_v49, %v9035_v60  ;;  %v19196_v49 = vpop.permute.xlu0 %10638  ;;  %vm20670_vm15 = vmmov %vm20653_vm8 }
 0x646   : > { %v12674_v25 = vcombine.low %v9853_v31, %v9863_v32  ;;  %v9871_v41 = vor.u32 %v9870_v43, %v9867_v28  ;;  %v9876_v10 = vrot.slane %v9874_v21, 5  ;;  %v9878_v19 = vshrl.u32 %v19085_v9, 16  ;;  %v19190_v31 = vpop.permute.xlu1 %10292  ;;  %vm20671_vm4 = vmmov %vm20659_vm1 }
 0x647   : > { %v9134_v50 = vrot.slane %v9133_v16, 4  ;;  %10304 = vrot.lane.b32.xlu1 %v12606_v4, %s14227_s10  ;;  %v9884_v17 = vshll.u32 %v19092_v29, 16  ;;  %v12537_v48 = vrot.slane %v8908_v37, 9  ;;  %v9038_v7 = vrot.slane %v19168_v18, 5  ;;  %vm20672_vm8 = vmmov %vm20659_vm1 }
 0x648   : > { %10650 = vrot.lane.b32.xlu0 %v12674_v25, %s14229_s17  ;;  %v9872_v36 = vrot.slane %v9871_v41, 4  ;;  %v9880_v57 = vrot.slane %v9878_v19, 4  ;;  %v12564_v56 = vrot.slane %v9971_v12, 9  ;;  %v10095_v28 = vrot.slane %v19178_v46, 5  ;;  %v19208_v12 = vld [vmem:[#allocation2 + $0x98] sm:$0x1] }
 0x649   : > { %v12661_v16 = vcombine.low %v19127_v38, %v19085_v9  ;;  %v12620_v15 = vcombine.low %v9072_v53, %v19180_v11  ;;  %v9040_v29 = vrot.slane %v9038_v7, 4  ;;  %v9041_v59 = vrot.slane %v19170_v23, 5  ;;  %20655 = vst [vmem:[#allocation38_spill] sm:$0xff] %v19208_v12  ;;  %v9439_v25 = vld [vmem:[#allocation2 + $0x90] sm:$0xe] }
 0x64a   : > { %v9881_v60 = vor.u32 %v9880_v57, %v9876_v10  ;;  %v9886_v43 = vrot.slane %v9884_v17, 5  ;;  %v10097_v21 = vrot.slane %v10095_v28, 4  ;;  %v10098_v37 = vrot.slane %v19186_v8, 5 }
 0x64b   : > { %10388 = vrot.lane.b32.xlu1 %v12620_v15, %s14229_s17  ;;  %v9877_v32 = vsel %vm14373_vm9, %v9872_v36, %v9876_v10  ;;  %v9039_v9 = vsel %vm14364_vm6, %v12537_v48, %v9038_v7  ;;  %v9042_v38 = vsel %vm14364_vm6, %v9040_v29, %v9041_v59  ;;  %v10885_v4 = vsel %vm20654_vm2, %v10857_v54, %v18942_v63  ;;  %v19223_v7 = vld [vmem:[#allocation2 + $0x9c] sm:$0xf]  ;;  %v19235_v59 = vpop.permute.xlu0 %10488  ;;  %vm20673_vm2 = vmmov %vm20666_vm0 }
 0x64c   : > { %10582 = vrot.lane.b32.xlu0 %v12661_v16, %s14227_s10  ;;  %v9882_v53 = vrot.slane %v9881_v60, 4  ;;  %v10096_v41 = vsel %vm14364_vm6, %v12564_v56, %v10095_v28  ;;  %v10099_v10 = vsel %vm14364_vm6, %v10097_v21, %v10098_v37  ;;  %11150 = vmatprep.mubr.bf16.mxu1 %v10885_v4  ;;  %v9563_v19 = vrot.slane %v19180_v11, 5  ;;  %v19229_v28 = vld [vmem:[#allocation2 + $0xa0] sm:$0xf]  ;;  %v14084_v16 = vld [vmem:[#allocation2 + $0xc] sm:$0xf] }
 0x64d   : > { %v9139_v17 = vsel %vm14373_vm9, %v9134_v50, %v19172_v27  ;;  %v9129_v63 = vsel %vm14373_vm9, %v19174_v20, %v19138_v62  ;;  %v12607_v54 = vcombine.low %v9039_v9, %v9042_v38  ;;  %v12690_v48 = vcombine.low %v10096_v41, %v10099_v10  ;;  %11151 = vmatmul.mubr.bf16.vlgmr.msra.gmra.mrb[80].mxu1 %v19145_v0  ;;  %v19231_v27 = vpop.permute.xlu1 %10376  ;;  %v14083_v50 = vld [vmem:[#allocation2 + $0x10] sm:$0xf]  ;;  %v14085_v0 = vld [vmem:[#allocation2 + $0x28] sm:$0xf]  ;;  %v14086_v21 = vld [vmem:[#allocation2 + $0x2c] sm:$0x1] }
 0x64e   : > { %v9887_v36 = vsel %vm14373_vm9, %v9882_v53, %v9886_v43  ;;  %v12550_v57 = vrot.slane %v9439_v25, 9  ;;  %v9565_v11 = vrot.slane %v9563_v19, 4  ;;  %v9566_v56 = vrot.slane %v19208_v12, 5  ;;  %v19241_v38 = vld [vmem:[#allocation2 + $0x90] sm:$0xf] }
 0x64f   : > { %v12568_v62 = vcombine.low %v14084_v16, %v14083_v50  ;;  %v12675_v20 = vcombine.low %v9877_v32, %v9887_v36  ;;  %10306 = vrot.lane.b32.xlu1 %v12607_v54, %s14227_s10  ;;  %13250 = vmatmul.mubr.msk.bf16.gmra.mrb[136].mxu0 %vm20656_vm13, %v12690_v48  ;;  %v9150_v15 = vshll.u32 %v14085_v0, 16  ;;  %v9154_v29 = vshrl.u32 %v14085_v0, 16  ;;  %20657 = vst [vmem:[#allocation39_spill] sm:$0xff] %v19241_v38  ;;  %v19243_v32 = vld [vmem:[#allocation2 + $0x60] sm:$0xf]  ;;  %v19284_v0 = vpop.permute.xlu0 %10572  ;;  %vm20675_vm13 = vmmov %vm20662_vm11 }
 0x650   : > { %v12624_v60 = vcombine.low %v9129_v63, %v9139_v17  ;;  %v9567_v43 = vsel %vm14364_vm6, %v9565_v11, %v9566_v56  ;;  %v9160_v37 = vshll.u32 %v14086_v21, 16  ;;  %v9147_v9 = vor.u32 %v18826_v34, %v18804_v14  ;;  %v19265_v63 = vld [vmem:[#allocation2 + $0x9c] sm:$0xf] }
 0x651   : > { %10652 = vrot.lane.b32.xlu0 %v12675_v20, %s14229_s17  ;;  %v12621_v25 = vcombine.low %v19223_v7, %v19229_v28  ;;  %v19249_v53 = vrot.slane %v9150_v15, 5  ;;  %v9156_v41 = vrot.slane %v9154_v29, 4  ;;  %v19253_v10 = vrot.slane %v9261_v1, 4  ;;  %v19282_v20 = vld [vmem:[#allocation2 + $0x9c] sm:$0xf] }
 0x652   : > { %v19257_v14 = vsel %vm20658_vm7, %v12568_v62, %v18891_v44  ;;  %v19261_v34 = vsel %vm20659_vm1, %v12624_v60, %v18872_v42  ;;  %v9564_v17 = vsel %vm14364_vm6, %v12550_v57, %v9563_v19  ;;  %v8849_v1 = vshrl.u32 %v19241_v38, 16  ;;  %v9440_v19 = vld [vmem:[#allocation2 + $0x9c] sm:$0xe]  ;;  %v19277_v57 = vpop.permute.xlu1 %10222  ;;  %20660 = vst [vmem:[#allocation41_spill] sm:$0xff] %v19282_v20  ;;  %vm20678_vm7 = vmmov %vm20666_vm0 }
 0x653   : > { %v12648_v54 = vcombine.low %v9564_v17, %v9567_v43  ;;  %10390 = vrot.lane.b32.xlu1 %v12621_v25, %s14229_s17  ;;  %v9157_v47 = vor.u32 %v9156_v41, %v19249_v53  ;;  %v8852_v48 = vshll.u32 %v19241_v38, 16  ;;  %v19271_v44 = vrot.slane %v9160_v37, 5  ;;  %v19288_v43 = vld [vmem:[#allocation2 + $0xa4] sm:$0x1]  ;;  %v19292_v41 = vld [vmem:[#allocation2 + $0xa0] sm:$0xf]  ;;  %vm20682_vm1 = vmmov %vm20662_vm11 }
 0x654   : > { %v19273_v36 = vrot.slane %v9147_v9, 4  ;;  %v8858_v42 = vshll.u32 %v19168_v18, 16  ;;  %v8862_v11 = vshrl.u32 %v19168_v18, 16  ;;  %v12662_v50 = vcombine.low %v19265_v63, %v19178_v46  ;;  %20661 = vst [vmem:[#allocation47_spill] sm:$0xff] %v19288_v43  ;;  %v8909_v12 = vld [vmem:[#allocation2 + $0x9c] sm:$0xe] }
 0x655   : > { %10500 = vrot.lane.b32.xlu0 %v12648_v54, %s14228_s12  ;;  %v9158_v56 = vrot.slane %v9157_v47, 4  ;;  %v8851_v16 = vrot.slane %v8849_v1, 4  ;;  %v8854_v62 = vrot.slane %v8852_v48, 5  ;;  %v9889_v15 = vshrl.u32 %v19265_v63, 16  ;;  %v19301_v1 = vld [vmem:[#allocation2 + $0xa4] sm:$0x1] }
 0x656   : > { %v8860_v29 = vrot.slane %v8858_v42, 5  ;;  %v8864_v60 = vrot.slane %v8862_v11, 4  ;;  %v8868_v18 = vshll.u32 %v19170_v23, 16  ;;  %v9892_v21 = vshll.u32 %v19265_v63, 16  ;;  %v9972_v48 = vld [vmem:[#allocation2 + $0xa8] sm:$0xe] }
 0x657   : > { %v8855_v37 = vor.u32 %v8854_v62, %v8851_v16  ;;  %v12551_v9 = vrot.slane %v9440_v19, 9  ;;  %v9570_v25 = vrot.slane %v19229_v28, 5  ;;  %v13231_v17 = vpop.f32.mrb[116].mxu0  ;;  %v9163_v54 = vsel %vm14373_vm9, %v9158_v56, %v19271_v44 }
 0x658   : > { %v9153_v23 = vsel %vm14373_vm9, %v19273_v36, %v19249_v53  ;;  %v8865_v47 = vor.u32 %v8864_v60, %v8860_v29  ;;  %v8873_v63 = vshrl.u32 %v19282_v20, 16  ;;  %v11285_v42 = vpop.f32.mrb[117].mxu0  ;;  %v9573_v16 = vrot.slane %v19288_v43, 5  ;;  %v19308_v36 = vpop.permute.xlu1 %10294 }
 0x659   : > { %10584 = vrot.lane.b32.xlu0 %v12662_v50, %s14227_s10  ;;  %v8856_v11 = vrot.slane %v8855_v37, 4  ;;  %v9572_v19 = vrot.slane %v9570_v25, 4  ;;  %v8876_v44 = vshll.u32 %v19282_v20, 16  ;;  %v13232_v56 = vpop.f32.mrb[118].mxu0  ;;  %v8870_v17 = vrot.slane %v8868_v18, 5 }
 0x65a   : > { %v8866_v62 = vrot.slane %v8865_v47, 4  ;;  %v8875_v4 = vrot.slane %v8873_v63, 4  ;;  %v8882_v53 = vshll.u32 %v19292_v41, 16  ;;  %v11287_v60 = vpop.f32.mrb[119].mxu0  ;;  %v9571_v50 = vsel %vm14364_vm6, %v12551_v9, %v9570_v25  ;;  %v19316_v20 = vld [vmem:[#allocation2 + $0xac] sm:$0xf]  ;;  %v19318_v47 = vpop.permute.xlu0 %10640 }
 0x65b   : > { %v8861_v42 = vsel %vm14373_vm9, %v8856_v11, %v8860_v29  ;;  %v9574_v37 = vsel %vm14364_vm6, %v9572_v19, %v9573_v16  ;;  %v8878_v38 = vrot.slane %v8876_v44, 5  ;;  %v8886_v60 = vshrl.u32 %v19292_v41, 16  ;;  %v19324_v9 = vld [vmem:[#allocation2 + $0xb0] sm:$0x1]  ;;  %v19326_v19 = vld [vmem:[#allocation2 + $0xa8] sm:$0xf] }
 0x65c   : > { %v8871_v18 = vsel %vm14373_vm9, %v8866_v62, %v8870_v17  ;;  %v12649_v63 = vcombine.low %v9571_v50, %v9574_v37  ;;  %v8884_v56 = vrot.slane %v8882_v53, 5  ;;  %v8892_v11 = vshll.u32 %v19301_v1, 16  ;;  %v19331_v44 = vld [vmem:[#allocation2 + $0x1c] sm:$0xf]  ;;  %v19333_v62 = vld [vmem:[#allocation2 + $0x18] sm:$0xf]  ;;  %v19343_v17 = vpop.permute.xlu1 %10378 }
 0x65d   : > { %v12593_v43 = vcombine.low %v8861_v42, %v8871_v18  ;;  %v8879_v29 = vor.u32 %v8878_v38, %v8875_v4  ;;  %v12565_v25 = vrot.slane %v9972_v48, 9  ;;  %v10859_v16 = vsel %vm20662_vm11, %v19261_v34, %v18898_v52  ;;  %vm20684_vm11 = vmmov %vm20666_vm0 }
 0x65e   : > { %10502 = vrot.lane.b32.xlu0 %v12649_v63, %s14228_s12  ;;  %v8888_v38 = vrot.slane %v8886_v60, 4  ;;  %v10102_v4 = vrot.slane %v19316_v20, 5  ;;  %v12625_v53 = vcombine.low %v9153_v23, %v9163_v54  ;;  %v9891_v48 = vrot.slane %v9889_v15, 4 }
 0x65f   : > { %v9894_v42 = vrot.slane %v9892_v21, 5  ;;  %10236 = vrot.lane.b32.xlu1 %v12593_v43, %s14228_s12  ;;  %v8880_v50 = vrot.slane %v8879_v29, 4  ;;  %v10105_v34 = vrot.slane %v19324_v9, 5  ;;  %v12663_v18 = vcombine.low %v19326_v19, %v19316_v20  ;;  %v19351_v21 = vpop.permute.xlu0 %10490 }
 0x660   : > { %v8889_v37 = vor.u32 %v8888_v38, %v8884_v56  ;;  %v10104_v52 = vrot.slane %v10102_v4, 4  ;;  %v10822_v63 = vsel %vm20663_vm3, %v12625_v53, %v18964_v45  ;;  %v8894_v60 = vrot.slane %v8892_v11, 5  ;;  %vm20686_vm3 = vmmov %vm20682_vm1 }
 0x661   : > { %v10103_v15 = vsel %vm14364_vm6, %v12565_v25, %v10102_v4  ;;  %v10888_v43 = vsel %vm20664_vm10, %v10859_v16, %v19016_v35  ;;  %v8885_v54 = vsel %vm14373_vm9, %v8880_v50, %v8884_v56  ;;  %v9045_v45 = vrot.slane %v19292_v41, 5  ;;  %vm20689_vm10 = vmmov %vm20666_vm0 }
 0x662   : > { %v8890_v23 = vrot.slane %v8889_v37, 4  ;;  %v10106_v29 = vsel %vm14364_vm6, %v10104_v52, %v10105_v34  ;;  %10586 = vrot.lane.b32.xlu0 %v12663_v18, %s14227_s10  ;;  %11156 = vmatprep.mubr.bf16.mxu1 %v10888_v43  ;;  %v9913_v25 = vshrl.u32 %v19326_v19, 16  ;;  %v12538_v38 = vrot.slane %v8909_v12, 9  ;;  %v14090_v12 = vld [vmem:[#allocation2 + $0x34] sm:$0xf] }
 0x663   : > { %v12691_v11 = vcombine.low %v10103_v15, %v10106_v29  ;;  %v10747_v35 = vsel %vm20665_vm14, %v19257_v14, %v18854_v55  ;;  %v9047_v16 = vrot.slane %v9045_v45, 4  ;;  %v9048_v4 = vrot.slane %v19301_v1, 5  ;;  %v14091_v43 = vld [vmem:[#allocation2 + $0x38] sm:$0x1]  ;;  %v19380_v29 = vpop.permute.xlu0 %10574  ;;  %vm20692_vm14 = vmmov %vm20671_vm4 }
 0x664   : > { %v8895_v56 = vsel %vm14373_vm9, %v8890_v23, %v8894_v60  ;;  %v10776_v53 = vsel %vm20666_vm0, %v10747_v35, %v18867_v58  ;;  %v9916_v37 = vshll.u32 %v19326_v19, 16  ;;  %v9174_v52 = vshll.u32 %v14090_v12, 16  ;;  %v19375_v60 = vpop.permute.xlu1 %10224  ;;  %v19378_v23 = vld [vmem:[#allocation2 + $0xa8] sm:$0xf]  ;;  %vm20693_vm0 = vmmov %vm20671_vm4 }
 0x665   : > { %v12594_v50 = vcombine.low %v8885_v54, %v8895_v56  ;;  %13253 = vmatprep.mubr.msk.bf16.mxu0 %vm20667_vm12, %v12691_v11  ;;  %11157 = vmatmul.mubr.bf16.gmra.mrb[84].mxu1 %v10776_v53  ;;  %v9178_v34 = vshrl.u32 %v14090_v12, 16  ;;  %v9049_v55 = vsel %vm14364_vm6, %v9047_v16, %v9048_v4  ;;  %v9171_v14 = vor.u32 %v18919_v3, %v18832_v61  ;;  %v9441_v4 = vld [vmem:[#allocation2 + $0xa8] sm:$0xe]  ;;  %vm20694_vm12 = vmmov %vm20682_vm1 }
 0x666   : > { %v9895_v18 = vor.u32 %v9894_v42, %v9891_v48  ;;  %v9898_v1 = vshll.u32 %v19178_v46, 16  ;;  %v9915_v58 = vrot.slane %v9913_v25, 4  ;;  %v9176_v15 = vrot.slane %v9174_v52, 5  ;;  %v19385_v42 = vld [vmem:[#allocation2 + $0xac] sm:$0xf] }
 0x667   : > { %10238 = vrot.lane.b32.xlu1 %v12594_v50, %s14228_s12  ;;  %v9180_v19 = vrot.slane %v9178_v34, 4  ;;  %v9184_v54 = vshll.u32 %v14091_v43, 16  ;;  %v9046_v11 = vsel %vm14364_vm6, %v12538_v38, %v9045_v45  ;;  %v9172_v61 = vrot.slane %v9171_v14, 4  ;;  %v14093_v52 = vld [vmem:[#allocation2 + $0x24] sm:$0xf] }
 0x668   : > { %v9900_v3 = vrot.slane %v9898_v1, 5  ;;  %v9902_v48 = vshrl.u32 %v19178_v46, 16  ;;  %v9918_v35 = vrot.slane %v9916_v37, 5  ;;  %v12608_v56 = vcombine.low %v9046_v11, %v9049_v55  ;;  %v14092_v46 = vld [vmem:[#allocation2 + $0x28] sm:$0xf] }
 0x669   : > { %v9181_v25 = vor.u32 %v9180_v19, %v9176_v15  ;;  %v9896_v16 = vrot.slane %v9895_v18, 4  ;;  %v20668_v53 = vcombine.low %v19333_v62, %v19331_v44  ;;  %v10861_v45 = vsel %vm20670_vm15, %v10822_v63, %v18987_v6  ;;  %v19398_v18 = vld [vmem:[#allocation2 + $0xb0] sm:$0x1]  ;;  %vm20698_vm15 = vmmov %vm20693_vm0 }
 0x66a   : > { %v9904_v38 = vrot.slane %v9902_v48, 4  ;;  %v9908_v12 = vshll.u32 %v19186_v8, 16  ;;  %v12570_v34 = vcombine.low %v14093_v52, %v14092_v46  ;;  %v9186_v55 = vrot.slane %v9184_v54, 5  ;;  %v19403_v8 = vpop.permute.xlu1 %10296  ;;  %v19410_v54 = vpop.permute.xlu0 %10642  ;;  %v19428_v52 = vld [vmem:[#allocation2 + $0xb4] sm:$0xf] }
 0x66b   : > { %v10710_v50 = vsel %vm20669_vm5, %v20668_v53, %v18980_v5  ;;  %10308 = vrot.lane.b32.xlu1 %v12608_v56, %s14227_s10  ;;  %v9182_v37 = vrot.slane %v9181_v25, 4  ;;  %v12622_v14 = vcombine.low %v19378_v23, %v19385_v42  ;;  %v9177_v5 = vsel %vm14373_vm9, %v9172_v61, %v9176_v15  ;;  %vm20697_vm5 = vmmov %vm20673_vm2 }
 0x66c   : > { %v9905_v44 = vor.u32 %v9904_v38, %v9900_v3  ;;  %v12552_v6 = vrot.slane %v9441_v4, 9  ;;  %v9577_v62 = vrot.slane %v19385_v42, 5  ;;  %v9901_v1 = vsel %vm14373_vm9, %v9896_v16, %v9900_v3 }
 0x66d   : > { %v9187_v63 = vsel %vm14373_vm9, %v9182_v37, %v9186_v55  ;;  %v9919_v19 = vor.u32 %v9918_v35, %v9915_v58  ;;  %v9922_v43 = vshll.u32 %v19316_v20, 16  ;;  %v9910_v48 = vrot.slane %v9908_v12, 5  ;;  %v20674_v55 = vld [vmem:[#allocation45_spill] sm:$0xff] }
 0x66e   : > { %v9906_v11 = vrot.slane %v9905_v44, 4  ;;  %v9579_v15 = vrot.slane %v9577_v62, 4  ;;  %v9580_v61 = vrot.slane %v19398_v18, 5  ;;  %v19415_v56 = vsel %vm20671_vm4, %v12570_v34, %v19071_v33  ;;  %v19438_v44 = vpop.permute.xlu1 %10380  ;;  %vm20700_vm4 = vmmov %vm20682_vm1 }
 0x66f   : > { %v12626_v25 = vcombine.low %v9177_v5, %v9187_v63  ;;  %10392 = vrot.lane.b32.xlu1 %v12622_v14, %s14229_s17  ;;  %v9920_v4 = vrot.slane %v9919_v19, 4  ;;  %v9926_v3 = vshrl.u32 %v19316_v20, 16  ;;  %v9578_v35 = vsel %vm14364_vm6, %v12552_v6, %v9577_v62  ;;  %v19436_v5 = vld [vmem:[#allocation2 + $0xb8] sm:$0xf]  ;;  %v14094_v62 = vld [vmem:[#allocation2 + $0x40] sm:$0xf] }
 0x670   : > { %v9911_v58 = vsel %vm14373_vm9, %v9906_v11, %v9910_v48  ;;  %v9581_v16 = vsel %vm14364_vm6, %v9579_v15, %v9580_v61  ;;  %v9924_v53 = vrot.slane %v9922_v43, 5  ;;  %v9932_v46 = vshll.u32 %v19324_v9, 16  ;;  %v20677_v9 = vld [vmem:[#allocation43_spill] sm:$0xff]  ;;  %v14095_v19 = vld [vmem:[#allocation2 + $0x44] sm:$0x1]  ;;  %v20679_v43 = vld [vmem:[#allocation49_spill] sm:$0xff] }
 0x671   : > { %v10825_v33 = vsel %vm20672_vm8, %v12626_v25, %v19044_v13  ;;  %v12676_v38 = vcombine.low %v9901_v1, %v9911_v58  ;;  %v12650_v12 = vcombine.low %v9578_v35, %v9581_v16  ;;  %v9928_v34 = vrot.slane %v9926_v3, 4  ;;  %v20676_v13 = vld [vmem:[#allocation12_spill] sm:$0xff]  ;;  %v19452_v35 = vld [vmem:[#allocation2 + $0xbc] sm:$0x1]  ;;  %vm20703_vm8 = vmmov %vm20673_vm2 }
 0x672   : > { %v9925_v20 = vsel %vm14373_vm9, %v9920_v4, %v9924_v53  ;;  %v10891_v37 = vsel %vm20673_vm2, %v10861_v45, %v19100_v22  ;;  %v10749_v14 = vsel %vm20675_vm13, %v10710_v50, %v20674_v55  ;;  %v9198_v63 = vshll.u32 %v14094_v62, 16  ;;  %v19445_v45 = vpop.permute.xlu0 %10492  ;;  %v20680_v11 = vld [vmem:[#allocation40_spill] sm:$0xff]  ;;  %vm20704_vm2 = vmmov %vm20682_vm1 }
 0x673   : > { %10654 = vrot.lane.b32.xlu0 %v12676_v38, %s14229_s17  ;;  %736 = vrot.lane.b32.xlu1 %v20676_v13, %s14229_s17  ;;  %v10779_v6 = vsel %vm20678_vm7, %v10749_v14, %v20677_v9  ;;  %v9202_v1 = vshrl.u32 %v14094_v62, 16  ;;  %v9208_v22 = vshll.u32 %v14095_v19, 16  ;;  %v9929_v50 = vor.u32 %v9928_v34, %v9924_v53  ;;  %v20681_v34 = vld [vmem:[#allocation37_spill] sm:$0xff]  ;;  %v20683_v14 = vld [vmem:[#allocation18_spill] sm:$0xff]  ;;  %v19463_v19 = vpop.permute.xlu1 %10226  ;;  %vm20706_vm13 = vmmov %vm20693_vm0 }
 0x674   : > { %11162 = vmatprep.mubr.bf16.mxu1 %v10891_v37  ;;  %v9195_v48 = vor.u32 %v20680_v11, %v20679_v43  ;;  %v9937_v15 = vshrl.u32 %v19428_v52, 16  ;;  %v9940_v61 = vshll.u32 %v19428_v52, 16  ;;  %v9934_v25 = vrot.slane %v9932_v46, 5  ;;  %vm20708_vm7 = vmmov %vm20682_vm1 }
 0x675   : > { %11163 = vmatmul.mubr.bf16.gmra.mrb[88].mxu1 %v10779_v6  ;;  %v9200_v4 = vrot.slane %v9198_v63, 5  ;;  %v9204_v3 = vrot.slane %v9202_v1, 4  ;;  %v9950_v58 = vshrl.u32 %v19436_v5, 16  ;;  %v9930_v16 = vrot.slane %v9929_v50, 4 }
 0x676   : > { %v9196_v38 = vrot.slane %v9195_v48, 4  ;;  %v9939_v55 = vrot.slane %v9937_v15, 4  ;;  %v9942_v53 = vrot.slane %v9940_v61, 5  ;;  %v10863_v37 = vsel %vm20682_vm1, %v10825_v33, %v20681_v34  ;;  %v19467_v11 = vpop.permute.xlu0 %10576  ;;  %v20685_v61 = vld [vmem:[#allocation46_spill] sm:$0xff]  ;;  %v20688_v34 = vld [vmem:[#allocation48_spill] sm:$0xff]  ;;  %vm20709_vm1 = vmmov %vm20697_vm5 }
 0x677   : > { %10504 = vrot.lane.b32.xlu0 %v12650_v12, %s14228_s12  ;;  %740 = vrot.lane.b32.xlu1 %v20683_v14, %s14229_s17  ;;  %v9205_v46 = vor.u32 %v9204_v3, %v9200_v4  ;;  %v9946_v13 = vshll.u32 %v19436_v5, 16  ;;  %v9952_v9 = vrot.slane %v9950_v58, 4  ;;  %v9935_v6 = vsel %vm14373_vm9, %v9930_v16, %v9934_v25  ;;  %v14096_v16 = vld [vmem:[#allocation2 + $0x4c] sm:$0xf] }
 0x678   : > { %v9210_v62 = vrot.slane %v9208_v22, 5  ;;  %v9943_v63 = vor.u32 %v9942_v53, %v9939_v55  ;;  %v9956_v1 = vshll.u32 %v19452_v35, 16  ;;  %v12677_v50 = vcombine.low %v9925_v20, %v9935_v6  ;;  %v14098_v55 = vld [vmem:[#allocation2 + $0x30] sm:$0xf]  ;;  %v20690_v6 = vld [vmem:[#allocation50_spill] sm:$0xff] }
 0x679   : > { %v9206_v33 = vrot.slane %v9205_v46, 4  ;;  %v9201_v12 = vsel %vm14373_vm9, %v9196_v38, %v9200_v4  ;;  %v9948_v43 = vrot.slane %v9946_v13, 5  ;;  %v12664_v48 = vcombine.low %v19428_v52, %v19436_v5  ;;  %v20687_v4 = vld [vmem:[#allocation17_spill] sm:$0xff]  ;;  %v14097_v38 = vld [vmem:[#allocation2 + $0x34] sm:$0xf] }
 0x67a   : > { %v9944_v15 = vrot.slane %v9943_v63, 4  ;;  %v10894_v22 = vsel %vm20684_vm11, %v10863_v37, %v19196_v49  ;;  %v10751_v25 = vsel %vm20686_vm3, %v19415_v56, %v20685_v61  ;;  %v9958_v58 = vrot.slane %v9956_v1, 5  ;;  %v20695_v61 = vld [vmem:[#allocation24_spill] sm:$0xff]  ;;  %vm20712_vm11 = vmmov %vm20709_vm1 }
 0x67b   : > { %10656 = vrot.lane.b32.xlu0 %v12677_v50, %s14229_s17  ;;  %v9211_v20 = vsel %vm14373_vm9, %v9206_v33, %v9210_v62  ;;  %744 = vrot.lane.b32.xlu1 %v20687_v4, %s14229_s17  ;;  %v9953_v3 = vor.u32 %v9952_v9, %v9948_v43  ;;  %v9222_v52 = vshll.u32 %v14096_v16, 16  ;;  %v12571_v53 = vcombine.low %v14098_v55, %v14097_v38  ;;  %v20691_v9 = vld [vmem:[#allocation44_spill] sm:$0xff]  ;;  %v20699_v38 = vld [vmem:[#allocation42_spill] sm:$0xff]  ;;  %vm20713_vm3 = vmmov %vm20693_vm0 }
 0x67c   : > { %v12627_v49 = vcombine.low %v9201_v12, %v9211_v20  ;;  %11168 = vmatprep.mubr.bf16.mxu1 %v10894_v22  ;;  %v10782_v56 = vsel %vm20689_vm10, %v10751_v25, %v20688_v34  ;;  %v9226_v37 = vshrl.u32 %v14096_v16, 16  ;;  %v9949_v14 = vsel %vm14373_vm9, %v9944_v15, %v9948_v43  ;;  %v14099_v33 = vld [vmem:[#allocation2 + $0x50] sm:$0x1]  ;;  %v19491_v22 = vpop.permute.xlu1 %10298  ;;  %v14101_v25 = vld [vmem:[#allocation2 + $0x3c] sm:$0xf]  ;;  %v19500_v4 = vpop.permute.xlu0 %10644  ;;  %vm20714_vm10 = vmmov %vm20704_vm2 }
 0x67d   : > { %v9954_v46 = vrot.slane %v9953_v3, 4  ;;  %11169 = vmatmul.mubr.bf16.gmra.mrb[92].mxu1 %v10782_v56  ;;  %v9224_v13 = vrot.slane %v9222_v52, 5  ;;  %v9219_v62 = vor.u32 %v20691_v9, %v20690_v6  ;;  %v10716_v63 = vsel %vm20692_vm14, %v12571_v53, %v19156_v30  ;;  %v14100_v30 = vld [vmem:[#allocation2 + $0x40] sm:$0xf]  ;;  %v14102_v53 = vld [vmem:[#allocation2 + $0x58] sm:$0xf]  ;;  %vm20715_vm14 = vmmov %vm20693_vm0 }
 0x67e   : > { %v10828_v1 = vsel %vm20693_vm0, %v12627_v49, %v19129_v2  ;;  %v9228_v50 = vrot.slane %v9226_v37, 4  ;;  %v9232_v12 = vshll.u32 %v14099_v33, 16  ;;  %v12572_v20 = vcombine.low %v14101_v25, %v14100_v30  ;;  %v14103_v9 = vld [vmem:[#allocation2 + $0x5c] sm:$0x1]  ;;  %vm20716_vm0 = vmmov %vm20709_vm1 }
 0x67f   : > { %10588 = vrot.lane.b32.xlu0 %v12664_v48, %s14227_s10  ;;  %v10865_v43 = vsel %vm20694_vm12, %v10828_v1, %v19161_v39  ;;  %v9959_v15 = vsel %vm14373_vm9, %v9954_v46, %v9958_v58  ;;  %748 = vrot.lane.b32.xlu1 %v20695_v61, %s14229_s17  ;;  %v9220_v2 = vrot.slane %v9219_v62, 4  ;;  %v20696_v3 = vshll.u32 %v19243_v32, 16  ;;  %vm20719_vm12 = vmmov %vm20713_vm3 }
 0x680   : > { %v12678_v52 = vcombine.low %v9949_v14, %v9959_v15  ;;  %v9229_v48 = vor.u32 %v9228_v50, %v9224_v13  ;;  %v10897_v39 = vsel %vm20697_vm5, %v10865_v43, %v19318_v47  ;;  %v10719_v58 = vsel %vm20698_vm15, %v12572_v20, %v19277_v57  ;;  %v20701_v14 = vld [vmem:[#allocation51_spill] sm:$0xff]  ;;  %vm20720_vm5 = vmmov %vm20704_vm2 }
 0x681   : > { %v9266_v16 = vrot.slane %v20696_v3, 5  ;;  %11176 = vmatprep.mubr.bf16.mxu1 %v10897_v39  ;;  %v10753_v55 = vsel %vm20700_vm4, %v10716_v63, %v20699_v38  ;;  %v9246_v49 = vshll.u32 %v14102_v53, 16  ;;  %v9250_v34 = vshrl.u32 %v14102_v53, 16  ;;  %v20702_v47 = vld [vmem:[#allocation23_spill] sm:$0xff]  ;;  %v14104_v63 = vld [vmem:[#allocation2 + $0x64] sm:$0xf]  ;;  %vm20721_vm15 = vmmov %vm20704_vm2 }
 0x682   : > { %v9230_v56 = vrot.slane %v9229_v48, 4  ;;  %v9234_v37 = vrot.slane %v9232_v12, 5  ;;  %v9225_v32 = vsel %vm14373_vm9, %v9220_v2, %v9224_v13  ;;  %v9243_v46 = vor.u32 %v19117_v51, %v20701_v14  ;;  %v19521_v12 = vpop.permute.xlu1 %10382  ;;  %v20707_v39 = vld [vmem:[#allocation30_spill] sm:$0xff]  ;;  %v14105_v53 = vld [vmem:[#allocation2 + $0x68] sm:$0x1]  ;;  %v20710_v14 = vld [vmem:[#allocation16_spill] sm:$0xff] }
 0x683   : > { %10658 = vrot.lane.b32.xlu0 %v12678_v52, %s14229_s17  ;;  %752 = vrot.lane.b32.xlu1 %v20702_v47, %s14229_s17  ;;  %v9248_v57 = vrot.slane %v9246_v49, 5  ;;  %v9252_v6 = vrot.slane %v9250_v34, 4  ;;  %v9256_v62 = vshll.u32 %v14103_v9, 16  ;;  %v9270_v1 = vshll.u32 %v14104_v63, 16  ;;  %v19523_v51 = vpop.f32.mrb[120].mxu0  ;;  %vm20723_vm4 = vmmov %vm20716_vm0 }
 0x684   : > { %v9235_v50 = vsel %vm14373_vm9, %v9230_v56, %v9234_v37  ;;  %v10785_v13 = vsel %vm20703_vm8, %v10753_v55, %v19121_v24  ;;  %v9244_v33 = vrot.slane %v9243_v46, 4  ;;  %v19525_v61 = vpop.permute.xlu0 %10494  ;;  %v11297_v30 = vpop.f32.mrb[121].mxu0  ;;  %v10755_v25 = vsel %vm20704_vm2, %v10719_v58, %v19190_v31  ;;  %v20705_v24 = vld [vmem:[#allocation10_spill] sm:$0xff]  ;;  %v20711_v46 = vld [vmem:[#allocation29_spill] sm:$0xff]  ;;  %v14107_v47 = vld [vmem:[#allocation2 + $0x48] sm:$0xf] }
 0x685   : > { %v12628_v43 = vcombine.low %v9225_v32, %v9235_v50  ;;  %11177 = vmatmul.mubr.bf16.gmra.mrb[96].mxu1 %v10785_v13  ;;  %v9253_v15 = vor.u32 %v9252_v6, %v9248_v57  ;;  %v9272_v20 = vrot.slane %v9270_v1, 5  ;;  %v9274_v2 = vshrl.u32 %v14104_v63, 16  ;;  %v19530_v52 = vpop.f32.mrb[122].mxu0  ;;  %vm20724_vm8 = vmmov %vm20716_vm0 }
 0x686   : > { %v9267_v3 = vor.u32 %v9266_v16, %v19253_v10  ;;  %v9258_v55 = vrot.slane %v9256_v62, 5  ;;  %v9249_v31 = vsel %vm14373_vm9, %v9244_v33, %v9248_v57  ;;  %v11299_v58 = vpop.f32.mrb[123].mxu0  ;;  %v9280_v49 = vshll.u32 %v14105_v53, 16  ;;  %v19552_v9 = vpop.permute.xlu1 %10228  ;;  %vm20725_vm2 = vmmov %vm20713_vm3 }
 0x687   : > { %734 = vrot.lane.b32.xlu0 %v20705_v24, %s14229_s17  ;;  %v10831_v48 = vsel %vm20706_vm13, %v12628_v43, %v19235_v59  ;;  %756 = vrot.lane.b32.xlu1 %v20707_v39, %s14229_s17  ;;  %v9254_v38 = vrot.slane %v9253_v15, 4  ;;  %v9276_v16 = vrot.slane %v9274_v2, 4  ;;  %v10788_v6 = vsel %vm20712_vm11, %v10755_v25, %v19231_v27  ;;  %v20718_v15 = vld [vmem:[#allocation34_spill] sm:$0xff]  ;;  %v14108_v2 = vld [vmem:[#allocation2 + $0x6c] sm:$0xf]  ;;  %vm20727_vm13 = vmmov %vm20720_vm5 }
 0x688   : > { %v10867_v10 = vsel %vm20708_vm7, %v10831_v48, %v19284_v0  ;;  %v9268_v34 = vrot.slane %v9267_v3, 4  ;;  %v14106_v0 = vld [vmem:[#allocation2 + $0x4c] sm:$0xf]  ;;  %v19554_v62 = vpop.permute.xlu0 %10578  ;;  %v9282_v1 = vrot.slane %v9280_v49, 5  ;;  %v9285_v3 = vshrl.u32 %v14108_v2, 16  ;;  %v20722_v48 = vld [vmem:[#allocation22_spill] sm:$0xff]  ;;  %vm20729_vm7 = vmmov %vm20716_vm0 }
 0x689   : > { %v9259_v56 = vsel %vm14373_vm9, %v9254_v38, %v9258_v55  ;;  %v10900_v59 = vsel %vm20709_vm1, %v10867_v10, %v19410_v54  ;;  %v9277_v32 = vor.u32 %v9276_v16, %v9272_v20  ;;  %v12573_v57 = vcombine.low %v14107_v47, %v14106_v0  ;;  %v14109_v39 = vld [vmem:[#allocation2 + $0x70] sm:$0xf]  ;;  %v14111_v58 = vld [vmem:[#allocation2 + $0x54] sm:$0xf]  ;;  %vm20732_vm1 = vmmov %vm20725_vm2 }
 0x68a   : > { %v12629_v37 = vcombine.low %v9249_v31, %v9259_v56  ;;  %11184 = vmatprep.mubr.bf16.mxu1 %v10900_v59  ;;  %v9273_v50 = vsel %vm14373_vm9, %v9268_v34, %v9272_v20  ;;  %v19576_v25 = vpop.permute.xlu1 %10300  ;;  %v9288_v24 = vshll.u32 %v14108_v2, 16  ;;  %v9294_v38 = vshll.u32 %v14109_v39, 16  ;;  %v14110_v31 = vld [vmem:[#allocation2 + $0x58] sm:$0xf]  ;;  %v20726_v49 = vld [vmem:[#allocation20_spill] sm:$0xff]  ;;  %vm20733_vm11 = vmmov %vm20732_vm1 }
 0x68b   : > { %738 = vrot.lane.b32.xlu0 %v20710_v14, %s14229_s17  ;;  %760 = vrot.lane.b32.xlu1 %v20711_v46, %s14229_s17  ;;  %v9278_v63 = vrot.slane %v9277_v32, 4  ;;  %v10722_v33 = vsel %vm20715_vm14, %v12573_v57, %v19375_v60  ;;  %v9298_v55 = vshrl.u32 %v14109_v39, 16  ;;  %v9408_v32 = vshll.u32 %v19378_v23, 16  ;;  %v20728_v14 = vld [vmem:[#allocation28_spill] sm:$0xff]  ;;  %v14115_v2 = vld [vmem:[#allocation2 + $0x60] sm:$0xf]  ;;  %vm20736_vm14 = vmmov %vm20716_vm0 }
 0x68c   : > { %v10834_v54 = vsel %vm20713_vm3, %v12629_v37, %v19351_v21  ;;  %v20717_v21 = vld [vmem:[#allocation14_spill] sm:$0xff]  ;;  %v10757_v60 = vsel %vm20720_vm5, %v10722_v33, %v19308_v36  ;;  %v12574_v36 = vcombine.low %v14111_v58, %v14110_v31  ;;  %v9290_v53 = vrot.slane %v9288_v24, 5  ;;  %vm20734_vm3 = vmmov %vm20720_vm5 }
 0x68d   : > { %v10869_v13 = vsel %vm20714_vm10, %v10834_v54, %v19380_v29  ;;  %11185 = vmatmul.mubr.bf16.gmra.mrb[100].mxu1 %v10788_v6  ;;  %v9283_v27 = vsel %vm14373_vm9, %v9278_v63, %v9282_v1  ;;  %v10791_v10 = vsel %vm20724_vm8, %v10757_v60, %v19343_v17  ;;  %v9296_v34 = vrot.slane %v9294_v38, 5  ;;  %v14112_v6 = vld [vmem:[#allocation2 + $0x74] sm:$0x1]  ;;  %vm20735_vm10 = vmmov %vm20734_vm3 }
 0x68e   : > { %v10903_v43 = vsel %vm20716_vm0, %v10869_v13, %v19500_v4  ;;  %v12630_v30 = vcombine.low %v9273_v50, %v9283_v27  ;;  %v10725_v16 = vsel %vm20725_vm2, %v12574_v36, %v19463_v19  ;;  %v9300_v56 = vrot.slane %v9298_v55, 4  ;;  %v19589_v59 = vpop.permute.xlu1 %10384  ;;  %vm20738_vm5 = vmmov %vm20732_vm1 }
 0x68f   : > { %742 = vrot.lane.b32.xlu0 %v20717_v21, %s14229_s17  ;;  %764 = vrot.lane.b32.xlu1 %v20718_v15, %s14229_s17  ;;  %v9405_v37 = vshrl.u32 %v19378_v23, 16  ;;  %v10759_v17 = vsel %vm20727_vm13, %v10725_v16, %v19403_v8  ;;  %v9410_v47 = vrot.slane %v9408_v32, 5  ;;  %v9304_v54 = vshll.u32 %v14112_v6, 16  ;;  %v20730_v8 = vld [vmem:[#allocation26_spill] sm:$0xff]  ;;  %vm20741_vm8 = vmmov %vm20716_vm0 }
 0x690   : > { %11192 = vmatprep.mubr.bf16.mxu1 %v10903_v43  ;;  %v10837_v29 = vsel %vm20719_vm12, %v12630_v30, %v19445_v45  ;;  %v9301_v19 = vor.u32 %v9300_v56, %v9296_v34  ;;  %v10794_v57 = vsel %vm20729_vm7, %v10759_v17, %v19438_v44  ;;  %v9414_v23 = vshll.u32 %v19385_v42, 16  ;;  %v14113_v30 = vld [vmem:[#allocation2 + $0x78] sm:$0xf]  ;;  %v14117_v6 = vld [vmem:[#allocation2 + $0x84] sm:$0xf]  ;;  %vm20737_vm12 = vmmov %vm20732_vm1 }
 0x691   : > { %v10647_v20 = vpop.permute.xlu0 %10646  ;;  %v10871_v4 = vsel %vm20721_vm15, %v10837_v29, %v19467_v11  ;;  %v9287_v11 = vrot.slane %v9285_v3, 4  ;;  %v9407_v0 = vrot.slane %v9405_v37, 4  ;;  %v9418_v33 = vshrl.u32 %v19385_v42, 16  ;;  %vm20739_vm15 = vmmov %vm20734_vm3 }
 0x692   : > { %v10906_v45 = vsel %vm20723_vm4, %v10871_v4, %v10647_v20  ;;  %v9302_v50 = vrot.slane %v9301_v19, 4  ;;  %v9416_v27 = vrot.slane %v9414_v23, 5  ;;  %v9306_v21 = vrot.slane %v9304_v54, 5  ;;  %v14114_v20 = vld [vmem:[#allocation2 + $0x64] sm:$0xf]  ;;  %vm20740_vm4 = vmmov %vm20734_vm3 }
 0x693   : > { %746 = vrot.lane.b32.xlu0 %v20722_v48, %s14229_s17  ;;  %v9291_v46 = vor.u32 %v9290_v53, %v9287_v11  ;;  %v19599_v63 = vpop.permute.xlu1 %10230  ;;  %v9411_v43 = vor.u32 %v9410_v47, %v9407_v0  ;;  %v9420_v44 = vrot.slane %v9418_v33, 4  ;;  %v9424_v15 = vshll.u32 %v19398_v18, 16  ;;  %v14116_v4 = vld [vmem:[#allocation2 + $0x7c] sm:$0xf]  ;;  %v14118_v23 = vld [vmem:[#allocation2 + $0x88] sm:$0xf]  ;;  %vm20742_vm2 = vmmov %vm20716_vm0 }
 0x694   : > { %v9309_v29 = vshrl.u32 %v14113_v30, 16  ;;  %v9312_v60 = vshll.u32 %v14113_v30, 16  ;;  %v12575_v3 = vcombine.low %v14115_v2, %v14114_v20  ;;  %v9318_v24 = vshll.u32 %v14116_v4, 16  ;;  %v20731_v48 = vld [vmem:[#allocation33_spill] sm:$0xff]  ;;  %vm20743_vm13 = vmmov %vm20732_vm1 }
 0x695   : > { %11193 = vmatmul.mubr.bf16.gmra.mrb[104].mxu1 %v10791_v10  ;;  %v9292_v13 = vrot.slane %v9291_v46, 4  ;;  %v9307_v42 = vsel %vm14373_vm9, %v9302_v50, %v9306_v21  ;;  %v9421_v55 = vor.u32 %v9420_v44, %v9416_v27  ;;  %v9322_v31 = vshrl.u32 %v14116_v4, 16  ;;  %vm20744_vm7 = vmmov %vm20732_vm1 }
 0x696   : > { %11200 = vmatprep.mubr.bf16.mxu1 %v10906_v45  ;;  %v9412_v45 = vrot.slane %v9411_v43, 4  ;;  %v10728_v58 = vsel %vm20732_vm1, %v12575_v3, %v19552_v9  ;;  %v9426_v10 = vrot.slane %v9424_v15, 5  ;;  %v9311_v53 = vrot.slane %v9309_v29, 4  ;;  %vm20745_vm1 = vmmov %vm20734_vm3 }
 0x697   : > { %750 = vrot.lane.b32.xlu0 %v20726_v49, %s14229_s17  ;;  %v9297_v39 = vsel %vm14373_vm9, %v9292_v13, %v9296_v34  ;;  %v9422_v36 = vrot.slane %v9421_v55, 4  ;;  %v9314_v49 = vrot.slane %v9312_v60, 5  ;;  %v9320_v56 = vrot.slane %v9318_v24, 5  ;;  %v14119_v13 = vld [vmem:[#allocation2 + $0x80] sm:$0x1] }
 0x698   : > { %v9417_v16 = vsel %vm14373_vm9, %v9412_v45, %v9416_v27  ;;  %v12631_v11 = vcombine.low %v9297_v39, %v9307_v42  ;;  %v9324_v32 = vrot.slane %v9322_v31, 4  ;;  %v10761_v17 = vsel %vm20734_vm3, %v10728_v58, %v19491_v22  ;;  %v14121_v60 = vld [vmem:[#allocation2 + $0x6c] sm:$0xf]  ;;  %vm20747_vm3 = vmmov %vm20716_vm0 }
 0x699   : > { %v9427_v34 = vsel %vm14373_vm9, %v9422_v36, %v9426_v10  ;;  %v10797_v47 = vsel %vm20716_vm0, %v10761_v17, %v19521_v12  ;;  %v9333_v54 = vshrl.u32 %v14117_v6, 16  ;;  %v9336_v22 = vshll.u32 %v14117_v6, 16  ;;  %v14120_v12 = vld [vmem:[#allocation2 + $0x70] sm:$0xf]  ;;  %v14122_v36 = vld [vmem:[#allocation2 + $0x8c] sm:$0x1] }
 0x69a   : > { %v19601_v1 = vpop.permute.xlu0 %10496  ;;  %v10840_v37 = vsel %vm20733_vm11, %v12631_v11, %v19525_v61  ;;  %v19628_v9 = vcombine.low %v9417_v16, %v9427_v34  ;;  %v9315_v61 = vor.u32 %v9314_v49, %v9311_v53  ;;  %v9346_v50 = vshrl.u32 %v14118_v23, 16  ;;  %vm20746_vm11 = vmmov %vm20745_vm1 }
 0x69b   : > { %754 = vrot.lane.b32.xlu0 %v20728_v14, %s14229_s17  ;;  %v10873_v14 = vsel %vm20735_vm10, %v10840_v37, %v19554_v62  ;;  %v9328_v62 = vshll.u32 %v14119_v13, 16  ;;  %v9335_v21 = vrot.slane %v9333_v54, 4  ;;  %v9338_v44 = vrot.slane %v9336_v22, 5  ;;  %vm20748_vm10 = vmmov %vm20716_vm0 }
 0x69c   : > { %v9316_v43 = vrot.slane %v9315_v61, 4  ;;  %v9348_v30 = vrot.slane %v9346_v50, 4  ;;  %v12576_v20 = vcombine.low %v14121_v60, %v14120_v12  ;;  %v9352_v10 = vshll.u32 %v14122_v36, 16  ;;  %vm20752_vm0 = vmmov %vm20738_vm5 }
 0x69d   : > { %11201 = vmatmul.mubr.bf16.gmra.mrb[108].mxu1 %v10794_v57  ;;  %v9325_v57 = vor.u32 %v9324_v32, %v9320_v56  ;;  %v9330_v29 = vrot.slane %v9328_v62, 5  ;;  %v9339_v42 = vor.u32 %v9338_v44, %v9335_v21  ;;  %v14126_v44 = vld [vmem:[#allocation2 + $0x94] sm:$0xf] }
 0x69e   : > { %v19616_v18 = vpop.permute.xlu0 %10580  ;;  %v9321_v3 = vsel %vm14373_vm9, %v9316_v43, %v9320_v56  ;;  %v10731_v45 = vsel %vm20737_vm12, %v12576_v20, %v19599_v63  ;;  %v9354_v63 = vrot.slane %v9352_v10, 5  ;;  %v14125_v43 = vld [vmem:[#allocation2 + $0x90] sm:$0xf]  ;;  %vm20753_vm12 = vmmov %vm20745_vm1 }
 0x69f   : > { %758 = vrot.lane.b32.xlu0 %v20730_v8, %s14229_s17  ;;  %v9342_v8 = vshll.u32 %v14118_v23, 16  ;;  %v9326_v27 = vrot.slane %v9325_v57, 4  ;;  %v9340_v49 = vrot.slane %v9339_v42, 4  ;;  %v10763_v56 = vsel %vm20739_vm15, %v10731_v45, %v19576_v25  ;;  %vm20755_vm15 = vmmov %vm20742_vm2 }
 0x6a0   : > { %v9357_v21 = vshrl.u32 %v14125_v43, 16  ;;  %v9390_v42 = vshll.u32 %v19229_v28, 16  ;;  %v9394_v45 = vshrl.u32 %v19229_v28, 16 }
 0x6a1   : > { %v19614_v38 = vpop.permute.xlu1 %10232  ;;  %v9344_v15 = vrot.slane %v9342_v8, 5  ;;  %v9331_v2 = vsel %vm14373_vm9, %v9326_v27, %v9330_v29 }
 0x6a2   : > { %v12632_v58 = vcombine.low %v9321_v3, %v9331_v2  ;;  %v9359_v29 = vrot.slane %v9357_v21, 4  ;;  %v9384_v3 = vshll.u32 %v19223_v7, 16 }
 0x6a3   : > { %762 = vrot.lane.b32.xlu0 %v20731_v48, %s14229_s17  ;;  %v9349_v48 = vor.u32 %v9348_v30, %v9344_v15  ;;  %v9370_v30 = vshrl.u32 %v14126_v44, 16 }
 0x6a4   : > { %v10843_v11 = vsel %vm20738_vm5, %v12632_v58, %v19601_v1  ;;  %v20749_v58 = vld [vmem:[#allocation38_spill] sm:$0xff] }
 0x6a5   : > { %v19632_v19 = vpop.permute.xlu1 %10302  ;;  %v9350_v53 = vrot.slane %v9349_v48, 4  ;;  %v10875_v34 = vsel %vm20740_vm4, %v10843_v11, %v19616_v18  ;;  %v14123_v18 = vld [vmem:[#allocation2 + $0x78] sm:$0xf]  ;;  %v9372_v60 = vrot.slane %v9370_v30, 4  ;;  %v9376_v36 = vshll.u32 %v20749_v58, 16  ;;  %vm20757_vm4 = vmmov %vm20742_vm2 }
 0x6a7   : > { %v9355_v1 = vsel %vm14373_vm9, %v9350_v53, %v9354_v63  ;;  %v9396_v63 = vrot.slane %v9394_v45, 4 }
 0x6a9   : > { %v10649_v46 = vpop.permute.xlu0 %10648  ;;  %v10387_v33 = vpop.permute.xlu1 %10386 }
 0x6aa   : > { %v10909_v0 = vsel %vm20736_vm14, %v10873_v14, %v10649_v46  ;;  %v10800_v14 = vsel %vm20742_vm2, %v10763_v56, %v19589_v59  ;;  %v9345_v46 = vsel %vm14373_vm9, %v9340_v49, %v9344_v15  ;;  %v9366_v15 = vshll.u32 %v14126_v44, 16  ;;  %vm20751_vm14 = vmmov %vm20738_vm5 }
 0x6ab   : > { %11208 = vmatprep.mubr.bf16.mxu1 %v10909_v0  ;;  %v12633_v0 = vcombine.low %v9345_v46, %v9355_v1  ;;  %v9386_v49 = vrot.slane %v9384_v3, 5  ;;  %vm20754_vm5 = vmmov %vm20745_vm1  ;;  %v20756_v3 = vld [vmem:[#allocation39_spill] sm:$0xff] }
 0x6ac   : > { %11209 = vmatmul.mubr.bf16.gmra.mrb[112].mxu1 %v10797_v47  ;;  %v14124_v47 = vld [vmem:[#allocation2 + $0x7c] sm:$0xf]  ;;  %vm20759_vm2 = vmmov %vm20752_vm0 }
 0x6ad   : > { %v10499_v4 = vpop.permute.xlu0 %10498  ;;  %v12577_v57 = vcombine.low %v14123_v18, %v14124_v47 }
 0x6ae   : > { %v10846_v6 = vsel %vm20743_vm13, %v12633_v0, %v10499_v4  ;;  %v20750_v0 = vld [vmem:[#allocation47_spill] sm:$0xff]  ;;  %vm20760_vm13 = vmmov %vm20745_vm1 }
 0x6af   : > { %v10734_v54 = vsel %vm20744_vm7, %v12577_v57, %v19614_v38  ;;  %v9360_v38 = vshll.u32 %v14125_v43, 16  ;;  %v9400_v18 = vshll.u32 %v20750_v0, 16  ;;  %vm20761_vm7 = vmmov %vm20745_vm1 }
 0x6b0   : > { %v19643_v39 = vpop.permute.xlu1 %10234  ;;  %v10765_v23 = vsel %vm20746_vm11, %v10734_v54, %v19632_v19  ;;  %v9368_v19 = vrot.slane %v9366_v15, 5  ;;  %vm20765_vm11 = vmmov %vm20752_vm0 }
 0x6b1   : > { %v10803_v50 = vsel %vm20748_vm10, %v10765_v23, %v10387_v33  ;;  %v9362_v12 = vrot.slane %v9360_v38, 5  ;;  %v9381_v33 = vshrl.u32 %v19223_v7, 16  ;;  %v9402_v30 = vrot.slane %v9400_v18, 5  ;;  %vm20767_vm10 = vmmov %vm20754_vm5 }
 0x6b2   : > { %v9373_v4 = vor.u32 %v9372_v60, %v9368_v19  ;;  %v787_v18 = vlaneseq }
 0x6b3   : > { %v9363_v48 = vor.u32 %v9362_v12, %v9359_v29  ;;  %v9383_v53 = vrot.slane %v9381_v33, 4  ;;  %v14129_v33 = vld [vmem:[#allocation2 + $0x94] sm:$0xf] }
 0x6b4   : > { %v19641_v24 = vpop.f32.mrb[124].mxu0  ;;  %v9374_v56 = vrot.slane %v9373_v4, 4  ;;  %v12579_v4 = vcombine.low %v20756_v3, %v14129_v33 }
 0x6b5   : > { %v19645_v55 = vpop.f32.mrb[125].mxu0  ;;  %v9387_v28 = vor.u32 %v9386_v49, %v9383_v53 }
 0x6b6   : > { %v19649_v31 = vpop.f32.mrb[126].mxu0 }
 0x6b7   : > { %v19651_v16 = vpop.f32.mrb[127].mxu0 }
 0x6b9   : > { %v19659_v32 = vpop.permute.xlu1 %10304 }
 0x6ba   : > { %v10651_v37 = vpop.permute.xlu0 %10650 }
 0x6bb   : > { %v10912_v17 = vsel %vm20741_vm8, %v10875_v34, %v10651_v37  ;;  %v9364_v34 = vrot.slane %v9363_v48, 4  ;;  %v9392_v37 = vrot.slane %v9390_v42, 5  ;;  %vm20758_vm8 = vmmov %vm20752_vm0 }
 0x6bc   : > { %11216 = vmatprep.mubr.bf16.mxu1 %v10912_v17  ;;  %v9378_v17 = vrot.slane %v9376_v36, 5 }
 0x6bd   : > { %11217 = vmatmul.mubr.bf16.gmra.mrb[116].mxu1 %v10800_v14  ;;  %v19668_v61 = vpop.permute.xlu1 %10388  ;;  %v9369_v1 = vsel %vm14373_vm9, %v9364_v34, %v9368_v19  ;;  %v9397_v46 = vor.u32 %v9396_v63, %v9392_v37 }
 0x6be   : > { %v10583_v25 = vpop.permute.xlu0 %10582  ;;  %v9379_v7 = vsel %vm14373_vm9, %v9374_v56, %v9378_v17 }
 0x6bf   : > { %v10877_v59 = vsel %vm20745_vm1, %v10846_v6, %v10583_v25  ;;  %v12634_v6 = vcombine.low %v9369_v1, %v9379_v7  ;;  %vm20763_vm1 = vmmov %vm20747_vm3 }
 0x6c1   : > { %v19678_v13 = vpop.permute.xlu1 %10306 }
 0x6c3   : > { %v10653_v22 = vpop.permute.xlu0 %10652 }
 0x6c4   : > { %v10915_v8 = vsel %vm20747_vm3, %v10877_v59, %v10653_v22  ;;  %v14127_v59 = vld [vmem:[#allocation2 + $0x84] sm:$0xf]  ;;  %v14128_v22 = vld [vmem:[#allocation2 + $0x88] sm:$0xf] }
 0x6c5   : > { %11224 = vmatprep.mubr.bf16.mxu1 %v10915_v8  ;;  %v19680_v27 = vpop.permute.xlu1 %10390  ;;  %v12578_v23 = vcombine.low %v14127_v59, %v14128_v22  ;;  %v9398_v8 = vrot.slane %v9397_v46, 4  ;;  %v788_v59 = vshrl.u32 %v787_v18, 7 }
 0x6c6   : > { %11225 = vmatmul.mubr.bf16.gmra.mrb[120].mxu1 %v10803_v50  ;;  %v9388_v50 = vrot.slane %v9387_v28, 4 }
 0x6c7   : > { %v10501_v62 = vpop.permute.xlu0 %10500  ;;  %v10737_v44 = vsel %vm20752_vm0, %v12578_v23, %v19643_v39 }
 0x6c8   : > { %v10849_v21 = vsel %vm20751_vm14, %v12634_v6, %v10501_v62  ;;  %v10767_v19 = vsel %vm20754_vm5, %v10737_v44, %v19659_v32  ;;  %v9403_v62 = vsel %vm14373_vm9, %v9398_v8, %v9402_v30  ;;  %v9393_v39 = vsel %vm14373_vm9, %v9388_v50, %v9392_v37  ;;  %vm20762_vm9 = vmmov %vm20747_vm3  ;;  %v20764_v37 = vld [vmem:[#allocation41_spill] sm:$0xff] }
 0x6c9   : > { %v12635_v45 = vcombine.low %v9393_v39, %v9403_v62  ;;  %v12580_v63 = vcombine.low %v20764_v37, %v19292_v41  ;;  %vm20766_vm3 = vmmov %vm20752_vm0 }
 0x6ca   : > { %vm20768_vm14 = vmmov %vm20754_vm5 }
 0x6cb   : > { %v10585_v20 = vpop.permute.xlu0 %10584  ;;  %vm20769_vm0 = vmmov %vm20763_vm1 }
 0x6cc   : > { %v10879_v15 = vsel %vm20753_vm12, %v10849_v21, %v10585_v20  ;;  %v10806_v20 = vsel %vm20757_vm4, %v10767_v19, %v19668_v61  ;;  %vm20770_vm12 = vmmov %vm20769_vm0 }
 0x6cd   : > { %vm20771_vm5 = vmmov %vm20759_vm2 }
 0x6ce   : > { %vm20774_vm4 = vmmov %vm20759_vm2 }
 0x6d0   : > { %v10503_v10 = vpop.permute.xlu0 %10502 }
 0x6d1   : > { %v10237_v2 = vpop.permute.xlu1 %10236  ;;  %v10852_v58 = vsel %vm20759_vm2, %v12635_v45, %v10503_v10 }
 0x6d2   : > { %v10740_v48 = vsel %vm20758_vm8, %v12579_v4, %v10237_v2  ;;  %vm20775_vm8 = vmmov %vm20759_vm2 }
 0x6d3   : > { %v10769_v36 = vsel %vm20760_vm13, %v10740_v48, %v19678_v13 }
 0x6d4   : > { %v10587_v25 = vpop.permute.xlu0 %10586  ;;  %v10809_v61 = vsel %vm20763_vm1, %v10769_v36, %v19680_v27  ;;  %vm20780_vm1 = vmmov %vm20769_vm0 }
 0x6d5   : > { %v10881_v53 = vsel %vm20761_vm7, %v10852_v58, %v10587_v25  ;;  %v14230_v25 = vmov 1983009808  }
 0x6d6   : > { %v785_v0 = vunpack.c.l.s4 %v14230_v25 }
 0x6d9   : > { %v10239_v11 = vpop.permute.xlu1 %10238 }
 0x6da   : > { %v10743_v7 = vsel %vm20766_vm3, %v12580_v63, %v10239_v11  ;;  %v14231_v11 = vmov 1934713408   ;;  %vm20782_vm3 = vmmov %vm20769_vm0 }
 0x6db   : > { %v849_v8 = vunpack.c.l.s4 %v14231_v11 }
 0x6dd   : > { %v10309_v14 = vpop.permute.xlu1 %10308  ;;  %v850_v3 = vunpack.c.0.s8 %v849_v8 }
 0x6de   : > { %v10771_v46 = vsel %vm20768_vm14, %v10743_v7, %v10309_v14  ;;  %vm20784_vm14 = vmmov %vm20774_vm4 }
 0x6e1   : > { %v10393_v47 = vpop.permute.xlu1 %10392  ;;  %v19692_v57 = vpop.f32.mrb[128].mxu0 }
 0x6e2   : > { %v19694_v54 = vpop.f32.mrb[129].mxu0  ;;  %v10812_v27 = vsel %vm20770_vm12, %v10771_v46, %v10393_v47 }
 0x6e3   : > { %v19696_v43 = vpop.f32.mrb[130].mxu0 }
 0x6e4   : > { %v19699_v38 = vpop.f32.mrb[131].mxu0 }
 0x6e5   : > { %v10655_v29 = vpop.permute.xlu0 %10654  ;;  %v19704_v12 = vpop.permute.xlu1 %736 }
 0x6e6   : > { %v10918_v60 = vsel %vm20755_vm15, %v10879_v15, %v10655_v29  ;;  %vm20773_vm15 = vmmov %vm20759_vm2 }
 0x6e7   : > { %11232 = vmatprep.mubr.bf16.mxu1 %v10918_v60 }
 0x6e8   : > { %11233 = vmatmul.mubr.bf16.gmra.mrb[124].mxu1 %v10806_v20 }
 0x6e9   : > { %v10505_v42 = vpop.permute.xlu0 %10504  ;;  %v741_v32 = vpop.permute.xlu1 %740 }
 0x6ea   : > { %v10855_v10 = vsel %vm20765_vm11, %v19628_v9, %v10505_v42  ;;  %v786_v9 = vunpack.c.0.s8 %v785_v0  ;;  %vm20781_vm11 = vmmov %vm20769_vm0 }
 0x6ec   : > { %v19733_v44 = vsub.s32 %v786_v9, %v788_v59  ;;  %v10109_v9 = vrot.slane %v19436_v5, 5 }
 0x6ed   : > { %v10657_v49 = vpop.permute.xlu0 %10656  ;;  %v745_v40 = vpop.permute.xlu1 %744 }
 0x6ee   : > { %v10921_v56 = vsel %vm20762_vm9, %v10881_v53, %v10657_v49  ;;  %v918_v15 = vcombine.low %v19704_v12, %v745_v40  ;;  %v919_v47 = vcombine.high %v19704_v12, %v745_v40  ;;  %v19767_v49 = vsub.s32 %v850_v3, %v788_v59 }
 0x6ef   : > { %11238 = vmatprep.mubr.bf16.mxu1 %v10921_v56  ;;  %v10112_v59 = vrot.slane %v19452_v35, 5 }
 0x6f0   : > { %11239 = vmatmul.mubr.bf16.gmra.mrb[128].mxu1 %v10809_v61  ;;  %v19753_v48 = vrot.slane %v918_v15, %v19733_v44  ;;  %v19756_v42 = vrot.slane %v919_v47, %v19733_v44 }
 0x6f1   : > { %v10589_v2 = vpop.permute.xlu0 %10588  ;;  %v749_v34 = vpop.permute.xlu1 %748 }
 0x6f2   : > { %v10883_v1 = vsel %vm20767_vm10, %v10855_v10, %v10589_v2  ;;  %v934_v50 = vcombine.low %v741_v32, %v749_v34  ;;  %v935_v21 = vcombine.high %v741_v32, %v749_v34  ;;  %vm20783_vm10 = vmmov %vm20769_vm0 }
 0x6f4   : > { %v19738_v4 = vrot.slane %v934_v50, %v19733_v44  ;;  %v19741_v62 = vrot.slane %v935_v21, %v19733_v44 }
 0x6f5   : > { %v10659_v13 = vpop.permute.xlu0 %10658  ;;  %v753_v17 = vpop.permute.xlu1 %752 }
 0x6f6   : > { %v10924_v28 = vsel %vm20769_vm0, %v10883_v1, %v10659_v13  ;;  %v982_v40 = vcombine.low %v19753_v48, %v19738_v4  ;;  %v998_v56 = vcombine.low %v19756_v42, %v19741_v62  ;;  %vm20785_vm0 = vmmov %vm20774_vm4 }
 0x6f7   : > { %11244 = vmatprep.mubr.bf16.mxu1 %v10924_v28  ;;  %vm20786_vm12 = vmmov %vm20785_vm0 }
 0x6f8   : > { %11245 = vmatmul.mubr.bf16.gmra.mrb[132].mxu1 %v10812_v27  ;;  %v19786_v13 = vrot.slane %v982_v40, %v19767_v49 }
 0x6f9   : > { %v735_v41 = vpop.permute.xlu0 %734  ;;  %v757_v6 = vpop.permute.xlu1 %756 }
 0x6fd   : > { %v739_v22 = vpop.permute.xlu0 %738  ;;  %v761_v23 = vpop.permute.xlu1 %760 }
 0x6fe   : > { %v950_v14 = vcombine.low %v753_v17, %v761_v23  ;;  %v951_v29 = vcombine.high %v753_v17, %v761_v23  ;;  %v19789_v17 = vrot.slane %v998_v56, %v19767_v49 }
 0x700   : > { %v19744_v39 = vrot.slane %v950_v14, %v19733_v44  ;;  %v19759_v32 = vrot.slane %v951_v29, %v19733_v44  ;;  %v10111_v14 = vrot.slane %v10109_v9, 4 }
 0x701   : > { %v743_v30 = vpop.permute.xlu0 %742  ;;  %v765_v19 = vpop.permute.xlu1 %764 }
 0x702   : > { %v966_v60 = vcombine.low %v757_v6, %v765_v19  ;;  %v967_v33 = vcombine.high %v757_v6, %v765_v19  ;;  %v782_v25 = vcombine.low %v735_v41, %v743_v30  ;;  %v783_v0 = vcombine.high %v735_v41, %v743_v30  ;;  %v9973_v6 = vld [vmem:[#allocation2 + $0xb4] sm:$0xe] }
 0x703   : > { %v12566_v8 = vrot.slane %v9973_v6, 9  ;;  %v10113_v35 = vsel %vm14364_vm6, %v10111_v14, %v10112_v59 }
 0x704   : > { %v19747_v20 = vrot.slane %v966_v60, %v19733_v44  ;;  %v19750_v12 = vrot.slane %v967_v33, %v19733_v44  ;;  %v19761_v58 = vpop.f32.mrb[132].mxu0  ;;  %v790_v15 = vrot.slane %v782_v25, %v19733_v44 }
 0x705   : > { %v747_v45 = vpop.permute.xlu0 %746  ;;  %v19765_v53 = vpop.f32.mrb[133].mxu0  ;;  %v10110_v41 = vsel %vm14364_vm6, %v12566_v8, %v10109_v9  ;;  %vm20772_vm6 = vmmov %vm20759_vm2 }
 0x706   : > { %v1014_v36 = vcombine.low %v19744_v39, %v19747_v20  ;;  %v1030_v61 = vcombine.low %v19759_v32, %v19750_v12  ;;  %v19775_v2 = vpop.f32.mrb[134].mxu0  ;;  %v798_v28 = vcombine.low %v739_v22, %v747_v45  ;;  %v799_v27 = vcombine.high %v739_v22, %v747_v45  ;;  %vm20776_vm2 = vmmov %vm20761_vm7 }
 0x707   : > { %v19777_v34 = vpop.f32.mrb[135].mxu0  ;;  %v797_v22 = vrot.slane %v783_v0, %v19733_v44  ;;  %v12692_v60 = vcombine.low %v10110_v41, %v10113_v35  ;;  %vm20777_vm13 = vmmov %vm20776_vm2 }
 0x708   : > { %v19780_v37 = vrot.slane %v1014_v36, %v19767_v49  ;;  %v19783_v63 = vrot.slane %v1030_v61, %v19767_v49  ;;  %v806_v23 = vrot.slane %v798_v28, %v19733_v44  ;;  %v813_v11 = vrot.slane %v799_v27, %v19733_v44  ;;  %vm20778_vm7 = vmmov %vm20776_vm2 }
 0x709   : > { %v751_v10 = vpop.permute.xlu0 %750  ;;  %13254 = vmatmul.mubr.msk.bf16.gmra.mrb[140].mxu0 %vm20771_vm5, %v12692_v60  ;;  %vm20779_vm9 = vmmov %vm20776_vm2 }
 0x70a   : > { %v1046_v1 = vcombine.low %v19786_v13, %v19780_v37  ;;  %v1050_v46 = vcombine.low %v19789_v17, %v19783_v63  ;;  %v846_v29 = vcombine.low %v790_v15, %v806_v23  ;;  %v862_v19 = vcombine.low %v797_v22, %v813_v11  ;;  %vm20787_vm5 = vmmov %vm20785_vm0 }
 0x70b   : > { %v847_v9 = vcombine.high %v790_v15, %v806_v23  ;;  %v863_v59 = vcombine.high %v797_v22, %v813_v11  ;;  %v1051_v23 = vcombine.high %v19789_v17, %v19783_v63  ;;  %v1047_v11 = vcombine.high %v19786_v13, %v19780_v37 }
 0x70c   : > { %v19811_v61 = vrot.slane %v846_v29, %v19767_v49  ;;  %v19814_v26 = vrot.slane %v862_v19, %v19767_v49 }
 0x70d   : > { %v755_v7 = vpop.permute.xlu0 %754 }
 0x711   : > { %v759_v18 = vpop.permute.xlu0 %758 }
 0x712   : > { %v814_v50 = vcombine.low %v751_v10, %v759_v18  ;;  %v815_v21 = vcombine.high %v751_v10, %v759_v18 }
 0x714   : > { %v822_v33 = vrot.slane %v814_v50, %v19733_v44  ;;  %v829_v3 = vrot.slane %v815_v21, %v19733_v44  ;;  %v1015_v50 = vcombine.high %v19744_v39, %v19747_v20  ;;  %v1031_v21 = vcombine.high %v19759_v32, %v19750_v12 }
 0x715   : > { %v763_v47 = vpop.permute.xlu0 %762  ;;  %v999_v12 = vcombine.high %v19756_v42, %v19741_v62  ;;  %v861_v32 = vrot.slane %v847_v9, %v19767_v49 }
 0x716   : > { %v830_v30 = vcombine.low %v755_v7, %v763_v47  ;;  %v831_v5 = vcombine.high %v755_v7, %v763_v47  ;;  %v1029_v19 = vrot.slane %v1015_v50, %v19767_v49 }
 0x717   : > { %v1013_v62 = vrot.slane %v999_v12, %v19767_v49 }
 0x718   : > { %v838_v45 = vrot.slane %v830_v30, %v19733_v44  ;;  %v845_v36 = vrot.slane %v831_v5, %v19733_v44  ;;  %v983_v30 = vcombine.high %v19753_v48, %v19738_v4  ;;  %v877_v5 = vrot.slane %v863_v59, %v19767_v49 }
 0x719   : > { %v1045_v4 = vrot.slane %v1031_v21, %v19767_v49 }
 0x71a   : > { %v878_v40 = vcombine.low %v822_v33, %v838_v45  ;;  %v894_v56 = vcombine.low %v829_v3, %v845_v36  ;;  %v879_v28 = vcombine.high %v822_v33, %v838_v45  ;;  %v895_v27 = vcombine.high %v829_v3, %v845_v36 }
 0x71b   : > { %v997_v33 = vrot.slane %v983_v30, %v19767_v49  ;;  %v1052_v42 = vcombine.low %v1013_v62, %v1045_v4 }
 0x71c   : > { %v19817_v10 = vrot.slane %v878_v40, %v19767_v49  ;;  %v19820_v7 = vrot.slane %v894_v56, %v19767_v49  ;;  %v893_v47 = vrot.slane %v879_v28, %v19767_v49  ;;  %v909_v41 = vrot.slane %v895_v27, %v19767_v49 }
 0x71d   : > { %v1048_v3 = vcombine.low %v997_v33, %v1029_v19  ;;  %v1053_v40 = vcombine.high %v1013_v62, %v1045_v4  ;;  %v1049_v56 = vcombine.high %v997_v33, %v1029_v19 }
 0x71e   : > { %v911_v25 = vcombine.high %v19811_v61, %v19817_v10  ;;  %v915_v0 = vcombine.high %v19814_v26, %v19820_v7  ;;  %v910_v18 = vcombine.low %v19811_v61, %v19817_v10  ;;  %v914_v6 = vcombine.low %v19814_v26, %v19820_v7 }
 0x71f   : > { %v916_v48 = vcombine.low %v877_v5, %v909_v41  ;;  %v912_v60 = vcombine.low %v861_v32, %v893_v47  ;;  %v917_v45 = vcombine.high %v877_v5, %v909_v41  ;;  %v913_v36 = vcombine.high %v861_v32, %v893_v47 }
 0x720   : > { %1055 = vrot.lane.b32.xlu0 %v911_v25, %s14228_s12  ;;  %1067 = vrot.lane.b32.xlu1 %v915_v0, %s14228_s12  ;;  %v13031_v8 = vpop.f32.mrb[80].mxu1 }
 0x721   : > { %v13032_v14 = vpop.f32.mrb[81].mxu1 }
 0x722   : > { %v13251_v15 = vpop.f32.mrb[136].mxu0  ;;  %v13034_v22 = vpop.f32.mrb[82].mxu1  ;;  %v19869_v14 = vld [vmem:[%s20199_s4 + $0x2] ss:$0 sm:$0xff] }
 0x723   : > { %v19844_v39 = vpop.f32.mrb[137].mxu0  ;;  %v13035_v20 = vpop.f32.mrb[83].mxu1 }
 0x724   : > { %1091 = vrot.lane.b32.xlu1 %v1051_v23, %s14228_s12  ;;  %1079 = vrot.lane.b32.xlu0 %v1047_v11, %s14228_s12  ;;  %v13252_v35 = vpop.f32.mrb[138].mxu0 }
 0x725   : > { %v19852_v29 = vpop.f32.mrb[139].mxu0 }
 0x728   : > { %1071 = vrot.lane.b32.xlu1 %v916_v48, %s14227_s10  ;;  %1059 = vrot.lane.b32.xlu0 %v912_v60, %s14227_s10 }
 0x72c   : > { %1095 = vrot.lane.b32.xlu1 %v1052_v42, %s14227_s10  ;;  %1083 = vrot.lane.b32.xlu0 %v1048_v3, %s14227_s10 }
 0x730   : > { %1075 = vrot.lane.b32.xlu1 %v917_v45, %s14229_s17  ;;  %1063 = vrot.lane.b32.xlu0 %v913_v36, %s14229_s17 }
 0x734   : > { %1099 = vrot.lane.b32.xlu1 %v1053_v40, %s14229_s17  ;;  %1087 = vrot.lane.b32.xlu0 %v1049_v56, %s14229_s17 }
 0x738   : > { %v13037_v28 = vpop.f32.mrb[84].mxu1 }
 0x739   : > { %v13038_v27 = vpop.f32.mrb[85].mxu1 }
 0x73a   : > { %v13040_v25 = vpop.f32.mrb[86].mxu1 }
 0x73b   : > { %v13041_v0 = vpop.f32.mrb[87].mxu1 }
 0x748   : > { %v13043_v9 = vpop.f32.mrb[88].mxu1 }
 0x749   : > { %v13044_v59 = vpop.f32.mrb[89].mxu1 }
 0x74a   : > { %v13046_v8 = vpop.f32.mrb[90].mxu1 }
 0x74b   : > { %v13047_v50 = vpop.f32.mrb[91].mxu1 }
 0x750   : > { %v13049_v21 = vpop.f32.mrb[92].mxu1 }
 0x751   : > { %v13050_v47 = vpop.f32.mrb[93].mxu1 }
 0x752   : > { %v13051_v41 = vadd.f32 %v13050_v47, %v13049_v21  ;;  %v13052_v23 = vpop.f32.mrb[94].mxu1 }
 0x753   : > { %v13053_v11 = vpop.f32.mrb[95].mxu1 }
 0x754   : > { %v11171_v15 = vadd.f32 %v13051_v41, %v19869_v14  ;;  %v13054_v22 = vadd.f32 %v13053_v11, %v13052_v23 }
 0x756   : > { %v19873_v30 = vadd.f32 %v19523_v51, %v11171_v15  ;;  %v11174_v20 = vadd.f32 %v13054_v22, %v19869_v14 }
 0x758   : > { %v19877_v12 = vadd.f32 %v19530_v52, %v11174_v20  ;;  %v13055_v32 = vpop.f32.mrb[96].mxu1  ;;  %v11384_v33 = vsub.f32 0.0, %v19873_v30 }
 0x759   : > { %v13056_v5 = vpop.f32.mrb[97].mxu1 }
 0x75a   : > { %v13057_v35 = vadd.f32 %v13056_v5, %v13055_v32  ;;  %v13058_v19 = vpop.f32.mrb[98].mxu1  ;;  %v11385_v42 = vsub.f32 0.0, %v19877_v12  ;;  %v11400_v36 = vmul.f32 1.442695, %v11384_v33 }
 0x75b   : > { %v13059_v4 = vpop.f32.mrb[99].mxu1 }
 0x75c   : > { %v11179_v48 = vadd.f32 %v13057_v35, %v19869_v14  ;;  %v13060_v60 = vadd.f32 %v13059_v4, %v13058_v19  ;;  %v11402_v28 = vmul.f32 1.442695, %v11385_v42  ;;  %13862 = vpow2.f32 %v11400_v36 }
 0x75e   : > { %v19882_v62 = vadd.f32 %v19645_v55, %v11179_v48  ;;  %v11182_v51 = vadd.f32 %v13060_v60, %v19869_v14  ;;  %13864 = vpow2.f32 %v11402_v28 }
 0x760   : > { %v19887_v52 = vadd.f32 %v19651_v16, %v11182_v51  ;;  %v13061_v3 = vpop.f32.mrb[100].mxu1  ;;  %v11386_v55 = vsub.f32 0.0, %v19882_v62 }
 0x761   : > { %v13062_v45 = vpop.f32.mrb[101].mxu1 }
 0x762   : > { %v13063_v40 = vadd.f32 %v13062_v45, %v13061_v3  ;;  %v13064_v56 = vpop.f32.mrb[102].mxu1  ;;  %v11387_v16 = vsub.f32 0.0, %v19887_v52  ;;  %v11404_v47 = vmul.f32 1.442695, %v11386_v55 }
 0x763   : > { %v13065_v27 = vpop.f32.mrb[103].mxu1 }
 0x764   : > { %v11187_v25 = vadd.f32 %v13063_v40, %v19869_v14  ;;  %v13066_v0 = vadd.f32 %v13065_v27, %v13064_v56 }
 0x766   : > { %v19892_v9 = vadd.f32 %v19641_v24, %v11187_v25  ;;  %v11190_v59 = vadd.f32 %v13066_v0, %v19869_v14  ;;  %v11406_v24 = vmul.f32 1.442695, %v11387_v16  ;;  %v13863_v4 = vpop.eup %13862 }
 0x767   : > { %v11432_v56 = vadd.f32 1.0, %v13863_v4 }
 0x768   : > { %v11388_v8 = vsub.f32 0.0, %v19892_v9  ;;  %v19898_v50 = vadd.f32 %v19649_v31, %v11190_v59  ;;  %v13067_v21 = vpop.f32.mrb[104].mxu1  ;;  %v13865_v51 = vpop.eup %13864 }
 0x769   : > { %v13068_v41 = vpop.f32.mrb[105].mxu1  ;;  %v11433_v28 = vadd.f32 1.0, %v13865_v51 }
 0x76a   : > { %v11408_v23 = vmul.f32 1.442695, %v11388_v8  ;;  %v11389_v11 = vsub.f32 0.0, %v19898_v50  ;;  %v13069_v15 = vadd.f32 %v13068_v41, %v13067_v21  ;;  %v13070_v22 = vpop.f32.mrb[106].mxu1 }
 0x76b   : > { %v13071_v20 = vpop.f32.mrb[107].mxu1 }
 0x76c   : > { %13866 = vpow2.f32 %v11408_v23  ;;  %v11410_v32 = vmul.f32 1.442695, %v11389_v11  ;;  %v11195_v5 = vadd.f32 %v13069_v15, %v19869_v14  ;;  %v13072_v35 = vadd.f32 %v13071_v20, %v13070_v22 }
 0x76d   : > { %13868 = vpow2.f32 %v11404_v47 }
 0x76e   : > { %13870 = vpow2.f32 %v11410_v32  ;;  %v19903_v31 = vadd.f32 %v19694_v54, %v11195_v5  ;;  %v11198_v19 = vadd.f32 %v13072_v35, %v19869_v14 }
 0x76f   : > { %13872 = vpow2.f32 %v11406_v24 }
 0x770   : > { %v11390_v48 = vsub.f32 0.0, %v19903_v31  ;;  %v19908_v60 = vadd.f32 %v19699_v38, %v11198_v19  ;;  %v13073_v33 = vpop.f32.mrb[108].mxu1 }
 0x771   : > { %v13074_v42 = vpop.f32.mrb[109].mxu1 }
 0x772   : > { %v11412_v3 = vmul.f32 1.442695, %v11390_v48  ;;  %v11391_v45 = vsub.f32 0.0, %v19908_v60  ;;  %v13075_v36 = vadd.f32 %v13074_v42, %v13073_v33  ;;  %v13076_v40 = vpop.f32.mrb[110].mxu1 }
 0x773   : > { %v13077_v54 = vpop.f32.mrb[111].mxu1 }
 0x774   : > { %13874 = vpow2.f32 %v11412_v3  ;;  %v11414_v27 = vmul.f32 1.442695, %v11391_v45  ;;  %v11203_v25 = vadd.f32 %v13075_v36, %v19869_v14  ;;  %v13078_v0 = vadd.f32 %v13077_v54, %v13076_v40 }
 0x776   : > { %v13867_v55 = vpop.eup %13866  ;;  %13876 = vpow2.f32 %v11414_v27  ;;  %v19913_v38 = vadd.f32 %v19692_v57, %v11203_v25  ;;  %v11206_v8 = vadd.f32 %v13078_v0, %v19869_v14 }
 0x777   : > { %v13869_v59 = vpop.eup %13868  ;;  %13878 = vrcp.f32 %v11432_v56  ;;  %v11436_v16 = vadd.f32 1.0, %v13867_v55 }
 0x778   : > { %v13871_v21 = vpop.eup %13870  ;;  %13880 = vrcp.f32 %v11433_v28  ;;  %v19917_v23 = vadd.f32 %v19696_v43, %v11206_v8  ;;  %v11434_v11 = vadd.f32 1.0, %v13869_v59 }
 0x779   : > { %v13873_v47 = vpop.eup %13872  ;;  %13882 = vrcp.f32 %v11436_v16  ;;  %v11437_v41 = vadd.f32 1.0, %v13871_v21 }
 0x77a   : > { %v11435_v15 = vadd.f32 1.0, %v13873_v47  ;;  %v11392_v47 = vsub.f32 0.0, %v19913_v38 }
 0x77b   : > { %13884 = vrcp.f32 %v11437_v41 }
 0x77c   : > { %13886 = vrcp.f32 %v11434_v11 }
 0x77d   : > { %13888 = vrcp.f32 %v11435_v15  ;;  %v11393_v15 = vsub.f32 0.0, %v19917_v23 }
 0x77e   : > { %v13875_v22 = vpop.eup %13874 }
 0x77f   : > { %v11438_v57 = vadd.f32 1.0, %v13875_v22  ;;  %v13079_v24 = vpop.f32.mrb[112].mxu1 }
 0x780   : > { %v13877_v20 = vpop.eup %13876  ;;  %v13080_v32 = vpop.f32.mrb[113].mxu1 }
 0x781   : > { %v13879_v5 = vpop.eup %13878  ;;  %13890 = vrcp.f32 %v11438_v57  ;;  %v11439_v35 = vadd.f32 1.0, %v13877_v20  ;;  %v13081_v19 = vadd.f32 %v13080_v32, %v13079_v24  ;;  %v13082_v4 = vpop.f32.mrb[114].mxu1  ;;  %v11416_v20 = vmul.f32 1.442695, %v11392_v47 }
 0x782   : > { %v13881_v48 = vpop.eup %13880  ;;  %v13083_v33 = vpop.f32.mrb[115].mxu1  ;;  %v11464_v3 = vmul.f32 %v13879_v5, %v19873_v30 }
 0x783   : > { %v13883_v51 = vpop.eup %13882  ;;  %13892 = vrcp.f32 %v11439_v35  ;;  %v11211_v43 = vadd.f32 %v13081_v19, %v19869_v14  ;;  %v13084_v42 = vadd.f32 %v13083_v33, %v13082_v4  ;;  %v11465_v54 = vmul.f32 %v13881_v48, %v19877_v12 }
 0x784   : > { %v11468_v45 = vmul.f32 %v13883_v51, %v19892_v9  ;;  %13894 = vpow2.f32 %v11416_v20 }
 0x785   : > { %v13885_v36 = vpop.eup %13884  ;;  %v19923_v40 = vadd.f32 %v19765_v53, %v11211_v43  ;;  %v11214_v56 = vadd.f32 %v13084_v42, %v19869_v14  ;;  %v11418_v42 = vmul.f32 1.442695, %v11393_v15 }
 0x786   : > { %v11480_v28 = vcombine.low %v11464_v3, %v11468_v45  ;;  %v11481_v27 = vcombine.high %v11464_v3, %v11468_v45  ;;  %v11469_v25 = vmul.f32 %v13885_v36, %v19898_v50  ;;  %v13887_v30 = vpop.eup %13886 }
 0x787   : > { %v19929_v0 = vadd.f32 %v19777_v34, %v11214_v56  ;;  %v13889_v16 = vpop.eup %13888  ;;  %v11466_v8 = vmul.f32 %v13887_v30, %v19882_v62  ;;  %13896 = vpow2.f32 %v11418_v42 }
 0x788   : > { %v11616_v55 = vcombine.low %v11465_v54, %v11469_v25  ;;  %v11617_v59 = vcombine.high %v11465_v54, %v11469_v25  ;;  %v11467_v12 = vmul.f32 %v13889_v16, %v19887_v52  ;;  %v19937_v34 = vrot.slane %v11481_v27, %v19733_v44 }
 0x789   : > { %v19947_v52 = vrot.slane %v11480_v28, %v19733_v44  ;;  %v11395_v30 = vsub.f32 0.0, %v19929_v0 }
 0x78a   : > { %v19958_v4 = vrot.slane %v11617_v59, %v19733_v44  ;;  %v19965_v43 = vrot.slane %v11616_v55, %v19733_v44  ;;  %v11394_v55 = vsub.f32 0.0, %v19923_v40 }
 0x78b   : > { %v13891_v9 = vpop.eup %13890 }
 0x78c   : > { %v11470_v53 = vmul.f32 %v13891_v9, %v19903_v31 }
 0x78d   : > { %v13893_v21 = vpop.eup %13892 }
 0x78e   : > { %v11496_v41 = vcombine.low %v11466_v8, %v11470_v53  ;;  %v11497_v11 = vcombine.high %v11466_v8, %v11470_v53  ;;  %v11471_v50 = vmul.f32 %v13893_v21, %v19908_v60 }
 0x790   : > { %v19941_v22 = vrot.slane %v11496_v41, %v19733_v44  ;;  %v19944_v62 = vrot.slane %v11497_v11, %v19733_v44  ;;  %v11632_v31 = vcombine.low %v11467_v12, %v11471_v50  ;;  %v11633_v57 = vcombine.high %v11467_v12, %v11471_v50  ;;  %v13085_v24 = vpop.f32.mrb[116].mxu1 }
 0x791   : > { %v13086_v32 = vpop.f32.mrb[117].mxu1  ;;  %v11420_v12 = vmul.f32 1.442695, %v11394_v55  ;;  %v11422_v50 = vmul.f32 1.442695, %v11395_v30 }
 0x792   : > { %v19950_v60 = vrot.slane %v11632_v31, %v19733_v44  ;;  %v19953_v5 = vrot.slane %v11633_v57, %v19733_v44  ;;  %v13087_v35 = vadd.f32 %v13086_v32, %v13085_v24  ;;  %v11560_v19 = vcombine.low %v19937_v34, %v19944_v62  ;;  %v13088_v48 = vpop.f32.mrb[118].mxu1  ;;  %v13895_v24 = vpop.eup %13894 }
 0x793   : > { %v11544_v33 = vcombine.low %v19947_v52, %v19941_v22  ;;  %v11561_v51 = vcombine.high %v19937_v34, %v19944_v62  ;;  %v13089_v45 = vpop.f32.mrb[119].mxu1  ;;  %v11545_v36 = vcombine.high %v19947_v52, %v19941_v22 }
 0x794   : > { %v11219_v3 = vadd.f32 %v13087_v35, %v19869_v14  ;;  %v13090_v56 = vadd.f32 %v13089_v45, %v13088_v48  ;;  %v11696_v54 = vcombine.low %v19958_v4, %v19953_v5  ;;  %v11680_v27 = vcombine.low %v19965_v43, %v19950_v60  ;;  %v13897_v35 = vpop.eup %13896 }
 0x795   : > { %v11697_v8 = vcombine.high %v19958_v4, %v19953_v5  ;;  %v11441_v55 = vadd.f32 1.0, %v13897_v35 }
 0x796   : > { %v11352_v28 = vadd.f32 %v19761_v58, %v11219_v3  ;;  %v11222_v25 = vadd.f32 %v13090_v56, %v19869_v14  ;;  %v11681_v58 = vcombine.high %v19965_v43, %v19950_v60  ;;  %v11440_v3 = vadd.f32 1.0, %v13895_v24 }
 0x797   : > { %v20021_v34 = vrot.slane %v11696_v54, %v19767_v49  ;;  %v20027_v22 = vrot.slane %v11680_v27, %v19767_v49  ;;  %v11711_v54 = vrot.slane %v11697_v8, %v19767_v49 }
 0x798   : > { %v11396_v59 = vsub.f32 0.0, %v11352_v28  ;;  %v11355_v16 = vadd.f32 %v19775_v2, %v11222_v25  ;;  %v11695_v27 = vrot.slane %v11681_v58, %v19767_v49 }
 0x799   : > { %v13091_v9 = vpop.f32.mrb[120].mxu1 }
 0x79a   : > { %v11424_v53 = vmul.f32 1.442695, %v11396_v59  ;;  %v11397_v21 = vsub.f32 0.0, %v11355_v16  ;;  %v13092_v47 = vpop.f32.mrb[121].mxu1 }
 0x79b   : > { %v13093_v41 = vadd.f32 %v13092_v47, %v13091_v9  ;;  %v13094_v11 = vpop.f32.mrb[122].mxu1 }
 0x79c   : > { %13898 = vpow2.f32 %v11424_v53  ;;  %v11426_v15 = vmul.f32 1.442695, %v11397_v21  ;;  %v13095_v31 = vpop.f32.mrb[123].mxu1 }
 0x79d   : > { %v11227_v57 = vadd.f32 %v13093_v41, %v19869_v14  ;;  %v13096_v2 = vadd.f32 %v13095_v31, %v13094_v11 }
 0x79e   : > { %13900 = vpow2.f32 %v11426_v15 }
 0x79f   : > { %13902 = vpow2.f32 %v11420_v12  ;;  %v11360_v20 = vadd.f32 %v19844_v39, %v11227_v57  ;;  %v11230_v32 = vadd.f32 %v13096_v2, %v19869_v14 }
 0x7a0   : > { %13904 = vpow2.f32 %v11422_v50 }
 0x7a1   : > { %v11398_v48 = vsub.f32 0.0, %v11360_v20  ;;  %v11363_v42 = vadd.f32 %v19852_v29, %v11230_v32 }
 0x7a3   : > { %v11428_v45 = vmul.f32 1.442695, %v11398_v48  ;;  %v11399_v56 = vsub.f32 0.0, %v11363_v42 }
 0x7a5   : > { %13906 = vpow2.f32 %v11428_v45  ;;  %v11430_v59 = vmul.f32 1.442695, %v11399_v56 }
 0x7a6   : > { %v13899_v25 = vpop.eup %13898  ;;  %13908 = vrcp.f32 %v11440_v3 }
 0x7a7   : > { %v11444_v30 = vadd.f32 1.0, %v13899_v25  ;;  %13910 = vpow2.f32 %v11430_v59 }
 0x7a8   : > { %v13901_v9 = vpop.eup %13900 }
 0x7a9   : > { %13912 = vrcp.f32 %v11444_v30  ;;  %v13903_v39 = vpop.eup %13902  ;;  %v11445_v14 = vadd.f32 1.0, %v13901_v9 }
 0x7aa   : > { %13914 = vrcp.f32 %v11441_v55  ;;  %v13905_v53 = vpop.eup %13904  ;;  %v11442_v21 = vadd.f32 1.0, %v13903_v39 }
 0x7ab   : > { %13916 = vrcp.f32 %v11445_v14  ;;  %v11443_v47 = vadd.f32 1.0, %v13905_v53 }
 0x7ac   : > { %13918 = vrcp.f32 %v11442_v21  ;;  %v19994_v21 = vrot.slane %v11560_v19, %v19767_v49  ;;  %v11575_v19 = vrot.slane %v11561_v51, %v19767_v49 }
 0x7ad   : > { %13920 = vrcp.f32 %v11443_v47 }
 0x7af   : > { %v13907_v29 = vpop.eup %13906 }
 0x7b0   : > { %v13909_v12 = vpop.eup %13908  ;;  %v11446_v41 = vadd.f32 1.0, %v13907_v29 }
 0x7b1   : > { %v13911_v11 = vpop.eup %13910  ;;  %v11472_v57 = vmul.f32 %v13909_v12, %v19913_v38 }
 0x7b2   : > { %13922 = vrcp.f32 %v11446_v41  ;;  %v11447_v15 = vadd.f32 1.0, %v13911_v11 }
 0x7b3   : > { %v13913_v50 = vpop.eup %13912 }
 0x7b4   : > { %v13915_v31 = vpop.eup %13914  ;;  %v11476_v2 = vmul.f32 %v13913_v50, %v11352_v28  ;;  %13924 = vrcp.f32 %v11447_v15 }
 0x7b5   : > { %v13917_v24 = vpop.eup %13916  ;;  %v11473_v48 = vmul.f32 %v13915_v31, %v19917_v23  ;;  %v20000_v23 = vrot.slane %v11544_v33, %v19767_v49  ;;  %v11559_v33 = vrot.slane %v11545_v36, %v19767_v49 }
 0x7b6   : > { %v11512_v32 = vcombine.low %v11472_v57, %v11476_v2  ;;  %v11513_v35 = vcombine.high %v11472_v57, %v11476_v2  ;;  %v11477_v3 = vmul.f32 %v13917_v24, %v11355_v16  ;;  %v13919_v25 = vpop.eup %13918 }
 0x7b7   : > { %v13921_v59 = vpop.eup %13920  ;;  %v11474_v14 = vmul.f32 %v13919_v25, %v19923_v40 }
 0x7b8   : > { %v11648_v45 = vcombine.low %v11473_v48, %v11477_v3  ;;  %v11649_v56 = vcombine.high %v11473_v48, %v11477_v3  ;;  %v11475_v16 = vmul.f32 %v13921_v59, %v19929_v0  ;;  %v11527_v12 = vrot.slane %v11513_v35, %v19733_v44 }
 0x7ba   : > { %v11656_v50 = vrot.slane %v11648_v45, %v19733_v44  ;;  %v11663_v15 = vrot.slane %v11649_v56, %v19733_v44 }
 0x7bb   : > { %v13097_v55 = vpop.f32.mrb[124].mxu1 }
 0x7bc   : > { %v13098_v30 = vpop.f32.mrb[125].mxu1  ;;  %v13923_v9 = vpop.eup %13922 }
 0x7bd   : > { %v13100_v39 = vpop.f32.mrb[126].mxu1  ;;  %v11478_v53 = vmul.f32 %v13923_v9, %v11360_v20  ;;  %v11520_v20 = vrot.slane %v11512_v32, %v19733_v44 }
 0x7be   : > { %v13101_v38 = vpop.f32.mrb[127].mxu1  ;;  %v13925_v28 = vpop.eup %13924 }
 0x7bf   : > { %v11528_v47 = vcombine.low %v11474_v14, %v11478_v53  ;;  %v11529_v29 = vcombine.high %v11474_v14, %v11478_v53  ;;  %v11479_v40 = vmul.f32 %v13925_v28, %v11363_v42 }
 0x7c1   : > { %v11536_v41 = vrot.slane %v11528_v47, %v19733_v44  ;;  %v11543_v0 = vrot.slane %v11529_v29, %v19733_v44  ;;  %v11664_v11 = vcombine.low %v11475_v16, %v11479_v40  ;;  %v11665_v42 = vcombine.high %v11475_v16, %v11479_v40 }
 0x7c3   : > { %v13103_v31 = vpop.f32.mrb[128].mxu1  ;;  %v11672_v62 = vrot.slane %v11664_v11, %v19733_v44  ;;  %v11679_v52 = vrot.slane %v11665_v42, %v19733_v44  ;;  %v11592_v36 = vcombine.low %v11527_v12, %v11543_v0  ;;  %v11576_v57 = vcombine.low %v11520_v20, %v11536_v41 }
 0x7c4   : > { %v13104_v51 = vpop.f32.mrb[129].mxu1  ;;  %v11593_v24 = vcombine.high %v11527_v12, %v11543_v0  ;;  %v11577_v32 = vcombine.high %v11520_v20, %v11536_v41 }
 0x7c5   : > { %v13106_v2 = vpop.f32.mrb[130].mxu1  ;;  %v20040_v48 = vrot.slane %v11592_v36, %v19767_v49  ;;  %v20043_v44 = vrot.slane %v11576_v57, %v19767_v49  ;;  %v11728_v3 = vcombine.low %v11663_v15, %v11679_v52  ;;  %v11712_v45 = vcombine.low %v11656_v50, %v11672_v62 }
 0x7c6   : > { %v13107_v35 = vpop.f32.mrb[131].mxu1  ;;  %v11607_v56 = vrot.slane %v11593_v24, %v19767_v49  ;;  %v11591_v25 = vrot.slane %v11577_v32, %v19767_v49  ;;  %v11729_v5 = vcombine.high %v11663_v15, %v11679_v52  ;;  %v11713_v4 = vcombine.high %v11656_v50, %v11672_v62  ;;  %v1056_v50 = vpop.permute.xlu0 %1055 }
 0x7c7   : > { %v11613_v8 = vcombine.high %v19994_v21, %v20040_v48  ;;  %v11609_v60 = vcombine.high %v20000_v23, %v20043_v44  ;;  %v20052_v43 = vrot.slane %v11728_v3, %v19767_v49  ;;  %v20055_v58 = vrot.slane %v11712_v45, %v19767_v49  ;;  %v1068_v15 = vpop.permute.xlu1 %1067 }
 0x7c8   : > { %v11614_v55 = vcombine.low %v11575_v19, %v11607_v56  ;;  %v11610_v59 = vcombine.low %v11559_v33, %v11591_v25  ;;  %v11615_v30 = vcombine.high %v11575_v19, %v11607_v56  ;;  %v11611_v9 = vcombine.high %v11559_v33, %v11591_v25 }
 0x7c9   : > { %11765 = vrot.lane.b32.xlu1 %v11613_v8, %s14228_s12  ;;  %11753 = vrot.lane.b32.xlu0 %v11609_v60, %s14228_s12  ;;  %v11749_v39 = vcombine.high %v20021_v34, %v20052_v43  ;;  %v11745_v14 = vcombine.high %v20027_v22, %v20055_v58  ;;  %v11743_v53 = vrot.slane %v11729_v5, %v19767_v49 }
 0x7ca   : > { %v11727_v38 = vrot.slane %v11713_v4, %v19767_v49  ;;  %v11608_v28 = vcombine.low %v20000_v23, %v20043_v44  ;;  %v11612_v16 = vcombine.low %v19994_v21, %v20040_v48  ;;  %v11744_v47 = vcombine.low %v20027_v22, %v20055_v58  ;;  %v1080_v31 = vpop.permute.xlu0 %1079 }
 0x7cb   : > { %v13109_v29 = vpop.f32.mrb[132].mxu1  ;;  %v11750_v40 = vcombine.low %v11711_v54, %v11743_v53  ;;  %v11751_v20 = vcombine.high %v11711_v54, %v11743_v53  ;;  %v11748_v12 = vcombine.low %v20021_v34, %v20052_v43  ;;  %v1092_v62 = vpop.permute.xlu1 %1091  ;;  %v1103_v3 = vsel %vm20772_vm6, %v910_v18, %v1056_v50  ;;  %vm20788_vm6 = vmmov %vm20776_vm2 }
 0x7cc   : > { %v13110_v19 = vpop.f32.mrb[133].mxu1  ;;  %v11746_v33 = vcombine.low %v11695_v27, %v11727_v38  ;;  %v11747_v41 = vcombine.high %v11695_v27, %v11727_v38  ;;  %v1108_v45 = vsel %vm20773_vm15, %v914_v6, %v1068_v15  ;;  %v1111_v53 = vsel %vm20784_vm14, %v1046_v1, %v1080_v31  ;;  %vm20789_vm15 = vmmov %vm20776_vm2 }
 0x7cd   : > { %v13112_v0 = vpop.f32.mrb[134].mxu1  ;;  %11769 = vrot.lane.b32.xlu1 %v11614_v55, %s14227_s10  ;;  %11757 = vrot.lane.b32.xlu0 %v11610_v59, %s14227_s10  ;;  %v1114_v38 = vsel %vm20785_vm0, %v1050_v46, %v1092_v62 }
 0x7ce   : > { %v13113_v49 = vpop.f32.mrb[135].mxu1  ;;  %v1060_v52 = vpop.permute.xlu0 %1059 }
 0x7cf   : > { %v1072_v51 = vpop.permute.xlu1 %1071  ;;  %v1105_v5 = vsel %vm20776_vm2, %v1103_v3, %v1060_v52 }
 0x7d0   : > { %v1109_v4 = vsel %vm20777_vm13, %v1108_v45, %v1072_v51  ;;  %vm20793_vm13 = vmmov %vm20780_vm1 }
 0x7d1   : > { %11773 = vrot.lane.b32.xlu1 %v11615_v30, %s14229_s17  ;;  %11761 = vrot.lane.b32.xlu0 %v11611_v9, %s14229_s17 }
 0x7d2   : > { %v1084_v36 = vpop.permute.xlu0 %1083 }
 0x7d3   : > { %v1096_v57 = vpop.permute.xlu1 %1095  ;;  %v1112_v37 = vsel %vm20788_vm6, %v1111_v53, %v1084_v36 }
 0x7d4   : > { %v1115_v63 = vsel %vm20789_vm15, %v1114_v38, %v1096_v57 }
 0x7d5   : > { %11789 = vrot.lane.b32.xlu1 %v11749_v39, %s14228_s12  ;;  %11777 = vrot.lane.b32.xlu0 %v11745_v14, %s14228_s12 }
 0x7d6   : > { %v1064_v2 = vpop.permute.xlu0 %1063 }
 0x7d7   : > { %v1076_v24 = vpop.permute.xlu1 %1075  ;;  %v1107_v26 = vsel %vm20780_vm1, %v1105_v5, %v1064_v2 }
 0x7d8   : > { %v1110_v7 = vsel %vm20781_vm11, %v1109_v4, %v1076_v24 }
 0x7d9   : > { %11793 = vrot.lane.b32.xlu1 %v11750_v40, %s14227_s10  ;;  %11781 = vrot.lane.b32.xlu0 %v11746_v33, %s14227_s10  ;;  %s239_s10 = sand.u32 1, %s14200_s19  }
 0x7da   : > { %v1088_v32 = vpop.permute.xlu0 %1087  ;;  %s11928_s12 = sshll.u32 %s239_s10, 5  ;;  %s11825_s30 = scalar_lea.sflag [#allocation4], %s239_s10 }
 0x7db   : > { %v1100_v54 = vpop.permute.xlu1 %1099 }
 0x7dc   : > { %v13255_v21 = vpop.f32.mrb[140].mxu0  ;;  %v1116_v22 = vsel %vm20793_vm13, %v1115_v63, %v1100_v54 }
 0x7dd   : > { %11797 = vrot.lane.b32.xlu1 %v11751_v20, %s14229_s17  ;;  %11785 = vrot.lane.b32.xlu0 %v11747_v41, %s14229_s17  ;;  %v11373_v23 = vpop.f32.mrb[141].mxu0  ;;  %s20104_s17 = scalar_lea.vmem [#allocation3], %s11928_s12  ;;  %s14134_s12 = sshll.u32 %s14232_s9, 4  ;;  %s14135_s12 = int_to_ptr.vmem [resolvable:$false] %s14134_s12 }
 0x7de   : > { %v13256_v11 = vpop.f32.mrb[142].mxu0  ;;  %s11841_s22 = sshll.u32 %s20104_s17, 4  ;;  %s14136_s13 = scalar_lea.vmem %s14135_s12, 1024  ;;  %s20140_s22 = int_to_ptr.vmem [resolvable:$true] %s11841_s22 }
 0x7df   : > { %v11375_v42 = vpop.f32.mrb[143].mxu0  ;;  %s14130_s8 = scalar_lea.vmem %s20140_s22, 512  ;;  %p14137_p4 = scmp.lt.s32.totalorder %s20140_s22, %s14135_s12 }
 0x7e0   : > { %p14131_p0 = scmp.ne.s32.totalorder %s20140_s22, %s14130_s8  ;;  %p14138_p5 = scmp.lt.s32.totalorder %s14136_s13, %s14130_s8 }
 0x7e2   : > { %p14132_p1 = pnand %p14131_p0, %p14314_p3  ;;  %p14139_p6 = por %p14138_p5, %p14137_p4 }
 0x7e4   : > { %p14133_p2 = pneg %p14132_p1 }
 0x7e6   : > { %p14140_p7 = pnand %p14139_p6, %p14133_p2 }
 0x83b   : > { %v11754_v27 = vpop.permute.xlu0 %11753  ;;  %v11766_v35 = vpop.permute.xlu1 %11765 }
 0x83c   : > { %v11800_v56 = vsel %vm20774_vm4, %v11608_v28, %v11754_v27  ;;  %v11803_v25 = vsel %vm20775_vm8, %v11612_v16, %v11766_v35  ;;  %vm20790_vm4 = vmmov %vm20776_vm2 }
 0x83d   : > { %vm20791_vm8 = vmmov %vm20776_vm2 }
 0x83e   : > { %vm20792_vm2 = vmmov %vm20780_vm1 }
 0x83f   : > { %v11758_v48 = vpop.permute.xlu0 %11757  ;;  %v11770_v44 = vpop.permute.xlu1 %11769  ;;  %v1113_v34 = vsel %vm20792_vm2, %v1112_v37, %v1088_v32 }
 0x840   : > { %v11801_v8 = vsel %vm20778_vm7, %v11800_v56, %v11758_v48  ;;  %v11804_v61 = vsel %vm20779_vm9, %v11803_v25, %v11770_v44  ;;  %vm20794_vm7 = vmmov %vm20780_vm1 }
 0x841   : > { %vm20795_vm9 = vmmov %vm20780_vm1 }
 0x843   : > { %v11762_v10 = vpop.permute.xlu0 %11761  ;;  %v11774_v18 = vpop.permute.xlu1 %11773 }
 0x844   : > { %v11802_v6 = vsel %vm20782_vm3, %v11801_v8, %v11762_v10  ;;  %v11805_v60 = vsel %vm20783_vm10, %v11804_v61, %v11774_v18 }
 0x845   : > { %v11816_v55 = vadd.f32 %v11802_v6, %v1107_v26  ;;  %v11817_v59 = vadd.f32 %v11805_v60, %v1110_v7 }
 0x847   : > { %11820 = vst [vmem:[%s20104_s17] sm:$0xff] %v11816_v55  ;;  %11821 = vst [vmem:[%s20104_s17 + $0x8] sm:$0xff] %v11817_v59  ;;  %v11778_v30 = vpop.permute.xlu0 %11777  ;;  %v11790_v9 = vpop.permute.xlu1 %11789 }
 0x848   : > { %v11806_v28 = vsel %vm20786_vm12, %v11744_v47, %v11778_v30  ;;  %v11809_v16 = vsel %vm20787_vm5, %v11748_v12, %v11790_v9 }
 0x84b   : > { %v11782_v39 = vpop.permute.xlu0 %11781  ;;  %v11794_v14 = vpop.permute.xlu1 %11793 }
 0x84c   : > { %v11807_v13 = vsel %vm20790_vm4, %v11806_v28, %v11782_v39  ;;  %v11810_v17 = vsel %vm20791_vm8, %v11809_v16, %v11794_v14 }
 0x84f   : > { %v11786_v1 = vpop.permute.xlu0 %11785  ;;  %v11798_v46 = vpop.permute.xlu1 %11797 }
 0x850   : > { %v11808_v43 = vsel %vm20794_vm7, %v11807_v13, %v11786_v1  ;;  %v11811_v58 = vsel %vm20795_vm9, %v11810_v17, %v11798_v46 }
 0x851   : > { %v11818_v47 = vadd.f32 %v11808_v43, %v1113_v34  ;;  %v11819_v29 = vadd.f32 %v11811_v58, %v1116_v22 }
 0x853   : > { %11822 = vst [vmem:[%s20104_s17 + $0x10] sm:$0xff] %v11818_v47  ;;  %11823 = vst [vmem:[%s20104_s17 + $0x18] sm:$0xff] %v11819_v29 }
 0x854   : > { %14143 = shalt.err (!%p14140_p7)
}
 0x855   : > { %s14144_s10 = scalar_lea.hbm %s20138_s27, 512  ;;  %s14148_s15 = scalar_lea.hbm %s20200_s5, 2048 }
 0x856   : > { %p14145_p9 = scmp.ne.s32.totalorder %s20138_s27, %s14144_s10  ;;  %p14149_p12 = scmp.lt.u32.totalorder %s20138_s27, %s20200_s5 }
 0x857   : > { %p14150_p13 = scmp.lt.u32.totalorder %s14148_s15, %s14144_s10  ;;  %p14152_p1 = scmp.lt.u32.totalorder %s14144_s10, %s20138_s27 }
 0x858   : > { %p14146_p10 = pnand %p14145_p9, %p14314_p3 }
 0x859   : > { %p14151_p0 = por %p14150_p13, %p14149_p12 }
 0x85a   : > { %p14147_p11 = pneg %p14146_p10 }
 0x85b   : > { %p14153_p2 = por %p14152_p1, %p14151_p0 }
 0x85d   : > { %p14154_p4 = pnand %p14153_p2, %p14147_p11 }
 0x85f   : > { %14157 = shalt.err (!%p14154_p4)
}
 0x860   : > { %13276 = dma.vmem_to_hbm [thread:$0]  (%p14314_p3), %s20140_s22, 512, %s20138_s27, %s11825_s30  }
 0x861 PF: > { %p13282_p5 = scmp.ge.s32.totalorder %s14224_s25, 2  ;;  %s11853_s26 = sand.u32 1, %s14196_s18  }
 0x862   : > { %s11854_s8 = scalar_lea.sflag [#allocation4], %s11853_s26 }
 0x863   : > { %p13279_p6 = pnand %p13282_p5, %p14323_p8 }
 0x865   : > { %14191 = dma.done.wait (!%p13279_p6), %s11854_s8, 512  }
 0x866   : > { %14193 = vsyncadd (!%p13279_p6), %s11854_s8, 4294966784  ;;  %s18_s25 = sadd.s32 1, %s14224_s25   ;;  %s20796_s18 = smov %s14200_s19 }
 0x867   : > { %p15_p7 = scmp.ge.s32.totalorder %s18_s25, 6   ;;  %s20797_s19 = smov %s14204_s20 }
 0x868   : > { %s20798_s20 = smov %s14332_s11  ;;  %s20799_s21 = smov %s14216_s23 }
 0x869   : > { %s20800_s22 = smov %s14220_s24  ;;  %s20801_s23 = smov %s20804_s28 }
 0x86a   : > { %s20802_s24 = smov %s20808_s29  ;;  %17 = sbr.rel (!%p15_p7) target bundleno = 5 (0x5), region = 80 }
 0x871   :  { %11859 = vsyncpa [#allocation4], 1 }
 0x872   :  { %11861 = vsyncpa [#allocation4 + $0x1], 1 }

</bundles_post_ra>
